<compile_context>
chip_gen: v7x
topology: tpu7x:2x2x1
jax: 0.10.0
libtpu: 0.0.40
codegen_flags: <defaults>
</compile_context>

<pallas_src>
import functools

import jax
import jax.numpy as jnp
from jax.experimental import pallas as pl
from jax.experimental.pallas import tpu as pltpu

HIDDEN_SIZES = [2048, 1024, 512, 256, 128, 64, 32, 16]
NUM_HIDDEN = len(HIDDEN_SIZES)
NUM_CLASSES = 2
LANE = 128            # lane width: pad every feature dim to a multiple of this
BN_EPS = 1e-5


def _round_up(n, m):
    return ((n + m - 1) // m) * m


# --------------------------------------------------------------------------
# Fused Pallas kernel: whole network in one body.
#   refs = (x, [w, b] * NUM_HIDDEN, w_out, b_out, o)
# Per hidden layer:  h = relu(h @ W' + b')        (BN pre-folded into W', b')
# Final:             o = h @ W'_out + b'_out      (lane-dense 128-wide slab)
# --------------------------------------------------------------------------
def _massive_net_kernel(*refs):
    x_ref = refs[0]
    o_ref = refs[-1]
    p = refs[1:-1]

    h = x_ref[...]                                           # (B, K) f32
    for i in range(NUM_HIDDEN):
        w_ref, b_ref = p[2 * i], p[2 * i + 1]
        y = jnp.dot(h.astype(jnp.bfloat16), w_ref[...],
                    preferred_element_type=jnp.float32)      # MXU, f32 acc
        h = jnp.maximum(y + b_ref[...], 0.0)                 # bias + ReLU (f32)
        # Dropout(p=0.3): identity in eval mode.
        # BatchNorm1d: folded into the next layer's weights/bias on the host.

    w_out_ref, b_out_ref = p[2 * NUM_HIDDEN], p[2 * NUM_HIDDEN + 1]
    out = jnp.dot(h.astype(jnp.bfloat16), w_out_ref[...],
                  preferred_element_type=jnp.float32) + b_out_ref[...]
    o_ref[...] = out                                         # (B, 128) lane-dense


# --------------------------------------------------------------------------
# Wrapper: one pallas_call, full-array blocks, grid=(1,).
# --------------------------------------------------------------------------
def massive_net_forward(x, hidden_params, final_params):
    B = x.shape[0]

    flat_inputs = [x]
    in_specs = [pl.BlockSpec(x.shape, lambda i: (0, 0))]
    for (w, b) in hidden_params:
        flat_inputs += [w, b]
        in_specs += [pl.BlockSpec(w.shape, lambda i: (0, 0)),
                     pl.BlockSpec(b.shape, lambda i: (0, 0))]
    w_out, b_out = final_params
    flat_inputs += [w_out, b_out]
    in_specs += [pl.BlockSpec(w_out.shape, lambda i: (0, 0)),
                 pl.BlockSpec(b_out.shape, lambda i: (0, 0))]

    n_pad = w_out.shape[1]
    out = pl.pallas_call(
        _massive_net_kernel,
        out_shape=jax.ShapeDtypeStruct((B, n_pad), jnp.float32),
        grid=(1,),
        in_specs=in_specs,
        out_specs=pl.BlockSpec((B, n_pad), lambda i: (0, 0)),
        compiler_params=pltpu.CompilerParams(
            dimension_semantics=("arbitrary",),
            vmem_limit_bytes=32 * 1024 * 1024),
    )(*flat_inputs)
    return out[:, :NUM_CLASSES]


# --------------------------------------------------------------------------
# Parameter construction mirroring nn.Linear / nn.BatchNorm1d defaults.
# --------------------------------------------------------------------------
def init_raw_params(key, input_size, hidden_sizes, num_classes):
    dims = [input_size] + list(hidden_sizes)
    layers = []
    for i in range(len(hidden_sizes)):
        fan_in, fan_out = dims[i], dims[i + 1]
        key, kw, kb = jax.random.split(key, 3)
        bound = 1.0 / (fan_in ** 0.5)
        w = jax.random.uniform(kw, (fan_in, fan_out), jnp.float32, -bound, bound)
        b = jax.random.uniform(kb, (fan_out,), jnp.float32, -bound, bound)
        layers.append(dict(
            w=w, b=b,
            gamma=jnp.ones((fan_out,), jnp.float32),
            beta=jnp.zeros((fan_out,), jnp.float32),
            mean=jnp.zeros((fan_out,), jnp.float32),
            var=jnp.ones((fan_out,), jnp.float32)))
    fan_in = hidden_sizes[-1]
    key, kw, kb = jax.random.split(key, 3)
    bound = 1.0 / (fan_in ** 0.5)
    w_out = jax.random.uniform(kw, (fan_in, num_classes), jnp.float32, -bound, bound)
    b_out = jax.random.uniform(kb, (num_classes,), jnp.float32, -bound, bound)
    return layers, (w_out, b_out)


# --------------------------------------------------------------------------
# Host-side fold (BatchNorm -> next layer's weights) + lane padding + bf16 cast.
# --------------------------------------------------------------------------
def fold_and_pad_params(layers, final):
    fused = []
    prev_scale = None
    prev_shift = None
    for L in layers:
        w, b = L["w"], L["b"]
        if prev_scale is not None:
            b = b + prev_shift @ w
            w = w * prev_scale[:, None]
        fused.append((w, b))
        s = L["gamma"] * jax.lax.rsqrt(L["var"] + BN_EPS)
        t = L["beta"] - L["mean"] * s
        prev_scale, prev_shift = s, t

    w_out, b_out = final
    b_out = b_out + prev_shift @ w_out
    w_out = w_out * prev_scale[:, None]

    # Zero-pad feature dims up to multiples of the 128-lane width so every
    # activation vreg and the final store are lane-dense.  Padding is exact:
    # extra weight rows/cols are zero, extra biases zero => relu(0) = 0.
    padded = []
    prev_pad = fused[0][0].shape[0]        # input feature dim (contraction only)
    for (w, b) in fused + [(w_out, b_out)]:
        fan_in, fan_out = w.shape
        pad_out = _round_up(max(fan_out, LANE), LANE)
        wp = jnp.zeros((prev_pad, pad_out), jnp.float32).at[:fan_in, :fan_out].set(w)
        bp = jnp.zeros((1, pad_out), jnp.float32).at[0, :fan_out].set(b)
        padded.append((wp.astype(jnp.bfloat16), bp))
        prev_pad = pad_out
    return padded[:-1], padded[-1]


# Pure-JAX reference using the exact same folded/padded params and matmul
# dtypes, to validate the kernel plumbing bit-for-bit (modulo MXU sum order).
def reference_forward(x, hidden_params, final_params):
    h = x
    for (w, b) in hidden_params:
        y = jnp.dot(h.astype(jnp.bfloat16), w, preferred_element_type=jnp.float32)
        h = jnp.maximum(y + b, 0.0)
    w_out, b_out = final_params
    out = jnp.dot(h.astype(jnp.bfloat16), w_out,
                  preferred_element_type=jnp.float32) + b_out
    return out[:, :NUM_CLASSES]


if __name__ == "__main__":
    batch = 8          # sublane-aligned; latency-bound regime at this size
    input_size = 32    # stand-in for X_train_scaled.shape[1]

    key = jax.random.PRNGKey(0)
    key, kx = jax.random.split(key)
    x = jax.random.normal(kx, (batch, input_size), jnp.float32)

    layers, final = init_raw_params(key, input_size, HIDDEN_SIZES, NUM_CLASSES)
    hidden_params, final_params = fold_and_pad_params(layers, final)

    fwd = jax.jit(functools.partial(massive_net_forward,
                                    hidden_params=hidden_params,
                                    final_params=final_params))
    out = fwd(x)
    jax.block_until_ready(out)

    ref = reference_forward(x, hidden_params, final_params)
    assert out.shape == (batch, NUM_CLASSES)
    assert jnp.allclose(out, ref, atol=5e-3, rtol=5e-3)
    print("KERNEL_OK")
</pallas_src>

<mosaic_0001>
module attributes {stable_mosaic.version = 11 : i64} {
  func.func @_massive_net_kernel(%arg0: i32, %arg1: memref<8x32xf32, #tpu.memory_space<vmem>>, %arg2: memref<32x2048xbf16, #tpu.memory_space<vmem>>, %arg3: memref<1x2048xf32, #tpu.memory_space<vmem>>, %arg4: memref<2048x1024xbf16, #tpu.memory_space<vmem>>, %arg5: memref<1x1024xf32, #tpu.memory_space<vmem>>, %arg6: memref<1024x512xbf16, #tpu.memory_space<vmem>>, %arg7: memref<1x512xf32, #tpu.memory_space<vmem>>, %arg8: memref<512x256xbf16, #tpu.memory_space<vmem>>, %arg9: memref<1x256xf32, #tpu.memory_space<vmem>>, %arg10: memref<256x128xbf16, #tpu.memory_space<vmem>>, %arg11: memref<1x128xf32, #tpu.memory_space<vmem>>, %arg12: memref<128x128xbf16, #tpu.memory_space<vmem>>, %arg13: memref<1x128xf32, #tpu.memory_space<vmem>>, %arg14: memref<128x128xbf16, #tpu.memory_space<vmem>>, %arg15: memref<1x128xf32, #tpu.memory_space<vmem>>, %arg16: memref<128x128xbf16, #tpu.memory_space<vmem>>, %arg17: memref<1x128xf32, #tpu.memory_space<vmem>>, %arg18: memref<128x128xbf16, #tpu.memory_space<vmem>>, %arg19: memref<1x128xf32, #tpu.memory_space<vmem>>, %arg20: memref<8x128xf32, #tpu.memory_space<vmem>>) attributes {dimension_semantics = [#tpu.dimension_semantics<arbitrary>], iteration_bounds = array<i64: 1>, scalar_prefetch = 0 : i64, scratch_operands = 0 : i64, tpu.core_type = #tpu.core_type<tc>, window_params = [{pipeline_mode = #tpu.pipeline_mode<synchronous>, transform_indices = @transform_0, window_bounds = array<i64: 8, 32>}, {pipeline_mode = #tpu.pipeline_mode<synchronous>, transform_indices = @transform_1, window_bounds = array<i64: 32, 2048>}, {pipeline_mode = #tpu.pipeline_mode<synchronous>, transform_indices = @transform_2, window_bounds = array<i64: 1, 2048>}, {pipeline_mode = #tpu.pipeline_mode<synchronous>, transform_indices = @transform_3, window_bounds = array<i64: 2048, 1024>}, {pipeline_mode = #tpu.pipeline_mode<synchronous>, transform_indices = @transform_4, window_bounds = array<i64: 1, 1024>}, {pipeline_mode = #tpu.pipeline_mode<synchronous>, transform_indices = @transform_5, window_bounds = array<i64: 1024, 512>}, {pipeline_mode = #tpu.pipeline_mode<synchronous>, transform_indices = @transform_6, window_bounds = array<i64: 1, 512>}, {pipeline_mode = #tpu.pipeline_mode<synchronous>, transform_indices = @transform_7, window_bounds = array<i64: 512, 256>}, {pipeline_mode = #tpu.pipeline_mode<synchronous>, transform_indices = @transform_8, window_bounds = array<i64: 1, 256>}, {pipeline_mode = #tpu.pipeline_mode<synchronous>, transform_indices = @transform_9, window_bounds = array<i64: 256, 128>}, {pipeline_mode = #tpu.pipeline_mode<synchronous>, transform_indices = @transform_10, window_bounds = array<i64: 1, 128>}, {pipeline_mode = #tpu.pipeline_mode<synchronous>, transform_indices = @transform_11, window_bounds = array<i64: 128, 128>}, {pipeline_mode = #tpu.pipeline_mode<synchronous>, transform_indices = @transform_12, window_bounds = array<i64: 1, 128>}, {pipeline_mode = #tpu.pipeline_mode<synchronous>, transform_indices = @transform_13, window_bounds = array<i64: 128, 128>}, {pipeline_mode = #tpu.pipeline_mode<synchronous>, transform_indices = @transform_14, window_bounds = array<i64: 1, 128>}, {pipeline_mode = #tpu.pipeline_mode<synchronous>, transform_indices = @transform_15, window_bounds = array<i64: 128, 128>}, {pipeline_mode = #tpu.pipeline_mode<synchronous>, transform_indices = @transform_16, window_bounds = array<i64: 1, 128>}, {pipeline_mode = #tpu.pipeline_mode<synchronous>, transform_indices = @transform_17, window_bounds = array<i64: 128, 128>}, {pipeline_mode = #tpu.pipeline_mode<synchronous>, transform_indices = @transform_18, window_bounds = array<i64: 1, 128>}, {pipeline_mode = #tpu.pipeline_mode<synchronous>, transform_indices = @transform_19, window_bounds = array<i64: 8, 128>}]} {
    %c0 = arith.constant 0 : index
    %c0_0 = arith.constant 0 : index
    %0 = vector.load %arg1[%c0, %c0_0] : memref<8x32xf32, #tpu.memory_space<vmem>>, vector<8x32xf32>
    %1 = arith.truncf %0 : vector<8x32xf32> to vector<8x32xbf16>
    %c0_1 = arith.constant 0 : index
    %c0_2 = arith.constant 0 : index
    %2 = vector.load %arg2[%c0_1, %c0_2] : memref<32x2048xbf16, #tpu.memory_space<vmem>>, vector<32x2048xbf16>
    %cst = arith.constant dense<0.000000e+00> : vector<8x2048xf32>
    %3 = tpu.matmul %1, %2, %cst {dimension_numbers = #tpu.dot_dimension_numbers<[1], [0], [0], [1], [0, 0, 1, 1], [], []>} : vector<8x32xbf16>, vector<32x2048xbf16>, vector<8x2048xf32> -> vector<8x2048xf32>
    %c0_3 = arith.constant 0 : index
    %c0_4 = arith.constant 0 : index
    %4 = vector.load %arg3[%c0_3, %c0_4] : memref<1x2048xf32, #tpu.memory_space<vmem>>, vector<1x2048xf32>
    %5 = vector.broadcast %4 : vector<1x2048xf32> to vector<8x2048xf32>
    %6 = arith.addf %3, %5 : vector<8x2048xf32>
    %cst_5 = arith.constant 0.000000e+00 : f32
    %7 = vector.broadcast %cst_5 : f32 to vector<8x2048xf32>
    %8 = arith.maximumf %6, %7 : vector<8x2048xf32>
    %9 = arith.truncf %8 : vector<8x2048xf32> to vector<8x2048xbf16>
    %c0_6 = arith.constant 0 : index
    %c0_7 = arith.constant 0 : index
    %10 = vector.load %arg4[%c0_6, %c0_7] : memref<2048x1024xbf16, #tpu.memory_space<vmem>>, vector<2048x1024xbf16>
    %cst_8 = arith.constant dense<0.000000e+00> : vector<8x1024xf32>
    %11 = tpu.matmul %9, %10, %cst_8 {dimension_numbers = #tpu.dot_dimension_numbers<[1], [0], [0], [1], [0, 0, 1, 1], [], []>} : vector<8x2048xbf16>, vector<2048x1024xbf16>, vector<8x1024xf32> -> vector<8x1024xf32>
    %c0_9 = arith.constant 0 : index
    %c0_10 = arith.constant 0 : index
    %12 = vector.load %arg5[%c0_9, %c0_10] : memref<1x1024xf32, #tpu.memory_space<vmem>>, vector<1x1024xf32>
    %13 = vector.broadcast %12 : vector<1x1024xf32> to vector<8x1024xf32>
    %14 = arith.addf %11, %13 : vector<8x1024xf32>
    %cst_11 = arith.constant 0.000000e+00 : f32
    %15 = vector.broadcast %cst_11 : f32 to vector<8x1024xf32>
    %16 = arith.maximumf %14, %15 : vector<8x1024xf32>
    %17 = arith.truncf %16 : vector<8x1024xf32> to vector<8x1024xbf16>
    %c0_12 = arith.constant 0 : index
    %c0_13 = arith.constant 0 : index
    %18 = vector.load %arg6[%c0_12, %c0_13] : memref<1024x512xbf16, #tpu.memory_space<vmem>>, vector<1024x512xbf16>
    %cst_14 = arith.constant dense<0.000000e+00> : vector<8x512xf32>
    %19 = tpu.matmul %17, %18, %cst_14 {dimension_numbers = #tpu.dot_dimension_numbers<[1], [0], [0], [1], [0, 0, 1, 1], [], []>} : vector<8x1024xbf16>, vector<1024x512xbf16>, vector<8x512xf32> -> vector<8x512xf32>
    %c0_15 = arith.constant 0 : index
    %c0_16 = arith.constant 0 : index
    %20 = vector.load %arg7[%c0_15, %c0_16] : memref<1x512xf32, #tpu.memory_space<vmem>>, vector<1x512xf32>
    %21 = vector.broadcast %20 : vector<1x512xf32> to vector<8x512xf32>
    %22 = arith.addf %19, %21 : vector<8x512xf32>
    %cst_17 = arith.constant 0.000000e+00 : f32
    %23 = vector.broadcast %cst_17 : f32 to vector<8x512xf32>
    %24 = arith.maximumf %22, %23 : vector<8x512xf32>
    %25 = arith.truncf %24 : vector<8x512xf32> to vector<8x512xbf16>
    %c0_18 = arith.constant 0 : index
    %c0_19 = arith.constant 0 : index
    %26 = vector.load %arg8[%c0_18, %c0_19] : memref<512x256xbf16, #tpu.memory_space<vmem>>, vector<512x256xbf16>
    %cst_20 = arith.constant dense<0.000000e+00> : vector<8x256xf32>
    %27 = tpu.matmul %25, %26, %cst_20 {dimension_numbers = #tpu.dot_dimension_numbers<[1], [0], [0], [1], [0, 0, 1, 1], [], []>} : vector<8x512xbf16>, vector<512x256xbf16>, vector<8x256xf32> -> vector<8x256xf32>
    %c0_21 = arith.constant 0 : index
    %c0_22 = arith.constant 0 : index
    %28 = vector.load %arg9[%c0_21, %c0_22] : memref<1x256xf32, #tpu.memory_space<vmem>>, vector<1x256xf32>
    %29 = vector.broadcast %28 : vector<1x256xf32> to vector<8x256xf32>
    %30 = arith.addf %27, %29 : vector<8x256xf32>
    %cst_23 = arith.constant 0.000000e+00 : f32
    %31 = vector.broadcast %cst_23 : f32 to vector<8x256xf32>
    %32 = arith.maximumf %30, %31 : vector<8x256xf32>
    %33 = arith.truncf %32 : vector<8x256xf32> to vector<8x256xbf16>
    %c0_24 = arith.constant 0 : index
    %c0_25 = arith.constant 0 : index
    %34 = vector.load %arg10[%c0_24, %c0_25] : memref<256x128xbf16, #tpu.memory_space<vmem>>, vector<256x128xbf16>
    %cst_26 = arith.constant dense<0.000000e+00> : vector<8x128xf32>
    %35 = tpu.matmul %33, %34, %cst_26 {dimension_numbers = #tpu.dot_dimension_numbers<[1], [0], [0], [1], [0, 0, 1, 1], [], []>} : vector<8x256xbf16>, vector<256x128xbf16>, vector<8x128xf32> -> vector<8x128xf32>
    %c0_27 = arith.constant 0 : index
    %c0_28 = arith.constant 0 : index
    %36 = vector.load %arg11[%c0_27, %c0_28] : memref<1x128xf32, #tpu.memory_space<vmem>>, vector<1x128xf32>
    %37 = vector.broadcast %36 : vector<1x128xf32> to vector<8x128xf32>
    %38 = arith.addf %35, %37 : vector<8x128xf32>
    %cst_29 = arith.constant 0.000000e+00 : f32
    %39 = vector.broadcast %cst_29 : f32 to vector<8x128xf32>
    %40 = arith.maximumf %38, %39 : vector<8x128xf32>
    %41 = arith.truncf %40 : vector<8x128xf32> to vector<8x128xbf16>
    %c0_30 = arith.constant 0 : index
    %c0_31 = arith.constant 0 : index
    %42 = vector.load %arg12[%c0_30, %c0_31] : memref<128x128xbf16, #tpu.memory_space<vmem>>, vector<128x128xbf16>
    %cst_32 = arith.constant dense<0.000000e+00> : vector<8x128xf32>
    %43 = tpu.matmul %41, %42, %cst_32 {dimension_numbers = #tpu.dot_dimension_numbers<[1], [0], [0], [1], [0, 0, 1, 1], [], []>} : vector<8x128xbf16>, vector<128x128xbf16>, vector<8x128xf32> -> vector<8x128xf32>
    %c0_33 = arith.constant 0 : index
    %c0_34 = arith.constant 0 : index
    %44 = vector.load %arg13[%c0_33, %c0_34] : memref<1x128xf32, #tpu.memory_space<vmem>>, vector<1x128xf32>
    %45 = vector.broadcast %44 : vector<1x128xf32> to vector<8x128xf32>
    %46 = arith.addf %43, %45 : vector<8x128xf32>
    %cst_35 = arith.constant 0.000000e+00 : f32
    %47 = vector.broadcast %cst_35 : f32 to vector<8x128xf32>
    %48 = arith.maximumf %46, %47 : vector<8x128xf32>
    %49 = arith.truncf %48 : vector<8x128xf32> to vector<8x128xbf16>
    %c0_36 = arith.constant 0 : index
    %c0_37 = arith.constant 0 : index
    %50 = vector.load %arg14[%c0_36, %c0_37] : memref<128x128xbf16, #tpu.memory_space<vmem>>, vector<128x128xbf16>
    %cst_38 = arith.constant dense<0.000000e+00> : vector<8x128xf32>
    %51 = tpu.matmul %49, %50, %cst_38 {dimension_numbers = #tpu.dot_dimension_numbers<[1], [0], [0], [1], [0, 0, 1, 1], [], []>} : vector<8x128xbf16>, vector<128x128xbf16>, vector<8x128xf32> -> vector<8x128xf32>
    %c0_39 = arith.constant 0 : index
    %c0_40 = arith.constant 0 : index
    %52 = vector.load %arg15[%c0_39, %c0_40] : memref<1x128xf32, #tpu.memory_space<vmem>>, vector<1x128xf32>
    %53 = vector.broadcast %52 : vector<1x128xf32> to vector<8x128xf32>
    %54 = arith.addf %51, %53 : vector<8x128xf32>
    %cst_41 = arith.constant 0.000000e+00 : f32
    %55 = vector.broadcast %cst_41 : f32 to vector<8x128xf32>
    %56 = arith.maximumf %54, %55 : vector<8x128xf32>
    %57 = arith.truncf %56 : vector<8x128xf32> to vector<8x128xbf16>
    %c0_42 = arith.constant 0 : index
    %c0_43 = arith.constant 0 : index
    %58 = vector.load %arg16[%c0_42, %c0_43] : memref<128x128xbf16, #tpu.memory_space<vmem>>, vector<128x128xbf16>
    %cst_44 = arith.constant dense<0.000000e+00> : vector<8x128xf32>
    %59 = tpu.matmul %57, %58, %cst_44 {dimension_numbers = #tpu.dot_dimension_numbers<[1], [0], [0], [1], [0, 0, 1, 1], [], []>} : vector<8x128xbf16>, vector<128x128xbf16>, vector<8x128xf32> -> vector<8x128xf32>
    %c0_45 = arith.constant 0 : index
    %c0_46 = arith.constant 0 : index
    %60 = vector.load %arg17[%c0_45, %c0_46] : memref<1x128xf32, #tpu.memory_space<vmem>>, vector<1x128xf32>
    %61 = vector.broadcast %60 : vector<1x128xf32> to vector<8x128xf32>
    %62 = arith.addf %59, %61 : vector<8x128xf32>
    %cst_47 = arith.constant 0.000000e+00 : f32
    %63 = vector.broadcast %cst_47 : f32 to vector<8x128xf32>
    %64 = arith.maximumf %62, %63 : vector<8x128xf32>
    %65 = arith.truncf %64 : vector<8x128xf32> to vector<8x128xbf16>
    %c0_48 = arith.constant 0 : index
    %c0_49 = arith.constant 0 : index
    %66 = vector.load %arg18[%c0_48, %c0_49] : memref<128x128xbf16, #tpu.memory_space<vmem>>, vector<128x128xbf16>
    %cst_50 = arith.constant dense<0.000000e+00> : vector<8x128xf32>
    %67 = tpu.matmul %65, %66, %cst_50 {dimension_numbers = #tpu.dot_dimension_numbers<[1], [0], [0], [1], [0, 0, 1, 1], [], []>} : vector<8x128xbf16>, vector<128x128xbf16>, vector<8x128xf32> -> vector<8x128xf32>
    %c0_51 = arith.constant 0 : index
    %c0_52 = arith.constant 0 : index
    %68 = vector.load %arg19[%c0_51, %c0_52] : memref<1x128xf32, #tpu.memory_space<vmem>>, vector<1x128xf32>
    %69 = vector.broadcast %68 : vector<1x128xf32> to vector<8x128xf32>
    %70 = arith.addf %67, %69 : vector<8x128xf32>
    %c0_53 = arith.constant 0 : index
    %c0_54 = arith.constant 0 : index
    %71 = vector.load %arg20[%c0_53, %c0_54] : memref<8x128xf32, #tpu.memory_space<vmem>>, vector<8x128xf32>
    tpu.vector_store %arg20[%c0_53, %c0_54], %70 {strides = array<i32>} : memref<8x128xf32, #tpu.memory_space<vmem>>, vector<8x128xf32>,
    return
  }
  func.func @transform_0(%arg0: i32) -> (i32, i32) {
    %c0_i32 = arith.constant 0 : i32
    %c0_i32_0 = arith.constant 0 : i32
    %c0_i32_1 = arith.constant 0 : i32
    return %c0_i32, %c0_i32_0 : i32, i32
  }
  func.func @transform_1(%arg0: i32) -> (i32, i32) {
    %c0_i32 = arith.constant 0 : i32
    %c0_i32_0 = arith.constant 0 : i32
    %c0_i32_1 = arith.constant 0 : i32
    return %c0_i32, %c0_i32_0 : i32, i32
  }
  func.func @transform_2(%arg0: i32) -> (i32, i32) {
    %c0_i32 = arith.constant 0 : i32
    %c0_i32_0 = arith.constant 0 : i32
    %c0_i32_1 = arith.constant 0 : i32
    return %c0_i32, %c0_i32_0 : i32, i32
  }
  func.func @transform_3(%arg0: i32) -> (i32, i32) {
    %c0_i32 = arith.constant 0 : i32
    %c0_i32_0 = arith.constant 0 : i32
    %c0_i32_1 = arith.constant 0 : i32
    return %c0_i32, %c0_i32_0 : i32, i32
  }
  func.func @transform_4(%arg0: i32) -> (i32, i32) {
    %c0_i32 = arith.constant 0 : i32
    %c0_i32_0 = arith.constant 0 : i32
    %c0_i32_1 = arith.constant 0 : i32
    return %c0_i32, %c0_i32_0 : i32, i32
  }
  func.func @transform_5(%arg0: i32) -> (i32, i32) {
    %c0_i32 = arith.constant 0 : i32
    %c0_i32_0 = arith.constant 0 : i32
    %c0_i32_1 = arith.constant 0 : i32
    return %c0_i32, %c0_i32_0 : i32, i32
  }
  func.func @transform_6(%arg0: i32) -> (i32, i32) {
    %c0_i32 = arith.constant 0 : i32
    %c0_i32_0 = arith.constant 0 : i32
    %c0_i32_1 = arith.constant 0 : i32
    return %c0_i32, %c0_i32_0 : i32, i32
  }
  func.func @transform_7(%arg0: i32) -> (i32, i32) {
    %c0_i32 = arith.constant 0 : i32
    %c0_i32_0 = arith.constant 0 : i32
    %c0_i32_1 = arith.constant 0 : i32
    return %c0_i32, %c0_i32_0 : i32, i32
  }
  func.func @transform_8(%arg0: i32) -> (i32, i32) {
    %c0_i32 = arith.constant 0 : i32
    %c0_i32_0 = arith.constant 0 : i32
    %c0_i32_1 = arith.constant 0 : i32
    return %c0_i32, %c0_i32_0 : i32, i32
  }
  func.func @transform_9(%arg0: i32) -> (i32, i32) {
    %c0_i32 = arith.constant 0 : i32
    %c0_i32_0 = arith.constant 0 : i32
    %c0_i32_1 = arith.constant 0 : i32
    return %c0_i32, %c0_i32_0 : i32, i32
  }
  func.func @transform_10(%arg0: i32) -> (i32, i32) {
    %c0_i32 = arith.constant 0 : i32
    %c0_i32_0 = arith.constant 0 : i32
    %c0_i32_1 = arith.constant 0 : i32
    return %c0_i32, %c0_i32_0 : i32, i32
  }
  func.func @transform_11(%arg0: i32) -> (i32, i32) {
    %c0_i32 = arith.constant 0 : i32
    %c0_i32_0 = arith.constant 0 : i32
    %c0_i32_1 = arith.constant 0 : i32
    return %c0_i32, %c0_i32_0 : i32, i32
  }
  func.func @transform_12(%arg0: i32) -> (i32, i32) {
    %c0_i32 = arith.constant 0 : i32
    %c0_i32_0 = arith.constant 0 : i32
    %c0_i32_1 = arith.constant 0 : i32
    return %c0_i32, %c0_i32_0 : i32, i32
  }
  func.func @transform_13(%arg0: i32) -> (i32, i32) {
    %c0_i32 = arith.constant 0 : i32
    %c0_i32_0 = arith.constant 0 : i32
    %c0_i32_1 = arith.constant 0 : i32
    return %c0_i32, %c0_i32_0 : i32, i32
  }
  func.func @transform_14(%arg0: i32) -> (i32, i32) {
    %c0_i32 = arith.constant 0 : i32
    %c0_i32_0 = arith.constant 0 : i32
    %c0_i32_1 = arith.constant 0 : i32
    return %c0_i32, %c0_i32_0 : i32, i32
  }
  func.func @transform_15(%arg0: i32) -> (i32, i32) {
    %c0_i32 = arith.constant 0 : i32
    %c0_i32_0 = arith.constant 0 : i32
    %c0_i32_1 = arith.constant 0 : i32
    return %c0_i32, %c0_i32_0 : i32, i32
  }
  func.func @transform_16(%arg0: i32) -> (i32, i32) {
    %c0_i32 = arith.constant 0 : i32
    %c0_i32_0 = arith.constant 0 : i32
    %c0_i32_1 = arith.constant 0 : i32
    return %c0_i32, %c0_i32_0 : i32, i32
  }
  func.func @transform_17(%arg0: i32) -> (i32, i32) {
    %c0_i32 = arith.constant 0 : i32
    %c0_i32_0 = arith.constant 0 : i32
    %c0_i32_1 = arith.constant 0 : i32
    return %c0_i32, %c0_i32_0 : i32, i32
  }
  func.func @transform_18(%arg0: i32) -> (i32, i32) {
    %c0_i32 = arith.constant 0 : i32
    %c0_i32_0 = arith.constant 0 : i32
    %c0_i32_1 = arith.constant 0 : i32
    return %c0_i32, %c0_i32_0 : i32, i32
  }
  func.func @transform_19(%arg0: i32) -> (i32, i32) {
    %c0_i32 = arith.constant 0 : i32
    %c0_i32_0 = arith.constant 0 : i32
    %c0_i32_1 = arith.constant 0 : i32
    return %c0_i32, %c0_i32_0 : i32, i32
  }
}

</mosaic_0001>

<bundles_post_ra>
// kernel: massive_net_forward.1
= control target key start
LH: loop header
LB: loop body
LE: loop exit
PB: predicated region body
PF: predicated region fallthrough
CT: control target
= control target key end

     0   :  { %v13490_v3 = vmov 0   ;;  %vm341_vm0 = vcmask 261120   ;;  %vm13492_vm1 = vmmov 0   ;;  %s18224_s1 = inlined_call_operand.vmem [shape: bf16[32,2048], index: 1, kind: input, shape index: {}]   ;;  %s18225_s0 = inlined_call_operand.vmem [shape: f32[8,32], index: 0, kind: input, shape index: {}]   ;;  %s18226_s3 = inlined_call_operand.vmem [shape: bf16[2048,1024], index: 3, kind: input, shape index: {}]   ;;  %s18227_s2 = inlined_call_operand.vmem [shape: f32[1,2048], index: 2, kind: input, shape index: {}]   ;;  %s18228_s5 = inlined_call_operand.vmem [shape: bf16[1024,512], index: 5, kind: input, shape index: {}]   ;;  %s18229_s4 = inlined_call_operand.vmem [shape: f32[1,1024], index: 4, kind: input, shape index: {}]   ;;  %s18230_s7 = inlined_call_operand.vmem [shape: bf16[512,256], index: 7, kind: input, shape index: {}]   ;;  %s18231_s9 = inlined_call_operand.vmem [shape: bf16[256,128], index: 9, kind: input, shape index: {}]   ;;  %s18232_s6 = inlined_call_operand.vmem [shape: f32[1,512], index: 6, kind: input, shape index: {}]   ;;  %s18233_s11 = inlined_call_operand.vmem [shape: bf16[128,128], index: 11, kind: input, shape index: {}]   ;;  %s18234_s8 = inlined_call_operand.vmem [shape: f32[1,256], index: 8, kind: input, shape index: {}]   ;;  %s18235_s13 = inlined_call_operand.vmem [shape: bf16[128,128], index: 13, kind: input, shape index: {}]   ;;  %s18236_s10 = inlined_call_operand.vmem [shape: f32[1,128], index: 10, kind: input, shape index: {}]   ;;  %s18237_s15 = inlined_call_operand.vmem [shape: bf16[128,128], index: 15, kind: input, shape index: {}]   ;;  %s18238_s12 = inlined_call_operand.vmem [shape: f32[1,128], index: 12, kind: input, shape index: {}]   ;;  %s18239_s17 = inlined_call_operand.vmem [shape: bf16[128,128], index: 17, kind: input, shape index: {}]   ;;  %s18240_s14 = inlined_call_operand.vmem [shape: f32[1,128], index: 14, kind: input, shape index: {}]   ;;  %s18241_s16 = inlined_call_operand.vmem [shape: f32[1,128], index: 16, kind: input, shape index: {}]   ;;  %s18242_s18 = inlined_call_operand.vmem [shape: f32[1,128], index: 18, kind: input, shape index: {}]   ;;  %s18243_s19 = inlined_call_operand.vmem [shape: f32[8,128], index: 19, kind: output, shape index: {}]  }
   0x1   :  { %18247 = sst [smem:[#allocation2_spill]] %s18224_s1  ;;  %377 = vmatprep.mubr.bf16.mxu1 %v13490_v3  ;;  %541 = vmatprep.mubr.bf16.mxu0 %v13490_v3 }
   0x2   :  { %18248 = sst [smem:[#allocation3_spill]] %s18225_s0  ;;  %s18251_s20 = sld [smem:[#allocation2_spill]] }
   0x3   :  { %18249 = sst [smem:[#allocation4_spill]] %s18226_s3  ;;  %s18252_s1 = sld [smem:[#allocation3_spill]] }
   0x4   :  { %18250 = sst [smem:[#allocation5_spill]] %s18227_s2  ;;  %s18253_s0 = sld [smem:[#allocation4_spill]] }
   0x5   :  { %s18254_s29 = sld [smem:[#allocation5_spill]] }
   0x8   :  { %v65_v0 = vld [vmem:[%s18251_s20] sm:$0xff]  ;;  %v66_v8 = vld [vmem:[%s18251_s20 + $0x8] sm:$0xff]  ;;  %v71_v24 = vld [vmem:[%s18251_s20 + $0x30] sm:$0xff] }
   0x9   :  { %v73_v1 = vld [vmem:[%s18251_s20 + $0x40] sm:$0xff]  ;;  %v74_v9 = vld [vmem:[%s18251_s20 + $0x48] sm:$0xff]  ;;  %v79_v25 = vld [vmem:[%s18251_s20 + $0x70] sm:$0xff] }
   0xa   :  { %v81_v2 = vld [vmem:[%s18251_s20 + $0x80] sm:$0xff]  ;;  %v11228_v4 = vcombine.high %v65_v0, %v73_v1  ;;  %v11227_v5 = vcombine.low %v65_v0, %v73_v1  ;;  %v11230_v12 = vcombine.high %v66_v8, %v74_v9  ;;  %v82_v14 = vld [vmem:[%s18251_s20 + $0x88] sm:$0xff]  ;;  %v11229_v22 = vcombine.low %v66_v8, %v74_v9  ;;  %v67_v27 = vld [vmem:[%s18251_s20 + $0x10] sm:$0xff] }
   0xb   :  { %v89_v6 = vld [vmem:[%s18251_s20 + $0xc0] sm:$0xff]  ;;  %v90_v15 = vld [vmem:[%s18251_s20 + $0xc8] sm:$0xff]  ;;  %v75_v28 = vld [vmem:[%s18251_s20 + $0x50] sm:$0xff]  ;;  %v11240_v30 = vcombine.high %v71_v24, %v79_v25  ;;  %v11239_v37 = vcombine.low %v71_v24, %v79_v25 }
   0xc   :  { %v11244_v7 = vcombine.high %v81_v2, %v89_v6  ;;  %345 = vmatprep.subr.bf16.mxu1 %v11228_v4  ;;  %v11243_v10 = vcombine.low %v81_v2, %v89_v6  ;;  %v63_v11 = vld [vmem:[%s18252_s1] sm:$0xff]  ;;  %v11246_v26 = vcombine.high %v82_v14, %v90_v15  ;;  %v11245_v31 = vcombine.low %v82_v14, %v90_v15  ;;  %v87_v32 = vld [vmem:[%s18251_s20 + $0xb0] sm:$0xff]  ;;  %v68_v43 = vld [vmem:[%s18251_s20 + $0x18] sm:$0xff] }
   0xd   :  { %346 = vmatpush1.bf16.msra.mxu1 %v11227_v5  ;;  %v69_v13 = vld [vmem:[%s18251_s20 + $0x20] sm:$0xff]  ;;  %v13628_v17 = vpack.c.bf16 %v63_v11, %v63_v11  ;;  %v95_v33 = vld [vmem:[%s18251_s20 + $0xf0] sm:$0xff]  ;;  %v11232_v34 = vcombine.high %v67_v27, %v75_v28  ;;  %v11231_v39 = vcombine.low %v67_v27, %v75_v28  ;;  %v76_v44 = vld [vmem:[%s18251_s20 + $0x58] sm:$0xff] }
   0xe   :  { %347 = vmatprep.subr.bf16.mxu1 %v11244_v7  ;;  %v77_v16 = vld [vmem:[%s18251_s20 + $0x60] sm:$0xff]  ;;  %v83_v35 = vld [vmem:[%s18251_s20 + $0x90] sm:$0xff]  ;;  %v11256_v38 = vcombine.high %v87_v32, %v95_v33  ;;  %v11255_v45 = vcombine.low %v87_v32, %v95_v33  ;;  %v11234_v50 = vcombine.high %v68_v43, %v76_v44  ;;  %v84_v51 = vld [vmem:[%s18251_s20 + $0x98] sm:$0xff]  ;;  %v11233_v55 = vcombine.low %v68_v43, %v76_v44 }
   0xf   :  { %v11236_v18 = vcombine.high %v69_v13, %v77_v16  ;;  %v11235_v19 = vcombine.low %v69_v13, %v77_v16  ;;  %v85_v20 = vld [vmem:[%s18251_s20 + $0xa0] sm:$0xff]  ;;  %v91_v36 = vld [vmem:[%s18251_s20 + $0xd0] sm:$0xff]  ;;  %v92_v52 = vld [vmem:[%s18251_s20 + $0xd8] sm:$0xff] }
  0x10   :  { %v93_v21 = vld [vmem:[%s18251_s20 + $0xe0] sm:$0xff]  ;;  %v11248_v42 = vcombine.high %v83_v35, %v91_v36  ;;  %v11247_v47 = vcombine.low %v83_v35, %v91_v36  ;;  %v11250_v58 = vcombine.high %v84_v51, %v92_v52  ;;  %v70_v59 = vld [vmem:[%s18251_s20 + $0x28] sm:$0xff]  ;;  %v11249_v63 = vcombine.low %v84_v51, %v92_v52  ;;  %v80_v13 = vld [vmem:[%s18251_s20 + $0x78] sm:$0xff] }
  0x11   :  { %348 = vmatpush1.bf16.msra.mxu1 %v11243_v10  ;;  %v11252_v23 = vcombine.high %v85_v20, %v93_v21  ;;  %509 = vmatprep.subr.bf16.mxu0 %v11236_v18  ;;  %v11251_v29 = vcombine.low %v85_v20, %v93_v21  ;;  %v705_v40 = vld [vmem:[%s18253_s0] sm:$0xff]  ;;  %v78_v60 = vld [vmem:[%s18251_s20 + $0x68] sm:$0xff]  ;;  %v88_v21 = vld [vmem:[%s18251_s20 + $0xb8] sm:$0xff] }
  0x12   :  { %386 = vmatprep.subr.bf16.mxu1 %v11230_v12  ;;  %510 = vmatpush1.bf16.msra.mxu0 %v11235_v19  ;;  %v709_v41 = vld [vmem:[%s18253_s0 + $0x20] sm:$0xff]  ;;  %v11238_v2 = vcombine.high %v70_v59, %v78_v60  ;;  %v86_v4 = vld [vmem:[%s18251_s20 + $0xa8] sm:$0xff]  ;;  %v11237_v8 = vcombine.low %v70_v59, %v78_v60  ;;  %v72_v12 = vld [vmem:[%s18251_s20 + $0x38] sm:$0xff] }
  0x13   :  { %511 = vmatprep.subr.bf16.mxu0 %v11252_v23  ;;  %v11268_v46 = vcombine.high %v705_v40, %v709_v41  ;;  %v713_v48 = vld [vmem:[%s18253_s0 + $0x40] sm:$0xff]  ;;  %v11267_v53 = vcombine.low %v705_v40, %v709_v41  ;;  %v94_v5 = vld [vmem:[%s18251_s20 + $0xe8] sm:$0xff]  ;;  %v11242_v20 = vcombine.high %v72_v12, %v80_v13  ;;  %v11241_v25 = vcombine.low %v72_v12, %v80_v13 }
  0x14   :  { %11259 = vmatmul.mubr.msk.bf16.vlgmr.msra.gmra.mrb[0].mxu1 %vm341_vm0, %v13628_v17  ;;  %v717_v49 = vld [vmem:[%s18253_s0 + $0x60] sm:$0xff]  ;;  %v11254_v11 = vcombine.high %v86_v4, %v94_v5  ;;  %v11253_v16 = vcombine.low %v86_v4, %v94_v5  ;;  %v722_v44 = vld [vmem:[%s18253_s0 + $0x88] sm:$0xff] }
  0x15   :  { %387 = vmatpush1.bf16.msra.mxu1 %v11229_v22  ;;  %418 = vmatprep.mubr.bf16.mxu1 %v13490_v3  ;;  %v11276_v54 = vcombine.high %v713_v48, %v717_v49  ;;  %v721_v56 = vld [vmem:[%s18253_s0 + $0x80] sm:$0xff]  ;;  %v11275_v61 = vcombine.low %v713_v48, %v717_v49  ;;  %v96_v22 = vld [vmem:[%s18251_s20 + $0xf8] sm:$0xff]  ;;  %v730_v52 = vld [vmem:[%s18253_s0 + $0xc8] sm:$0xff] }
  0x16   :  { %388 = vmatprep.subr.bf16.mxu1 %v11246_v26  ;;  %512 = vmatpush1.bf16.msra.mxu0 %v11251_v29  ;;  %v725_v57 = vld [vmem:[%s18253_s0 + $0xa0] sm:$0xff]  ;;  %v11258_v28 = vcombine.high %v88_v21, %v96_v22  ;;  %v706_v29 = vld [vmem:[%s18253_s0 + $0x8] sm:$0xff]  ;;  %v11257_v33 = vcombine.low %v88_v21, %v96_v22 }
  0x17   :  { %591 = vmatprep.subr.bf16.mxu0 %v11240_v30  ;;  %v11284_v62 = vcombine.high %v721_v56, %v725_v57  ;;  %v729_v0 = vld [vmem:[%s18253_s0 + $0xc0] sm:$0xff]  ;;  %v11283_v6 = vcombine.low %v721_v56, %v725_v57  ;;  %v710_v30 = vld [vmem:[%s18253_s0 + $0x28] sm:$0xff] }
  0x18   :  { %v733_v1 = vld [vmem:[%s18253_s0 + $0xe0] sm:$0xff]  ;;  %v11270_v36 = vcombine.high %v706_v29, %v710_v30  ;;  %v11269_v40 = vcombine.low %v706_v29, %v710_v30  ;;  %v738_v59 = vld [vmem:[%s18253_s0 + $0x108] sm:$0xff] }
  0x19   :  { %389 = vmatpush1.bf16.msra.mxu1 %v11245_v31  ;;  %11263 = vmatmul.mubr.msk.bf16.vlgmr.msra.gmra.mrb[0].mxu0 %vm341_vm0, %v13628_v17  ;;  %v11292_v7 = vcombine.high %v729_v0, %v733_v1  ;;  %v737_v9 = vld [vmem:[%s18253_s0 + $0x100] sm:$0xff]  ;;  %v11291_v14 = vcombine.low %v729_v0, %v733_v1  ;;  %v742_v60 = vld [vmem:[%s18253_s0 + $0x128] sm:$0xff] }
  0x1a   :  { %427 = vmatprep.subr.bf16.mxu1 %v11232_v34  ;;  %592 = vmatpush1.bf16.msra.mxu0 %v11239_v37  ;;  %v741_v10 = vld [vmem:[%s18253_s0 + $0x120] sm:$0xff]  ;;  %v714_v37 = vld [vmem:[%s18253_s0 + $0x48] sm:$0xff] }
  0x1b   :  { %623 = vmatprep.mubr.bf16.mxu0 %v13490_v3  ;;  %593 = vmatprep.subr.bf16.mxu0 %v11256_v38  ;;  %v11300_v15 = vcombine.high %v737_v9, %v741_v10  ;;  %v745_v18 = vld [vmem:[%s18253_s0 + $0x140] sm:$0xff]  ;;  %v11299_v23 = vcombine.low %v737_v9, %v741_v10  ;;  %v718_v38 = vld [vmem:[%s18253_s0 + $0x68] sm:$0xff] }
  0x1c   :  { %11260 = vmatmul.mubr.msk.bf16.vlgmr.msra.gmra.mrb[4].mxu1 %vm341_vm0, %v13628_v17  ;;  %v749_v19 = vld [vmem:[%s18253_s0 + $0x160] sm:$0xff]  ;;  %v11278_v43 = vcombine.high %v714_v37, %v718_v38  ;;  %v11277_v48 = vcombine.low %v714_v37, %v718_v38  ;;  %v746_v4 = vld [vmem:[%s18253_s0 + $0x148] sm:$0xff] }
  0x1d   :  { %428 = vmatpush1.bf16.msra.mxu1 %v11231_v39  ;;  %459 = vmatprep.mubr.bf16.mxu1 %v13490_v3  ;;  %v11308_v24 = vcombine.high %v745_v18, %v749_v19  ;;  %v753_v26 = vld [vmem:[%s18253_s0 + $0x180] sm:$0xff]  ;;  %v11307_v31 = vcombine.low %v745_v18, %v749_v19  ;;  %v750_v5 = vld [vmem:[%s18253_s0 + $0x168] sm:$0xff] }
  0x1e   :  { %429 = vmatprep.subr.bf16.mxu1 %v11248_v42  ;;  %594 = vmatpush1.bf16.msra.mxu0 %v11255_v45  ;;  %v757_v27 = vld [vmem:[%s18253_s0 + $0x1a0] sm:$0xff]  ;;  %v726_v45 = vld [vmem:[%s18253_s0 + $0xa8] sm:$0xff] }
  0x1f   :  { %6891 = vmatprep.subr.bf16.mxu0 %v11268_v46  ;;  %v11316_v32 = vcombine.high %v753_v26, %v757_v27  ;;  %v761_v34 = vld [vmem:[%s18253_s0 + $0x1c0] sm:$0xff]  ;;  %v11286_v51 = vcombine.high %v722_v44, %v726_v45  ;;  %v754_v12 = vld [vmem:[%s18253_s0 + $0x188] sm:$0xff] }
  0x20   :  { %v765_v35 = vld [vmem:[%s18253_s0 + $0x1e0] sm:$0xff]  ;;  %v758_v13 = vld [vmem:[%s18253_s0 + $0x1a8] sm:$0xff] }
  0x21   :  { %430 = vmatpush1.bf16.msra.mxu1 %v11247_v47  ;;  %11265 = vmatmul.mubr.msk.bf16.vlgmr.msra.gmra.mrb[4].mxu0 %vm341_vm0, %v13628_v17  ;;  %v11324_v39 = vcombine.high %v761_v34, %v765_v35  ;;  %v769_v41 = vld [vmem:[%s18253_s0 + $0x200] sm:$0xff]  ;;  %v11323_v46 = vcombine.low %v761_v34, %v765_v35  ;;  %v762_v21 = vld [vmem:[%s18253_s0 + $0x1c8] sm:$0xff] }
  0x22   :  { %468 = vmatprep.subr.bf16.mxu1 %v11234_v50  ;;  %6892 = vmatpush1.bf16.msra.mxu0 %v11267_v53  ;;  %v773_v42 = vld [vmem:[%s18253_s0 + $0x220] sm:$0xff]  ;;  %v766_v22 = vld [vmem:[%s18253_s0 + $0x1e8] sm:$0xff] }
  0x23   :  { %6893 = vmatprep.subr.bf16.mxu0 %v11276_v54  ;;  %v11332_v47 = vcombine.high %v769_v41, %v773_v42  ;;  %v777_v49 = vld [vmem:[%s18253_s0 + $0x240] sm:$0xff]  ;;  %v11331_v53 = vcombine.low %v769_v41, %v773_v42  ;;  %v11325_v30 = vcombine.low %v762_v21, %v766_v22  ;;  %v790_v37 = vld [vmem:[%s18253_s0 + $0x2a8] sm:$0xff] }
  0x24   :  { %11261 = vmatmul.mubr.msk.bf16.vlgmr.msra.gmra.mrb[8].mxu1 %vm341_vm0, %v13628_v17  ;;  %v781_v50 = vld [vmem:[%s18253_s0 + $0x260] sm:$0xff] }
  0x25   :  { %469 = vmatpush1.bf16.msra.mxu1 %v11233_v55  ;;  %500 = vmatprep.mubr.bf16.mxu1 %v13490_v3  ;;  %v11340_v54 = vcombine.high %v777_v49, %v781_v50  ;;  %v11285_v55 = vcombine.low %v722_v44, %v726_v45  ;;  %v785_v56 = vld [vmem:[%s18253_s0 + $0x280] sm:$0xff]  ;;  %v806_v44 = vld [vmem:[%s18253_s0 + $0x328] sm:$0xff] }
  0x26   :  { %470 = vmatprep.subr.bf16.mxu1 %v11250_v58  ;;  %6894 = vmatpush1.bf16.msra.mxu0 %v11275_v61  ;;  %v789_v57 = vld [vmem:[%s18253_s0 + $0x2a0] sm:$0xff]  ;;  %v11339_v61 = vcombine.low %v777_v49, %v781_v50 }
  0x27   :  { %6895 = vmatprep.subr.bf16.mxu0 %v11284_v62  ;;  %v11348_v62 = vcombine.high %v785_v56, %v789_v57  ;;  %v793_v0 = vld [vmem:[%s18253_s0 + $0x2c0] sm:$0xff] }
  0x28   :  { %v797_v1 = vld [vmem:[%s18253_s0 + $0x2e0] sm:$0xff] }
  0x29   :  { %471 = vmatpush1.bf16.msra.mxu1 %v11249_v63  ;;  %v801_v9 = vld [vmem:[%s18253_s0 + $0x300] sm:$0xff] }
  0x2a   :  { %550 = vmatprep.subr.bf16.mxu1 %v11238_v2  ;;  %6896 = vmatpush1.bf16.msra.mxu0 %v11283_v6  ;;  %v11302_v2 = vcombine.high %v738_v59, %v742_v60  ;;  %v11347_v6 = vcombine.low %v785_v56, %v789_v57  ;;  %v805_v10 = vld [vmem:[%s18253_s0 + $0x320] sm:$0xff] }
  0x2b   :  { %6897 = vmatprep.subr.bf16.mxu0 %v11292_v7  ;;  %v11356_v7 = vcombine.high %v793_v0, %v797_v1  ;;  %v809_v18 = vld [vmem:[%s18253_s0 + $0x340] sm:$0xff] }
  0x2c   :  { %11262 = vmatmul.mubr.msk.bf16.vlgmr.msra.gmra.mrb[12].mxu1 %vm341_vm0, %v13628_v17  ;;  %v813_v19 = vld [vmem:[%s18253_s0 + $0x360] sm:$0xff] }
  0x2d   :  { %551 = vmatpush1.bf16.msra.mxu1 %v11237_v8  ;;  %582 = vmatprep.mubr.bf16.mxu1 %v13490_v3  ;;  %v11301_v8 = vcombine.low %v738_v59, %v742_v60  ;;  %v11371_v29 = vcombine.low %v809_v18, %v813_v19  ;;  %v817_v45 = vld [vmem:[%s18253_s0 + $0x380] sm:$0xff]  ;;  %v822_v59 = vld [vmem:[%s18253_s0 + $0x3a8] sm:$0xff] }
  0x2e   :  { %552 = vmatprep.subr.bf16.mxu1 %v11254_v11  ;;  %6898 = vmatpush1.bf16.msra.mxu0 %v11291_v14  ;;  %v11310_v11 = vcombine.high %v746_v4, %v750_v5  ;;  %v11355_v14 = vcombine.low %v793_v0, %v797_v1  ;;  %v833_v60 = vld [vmem:[%s18253_s0 + $0x400] sm:$0xff]  ;;  %v838_v1 = vld [vmem:[%s18253_s0 + $0x428] sm:$0xff] }
  0x2f   :  { %6899 = vmatprep.subr.bf16.mxu0 %v11300_v15  ;;  %v11364_v15 = vcombine.high %v801_v9, %v805_v10 }
  0x31   :  { %553 = vmatpush1.bf16.msra.mxu1 %v11253_v16  ;;  %v11309_v16 = vcombine.low %v746_v4, %v750_v5 }
  0x32   :  { %632 = vmatprep.subr.bf16.mxu1 %v11242_v20  ;;  %6900 = vmatpush1.bf16.msra.mxu0 %v11299_v23  ;;  %v11318_v20 = vcombine.high %v754_v12, %v758_v13  ;;  %v11363_v23 = vcombine.low %v801_v9, %v805_v10 }
  0x33   :  { %6901 = vmatprep.subr.bf16.mxu0 %v11308_v24  ;;  %v11372_v24 = vcombine.high %v809_v18, %v813_v19 }
  0x34   :  { %11264 = vmatmul.mubr.msk.bf16.vlgmr.msra.gmra.mrb[16].mxu1 %vm341_vm0, %v13628_v17 }
  0x35   :  { %633 = vmatpush1.bf16.msra.mxu1 %v11241_v25  ;;  %664 = vmatprep.mubr.bf16.mxu1 %v13490_v3  ;;  %v11315_v3 = vcombine.low %v753_v26, %v757_v27  ;;  %v11317_v25 = vcombine.low %v754_v12, %v758_v13  ;;  %v11326_v26 = vcombine.high %v762_v21, %v766_v22  ;;  %v770_v27 = vld [vmem:[%s18253_s0 + $0x208] sm:$0xff]  ;;  %v101_v12 = vlaneseq }
  0x36   :  { %634 = vmatprep.subr.bf16.mxu1 %v11258_v28  ;;  %6902 = vmatpush1.bf16.msra.mxu0 %v11307_v31  ;;  %v774_v28 = vld [vmem:[%s18253_s0 + $0x228] sm:$0xff] }
  0x37   :  { %6903 = vmatprep.subr.bf16.mxu0 %v11316_v32  ;;  %v11334_v31 = vcombine.high %v770_v27, %v774_v28  ;;  %v778_v32 = vld [vmem:[%s18253_s0 + $0x248] sm:$0xff]  ;;  %v11333_v34 = vcombine.low %v770_v27, %v774_v28  ;;  %v13922_v13 = vshrl.u32 %v101_v12, 7  ;;  %v841_v28 = vld [vmem:[%s18253_s0 + $0x440] sm:$0xff] }
  0x38   :  { %v877_v12 = vld [vmem:[%s18253_s0 + $0x560] sm:$0xff] }
  0x39   :  { %635 = vmatpush1.bf16.msra.mxu1 %v11257_v33  ;;  %v782_v33 = vld [vmem:[%s18253_s0 + $0x268] sm:$0xff] }
  0x3a   :  { %7219 = vmatprep.subr.bf16.mxu1 %v11270_v36  ;;  %6904 = vmatpush1.bf16.msra.mxu0 %v11315_v3  ;;  %v11342_v35 = vcombine.high %v778_v32, %v782_v33  ;;  %v786_v36 = vld [vmem:[%s18253_s0 + $0x288] sm:$0xff]  ;;  %v11341_v38 = vcombine.low %v778_v32, %v782_v33 }
  0x3b   :  { %6905 = vmatprep.subr.bf16.mxu0 %v11324_v39  ;;  %v11350_v3 = vcombine.high %v786_v36, %v790_v37  ;;  %v794_v39 = vld [vmem:[%s18253_s0 + $0x2c8] sm:$0xff]  ;;  %v11349_v41 = vcombine.low %v786_v36, %v790_v37 }
  0x3c   :  { %11266 = vmatmul.mubr.msk.bf16.vlgmr.msra.gmra.mrb[20].mxu1 %vm341_vm0, %v13628_v17  ;;  %v734_v17 = vld [vmem:[%s18253_s0 + $0xe8] sm:$0xff] }
  0x3d   :  { %7220 = vmatpush1.bf16.msra.mxu1 %v11269_v40  ;;  %v11294_v58 = vcombine.high %v730_v52, %v734_v17  ;;  %v11293_v63 = vcombine.low %v730_v52, %v734_v17  ;;  %v798_v40 = vld [vmem:[%s18253_s0 + $0x2e8] sm:$0xff]  ;;  %v825_v17 = vld [vmem:[%s18253_s0 + $0x3c0] sm:$0xff] }
  0x3e   :  { %7221 = vmatprep.subr.bf16.mxu1 %v11278_v43  ;;  %6906 = vmatpush1.bf16.msra.mxu0 %v11323_v46  ;;  %v11358_v42 = vcombine.high %v794_v39, %v798_v40  ;;  %v802_v43 = vld [vmem:[%s18253_s0 + $0x308] sm:$0xff]  ;;  %v821_v46 = vld [vmem:[%s18253_s0 + $0x3a0] sm:$0xff] }
  0x3f   :  { %6907 = vmatprep.subr.bf16.mxu0 %v11332_v47  ;;  %v11357_v47 = vcombine.low %v794_v39, %v798_v40  ;;  %v11366_v49 = vcombine.high %v802_v43, %v806_v44  ;;  %v11379_v50 = vcombine.low %v817_v45, %v821_v46  ;;  %v814_v52 = vld [vmem:[%s18253_s0 + $0x368] sm:$0xff] }
  0x40   :  { %v846_v32 = vld [vmem:[%s18253_s0 + $0x468] sm:$0xff] }
  0x41   :  { %7222 = vmatpush1.bf16.msra.mxu1 %v11277_v48  ;;  %v11380_v48 = vcombine.high %v817_v45, %v821_v46  ;;  %v850_v39 = vld [vmem:[%s18253_s0 + $0x488] sm:$0xff] }
  0x42   :  { %7223 = vmatprep.subr.bf16.mxu1 %v11286_v51  ;;  %6908 = vmatpush1.bf16.msra.mxu0 %v11331_v53  ;;  %v810_v51 = vld [vmem:[%s18253_s0 + $0x348] sm:$0xff]  ;;  %v829_v53 = vld [vmem:[%s18253_s0 + $0x3e0] sm:$0xff] }
  0x43   :  { %6909 = vmatprep.subr.bf16.mxu0 %v11340_v54  ;;  %v11365_v54 = vcombine.low %v802_v43, %v806_v44  ;;  %v11374_v56 = vcombine.high %v810_v51, %v814_v52  ;;  %v11387_v57 = vcombine.low %v825_v17, %v829_v53  ;;  %v854_v40 = vld [vmem:[%s18253_s0 + $0x4a8] sm:$0xff] }
  0x45   :  { %7224 = vmatpush1.bf16.msra.mxu1 %v11285_v55  ;;  %v11388_v55 = vcombine.high %v825_v17, %v829_v53  ;;  %v862_v17 = vld [vmem:[%s18253_s0 + $0x4e8] sm:$0xff] }
  0x46   :  { %7225 = vmatprep.subr.bf16.mxu1 %v11294_v58  ;;  %6910 = vmatpush1.bf16.msra.mxu0 %v11339_v61  ;;  %v818_v58 = vld [vmem:[%s18253_s0 + $0x388] sm:$0xff]  ;;  %v837_v61 = vld [vmem:[%s18253_s0 + $0x420] sm:$0xff] }
  0x47   :  { %6911 = vmatprep.subr.bf16.mxu0 %v11348_v62  ;;  %v834_v62 = vld [vmem:[%s18253_s0 + $0x408] sm:$0xff]  ;;  %v11396_v0 = vcombine.high %v833_v60, %v837_v61  ;;  %v11395_v4 = vcombine.low %v833_v60, %v837_v61  ;;  %v869_v61 = vld [vmem:[%s18253_s0 + $0x520] sm:$0xff] }
  0x48   :  { %v11397_v5 = vcombine.low %v834_v62, %v838_v1 }
  0x49   :  { %7226 = vmatpush1.bf16.msra.mxu1 %v11293_v63  ;;  %v11373_v63 = vcombine.low %v810_v51, %v814_v52  ;;  %v861_v51 = vld [vmem:[%s18253_s0 + $0x4e0] sm:$0xff]  ;;  %v858_v52 = vld [vmem:[%s18253_s0 + $0x4c8] sm:$0xff] }
  0x4a   :  { %7227 = vmatprep.subr.bf16.mxu1 %v11302_v2  ;;  %6912 = vmatpush1.bf16.msra.mxu0 %v11347_v6  ;;  %v11382_v2 = vcombine.high %v818_v58, %v822_v59  ;;  %v826_v6 = vld [vmem:[%s18253_s0 + $0x3c8] sm:$0xff] }
  0x4b   :  { %6913 = vmatprep.subr.bf16.mxu0 %v11356_v7  ;;  %v830_v7 = vld [vmem:[%s18253_s0 + $0x3e8] sm:$0xff] }
  0x4c   :  { %v11390_v9 = vcombine.high %v826_v6, %v830_v7  ;;  %v11389_v10 = vcombine.low %v826_v6, %v830_v7 }
  0x4d   :  { %7228 = vmatpush1.bf16.msra.mxu1 %v11301_v8  ;;  %v11381_v8 = vcombine.low %v818_v58, %v822_v59  ;;  %v11422_v58 = vcombine.high %v858_v52, %v862_v17  ;;  %v865_v59 = vld [vmem:[%s18253_s0 + $0x500] sm:$0xff] }
  0x4e   :  { %7229 = vmatprep.subr.bf16.mxu1 %v11310_v11  ;;  %6914 = vmatpush1.bf16.msra.mxu0 %v11355_v14  ;;  %v11398_v11 = vcombine.high %v834_v62, %v838_v1  ;;  %v13925_v14 = vsub.s32 0, %v13922_v13  ;;  %v866_v62 = vld [vmem:[%s18253_s0 + $0x508] sm:$0xff]  ;;  %v11428_v7 = vcombine.high %v865_v59, %v869_v61 }
  0x4f   :  { %6915 = vmatprep.subr.bf16.mxu0 %v11364_v15  ;;  %v13930_v15 = vld [vmem:[%s18254_s29] sm:$0xff] }
  0x50   :  { %v104_v18 = vrot.slane %v13930_v15, %v13925_v14 }
  0x51   :  { %7230 = vmatpush1.bf16.msra.mxu1 %v11309_v16  ;;  %v13933_v16 = vsub.s32 1, %v13922_v13 }
  0x52   :  { %7231 = vmatprep.subr.bf16.mxu1 %v11318_v20  ;;  %6916 = vmatpush1.bf16.msra.mxu0 %v11363_v23 }
  0x53   :  { %6917 = vmatprep.subr.bf16.mxu0 %v11372_v24  ;;  %v108_v19 = vrot.slane %v13930_v15, %v13933_v16 }
  0x55   :  { %7232 = vmatpush1.bf16.msra.mxu1 %v11317_v25  ;;  %v13940_v25 = vsub.s32 3, %v13922_v13 }
  0x56   :  { %7233 = vmatprep.subr.bf16.mxu1 %v11326_v26  ;;  %6918 = vmatpush1.bf16.msra.mxu0 %v11371_v29 }
  0x57   :  { %6919 = vmatprep.subr.bf16.mxu0 %v11380_v48  ;;  %v11414_v48 = vcombine.high %v850_v39, %v854_v40 }
  0x59   :  { %7234 = vmatpush1.bf16.msra.mxu1 %v11325_v30  ;;  %v845_v30 = vld [vmem:[%s18253_s0 + $0x460] sm:$0xff] }
  0x5a   :  { %7235 = vmatprep.subr.bf16.mxu1 %v11334_v31  ;;  %6920 = vmatpush1.bf16.msra.mxu0 %v11379_v50  ;;  %v842_v31 = vld [vmem:[%s18253_s0 + $0x448] sm:$0xff]  ;;  %v11404_v36 = vcombine.high %v841_v28, %v845_v30  ;;  %v11403_v43 = vcombine.low %v841_v28, %v845_v30  ;;  %v885_v28 = vld [vmem:[%s18253_s0 + $0x5a0] sm:$0xff] }
  0x5b   :  { %6921 = vmatprep.subr.bf16.mxu0 %v11388_v55  ;;  %v11406_v37 = vcombine.high %v842_v31, %v846_v32  ;;  %v11405_v44 = vcombine.low %v842_v31, %v846_v32  ;;  %v11413_v55 = vcombine.low %v850_v39, %v854_v40  ;;  %v886_v30 = vld [vmem:[%s18253_s0 + $0x5a8] sm:$0xff]  ;;  %v893_v39 = vld [vmem:[%s18253_s0 + $0x5e0] sm:$0xff] }
  0x5c   :  { %v890_v40 = vld [vmem:[%s18253_s0 + $0x5c8] sm:$0xff] }
  0x5d   :  { %7236 = vmatpush1.bf16.msra.mxu1 %v11333_v34  ;;  %v116_v34 = vrot.slane %v13930_v15, %v13940_v25 }
  0x5e   :  { %7237 = vmatprep.subr.bf16.mxu1 %v11342_v35  ;;  %6922 = vmatpush1.bf16.msra.mxu0 %v11387_v57 }
  0x5f   :  { %6932 = vmatprep.subr.bf16.mxu0 %v11396_v0 }
  0x61   :  { %7238 = vmatpush1.bf16.msra.mxu1 %v11341_v38  ;;  %v849_v38 = vld [vmem:[%s18253_s0 + $0x480] sm:$0xff] }
  0x62   :  { %7239 = vmatprep.subr.bf16.mxu1 %v11350_v3  ;;  %v853_v3 = vld [vmem:[%s18253_s0 + $0x4a0] sm:$0xff] }
  0x65   :  { %7240 = vmatpush1.bf16.msra.mxu1 %v11349_v41 }
  0x66   :  { %7241 = vmatprep.subr.bf16.mxu1 %v11358_v42 }
  0x69   :  { %7242 = vmatpush1.bf16.msra.mxu1 %v11357_v47  ;;  %v11412_v47 = vcombine.high %v849_v38, %v853_v3 }
  0x6a   :  { %7243 = vmatprep.subr.bf16.mxu1 %v11366_v49  ;;  %v857_v49 = vld [vmem:[%s18253_s0 + $0x4c0] sm:$0xff] }
  0x6b   :  { %v11420_v57 = vcombine.high %v857_v49, %v861_v51 }
  0x6d   :  { %7244 = vmatpush1.bf16.msra.mxu1 %v11365_v54  ;;  %v11411_v54 = vcombine.low %v849_v38, %v853_v3  ;;  %v889_v38 = vld [vmem:[%s18253_s0 + $0x5c0] sm:$0xff] }
  0x6e   :  { %7245 = vmatprep.subr.bf16.mxu1 %v11374_v56 }
  0x71   :  { %7246 = vmatpush1.bf16.msra.mxu1 %v11373_v63  ;;  %v870_v63 = vld [vmem:[%s18253_s0 + $0x528] sm:$0xff] }
  0x72   :  { %7247 = vmatprep.subr.bf16.mxu1 %v11382_v2  ;;  %v11419_v2 = vcombine.low %v857_v49, %v861_v51  ;;  %v901_v49 = vld [vmem:[%s18253_s0 + $0x620] sm:$0xff]  ;;  %v902_v51 = vld [vmem:[%s18253_s0 + $0x628] sm:$0xff] }
  0x75   :  { %7248 = vmatpush1.bf16.msra.mxu1 %v11381_v8  ;;  %v11430_v8 = vcombine.high %v866_v62, %v870_v63 }
  0x76   :  { %7249 = vmatprep.subr.bf16.mxu1 %v11390_v9  ;;  %v873_v9 = vld [vmem:[%s18253_s0 + $0x540] sm:$0xff] }
  0x77   :  { %v11435_v31 = vcombine.low %v873_v9, %v877_v12 }
  0x79   :  { %7250 = vmatpush1.bf16.msra.mxu1 %v11389_v10 }
  0x7a   :  { %7260 = vmatprep.subr.bf16.mxu1 %v11398_v11 }
  0xe7   :  { %v379_v20 = vpop.f32.mrb[0].mxu1 }
  0xe8   :  { %v380_v21 = vadd.f32 %v379_v20, %v104_v18  ;;  %v381_v22 = vpop.f32.mrb[1].mxu1  ;;  %v874_v18 = vld [vmem:[%s18253_s0 + $0x548] sm:$0xff] }
  0xe9   :  { %v382_v23 = vadd.f32 %v381_v22, %v108_v19  ;;  %v383_v24 = vpop.f32.mrb[2].mxu1  ;;  %v878_v19 = vld [vmem:[%s18253_s0 + $0x568] sm:$0xff]  ;;  %v11429_v22 = vcombine.low %v866_v62, %v870_v63 }
  0xea   :  { %v673_v26 = vmax.f32 %v380_v21, 0.0  ;;  %v384_v27 = vpop.f32.mrb[3].mxu1  ;;  %v11427_v21 = vcombine.low %v865_v59, %v869_v61  ;;  %v11438_v24 = vcombine.high %v874_v18, %v878_v19  ;;  %v11437_v32 = vcombine.low %v874_v18, %v878_v19  ;;  %v910_v59 = vld [vmem:[%s18253_s0 + $0x668] sm:$0xff]  ;;  %v921_v18 = vld [vmem:[%s18253_s0 + $0x6c0] sm:$0xff] }
  0xeb   :  { %v674_v29 = vmax.f32 %v382_v23, 0.0  ;;  %v11436_v23 = vcombine.high %v873_v9, %v877_v12  ;;  %v925_v19 = vld [vmem:[%s18253_s0 + $0x6e0] sm:$0xff] }
  0xec   :  { %v13958_v35 = vpack.c.bf16 %v673_v26, %v673_v26  ;;  %v13995_v60 = vpop.f32.mrb[0].mxu0  ;;  %v881_v26 = vld [vmem:[%s18253_s0 + $0x580] sm:$0xff] }
  0xed   :  { %v13954_v33 = vpack.c.bf16 %v674_v29, %v674_v29  ;;  %v14012_v6 = vpop.f32.mrb[1].mxu0  ;;  %v882_v29 = vld [vmem:[%s18253_s0 + $0x588] sm:$0xff] }
  0xee   :  { %v547_v11 = vpop.f32.mrb[2].mxu0 }
  0xef   :  { %6923 = vmatprep.mubr.bf16.mxu0 %v13954_v33  ;;  %7251 = vmatprep.mubr.bf16.mxu1 %v13954_v33  ;;  %v13974_v41 = vpop.f32.mrb[4].mxu1  ;;  %v548_v20 = vpop.f32.mrb[3].mxu0 }
  0xf0   :  { %6924 = vmatmul.mubr.bf16.vlgmr.msra.gmra.mrb[8].mxu0 %v13958_v35  ;;  %7252 = vmatmul.mubr.bf16.vlgmr.msra.gmra.mrb[24].mxu1 %v13958_v35  ;;  %v422_v42 = vpop.f32.mrb[5].mxu1  ;;  %v922_v20 = vld [vmem:[%s18253_s0 + $0x6c8] sm:$0xff] }
  0xf1   :  { %6933 = vmatpush1.bf16.msra.mxu0 %v11395_v4  ;;  %7261 = vmatpush1.bf16.msra.mxu1 %v11397_v5  ;;  %v423_v45 = vadd.f32 %v422_v42, %v116_v34  ;;  %v424_v46 = vpop.f32.mrb[6].mxu1  ;;  %v11421_v4 = vcombine.low %v858_v52, %v862_v17  ;;  %v894_v42 = vld [vmem:[%s18253_s0 + $0x5e8] sm:$0xff]  ;;  %v11451_v52 = vcombine.low %v889_v38, %v893_v39 }
  0xf2   :  { %6934 = vmatprep.subr.bf16.mxu0 %v11404_v36  ;;  %7262 = vmatprep.subr.bf16.mxu1 %v11406_v37  ;;  %v425_v50 = vpop.f32.mrb[7].mxu1  ;;  %v11444_v36 = vcombine.high %v881_v26, %v885_v28  ;;  %v11446_v37 = vcombine.high %v882_v29, %v886_v30  ;;  %v11452_v46 = vcombine.high %v889_v38, %v893_v39  ;;  %v941_v39 = vld [vmem:[%s18253_s0 + $0x760] sm:$0xff] }
  0xf3   :  { %v676_v53 = vmax.f32 %v423_v45, 0.0  ;;  %v11445_v45 = vcombine.low %v882_v29, %v886_v30  ;;  %v898_v50 = vld [vmem:[%s18253_s0 + $0x608] sm:$0xff]  ;;  %v11453_v17 = vcombine.low %v890_v40, %v894_v42  ;;  %v933_v29 = vld [vmem:[%s18253_s0 + $0x720] sm:$0xff] }
  0xf4   :  { %v14029_v27 = vpop.f32.mrb[4].mxu0  ;;  %v11461_v62 = vcombine.low %v898_v50, %v902_v51  ;;  %v930_v30 = vld [vmem:[%s18253_s0 + $0x708] sm:$0xff] }
  0xf5   :  { %6935 = vmatpush1.bf16.msra.mxu0 %v11403_v43  ;;  %7263 = vmatpush1.bf16.msra.mxu1 %v11405_v44  ;;  %v13990_v56 = vpack.c.bf16 %v676_v53, %v676_v53  ;;  %v14040_v34 = vpop.f32.mrb[5].mxu0  ;;  %v11443_v44 = vcombine.low %v881_v26, %v885_v28  ;;  %v929_v28 = vld [vmem:[%s18253_s0 + $0x700] sm:$0xff] }
  0xf6   :  { %6936 = vmatprep.subr.bf16.mxu0 %v11412_v47  ;;  %7264 = vmatprep.subr.bf16.mxu1 %v11414_v48  ;;  %v629_v3 = vpop.f32.mrb[6].mxu0  ;;  %v11454_v47 = vcombine.high %v890_v40, %v894_v42  ;;  %v897_v48 = vld [vmem:[%s18253_s0 + $0x600] sm:$0xff]  ;;  %v938_v40 = vld [vmem:[%s18253_s0 + $0x748] sm:$0xff] }
  0xf7   :  { %6964 = vmatprep.mubr.bf16.mxu0 %v13990_v56  ;;  %7292 = vmatprep.mubr.bf16.mxu1 %v13990_v56  ;;  %v14008_v0 = vpop.f32.mrb[8].mxu1  ;;  %v630_v43 = vpop.f32.mrb[7].mxu0  ;;  %v11460_v53 = vcombine.high %v897_v48, %v901_v49  ;;  %v11459_v61 = vcombine.low %v897_v48, %v901_v49  ;;  %v937_v3 = vld [vmem:[%s18253_s0 + $0x740] sm:$0xff]  ;;  %v942_v42 = vld [vmem:[%s18253_s0 + $0x768] sm:$0xff] }
  0xf8   :  { %v14010_v1 = vpop.f32.mrb[9].mxu1  ;;  %v14127_v43 = vsub.s32 2, %v13922_v13  ;;  %v945_v48 = vld [vmem:[%s18253_s0 + $0x780] sm:$0xff] }
  0xf9   :  { %6937 = vmatpush1.bf16.msra.mxu0 %v11411_v54  ;;  %7265 = vmatpush1.bf16.msra.mxu1 %v11413_v55  ;;  %v465_v5 = vpop.f32.mrb[10].mxu1  ;;  %v11462_v54 = vcombine.high %v898_v50, %v902_v51  ;;  %v905_v55 = vld [vmem:[%s18253_s0 + $0x640] sm:$0xff]  ;;  %v946_v50 = vld [vmem:[%s18253_s0 + $0x788] sm:$0xff] }
  0xfa   :  { %6938 = vmatprep.subr.bf16.mxu0 %v11420_v57  ;;  %7266 = vmatprep.subr.bf16.mxu1 %v11422_v58  ;;  %v466_v10 = vpop.f32.mrb[11].mxu1  ;;  %v909_v57 = vld [vmem:[%s18253_s0 + $0x660] sm:$0xff]  ;;  %v906_v58 = vld [vmem:[%s18253_s0 + $0x648] sm:$0xff] }
  0xfb   :  { %v11468_v63 = vcombine.high %v905_v55, %v909_v57  ;;  %v917_v5 = vld [vmem:[%s18253_s0 + $0x6a0] sm:$0xff]  ;;  %v11467_v9 = vcombine.low %v905_v55, %v909_v57  ;;  %v11469_v10 = vcombine.low %v906_v58, %v910_v59  ;;  %v950_v51 = vld [vmem:[%s18253_s0 + $0x7a8] sm:$0xff] }
  0xfc   :  { %v949_v49 = vld [vmem:[%s18253_s0 + $0x7a0] sm:$0xff]  ;;  %v11510_v57 = vcombine.high %v946_v50, %v950_v51 }
  0xfd   :  { %6939 = vmatpush1.bf16.msra.mxu0 %v11419_v2  ;;  %7267 = vmatpush1.bf16.msra.mxu1 %v11421_v4  ;;  %v11470_v2 = vcombine.high %v906_v58, %v910_v59  ;;  %v913_v4 = vld [vmem:[%s18253_s0 + $0x680] sm:$0xff]  ;;  %v11508_v55 = vcombine.high %v945_v48, %v949_v49 }
  0xfe   :  { %6940 = vmatprep.subr.bf16.mxu0 %v11428_v7  ;;  %7268 = vmatprep.subr.bf16.mxu1 %v11430_v8  ;;  %v914_v7 = vld [vmem:[%s18253_s0 + $0x688] sm:$0xff]  ;;  %v11476_v11 = vcombine.high %v913_v4, %v917_v5  ;;  %v953_v58 = vld [vmem:[%s18253_s0 + $0x7c0] sm:$0xff] }
  0xff   :  { %v918_v8 = vld [vmem:[%s18253_s0 + $0x6a8] sm:$0xff]  ;;  %v14149_v59 = vpop.f32.mrb[12].mxu1 }
 0x100   :  { %v11478_v12 = vcombine.high %v914_v7, %v918_v8 }
 0x101   :  { %6941 = vmatpush1.bf16.msra.mxu0 %v11427_v21  ;;  %7269 = vmatpush1.bf16.msra.mxu1 %v11429_v22  ;;  %v926_v21 = vld [vmem:[%s18253_s0 + $0x6e8] sm:$0xff]  ;;  %v11475_v22 = vcombine.low %v913_v4, %v917_v5  ;;  %v11507_v5 = vcombine.low %v945_v48, %v949_v49 }
 0x102   :  { %6942 = vmatprep.subr.bf16.mxu0 %v11436_v23  ;;  %7270 = vmatprep.subr.bf16.mxu1 %v11438_v24  ;;  %v11477_v23 = vcombine.low %v914_v7, %v918_v8  ;;  %v11484_v24 = vcombine.high %v921_v18, %v925_v19  ;;  %v11486_v26 = vcombine.high %v922_v20, %v926_v21  ;;  %v14163_v8 = vpop.f32.mrb[13].mxu1 }
 0x103   :  { %v11509_v7 = vcombine.low %v946_v50, %v950_v51  ;;  %v985_v51 = vld [vmem:[%s18253_s0 + $0x8c0] sm:$0xff] }
 0x105   :  { %6943 = vmatpush1.bf16.msra.mxu0 %v11435_v31  ;;  %7271 = vmatpush1.bf16.msra.mxu1 %v11437_v32  ;;  %v934_v31 = vld [vmem:[%s18253_s0 + $0x728] sm:$0xff]  ;;  %v11483_v32 = vcombine.low %v921_v18, %v925_v19  ;;  %v965_v18 = vld [vmem:[%s18253_s0 + $0x820] sm:$0xff] }
 0x106   :  { %6944 = vmatprep.subr.bf16.mxu0 %v11444_v36  ;;  %7272 = vmatprep.subr.bf16.mxu1 %v11446_v37  ;;  %v11485_v36 = vcombine.low %v922_v20, %v926_v21  ;;  %v11492_v37 = vcombine.high %v929_v28, %v933_v29  ;;  %v11494_v38 = vcombine.high %v930_v30, %v934_v31  ;;  %v966_v19 = vld [vmem:[%s18253_s0 + $0x828] sm:$0xff] }
 0x109   :  { %6945 = vmatpush1.bf16.msra.mxu0 %v11443_v44  ;;  %7273 = vmatpush1.bf16.msra.mxu1 %v11445_v45  ;;  %v11491_v44 = vcombine.low %v929_v28, %v933_v29  ;;  %v11493_v45 = vcombine.low %v930_v30, %v934_v31  ;;  %v969_v29 = vld [vmem:[%s18253_s0 + $0x840] sm:$0xff]  ;;  %v974_v31 = vld [vmem:[%s18253_s0 + $0x868] sm:$0xff] }
 0x10a   :  { %6946 = vmatprep.subr.bf16.mxu0 %v11452_v46  ;;  %7274 = vmatprep.subr.bf16.mxu1 %v11454_v47  ;;  %v11500_v46 = vcombine.high %v937_v3, %v941_v39  ;;  %v11502_v47 = vcombine.high %v938_v40, %v942_v42  ;;  %v973_v30 = vld [vmem:[%s18253_s0 + $0x860] sm:$0xff] }
 0x10d   :  { %6947 = vmatpush1.bf16.msra.mxu0 %v11451_v52  ;;  %7275 = vmatpush1.bf16.msra.mxu1 %v11453_v17  ;;  %v14142_v52 = vsub.s32 5, %v13922_v13  ;;  %v112_v17 = vrot.slane %v13930_v15, %v14127_v43 }
 0x10e   :  { %6948 = vmatprep.subr.bf16.mxu0 %v11460_v53  ;;  %7276 = vmatprep.subr.bf16.mxu1 %v11462_v54  ;;  %v11499_v53 = vcombine.low %v937_v3, %v941_v39  ;;  %v11501_v54 = vcombine.low %v938_v40, %v942_v42  ;;  %v11532_v3 = vcombine.high %v969_v29, %v973_v30  ;;  %v977_v40 = vld [vmem:[%s18253_s0 + $0x880] sm:$0xff] }
 0x10f   :  { %v421_v4 = vadd.f32 %v13974_v41, %v112_v17  ;;  %v962_v41 = vld [vmem:[%s18253_s0 + $0x808] sm:$0xff]  ;;  %v981_v42 = vld [vmem:[%s18253_s0 + $0x8a0] sm:$0xff] }
 0x110   :  { %v11526_v28 = vcombine.high %v962_v41, %v966_v19  ;;  %v11540_v49 = vcombine.high %v977_v40, %v981_v42  ;;  %v989_v17 = vld [vmem:[%s18253_s0 + $0x8e0] sm:$0xff] }
 0x111   :  { %6949 = vmatpush1.bf16.msra.mxu0 %v11459_v61  ;;  %7277 = vmatpush1.bf16.msra.mxu1 %v11461_v62  ;;  %v957_v61 = vld [vmem:[%s18253_s0 + $0x7e0] sm:$0xff]  ;;  %v954_v62 = vld [vmem:[%s18253_s0 + $0x7c8] sm:$0xff] }
 0x112   :  { %6950 = vmatprep.subr.bf16.mxu0 %v11468_v63  ;;  %7278 = vmatprep.subr.bf16.mxu1 %v11470_v2  ;;  %v958_v63 = vld [vmem:[%s18253_s0 + $0x7e8] sm:$0xff]  ;;  %v124_v2 = vrot.slane %v13930_v15, %v14142_v52 }
 0x114   :  { %v464_v20 = vadd.f32 %v14010_v1, %v124_v2  ;;  %v970_v1 = vld [vmem:[%s18253_s0 + $0x848] sm:$0xff]  ;;  %v997_v2 = vld [vmem:[%s18253_s0 + $0x920] sm:$0xff] }
 0x115   :  { %6951 = vmatpush1.bf16.msra.mxu0 %v11467_v9  ;;  %7279 = vmatpush1.bf16.msra.mxu1 %v11469_v10  ;;  %v11516_v9 = vcombine.high %v953_v58, %v957_v61  ;;  %v11518_v10 = vcombine.high %v954_v62, %v958_v63  ;;  %v11534_v39 = vcombine.high %v970_v1, %v974_v31 }
 0x116   :  { %6952 = vmatprep.subr.bf16.mxu0 %v11476_v11  ;;  %7280 = vmatprep.subr.bf16.mxu1 %v11478_v12  ;;  %v961_v11 = vld [vmem:[%s18253_s0 + $0x800] sm:$0xff]  ;;  %v506_v12 = vpop.f32.mrb[14].mxu1  ;;  %v11533_v48 = vcombine.low %v970_v1, %v974_v31  ;;  %v1010_v31 = vld [vmem:[%s18253_s0 + $0x988] sm:$0xff] }
 0x117   :  { %v507_v21 = vpop.f32.mrb[15].mxu1  ;;  %v1013_v1 = vld [vmem:[%s18253_s0 + $0x9a0] sm:$0xff] }
 0x118   :  { %v1002_v21 = vld [vmem:[%s18253_s0 + $0x948] sm:$0xff] }
 0x119   :  { %6953 = vmatpush1.bf16.msra.mxu0 %v11475_v22  ;;  %7281 = vmatpush1.bf16.msra.mxu1 %v11477_v23  ;;  %v675_v22 = vmax.f32 %v421_v4, 0.0  ;;  %v11515_v23 = vcombine.low %v953_v58, %v957_v61  ;;  %v11548_v58 = vcombine.high %v985_v51, %v989_v17  ;;  %v994_v4 = vld [vmem:[%s18253_s0 + $0x908] sm:$0xff] }
 0x11a   :  { %6954 = vmatprep.subr.bf16.mxu0 %v11484_v24  ;;  %7282 = vmatprep.subr.bf16.mxu1 %v11486_v26  ;;  %v11517_v24 = vcombine.low %v954_v62, %v958_v63  ;;  %v11524_v26 = vcombine.high %v961_v11, %v965_v18  ;;  %v993_v62 = vld [vmem:[%s18253_s0 + $0x900] sm:$0xff]  ;;  %v14225_v63 = vpop.f32.mrb[16].mxu1 }
 0x11d   :  { %6955 = vmatpush1.bf16.msra.mxu0 %v11483_v32  ;;  %7283 = vmatpush1.bf16.msra.mxu1 %v11485_v36  ;;  %v678_v32 = vmax.f32 %v464_v20, 0.0  ;;  %v14190_v36 = vpack.c.bf16 %v675_v22, %v675_v22  ;;  %v1005_v20 = vld [vmem:[%s18253_s0 + $0x960] sm:$0xff]  ;;  %v1006_v22 = vld [vmem:[%s18253_s0 + $0x968] sm:$0xff] }
 0x11e   :  { %6956 = vmatprep.subr.bf16.mxu0 %v11492_v37  ;;  %7284 = vmatprep.subr.bf16.mxu1 %v11494_v38  ;;  %v11523_v37 = vcombine.low %v961_v11, %v965_v18  ;;  %v11525_v38 = vcombine.low %v962_v41, %v966_v19  ;;  %v11556_v18 = vcombine.high %v993_v62, %v997_v2  ;;  %v1001_v19 = vld [vmem:[%s18253_s0 + $0x940] sm:$0xff] }
 0x121   :  { %6957 = vmatpush1.bf16.msra.mxu0 %v11491_v44  ;;  %7285 = vmatpush1.bf16.msra.mxu1 %v11493_v45  ;;  %v978_v44 = vld [vmem:[%s18253_s0 + $0x888] sm:$0xff] }
 0x122   :  { %6958 = vmatprep.subr.bf16.mxu0 %v11500_v46  ;;  %7286 = vmatprep.subr.bf16.mxu1 %v11502_v47  ;;  %v982_v45 = vld [vmem:[%s18253_s0 + $0x8a8] sm:$0xff]  ;;  %v14204_v46 = vpack.c.bf16 %v678_v32, %v678_v32  ;;  %v11531_v47 = vcombine.low %v969_v29, %v973_v30  ;;  %v1009_v29 = vld [vmem:[%s18253_s0 + $0x980] sm:$0xff] }
 0x123   :  { %v11542_v50 = vcombine.high %v978_v44, %v982_v45  ;;  %v1014_v32 = vld [vmem:[%s18253_s0 + $0x9a8] sm:$0xff] }
 0x125   :  { %6959 = vmatpush1.bf16.msra.mxu0 %v11499_v53  ;;  %7287 = vmatpush1.bf16.msra.mxu1 %v11501_v54  ;;  %v986_v53 = vld [vmem:[%s18253_s0 + $0x8c8] sm:$0xff] }
 0x126   :  { %6960 = vmatprep.subr.bf16.mxu0 %v11508_v55  ;;  %7288 = vmatprep.subr.bf16.mxu1 %v11510_v57  ;;  %v990_v54 = vld [vmem:[%s18253_s0 + $0x8e8] sm:$0xff]  ;;  %v11539_v55 = vcombine.low %v977_v40, %v981_v42  ;;  %v11541_v57 = vcombine.low %v978_v44, %v982_v45  ;;  %v11572_v42 = vcombine.high %v1009_v29, %v1013_v1  ;;  %v1017_v45 = vld [vmem:[%s18253_s0 + $0x9c0] sm:$0xff] }
 0x127   :  { %v11550_v61 = vcombine.high %v986_v53, %v990_v54  ;;  %v11549_v11 = vcombine.low %v986_v53, %v990_v54  ;;  %v11574_v44 = vcombine.high %v1010_v31, %v1014_v32  ;;  %v1025_v54 = vld [vmem:[%s18253_s0 + $0xa00] sm:$0xff] }
 0x129   :  { %6961 = vmatpush1.bf16.msra.mxu0 %v11507_v5  ;;  %7289 = vmatpush1.bf16.msra.mxu1 %v11509_v7  ;;  %v998_v5 = vld [vmem:[%s18253_s0 + $0x928] sm:$0xff]  ;;  %v14236_v7 = vpop.f32.mrb[17].mxu1 }
 0x12a   :  { %6962 = vmatprep.subr.bf16.mxu0 %v11516_v9  ;;  %7290 = vmatprep.subr.bf16.mxu1 %v11518_v10  ;;  %v588_v9 = vpop.f32.mrb[18].mxu1  ;;  %v11547_v10 = vcombine.low %v985_v51, %v989_v17  ;;  %v11558_v41 = vcombine.high %v994_v4, %v998_v5  ;;  %v11573_v51 = vcombine.low %v1010_v31, %v1014_v32  ;;  %v1053_v31 = vld [vmem:[%s18253_s0 + $0xae0] sm:$0xff]  ;;  %v1050_v32 = vld [vmem:[%s18253_s0 + $0xac8] sm:$0xff] }
 0x12b   :  { %v589_v12 = vpop.f32.mrb[19].mxu1  ;;  %v1037_v9 = vld [vmem:[%s18253_s0 + $0xa60] sm:$0xff] }
 0x12c   :  { %v14253_v30 = vpop.f32.mrb[20].mxu1 }
 0x12d   :  { %6963 = vmatpush1.bf16.msra.mxu0 %v11515_v23  ;;  %7291 = vmatpush1.bf16.msra.mxu1 %v11517_v24  ;;  %v11555_v23 = vcombine.low %v993_v62, %v997_v2  ;;  %v11557_v24 = vcombine.low %v994_v4, %v998_v5  ;;  %v1033_v5 = vld [vmem:[%s18253_s0 + $0xa40] sm:$0xff] }
 0x12e   :  { %6973 = vmatprep.subr.bf16.mxu0 %v11524_v26  ;;  %7301 = vmatprep.subr.bf16.mxu1 %v11526_v28  ;;  %v11564_v26 = vcombine.high %v1001_v19, %v1005_v20  ;;  %v11566_v28 = vcombine.high %v1002_v21, %v1006_v22 }
 0x130   :  { %6965 = vmatmul.mubr.bf16.vlgmr.msra.gmra.mrb[8].mxu0 %v14190_v36  ;;  %7293 = vmatmul.mubr.bf16.vlgmr.msra.gmra.mrb[24].mxu1 %v14190_v36 }
 0x131   :  { %6974 = vmatpush1.bf16.msra.mxu0 %v11523_v37  ;;  %7302 = vmatpush1.bf16.msra.mxu1 %v11525_v38  ;;  %v14264_v37 = vpop.f32.mrb[21].mxu1 }
 0x132   :  { %6975 = vmatprep.subr.bf16.mxu0 %v11532_v3  ;;  %7303 = vmatprep.subr.bf16.mxu1 %v11534_v39  ;;  %v670_v38 = vpop.f32.mrb[22].mxu1  ;;  %v11563_v3 = vcombine.low %v1001_v19, %v1005_v20  ;;  %v11565_v39 = vcombine.low %v1002_v21, %v1006_v22  ;;  %v1041_v20 = vld [vmem:[%s18253_s0 + $0xa80] sm:$0xff]  ;;  %v1042_v22 = vld [vmem:[%s18253_s0 + $0xa88] sm:$0xff] }
 0x133   :  { %7005 = vmatprep.mubr.bf16.mxu0 %v14204_v46  ;;  %7333 = vmatprep.mubr.bf16.mxu1 %v14204_v46  ;;  %v671_v40 = vpop.f32.mrb[23].mxu1  ;;  %v1045_v21 = vld [vmem:[%s18253_s0 + $0xaa0] sm:$0xff]  ;;  %v1054_v38 = vld [vmem:[%s18253_s0 + $0xae8] sm:$0xff] }
 0x135   :  { %6976 = vmatpush1.bf16.msra.mxu0 %v11531_v47  ;;  %7304 = vmatpush1.bf16.msra.mxu1 %v11533_v48  ;;  %v1021_v47 = vld [vmem:[%s18253_s0 + $0x9e0] sm:$0xff]  ;;  %v1018_v48 = vld [vmem:[%s18253_s0 + $0x9c8] sm:$0xff] }
 0x136   :  { %6977 = vmatprep.subr.bf16.mxu0 %v11540_v49  ;;  %7305 = vmatprep.subr.bf16.mxu1 %v11542_v50  ;;  %v1022_v49 = vld [vmem:[%s18253_s0 + $0x9e8] sm:$0xff]  ;;  %v11571_v50 = vcombine.low %v1009_v29, %v1013_v1  ;;  %v11580_v17 = vcombine.high %v1017_v45, %v1021_v47  ;;  %v1049_v1 = vld [vmem:[%s18253_s0 + $0xac0] sm:$0xff] }
 0x137   :  { %v11582_v53 = vcombine.high %v1018_v48, %v1022_v49  ;;  %v11581_v62 = vcombine.low %v1018_v48, %v1022_v49  ;;  %v11612_v40 = vcombine.high %v1049_v1, %v1053_v31  ;;  %v1062_v48 = vld [vmem:[%s18253_s0 + $0xb28] sm:$0xff]  ;;  %v11611_v49 = vcombine.low %v1049_v1, %v1053_v31 }
 0x139   :  { %6978 = vmatpush1.bf16.msra.mxu0 %v11539_v55  ;;  %7306 = vmatpush1.bf16.msra.mxu1 %v11541_v57  ;;  %v1029_v55 = vld [vmem:[%s18253_s0 + $0xa20] sm:$0xff]  ;;  %v1026_v57 = vld [vmem:[%s18253_s0 + $0xa08] sm:$0xff] }
 0x13a   :  { %6979 = vmatprep.subr.bf16.mxu0 %v11548_v58  ;;  %7307 = vmatprep.subr.bf16.mxu1 %v11550_v61  ;;  %v1030_v58 = vld [vmem:[%s18253_s0 + $0xa28] sm:$0xff]  ;;  %v11579_v61 = vcombine.low %v1017_v45, %v1021_v47  ;;  %v11588_v2 = vcombine.high %v1025_v54, %v1029_v55  ;;  %v11587_v12 = vcombine.low %v1025_v54, %v1029_v55  ;;  %v1061_v45 = vld [vmem:[%s18253_s0 + $0xb20] sm:$0xff] }
 0x13b   :  { %v11590_v4 = vcombine.high %v1026_v57, %v1030_v58  ;;  %v1058_v47 = vld [vmem:[%s18253_s0 + $0xb08] sm:$0xff]  ;;  %v1069_v54 = vld [vmem:[%s18253_s0 + $0xb60] sm:$0xff] }
 0x13c   :  { %v1066_v55 = vld [vmem:[%s18253_s0 + $0xb48] sm:$0xff] }
 0x13d   :  { %6980 = vmatpush1.bf16.msra.mxu0 %v11547_v10  ;;  %7308 = vmatpush1.bf16.msra.mxu1 %v11549_v11  ;;  %v1034_v10 = vld [vmem:[%s18253_s0 + $0xa48] sm:$0xff] }
 0x13e   :  { %6981 = vmatprep.subr.bf16.mxu0 %v11556_v18  ;;  %7309 = vmatprep.subr.bf16.mxu1 %v11558_v41  ;;  %v1038_v11 = vld [vmem:[%s18253_s0 + $0xa68] sm:$0xff]  ;;  %v11589_v18 = vcombine.low %v1026_v57, %v1030_v58  ;;  %v11596_v41 = vcombine.high %v1033_v5, %v1037_v9  ;;  %v14351_v58 = vsub.s32 4, %v13922_v13 }
 0x13f   :  { %v11598_v19 = vcombine.high %v1034_v10, %v1038_v11  ;;  %v1070_v57 = vld [vmem:[%s18253_s0 + $0xb68] sm:$0xff] }
 0x141   :  { %6982 = vmatpush1.bf16.msra.mxu0 %v11555_v23  ;;  %7310 = vmatpush1.bf16.msra.mxu1 %v11557_v24  ;;  %v1046_v23 = vld [vmem:[%s18253_s0 + $0xaa8] sm:$0xff]  ;;  %v11595_v24 = vcombine.low %v1033_v5, %v1037_v9  ;;  %v1073_v5 = vld [vmem:[%s18253_s0 + $0xb80] sm:$0xff] }
 0x142   :  { %6983 = vmatprep.subr.bf16.mxu0 %v11564_v26  ;;  %7311 = vmatprep.subr.bf16.mxu1 %v11566_v28  ;;  %v11597_v26 = vcombine.low %v1034_v10, %v1038_v11  ;;  %v11604_v28 = vcombine.high %v1041_v20, %v1045_v21  ;;  %v11606_v29 = vcombine.high %v1042_v22, %v1046_v23  ;;  %v1077_v9 = vld [vmem:[%s18253_s0 + $0xba0] sm:$0xff]  ;;  %v1074_v10 = vld [vmem:[%s18253_s0 + $0xb88] sm:$0xff] }
 0x143   :  { %v1078_v11 = vld [vmem:[%s18253_s0 + $0xba8] sm:$0xff]  ;;  %v11635_v1 = vcombine.low %v1073_v5, %v1077_v9 }
 0x144   :  { %v11637_v31 = vcombine.low %v1074_v10, %v1078_v11 }
 0x145   :  { %6984 = vmatpush1.bf16.msra.mxu0 %v11563_v3  ;;  %7312 = vmatpush1.bf16.msra.mxu1 %v11565_v39  ;;  %v11603_v3 = vcombine.low %v1041_v20, %v1045_v21  ;;  %v11605_v39 = vcombine.low %v1042_v22, %v1046_v23  ;;  %v11636_v20 = vcombine.high %v1073_v5, %v1077_v9  ;;  %v1081_v22 = vld [vmem:[%s18253_s0 + $0xbc0] sm:$0xff]  ;;  %v1110_v5 = vld [vmem:[%s18253_s0 + $0xca8] sm:$0xff] }
 0x146   :  { %6985 = vmatprep.subr.bf16.mxu0 %v11572_v42  ;;  %7313 = vmatprep.subr.bf16.mxu1 %v11574_v44  ;;  %v11614_v42 = vcombine.high %v1050_v32, %v1054_v38  ;;  %v1057_v44 = vld [vmem:[%s18253_s0 + $0xb00] sm:$0xff]  ;;  %v11638_v21 = vcombine.high %v1074_v10, %v1078_v11 }
 0x147   :  { %v1085_v23 = vld [vmem:[%s18253_s0 + $0xbe0] sm:$0xff] }
 0x149   :  { %6986 = vmatpush1.bf16.msra.mxu0 %v11571_v50  ;;  %7314 = vmatpush1.bf16.msra.mxu1 %v11573_v51  ;;  %v11613_v50 = vcombine.low %v1050_v32, %v1054_v38  ;;  %v11620_v51 = vcombine.high %v1057_v44, %v1061_v45  ;;  %v11644_v32 = vcombine.high %v1081_v22, %v1085_v23 }
 0x14a   :  { %6987 = vmatprep.subr.bf16.mxu0 %v11580_v17  ;;  %7315 = vmatprep.subr.bf16.mxu1 %v11582_v53  ;;  %v11622_v17 = vcombine.high %v1058_v47, %v1062_v48  ;;  %v1065_v53 = vld [vmem:[%s18253_s0 + $0xb40] sm:$0xff] }
 0x14d   :  { %6988 = vmatpush1.bf16.msra.mxu0 %v11579_v61  ;;  %7316 = vmatpush1.bf16.msra.mxu1 %v11581_v62  ;;  %v11619_v61 = vcombine.low %v1057_v44, %v1061_v45  ;;  %v11621_v62 = vcombine.low %v1058_v47, %v1062_v48  ;;  %v11643_v44 = vcombine.low %v1081_v22, %v1085_v23  ;;  %v1118_v22 = vld [vmem:[%s18253_s0 + $0xce8] sm:$0xff] }
 0x14e   :  { %6989 = vmatprep.subr.bf16.mxu0 %v11588_v2  ;;  %7317 = vmatprep.subr.bf16.mxu1 %v11590_v4  ;;  %v11628_v2 = vcombine.high %v1065_v53, %v1069_v54  ;;  %v11630_v4 = vcombine.high %v1066_v55, %v1070_v57 }
 0x151   :  { %6990 = vmatpush1.bf16.msra.mxu0 %v11587_v12  ;;  %7318 = vmatpush1.bf16.msra.mxu1 %v11589_v18  ;;  %v14366_v12 = vsub.s32 7, %v13922_v13  ;;  %v120_v18 = vrot.slane %v13930_v15, %v14351_v58 }
 0x152   :  { %6991 = vmatprep.subr.bf16.mxu0 %v11596_v41  ;;  %7319 = vmatprep.subr.bf16.mxu1 %v11598_v19  ;;  %v11627_v41 = vcombine.low %v1065_v53, %v1069_v54  ;;  %v11629_v19 = vcombine.low %v1066_v55, %v1070_v57 }
 0x155   :  { %6992 = vmatpush1.bf16.msra.mxu0 %v11595_v24  ;;  %7320 = vmatpush1.bf16.msra.mxu1 %v11597_v26  ;;  %v1082_v24 = vld [vmem:[%s18253_s0 + $0xbc8] sm:$0xff] }
 0x156   :  { %6993 = vmatprep.subr.bf16.mxu0 %v11604_v28  ;;  %7321 = vmatprep.subr.bf16.mxu1 %v11606_v29  ;;  %v1086_v26 = vld [vmem:[%s18253_s0 + $0xbe8] sm:$0xff]  ;;  %v132_v28 = vrot.slane %v13930_v15, %v14366_v12  ;;  %v462_v29 = vadd.f32 %v14008_v0, %v120_v18 }
 0x157   :  { %v11646_v38 = vcombine.high %v1082_v24, %v1086_v26  ;;  %v1090_v15 = vld [vmem:[%s18253_s0 + $0xc08] sm:$0xff]  ;;  %v11645_v45 = vcombine.low %v1082_v24, %v1086_v26 }
 0x158   :  { %v1094_v0 = vld [vmem:[%s18253_s0 + $0xc28] sm:$0xff] }
 0x159   :  { %6994 = vmatpush1.bf16.msra.mxu0 %v11603_v3  ;;  %7322 = vmatpush1.bf16.msra.mxu1 %v11605_v39  ;;  %v1089_v3 = vld [vmem:[%s18253_s0 + $0xc00] sm:$0xff]  ;;  %v11654_v48 = vcombine.high %v1090_v15, %v1094_v0  ;;  %v11653_v55 = vcombine.low %v1090_v15, %v1094_v0 }
 0x15a   :  { %6995 = vmatprep.subr.bf16.mxu0 %v11612_v40  ;;  %7323 = vmatprep.subr.bf16.mxu1 %v11614_v42  ;;  %v1093_v39 = vld [vmem:[%s18253_s0 + $0xc20] sm:$0xff]  ;;  %v505_v40 = vadd.f32 %v14163_v8, %v132_v28  ;;  %v677_v42 = vmax.f32 %v462_v29, 0.0  ;;  %v1098_v8 = vld [vmem:[%s18253_s0 + $0xc48] sm:$0xff] }
 0x15b   :  { %v11652_v47 = vcombine.high %v1089_v3, %v1093_v39  ;;  %v11651_v54 = vcombine.low %v1089_v3, %v1093_v39  ;;  %v1121_v29 = vld [vmem:[%s18253_s0 + $0xd00] sm:$0xff] }
 0x15c   :  { %v14410_v53 = vpack.c.bf16 %v677_v42, %v677_v42  ;;  %v1129_v0 = vld [vmem:[%s18253_s0 + $0xd40] sm:$0xff]  ;;  %v1130_v42 = vld [vmem:[%s18253_s0 + $0xd48] sm:$0xff] }
 0x15d   :  { %6996 = vmatpush1.bf16.msra.mxu0 %v11611_v49  ;;  %7324 = vmatpush1.bf16.msra.mxu1 %v11613_v50  ;;  %v1097_v49 = vld [vmem:[%s18253_s0 + $0xc40] sm:$0xff] }
 0x15e   :  { %6997 = vmatprep.subr.bf16.mxu0 %v11620_v51  ;;  %7325 = vmatprep.subr.bf16.mxu1 %v11622_v17  ;;  %v1101_v50 = vld [vmem:[%s18253_s0 + $0xc60] sm:$0xff]  ;;  %v1102_v51 = vld [vmem:[%s18253_s0 + $0xc68] sm:$0xff]  ;;  %v680_v17 = vmax.f32 %v505_v40, 0.0 }
 0x15f   :  { %v11660_v57 = vcombine.high %v1097_v49, %v1101_v50  ;;  %v11659_v10 = vcombine.low %v1097_v49, %v1101_v50  ;;  %v11661_v11 = vcombine.low %v1098_v8, %v1102_v51  ;;  %v1133_v40 = vld [vmem:[%s18253_s0 + $0xd60] sm:$0xff] }
 0x160   :  { %v14424_v9 = vpack.c.bf16 %v680_v17, %v680_v17  ;;  %v1137_v50 = vld [vmem:[%s18253_s0 + $0xd80] sm:$0xff]  ;;  %v1142_v17 = vld [vmem:[%s18253_s0 + $0xda8] sm:$0xff] }
 0x161   :  { %6998 = vmatpush1.bf16.msra.mxu0 %v11619_v61  ;;  %7326 = vmatpush1.bf16.msra.mxu1 %v11621_v62  ;;  %v11662_v61 = vcombine.high %v1098_v8, %v1102_v51  ;;  %v1105_v62 = vld [vmem:[%s18253_s0 + $0xc80] sm:$0xff]  ;;  %v1138_v51 = vld [vmem:[%s18253_s0 + $0xd88] sm:$0xff] }
 0x162   :  { %6999 = vmatprep.subr.bf16.mxu0 %v11628_v2  ;;  %7327 = vmatprep.subr.bf16.mxu1 %v11630_v4  ;;  %v1109_v2 = vld [vmem:[%s18253_s0 + $0xca0] sm:$0xff]  ;;  %v1106_v4 = vld [vmem:[%s18253_s0 + $0xc88] sm:$0xff] }
 0x163   :  { %v11668_v18 = vcombine.high %v1105_v62, %v1109_v2  ;;  %v11667_v23 = vcombine.low %v1105_v62, %v1109_v2  ;;  %v11669_v24 = vcombine.low %v1106_v4, %v1110_v5  ;;  %v1141_v8 = vld [vmem:[%s18253_s0 + $0xda0] sm:$0xff] }
 0x164   :  { %v1145_v62 = vld [vmem:[%s18253_s0 + $0xdc0] sm:$0xff] }
 0x165   :  { %7000 = vmatpush1.bf16.msra.mxu0 %v11627_v41  ;;  %7328 = vmatpush1.bf16.msra.mxu1 %v11629_v19  ;;  %v11670_v41 = vcombine.high %v1106_v4, %v1110_v5  ;;  %v1113_v19 = vld [vmem:[%s18253_s0 + $0xcc0] sm:$0xff]  ;;  %v1146_v4 = vld [vmem:[%s18253_s0 + $0xdc8] sm:$0xff] }
 0x166   :  { %7001 = vmatprep.subr.bf16.mxu0 %v11636_v20  ;;  %7329 = vmatprep.subr.bf16.mxu1 %v11638_v21  ;;  %v1117_v20 = vld [vmem:[%s18253_s0 + $0xce0] sm:$0xff]  ;;  %v1114_v21 = vld [vmem:[%s18253_s0 + $0xcc8] sm:$0xff] }
 0x167   :  { %v11676_v26 = vcombine.high %v1113_v19, %v1117_v20  ;;  %v11678_v28 = vcombine.high %v1114_v21, %v1118_v22  ;;  %v11677_v3 = vcombine.low %v1114_v21, %v1118_v22  ;;  %v1149_v2 = vld [vmem:[%s18253_s0 + $0xde0] sm:$0xff]  ;;  %v1150_v5 = vld [vmem:[%s18253_s0 + $0xde8] sm:$0xff] }
 0x168   :  { %v1154_v21 = vld [vmem:[%s18253_s0 + $0xe08] sm:$0xff] }
 0x169   :  { %7002 = vmatpush1.bf16.msra.mxu0 %v11635_v1  ;;  %7330 = vmatpush1.bf16.msra.mxu1 %v11637_v31  ;;  %v1125_v1 = vld [vmem:[%s18253_s0 + $0xd20] sm:$0xff]  ;;  %v1122_v31 = vld [vmem:[%s18253_s0 + $0xd08] sm:$0xff] }
 0x16a   :  { %7003 = vmatprep.subr.bf16.mxu0 %v11644_v32  ;;  %7331 = vmatprep.subr.bf16.mxu1 %v11646_v38  ;;  %v1126_v32 = vld [vmem:[%s18253_s0 + $0xd28] sm:$0xff]  ;;  %v11675_v38 = vcombine.low %v1113_v19, %v1117_v20  ;;  %v11684_v39 = vcombine.high %v1121_v29, %v1125_v1  ;;  %v1153_v19 = vld [vmem:[%s18253_s0 + $0xe00] sm:$0xff] }
 0x16b   :  { %v11686_v15 = vcombine.high %v1122_v31, %v1126_v32  ;;  %v1157_v20 = vld [vmem:[%s18253_s0 + $0xe20] sm:$0xff]  ;;  %v1158_v22 = vld [vmem:[%s18253_s0 + $0xe28] sm:$0xff] }
 0x16d   :  { %7004 = vmatpush1.bf16.msra.mxu0 %v11643_v44  ;;  %7332 = vmatpush1.bf16.msra.mxu1 %v11645_v45  ;;  %v1134_v44 = vld [vmem:[%s18253_s0 + $0xd68] sm:$0xff]  ;;  %v11683_v45 = vcombine.low %v1121_v29, %v1125_v1  ;;  %v1161_v29 = vld [vmem:[%s18253_s0 + $0xe40] sm:$0xff] }
 0x16e   :  { %7014 = vmatprep.subr.bf16.mxu0 %v11652_v47  ;;  %7342 = vmatprep.subr.bf16.mxu1 %v11654_v48  ;;  %v11685_v47 = vcombine.low %v1122_v31, %v1126_v32  ;;  %v11692_v48 = vcombine.high %v1129_v0, %v1133_v40  ;;  %v11694_v49 = vcombine.high %v1130_v42, %v1134_v44  ;;  %v1165_v1 = vld [vmem:[%s18253_s0 + $0xe60] sm:$0xff]  ;;  %v1162_v31 = vld [vmem:[%s18253_s0 + $0xe48] sm:$0xff] }
 0x16f   :  { %v1166_v32 = vld [vmem:[%s18253_s0 + $0xe68] sm:$0xff] }
 0x170   :  { %7006 = vmatmul.mubr.bf16.vlgmr.msra.gmra.mrb[8].mxu0 %v14410_v53  ;;  %7334 = vmatmul.mubr.bf16.vlgmr.msra.gmra.mrb[24].mxu1 %v14410_v53 }
 0x171   :  { %7015 = vmatpush1.bf16.msra.mxu0 %v11651_v54  ;;  %7343 = vmatpush1.bf16.msra.mxu1 %v11653_v55  ;;  %v11691_v54 = vcombine.low %v1129_v0, %v1133_v40  ;;  %v11693_v55 = vcombine.low %v1130_v42, %v1134_v44  ;;  %v1169_v0 = vld [vmem:[%s18253_s0 + $0xe80] sm:$0xff]  ;;  %v1170_v42 = vld [vmem:[%s18253_s0 + $0xe88] sm:$0xff] }
 0x172   :  { %7016 = vmatprep.subr.bf16.mxu0 %v11660_v57  ;;  %7344 = vmatprep.subr.bf16.mxu1 %v11662_v61  ;;  %v11700_v57 = vcombine.high %v1137_v50, %v1141_v8  ;;  %v11702_v61 = vcombine.high %v1138_v51, %v1142_v17  ;;  %v1173_v40 = vld [vmem:[%s18253_s0 + $0xea0] sm:$0xff]  ;;  %v1174_v44 = vld [vmem:[%s18253_s0 + $0xea8] sm:$0xff] }
 0x173   :  { %7046 = vmatprep.mubr.bf16.mxu0 %v14424_v9  ;;  %7374 = vmatprep.mubr.bf16.mxu1 %v14424_v9 }
 0x175   :  { %7017 = vmatpush1.bf16.msra.mxu0 %v11659_v10  ;;  %7345 = vmatpush1.bf16.msra.mxu1 %v11661_v11  ;;  %v11699_v10 = vcombine.low %v1137_v50, %v1141_v8  ;;  %v11701_v11 = vcombine.low %v1138_v51, %v1142_v17  ;;  %v1177_v50 = vld [vmem:[%s18253_s0 + $0xec0] sm:$0xff]  ;;  %v1178_v51 = vld [vmem:[%s18253_s0 + $0xec8] sm:$0xff] }
 0x176   :  { %7018 = vmatprep.subr.bf16.mxu0 %v11668_v18  ;;  %7346 = vmatprep.subr.bf16.mxu1 %v11670_v41  ;;  %v11708_v18 = vcombine.high %v1145_v62, %v1149_v2  ;;  %v11710_v41 = vcombine.high %v1146_v4, %v1150_v5  ;;  %v1181_v8 = vld [vmem:[%s18253_s0 + $0xee0] sm:$0xff]  ;;  %v1182_v17 = vld [vmem:[%s18253_s0 + $0xee8] sm:$0xff] }
 0x179   :  { %7019 = vmatpush1.bf16.msra.mxu0 %v11667_v23  ;;  %7347 = vmatpush1.bf16.msra.mxu1 %v11669_v24  ;;  %v11707_v23 = vcombine.low %v1145_v62, %v1149_v2  ;;  %v11709_v24 = vcombine.low %v1146_v4, %v1150_v5  ;;  %v1185_v62 = vld [vmem:[%s18253_s0 + $0xf00] sm:$0xff]  ;;  %v1186_v4 = vld [vmem:[%s18253_s0 + $0xf08] sm:$0xff] }
 0x17a   :  { %7020 = vmatprep.subr.bf16.mxu0 %v11676_v26  ;;  %7348 = vmatprep.subr.bf16.mxu1 %v11678_v28  ;;  %v11716_v26 = vcombine.high %v1153_v19, %v1157_v20  ;;  %v11718_v28 = vcombine.high %v1154_v21, %v1158_v22  ;;  %v1189_v2 = vld [vmem:[%s18253_s0 + $0xf20] sm:$0xff]  ;;  %v1190_v5 = vld [vmem:[%s18253_s0 + $0xf28] sm:$0xff] }
 0x17d   :  { %7021 = vmatpush1.bf16.msra.mxu0 %v11675_v38  ;;  %7349 = vmatpush1.bf16.msra.mxu1 %v11677_v3  ;;  %v11715_v38 = vcombine.low %v1153_v19, %v1157_v20  ;;  %v11717_v3 = vcombine.low %v1154_v21, %v1158_v22  ;;  %v1193_v19 = vld [vmem:[%s18253_s0 + $0xf40] sm:$0xff]  ;;  %v1194_v21 = vld [vmem:[%s18253_s0 + $0xf48] sm:$0xff] }
 0x17e   :  { %7022 = vmatprep.subr.bf16.mxu0 %v11684_v39  ;;  %7350 = vmatprep.subr.bf16.mxu1 %v11686_v15  ;;  %v11724_v39 = vcombine.high %v1161_v29, %v1165_v1  ;;  %v11726_v15 = vcombine.high %v1162_v31, %v1166_v32  ;;  %v1197_v20 = vld [vmem:[%s18253_s0 + $0xf60] sm:$0xff]  ;;  %v1198_v22 = vld [vmem:[%s18253_s0 + $0xf68] sm:$0xff] }
 0x181   :  { %7023 = vmatpush1.bf16.msra.mxu0 %v11683_v45  ;;  %7351 = vmatpush1.bf16.msra.mxu1 %v11685_v47  ;;  %v11723_v45 = vcombine.low %v1161_v29, %v1165_v1  ;;  %v11725_v47 = vcombine.low %v1162_v31, %v1166_v32  ;;  %v11758_v29 = vcombine.high %v1194_v21, %v1198_v22  ;;  %v1201_v1 = vld [vmem:[%s18253_s0 + $0xf80] sm:$0xff]  ;;  %v1206_v32 = vld [vmem:[%s18253_s0 + $0xfa8] sm:$0xff] }
 0x182   :  { %7024 = vmatprep.subr.bf16.mxu0 %v11692_v48  ;;  %7352 = vmatprep.subr.bf16.mxu1 %v11694_v49  ;;  %v11732_v48 = vcombine.high %v1169_v0, %v1173_v40  ;;  %v11734_v49 = vcombine.high %v1170_v42, %v1174_v44  ;;  %v1205_v31 = vld [vmem:[%s18253_s0 + $0xfa0] sm:$0xff] }
 0x185   :  { %7025 = vmatpush1.bf16.msra.mxu0 %v11691_v54  ;;  %7353 = vmatpush1.bf16.msra.mxu1 %v11693_v55  ;;  %v11731_v54 = vcombine.low %v1169_v0, %v1173_v40  ;;  %v11733_v55 = vcombine.low %v1170_v42, %v1174_v44  ;;  %v11757_v0 = vcombine.low %v1194_v21, %v1198_v22  ;;  %v1209_v44 = vld [vmem:[%s18253_s0 + $0xfc0] sm:$0xff]  ;;  %v1230_v21 = vld [vmem:[%s18253_s0 + $0x1068] sm:$0xff] }
 0x186   :  { %7026 = vmatprep.subr.bf16.mxu0 %v11700_v57  ;;  %7354 = vmatprep.subr.bf16.mxu1 %v11702_v61  ;;  %v11740_v57 = vcombine.high %v1177_v50, %v1181_v8  ;;  %v11742_v61 = vcombine.high %v1178_v51, %v1182_v17  ;;  %v11764_v40 = vcombine.high %v1201_v1, %v1205_v31 }
 0x189   :  { %7027 = vmatpush1.bf16.msra.mxu0 %v11699_v10  ;;  %7355 = vmatpush1.bf16.msra.mxu1 %v11701_v11  ;;  %v11739_v10 = vcombine.low %v1177_v50, %v1181_v8  ;;  %v11741_v11 = vcombine.low %v1178_v51, %v1182_v17  ;;  %v11763_v8 = vcombine.low %v1201_v1, %v1205_v31  ;;  %v1233_v1 = vld [vmem:[%s18253_s0 + $0x1080] sm:$0xff] }
 0x18a   :  { %7028 = vmatprep.subr.bf16.mxu0 %v11708_v18  ;;  %7356 = vmatprep.subr.bf16.mxu1 %v11710_v41  ;;  %v11748_v18 = vcombine.high %v1185_v62, %v1189_v2  ;;  %v11750_v41 = vcombine.high %v1186_v4, %v1190_v5  ;;  %v1237_v31 = vld [vmem:[%s18253_s0 + $0x10a0] sm:$0xff] }
 0x18d   :  { %7029 = vmatpush1.bf16.msra.mxu0 %v11707_v23  ;;  %7357 = vmatpush1.bf16.msra.mxu1 %v11709_v24  ;;  %v14563_v23 = vsub.s32 6, %v13922_v13  ;;  %v11747_v24 = vcombine.low %v1185_v62, %v1189_v2  ;;  %v1202_v13 = vld [vmem:[%s18253_s0 + $0xf88] sm:$0xff] }
 0x18e   :  { %7030 = vmatprep.subr.bf16.mxu0 %v11716_v26  ;;  %7358 = vmatprep.subr.bf16.mxu1 %v11718_v28  ;;  %v11749_v26 = vcombine.low %v1186_v4, %v1190_v5  ;;  %v11756_v28 = vcombine.high %v1193_v19, %v1197_v20  ;;  %v11766_v42 = vcombine.high %v1202_v13, %v1206_v32  ;;  %v1222_v62 = vld [vmem:[%s18253_s0 + $0x1028] sm:$0xff] }
 0x18f   :  { %v11765_v51 = vcombine.low %v1202_v13, %v1206_v32  ;;  %v1234_v13 = vld [vmem:[%s18253_s0 + $0x1088] sm:$0xff] }
 0x190   :  { %v1238_v32 = vld [vmem:[%s18253_s0 + $0x10a8] sm:$0xff] }
 0x191   :  { %7031 = vmatpush1.bf16.msra.mxu0 %v11715_v38  ;;  %7359 = vmatpush1.bf16.msra.mxu1 %v11717_v3  ;;  %v14580_v38 = vld [vmem:[%s18254_s29 + $0x8] sm:$0xff]  ;;  %v13487_v3 = vld [vmem:[%s18254_s29] sm:$0xff] }
 0x192   :  { %7032 = vmatprep.subr.bf16.mxu0 %v11724_v39  ;;  %7360 = vmatprep.subr.bf16.mxu1 %v11726_v15  ;;  %v128_v39 = vrot.slane %v13487_v3, %v14563_v23  ;;  %v11755_v15 = vcombine.low %v1193_v19, %v1197_v20  ;;  %v1229_v19 = vld [vmem:[%s18253_s0 + $0x1060] sm:$0xff]  ;;  %v1226_v20 = vld [vmem:[%s18253_s0 + $0x1048] sm:$0xff] }
 0x194   :  { %v503_v50 = vadd.f32 %v14149_v59, %v128_v39  ;;  %v1218_v59 = vld [vmem:[%s18253_s0 + $0x1008] sm:$0xff]  ;;  %v11789_v39 = vcombine.low %v1226_v20, %v1230_v21 }
 0x195   :  { %7033 = vmatpush1.bf16.msra.mxu0 %v11723_v45  ;;  %7361 = vmatpush1.bf16.msra.mxu1 %v11725_v47  ;;  %v140_v45 = vrot.slane %v14580_v38, %v13933_v16  ;;  %v1213_v47 = vld [vmem:[%s18253_s0 + $0xfe0] sm:$0xff] }
 0x196   :  { %7034 = vmatprep.subr.bf16.mxu0 %v11732_v48  ;;  %7362 = vmatprep.subr.bf16.mxu1 %v11734_v49  ;;  %v1210_v48 = vld [vmem:[%s18253_s0 + $0xfc8] sm:$0xff]  ;;  %v11772_v17 = vcombine.high %v1209_v44, %v1213_v47  ;;  %v679_v2 = vmax.f32 %v503_v50, 0.0  ;;  %v11771_v4 = vcombine.low %v1209_v44, %v1213_v47  ;;  %v11795_v47 = vcombine.low %v1233_v1, %v1237_v31 }
 0x197   :  { %v1214_v49 = vld [vmem:[%s18253_s0 + $0xfe8] sm:$0xff] }
 0x198   :  { %v11773_v5 = vcombine.low %v1210_v48, %v1214_v49  ;;  %v1242_v44 = vld [vmem:[%s18253_s0 + $0x10c8] sm:$0xff] }
 0x199   :  { %7035 = vmatpush1.bf16.msra.mxu0 %v11731_v54  ;;  %7363 = vmatpush1.bf16.msra.mxu1 %v11733_v55  ;;  %v11774_v54 = vcombine.high %v1210_v48, %v1214_v49  ;;  %v1217_v55 = vld [vmem:[%s18253_s0 + $0x1000] sm:$0xff]  ;;  %v11797_v48 = vcombine.low %v1234_v13, %v1238_v32 }
 0x19a   :  { %7036 = vmatprep.subr.bf16.mxu0 %v11740_v57  ;;  %7364 = vmatprep.subr.bf16.mxu1 %v11742_v61  ;;  %v546_v57 = vadd.f32 %v14012_v6, %v140_v45  ;;  %v1221_v61 = vld [vmem:[%s18253_s0 + $0x1020] sm:$0xff]  ;;  %v1246_v45 = vld [vmem:[%s18253_s0 + $0x10e8] sm:$0xff] }
 0x19b   :  { %v11780_v6 = vcombine.high %v1217_v55, %v1221_v61  ;;  %v11779_v22 = vcombine.low %v1217_v55, %v1221_v61  ;;  %v11806_v50 = vcombine.high %v1242_v44, %v1246_v45 }
 0x19d   :  { %7037 = vmatpush1.bf16.msra.mxu0 %v11739_v10  ;;  %7365 = vmatpush1.bf16.msra.mxu1 %v11741_v11  ;;  %v11782_v10 = vcombine.high %v1218_v59, %v1222_v62  ;;  %v682_v11 = vmax.f32 %v546_v57, 0.0  ;;  %v11805_v57 = vcombine.low %v1242_v44, %v1246_v45  ;;  %v1285_v44 = vld [vmem:[%s18253_s0 + $0x1220] sm:$0xff]  ;;  %v1282_v45 = vld [vmem:[%s18253_s0 + $0x1208] sm:$0xff] }
 0x19e   :  { %7038 = vmatprep.subr.bf16.mxu0 %v11748_v18  ;;  %7366 = vmatprep.subr.bf16.mxu1 %v11750_v41  ;;  %v1225_v18 = vld [vmem:[%s18253_s0 + $0x1040] sm:$0xff]  ;;  %v14617_v41 = vpack.c.bf16 %v679_v2, %v679_v2 }
 0x19f   :  { %v11787_v3 = vcombine.low %v1225_v18, %v1229_v19  ;;  %v1261_v2 = vld [vmem:[%s18253_s0 + $0x1160] sm:$0xff] }
 0x1a1   :  { %7039 = vmatpush1.bf16.msra.mxu0 %v11747_v24  ;;  %7367 = vmatpush1.bf16.msra.mxu1 %v11749_v26  ;;  %v11781_v24 = vcombine.low %v1218_v59, %v1222_v62  ;;  %v14628_v26 = vpack.c.bf16 %v682_v11, %v682_v11  ;;  %v1257_v62 = vld [vmem:[%s18253_s0 + $0x1140] sm:$0xff] }
 0x1a2   :  { %7040 = vmatprep.subr.bf16.mxu0 %v11756_v28  ;;  %7368 = vmatprep.subr.bf16.mxu1 %v11758_v29  ;;  %v11788_v28 = vcombine.high %v1225_v18, %v1229_v19  ;;  %v11790_v29 = vcombine.high %v1226_v20, %v1230_v21  ;;  %v11820_v11 = vcombine.high %v1257_v62, %v1261_v2  ;;  %v1265_v19 = vld [vmem:[%s18253_s0 + $0x1180] sm:$0xff]  ;;  %v1266_v21 = vld [vmem:[%s18253_s0 + $0x1188] sm:$0xff] }
 0x1a3   :  { %v1269_v20 = vld [vmem:[%s18253_s0 + $0x11a0] sm:$0xff] }
 0x1a5   :  { %7041 = vmatpush1.bf16.msra.mxu0 %v11755_v15  ;;  %7369 = vmatpush1.bf16.msra.mxu1 %v11757_v0  ;;  %v11796_v15 = vcombine.high %v1233_v1, %v1237_v31  ;;  %v11798_v0 = vcombine.high %v1234_v13, %v1238_v32  ;;  %v1273_v31 = vld [vmem:[%s18253_s0 + $0x11c0] sm:$0xff]  ;;  %v1274_v32 = vld [vmem:[%s18253_s0 + $0x11c8] sm:$0xff] }
 0x1a6   :  { %7042 = vmatprep.subr.bf16.mxu0 %v11764_v40  ;;  %7370 = vmatprep.subr.bf16.mxu1 %v11766_v42  ;;  %v1241_v40 = vld [vmem:[%s18253_s0 + $0x10c0] sm:$0xff] }
 0x1a7   :  { %v1245_v42 = vld [vmem:[%s18253_s0 + $0x10e0] sm:$0xff] }
 0x1a8   :  { %v11804_v49 = vcombine.high %v1241_v40, %v1245_v42  ;;  %v11803_v55 = vcombine.low %v1241_v40, %v1245_v42  ;;  %v1277_v13 = vld [vmem:[%s18253_s0 + $0x11e0] sm:$0xff] }
 0x1a9   :  { %7043 = vmatpush1.bf16.msra.mxu0 %v11763_v8  ;;  %7371 = vmatpush1.bf16.msra.mxu1 %v11765_v51  ;;  %v1249_v8 = vld [vmem:[%s18253_s0 + $0x1100] sm:$0xff] }
 0x1aa   :  { %7044 = vmatprep.subr.bf16.mxu0 %v11772_v17  ;;  %7372 = vmatprep.subr.bf16.mxu1 %v11774_v54  ;;  %v1253_v51 = vld [vmem:[%s18253_s0 + $0x1120] sm:$0xff]  ;;  %v1250_v17 = vld [vmem:[%s18253_s0 + $0x1108] sm:$0xff] }
 0x1ab   :  { %v1254_v54 = vld [vmem:[%s18253_s0 + $0x1128] sm:$0xff]  ;;  %v11812_v61 = vcombine.high %v1249_v8, %v1253_v51  ;;  %v1281_v42 = vld [vmem:[%s18253_s0 + $0x1200] sm:$0xff] }
 0x1ac   :  { %v11814_v59 = vcombine.high %v1250_v17, %v1254_v54 }
 0x1ad   :  { %7045 = vmatpush1.bf16.msra.mxu0 %v11771_v4  ;;  %7373 = vmatpush1.bf16.msra.mxu1 %v11773_v5  ;;  %v1258_v4 = vld [vmem:[%s18253_s0 + $0x1148] sm:$0xff] }
 0x1ae   :  { %7055 = vmatprep.subr.bf16.mxu0 %v11780_v6  ;;  %7383 = vmatprep.subr.bf16.mxu1 %v11782_v10  ;;  %v1262_v5 = vld [vmem:[%s18253_s0 + $0x1168] sm:$0xff]  ;;  %v11811_v6 = vcombine.low %v1249_v8, %v1253_v51  ;;  %v11813_v10 = vcombine.low %v1250_v17, %v1254_v54  ;;  %v1289_v51 = vld [vmem:[%s18253_s0 + $0x1240] sm:$0xff] }
 0x1af   :  { %v11822_v18 = vcombine.high %v1258_v4, %v1262_v5  ;;  %v1293_v17 = vld [vmem:[%s18253_s0 + $0x1260] sm:$0xff]  ;;  %v1290_v54 = vld [vmem:[%s18253_s0 + $0x1248] sm:$0xff] }
 0x1b0   :  { %7047 = vmatmul.mubr.bf16.vlgmr.msra.gmra.mrb[8].mxu0 %v14617_v41  ;;  %7375 = vmatmul.mubr.bf16.vlgmr.msra.gmra.mrb[24].mxu1 %v14617_v41 }
 0x1b1   :  { %7056 = vmatpush1.bf16.msra.mxu0 %v11779_v22  ;;  %7087 = vmatprep.mubr.bf16.mxu0 %v14628_v26  ;;  %v1270_v22 = vld [vmem:[%s18253_s0 + $0x11a8] sm:$0xff] }
 0x1b2   :  { %7384 = vmatpush1.bf16.msra.mxu1 %v11781_v24  ;;  %7415 = vmatprep.mubr.bf16.mxu1 %v14628_v26  ;;  %v11819_v24 = vcombine.low %v1257_v62, %v1261_v2  ;;  %v11830_v1 = vcombine.high %v1266_v21, %v1270_v22  ;;  %v1297_v2 = vld [vmem:[%s18253_s0 + $0x1280] sm:$0xff] }
 0x1b3   :  { %7057 = vmatprep.subr.bf16.mxu0 %v11788_v28  ;;  %7385 = vmatprep.subr.bf16.mxu1 %v11790_v29  ;;  %v11821_v28 = vcombine.low %v1258_v4, %v1262_v5  ;;  %v11828_v29 = vcombine.high %v1265_v19, %v1269_v20  ;;  %v1301_v4 = vld [vmem:[%s18253_s0 + $0x12a0] sm:$0xff]  ;;  %v1298_v5 = vld [vmem:[%s18253_s0 + $0x1288] sm:$0xff] }
 0x1b5   :  { %7058 = vmatpush1.bf16.msra.mxu0 %v11787_v3  ;;  %v1278_v3 = vld [vmem:[%s18253_s0 + $0x11e8] sm:$0xff] }
 0x1b6   :  { %7386 = vmatpush1.bf16.msra.mxu1 %v11789_v39  ;;  %7059 = vmatprep.subr.bf16.mxu0 %v11796_v15  ;;  %v11827_v39 = vcombine.low %v1265_v19, %v1269_v20  ;;  %v11829_v15 = vcombine.low %v1266_v21, %v1270_v22  ;;  %v11838_v40 = vcombine.high %v1274_v32, %v1278_v3  ;;  %v1305_v20 = vld [vmem:[%s18253_s0 + $0x12c0] sm:$0xff]  ;;  %v1306_v22 = vld [vmem:[%s18253_s0 + $0x12c8] sm:$0xff] }
 0x1b7   :  { %7387 = vmatprep.subr.bf16.mxu1 %v11798_v0  ;;  %v11836_v0 = vcombine.high %v1273_v31, %v1277_v13  ;;  %v1309_v21 = vld [vmem:[%s18253_s0 + $0x12e0] sm:$0xff] }
 0x1b9   :  { %7060 = vmatpush1.bf16.msra.mxu0 %v11795_v47  ;;  %v1286_v47 = vld [vmem:[%s18253_s0 + $0x1228] sm:$0xff] }
 0x1ba   :  { %7388 = vmatpush1.bf16.msra.mxu1 %v11797_v48  ;;  %7061 = vmatprep.subr.bf16.mxu0 %v11804_v49  ;;  %v11835_v48 = vcombine.low %v1273_v31, %v1277_v13  ;;  %v11837_v49 = vcombine.low %v1274_v32, %v1278_v3  ;;  %v11846_v8 = vcombine.high %v1282_v45, %v1286_v47  ;;  %v1313_v13 = vld [vmem:[%s18253_s0 + $0x1300] sm:$0xff]  ;;  %v1314_v3 = vld [vmem:[%s18253_s0 + $0x1308] sm:$0xff] }
 0x1bb   :  { %7389 = vmatprep.subr.bf16.mxu1 %v11806_v50  ;;  %v11844_v50 = vcombine.high %v1281_v42, %v1285_v44  ;;  %v1317_v32 = vld [vmem:[%s18253_s0 + $0x1320] sm:$0xff] }
 0x1bd   :  { %7062 = vmatpush1.bf16.msra.mxu0 %v11803_v55  ;;  %v1294_v55 = vld [vmem:[%s18253_s0 + $0x1268] sm:$0xff] }
 0x1be   :  { %7390 = vmatpush1.bf16.msra.mxu1 %v11805_v57  ;;  %7063 = vmatprep.subr.bf16.mxu0 %v11812_v61  ;;  %v11843_v57 = vcombine.low %v1281_v42, %v1285_v44  ;;  %v11845_v61 = vcombine.low %v1282_v45, %v1286_v47  ;;  %v11854_v62 = vcombine.high %v1290_v54, %v1294_v55  ;;  %v1321_v44 = vld [vmem:[%s18253_s0 + $0x1340] sm:$0xff]  ;;  %v1322_v47 = vld [vmem:[%s18253_s0 + $0x1348] sm:$0xff] }
 0x1bf   :  { %7391 = vmatprep.subr.bf16.mxu1 %v11814_v59  ;;  %v11852_v59 = vcombine.high %v1289_v51, %v1293_v17  ;;  %v1325_v45 = vld [vmem:[%s18253_s0 + $0x1360] sm:$0xff] }
 0x1c1   :  { %7064 = vmatpush1.bf16.msra.mxu0 %v11811_v6  ;;  %v1302_v6 = vld [vmem:[%s18253_s0 + $0x12a8] sm:$0xff] }
 0x1c2   :  { %7392 = vmatpush1.bf16.msra.mxu1 %v11813_v10  ;;  %7065 = vmatprep.subr.bf16.mxu0 %v11820_v11  ;;  %v11851_v10 = vcombine.low %v1289_v51, %v1293_v17  ;;  %v11853_v11 = vcombine.low %v1290_v54, %v1294_v55  ;;  %v11862_v19 = vcombine.high %v1298_v5, %v1302_v6  ;;  %v1329_v17 = vld [vmem:[%s18253_s0 + $0x1380] sm:$0xff]  ;;  %v1330_v55 = vld [vmem:[%s18253_s0 + $0x1388] sm:$0xff] }
 0x1c3   :  { %7393 = vmatprep.subr.bf16.mxu1 %v11822_v18  ;;  %v11860_v18 = vcombine.high %v1297_v2, %v1301_v4  ;;  %v1333_v54 = vld [vmem:[%s18253_s0 + $0x13a0] sm:$0xff] }
 0x1c5   :  { %7066 = vmatpush1.bf16.msra.mxu0 %v11819_v24  ;;  %v1310_v24 = vld [vmem:[%s18253_s0 + $0x12e8] sm:$0xff] }
 0x1c6   :  { %7394 = vmatpush1.bf16.msra.mxu1 %v11821_v28  ;;  %7067 = vmatprep.subr.bf16.mxu0 %v11828_v29  ;;  %v11859_v28 = vcombine.low %v1297_v2, %v1301_v4  ;;  %v11861_v29 = vcombine.low %v1298_v5, %v1302_v6  ;;  %v11870_v31 = vcombine.high %v1306_v22, %v1310_v24  ;;  %v1337_v5 = vld [vmem:[%s18253_s0 + $0x13c0] sm:$0xff] }
 0x1c7   :  { %7395 = vmatprep.subr.bf16.mxu1 %v11830_v1  ;;  %v11868_v1 = vcombine.high %v1305_v20, %v1309_v21  ;;  %v11892_v2 = vcombine.high %v1329_v17, %v1333_v54  ;;  %v1341_v6 = vld [vmem:[%s18253_s0 + $0x13e0] sm:$0xff] }
 0x1c9   :  { %7068 = vmatpush1.bf16.msra.mxu0 %v11827_v39  ;;  %v1318_v39 = vld [vmem:[%s18253_s0 + $0x1328] sm:$0xff] }
 0x1ca   :  { %7396 = vmatpush1.bf16.msra.mxu1 %v11829_v15  ;;  %7069 = vmatprep.subr.bf16.mxu0 %v11836_v0  ;;  %v11867_v15 = vcombine.low %v1305_v20, %v1309_v21  ;;  %v11869_v0 = vcombine.low %v1306_v22, %v1310_v24  ;;  %v11878_v42 = vcombine.high %v1314_v3, %v1318_v39 }
 0x1cb   :  { %7397 = vmatprep.subr.bf16.mxu1 %v11838_v40  ;;  %v11876_v40 = vcombine.high %v1313_v13, %v1317_v32  ;;  %v11900_v22 = vcombine.high %v1337_v5, %v1341_v6 }
 0x1cd   :  { %7070 = vmatpush1.bf16.msra.mxu0 %v11835_v48  ;;  %v1326_v48 = vld [vmem:[%s18253_s0 + $0x1368] sm:$0xff] }
 0x1ce   :  { %7398 = vmatpush1.bf16.msra.mxu1 %v11837_v49  ;;  %7071 = vmatprep.subr.bf16.mxu0 %v11844_v50  ;;  %v11875_v49 = vcombine.low %v1313_v13, %v1317_v32  ;;  %v11877_v50 = vcombine.low %v1314_v3, %v1318_v39  ;;  %v11886_v51 = vcombine.high %v1322_v47, %v1326_v48 }
 0x1cf   :  { %7399 = vmatprep.subr.bf16.mxu1 %v11846_v8  ;;  %v11884_v8 = vcombine.high %v1321_v44, %v1325_v45  ;;  %v11899_v13 = vcombine.low %v1337_v5, %v1341_v6  ;;  %v1370_v5 = vld [vmem:[%s18253_s0 + $0x14c8] sm:$0xff] }
 0x1d0   :  { %v1374_v6 = vld [vmem:[%s18253_s0 + $0x14e8] sm:$0xff] }
 0x1d1   :  { %7072 = vmatpush1.bf16.msra.mxu0 %v11843_v57  ;;  %v1334_v57 = vld [vmem:[%s18253_s0 + $0x13a8] sm:$0xff] }
 0x1d2   :  { %7400 = vmatpush1.bf16.msra.mxu1 %v11845_v61  ;;  %7073 = vmatprep.subr.bf16.mxu0 %v11852_v59  ;;  %v11883_v61 = vcombine.low %v1321_v44, %v1325_v45  ;;  %v136_v59 = vrot.slane %v14580_v38, %v13925_v14  ;;  %v11894_v4 = vcombine.high %v1330_v55, %v1334_v57  ;;  %v1354_v44 = vld [vmem:[%s18253_s0 + $0x1448] sm:$0xff] }
 0x1d3   :  { %7401 = vmatprep.subr.bf16.mxu1 %v11854_v62  ;;  %v11885_v62 = vcombine.low %v1322_v47, %v1326_v48  ;;  %v11893_v21 = vcombine.low %v1330_v55, %v1334_v57  ;;  %v1358_v45 = vld [vmem:[%s18253_s0 + $0x1468] sm:$0xff] }
 0x1d4   :  { %v544_v20 = vadd.f32 %v13995_v60, %v136_v59  ;;  %v1346_v60 = vld [vmem:[%s18253_s0 + $0x1408] sm:$0xff] }
 0x1d5   :  { %7074 = vmatpush1.bf16.msra.mxu0 %v11851_v10  ;;  %v148_v10 = vrot.slane %v14580_v38, %v13940_v25  ;;  %v1366_v55 = vld [vmem:[%s18253_s0 + $0x14a8] sm:$0xff] }
 0x1d6   :  { %7402 = vmatpush1.bf16.msra.mxu1 %v11853_v11  ;;  %7075 = vmatprep.subr.bf16.mxu0 %v11860_v18  ;;  %v1338_v11 = vld [vmem:[%s18253_s0 + $0x13c8] sm:$0xff]  ;;  %v681_v32 = vmax.f32 %v544_v20, 0.0  ;;  %v1377_v20 = vld [vmem:[%s18253_s0 + $0x1500] sm:$0xff] }
 0x1d7   :  { %7403 = vmatprep.subr.bf16.mxu1 %v11862_v19  ;;  %v1342_v18 = vld [vmem:[%s18253_s0 + $0x13e8] sm:$0xff]  ;;  %v11891_v19 = vcombine.low %v1329_v17, %v1333_v54  ;;  %v11918_v17 = vcombine.high %v1354_v44, %v1358_v45 }
 0x1d8   :  { %v11902_v24 = vcombine.high %v1338_v11, %v1342_v18  ;;  %v11901_v3 = vcombine.low %v1338_v11, %v1342_v18  ;;  %v14832_v47 = vpack.c.bf16 %v681_v32, %v681_v32  ;;  %v1362_v54 = vld [vmem:[%s18253_s0 + $0x1488] sm:$0xff] }
 0x1d9   :  { %7076 = vmatpush1.bf16.msra.mxu0 %v11859_v28  ;;  %v1345_v28 = vld [vmem:[%s18253_s0 + $0x1400] sm:$0xff]  ;;  %v11925_v11 = vcombine.low %v1362_v54, %v1366_v55  ;;  %v1386_v32 = vld [vmem:[%s18253_s0 + $0x1548] sm:$0xff] }
 0x1da   :  { %7404 = vmatpush1.bf16.msra.mxu1 %v11861_v29  ;;  %7077 = vmatprep.subr.bf16.mxu0 %v11868_v1  ;;  %v1349_v29 = vld [vmem:[%s18253_s0 + $0x1420] sm:$0xff]  ;;  %v587_v1 = vadd.f32 %v14236_v7, %v148_v10 }
 0x1db   :  { %7405 = vmatprep.subr.bf16.mxu1 %v11870_v31  ;;  %v1350_v31 = vld [vmem:[%s18253_s0 + $0x1428] sm:$0xff]  ;;  %v11908_v39 = vcombine.high %v1345_v28, %v1349_v29  ;;  %v1353_v7 = vld [vmem:[%s18253_s0 + $0x1440] sm:$0xff] }
 0x1dc   :  { %v11909_v48 = vcombine.low %v1346_v60, %v1350_v31 }
 0x1dd   :  { %7078 = vmatpush1.bf16.msra.mxu0 %v11867_v15  ;;  %v11910_v15 = vcombine.high %v1346_v60, %v1350_v31  ;;  %v1385_v31 = vld [vmem:[%s18253_s0 + $0x1540] sm:$0xff] }
 0x1de   :  { %7406 = vmatpush1.bf16.msra.mxu1 %v11869_v0  ;;  %7079 = vmatprep.subr.bf16.mxu0 %v11876_v40  ;;  %v684_v0 = vmax.f32 %v587_v1, 0.0  ;;  %v1357_v40 = vld [vmem:[%s18253_s0 + $0x1460] sm:$0xff] }
 0x1df   :  { %7407 = vmatprep.subr.bf16.mxu1 %v11878_v42  ;;  %v11907_v42 = vcombine.low %v1345_v28, %v1349_v29  ;;  %v11915_v57 = vcombine.low %v1353_v7, %v1357_v40  ;;  %v11933_v29 = vcombine.low %v1370_v5, %v1374_v6 }
 0x1e1   :  { %7080 = vmatpush1.bf16.msra.mxu0 %v11875_v49  ;;  %v11916_v49 = vcombine.high %v1353_v7, %v1357_v40  ;;  %v1393_v40 = vld [vmem:[%s18253_s0 + $0x1580] sm:$0xff] }
 0x1e2   :  { %7408 = vmatpush1.bf16.msra.mxu1 %v11877_v50  ;;  %7081 = vmatprep.subr.bf16.mxu0 %v11884_v8  ;;  %v1361_v50 = vld [vmem:[%s18253_s0 + $0x1480] sm:$0xff] }
 0x1e3   :  { %7409 = vmatprep.subr.bf16.mxu1 %v11886_v51  ;;  %v1365_v8 = vld [vmem:[%s18253_s0 + $0x14a0] sm:$0xff]  ;;  %v14840_v51 = vpack.c.bf16 %v684_v0, %v684_v0 }
 0x1e4   :  { %v11924_v59 = vcombine.high %v1361_v50, %v1365_v8  ;;  %v11923_v10 = vcombine.low %v1361_v50, %v1365_v8 }
 0x1e5   :  { %7082 = vmatpush1.bf16.msra.mxu0 %v11883_v61  ;;  %v11917_v61 = vcombine.low %v1354_v44, %v1358_v45  ;;  %v1394_v44 = vld [vmem:[%s18253_s0 + $0x1588] sm:$0xff] }
 0x1e6   :  { %7410 = vmatpush1.bf16.msra.mxu1 %v11885_v62  ;;  %7083 = vmatprep.subr.bf16.mxu0 %v11892_v2  ;;  %v11926_v62 = vcombine.high %v1362_v54, %v1366_v55  ;;  %v1369_v2 = vld [vmem:[%s18253_s0 + $0x14c0] sm:$0xff]  ;;  %v1398_v45 = vld [vmem:[%s18253_s0 + $0x15a8] sm:$0xff] }
 0x1e7   :  { %7411 = vmatprep.subr.bf16.mxu1 %v11894_v4  ;;  %v1373_v4 = vld [vmem:[%s18253_s0 + $0x14e0] sm:$0xff]  ;;  %v11958_v8 = vcombine.high %v1394_v44, %v1398_v45  ;;  %v1402_v55 = vld [vmem:[%s18253_s0 + $0x15c8] sm:$0xff] }
 0x1e8   :  { %v11932_v18 = vcombine.high %v1369_v2, %v1373_v4  ;;  %v11931_v28 = vcombine.low %v1369_v2, %v1373_v4  ;;  %v1405_v54 = vld [vmem:[%s18253_s0 + $0x15e0] sm:$0xff] }
 0x1e9   :  { %7084 = vmatpush1.bf16.msra.mxu0 %v11891_v19  ;;  %v11934_v19 = vcombine.high %v1370_v5, %v1374_v6  ;;  %v1409_v4 = vld [vmem:[%s18253_s0 + $0x1600] sm:$0xff]  ;;  %v1410_v6 = vld [vmem:[%s18253_s0 + $0x1608] sm:$0xff] }
 0x1ea   :  { %7412 = vmatpush1.bf16.msra.mxu1 %v11893_v21  ;;  %7085 = vmatprep.subr.bf16.mxu0 %v11900_v22  ;;  %v1381_v21 = vld [vmem:[%s18253_s0 + $0x1520] sm:$0xff]  ;;  %v1378_v22 = vld [vmem:[%s18253_s0 + $0x1508] sm:$0xff] }
 0x1eb   :  { %7413 = vmatprep.subr.bf16.mxu1 %v11902_v24  ;;  %v1382_v24 = vld [vmem:[%s18253_s0 + $0x1528] sm:$0xff]  ;;  %v11940_v1 = vcombine.high %v1377_v20, %v1381_v21  ;;  %v1413_v5 = vld [vmem:[%s18253_s0 + $0x1620] sm:$0xff] }
 0x1ec   :  { %v11942_v60 = vcombine.high %v1378_v22, %v1382_v24 }
 0x1ed   :  { %7086 = vmatpush1.bf16.msra.mxu0 %v11899_v13  ;;  %v1389_v13 = vld [vmem:[%s18253_s0 + $0x1560] sm:$0xff] }
 0x1ee   :  { %7414 = vmatpush1.bf16.msra.mxu1 %v11901_v3  ;;  %7096 = vmatprep.subr.bf16.mxu0 %v11908_v39  ;;  %v1390_v3 = vld [vmem:[%s18253_s0 + $0x1568] sm:$0xff]  ;;  %v11939_v39 = vcombine.low %v1377_v20, %v1381_v21  ;;  %v11948_v0 = vcombine.high %v1385_v31, %v1389_v13  ;;  %v1417_v21 = vld [vmem:[%s18253_s0 + $0x1640] sm:$0xff] }
 0x1ef   :  { %7424 = vmatprep.subr.bf16.mxu1 %v11910_v15  ;;  %v11941_v15 = vcombine.low %v1378_v22, %v1382_v24  ;;  %v11950_v7 = vcombine.high %v1386_v32, %v1390_v3  ;;  %v1421_v22 = vld [vmem:[%s18253_s0 + $0x1660] sm:$0xff]  ;;  %v1418_v24 = vld [vmem:[%s18253_s0 + $0x1648] sm:$0xff] }
 0x1f0   :  { %7088 = vmatmul.mubr.bf16.vlgmr.msra.gmra.mrb[8].mxu0 %v14832_v47 }
 0x1f1   :  { %7416 = vmatmul.mubr.bf16.vlgmr.msra.gmra.mrb[24].mxu1 %v14832_v47  ;;  %7097 = vmatpush1.bf16.msra.mxu0 %v11907_v42  ;;  %v1397_v42 = vld [vmem:[%s18253_s0 + $0x15a0] sm:$0xff] }
 0x1f2   :  { %7128 = vmatprep.mubr.bf16.mxu0 %v14840_v51  ;;  %7425 = vmatpush1.bf16.msra.mxu1 %v11909_v48  ;;  %v11947_v48 = vcombine.low %v1385_v31, %v1389_v13  ;;  %v11956_v50 = vcombine.high %v1393_v40, %v1397_v42  ;;  %v1425_v13 = vld [vmem:[%s18253_s0 + $0x1680] sm:$0xff] }
 0x1f3   :  { %7456 = vmatprep.mubr.bf16.mxu1 %v14840_v51  ;;  %7098 = vmatprep.subr.bf16.mxu0 %v11916_v49  ;;  %v11949_v49 = vcombine.low %v1386_v32, %v1390_v3  ;;  %v1429_v32 = vld [vmem:[%s18253_s0 + $0x16a0] sm:$0xff]  ;;  %v1426_v3 = vld [vmem:[%s18253_s0 + $0x1688] sm:$0xff] }
 0x1f4   :  { %7426 = vmatprep.subr.bf16.mxu1 %v11918_v17  ;;  %v1401_v17 = vld [vmem:[%s18253_s0 + $0x15c0] sm:$0xff] }
 0x1f5   :  { %7099 = vmatpush1.bf16.msra.mxu0 %v11915_v57  ;;  %v1406_v57 = vld [vmem:[%s18253_s0 + $0x15e8] sm:$0xff] }
 0x1f6   :  { %7427 = vmatpush1.bf16.msra.mxu1 %v11917_v61  ;;  %7100 = vmatprep.subr.bf16.mxu0 %v11924_v59  ;;  %v11955_v61 = vcombine.low %v1393_v40, %v1397_v42  ;;  %v11957_v59 = vcombine.low %v1394_v44, %v1398_v45  ;;  %v11966_v2 = vcombine.high %v1402_v55, %v1406_v57  ;;  %v1433_v42 = vld [vmem:[%s18253_s0 + $0x16c0] sm:$0xff]  ;;  %v1434_v45 = vld [vmem:[%s18253_s0 + $0x16c8] sm:$0xff] }
 0x1f7   :  { %7428 = vmatprep.subr.bf16.mxu1 %v11926_v62  ;;  %v11964_v62 = vcombine.high %v1401_v17, %v1405_v54  ;;  %v1437_v44 = vld [vmem:[%s18253_s0 + $0x16e0] sm:$0xff] }
 0x1f9   :  { %7101 = vmatpush1.bf16.msra.mxu0 %v11923_v10  ;;  %v1414_v10 = vld [vmem:[%s18253_s0 + $0x1628] sm:$0xff] }
 0x1fa   :  { %7429 = vmatpush1.bf16.msra.mxu1 %v11925_v11  ;;  %7102 = vmatprep.subr.bf16.mxu0 %v11932_v18  ;;  %v11963_v11 = vcombine.low %v1401_v17, %v1405_v54  ;;  %v11965_v18 = vcombine.low %v1402_v55, %v1406_v57  ;;  %v11974_v20 = vcombine.high %v1410_v6, %v1414_v10  ;;  %v1441_v54 = vld [vmem:[%s18253_s0 + $0x1700] sm:$0xff]  ;;  %v1442_v57 = vld [vmem:[%s18253_s0 + $0x1708] sm:$0xff] }
 0x1fb   :  { %7430 = vmatprep.subr.bf16.mxu1 %v11934_v19  ;;  %v11972_v19 = vcombine.high %v1409_v4, %v1413_v5  ;;  %v1445_v55 = vld [vmem:[%s18253_s0 + $0x1720] sm:$0xff] }
 0x1fd   :  { %7103 = vmatpush1.bf16.msra.mxu0 %v11931_v28  ;;  %v1422_v28 = vld [vmem:[%s18253_s0 + $0x1668] sm:$0xff] }
 0x1fe   :  { %7431 = vmatpush1.bf16.msra.mxu1 %v11933_v29  ;;  %7104 = vmatprep.subr.bf16.mxu0 %v11940_v1  ;;  %v11971_v29 = vcombine.low %v1409_v4, %v1413_v5  ;;  %v11973_v1 = vcombine.low %v1410_v6, %v1414_v10  ;;  %v11982_v31 = vcombine.high %v1418_v24, %v1422_v28  ;;  %v1449_v5 = vld [vmem:[%s18253_s0 + $0x1740] sm:$0xff]  ;;  %v1450_v10 = vld [vmem:[%s18253_s0 + $0x1748] sm:$0xff] }
 0x1ff   :  { %7432 = vmatprep.subr.bf16.mxu1 %v11942_v60  ;;  %v11980_v60 = vcombine.high %v1417_v21, %v1421_v22  ;;  %v1453_v6 = vld [vmem:[%s18253_s0 + $0x1760] sm:$0xff] }
 0x201   :  { %7105 = vmatpush1.bf16.msra.mxu0 %v11939_v39  ;;  %v1430_v39 = vld [vmem:[%s18253_s0 + $0x16a8] sm:$0xff] }
 0x202   :  { %7433 = vmatpush1.bf16.msra.mxu1 %v11941_v15  ;;  %7106 = vmatprep.subr.bf16.mxu0 %v11948_v0  ;;  %v11979_v15 = vcombine.low %v1417_v21, %v1421_v22  ;;  %v11981_v0 = vcombine.low %v1418_v24, %v1422_v28  ;;  %v11990_v40 = vcombine.high %v1426_v3, %v1430_v39  ;;  %v1457_v22 = vld [vmem:[%s18253_s0 + $0x1780] sm:$0xff]  ;;  %v1458_v28 = vld [vmem:[%s18253_s0 + $0x1788] sm:$0xff] }
 0x203   :  { %7434 = vmatprep.subr.bf16.mxu1 %v11950_v7  ;;  %v11988_v7 = vcombine.high %v1425_v13, %v1429_v32  ;;  %v1461_v24 = vld [vmem:[%s18253_s0 + $0x17a0] sm:$0xff] }
 0x205   :  { %7107 = vmatpush1.bf16.msra.mxu0 %v11947_v48  ;;  %v1438_v48 = vld [vmem:[%s18253_s0 + $0x16e8] sm:$0xff] }
 0x206   :  { %7435 = vmatpush1.bf16.msra.mxu1 %v11949_v49  ;;  %7108 = vmatprep.subr.bf16.mxu0 %v11956_v50  ;;  %v11987_v49 = vcombine.low %v1425_v13, %v1429_v32  ;;  %v11989_v50 = vcombine.low %v1426_v3, %v1430_v39  ;;  %v11998_v17 = vcombine.high %v1434_v45, %v1438_v48  ;;  %v1465_v3 = vld [vmem:[%s18253_s0 + $0x17c0] sm:$0xff] }
 0x207   :  { %7436 = vmatprep.subr.bf16.mxu1 %v11958_v8  ;;  %v11996_v8 = vcombine.high %v1433_v42, %v1437_v44  ;;  %v12020_v13 = vcombine.high %v1457_v22, %v1461_v24  ;;  %v1469_v39 = vld [vmem:[%s18253_s0 + $0x17e0] sm:$0xff] }
 0x209   :  { %7109 = vmatpush1.bf16.msra.mxu0 %v11955_v61  ;;  %v1446_v61 = vld [vmem:[%s18253_s0 + $0x1728] sm:$0xff] }
 0x20a   :  { %7437 = vmatpush1.bf16.msra.mxu1 %v11957_v59  ;;  %7110 = vmatprep.subr.bf16.mxu0 %v11964_v62  ;;  %v11995_v59 = vcombine.low %v1433_v42, %v1437_v44  ;;  %v11997_v62 = vcombine.low %v1434_v45, %v1438_v48  ;;  %v12006_v4 = vcombine.high %v1442_v57, %v1446_v61 }
 0x20b   :  { %7438 = vmatprep.subr.bf16.mxu1 %v11966_v2  ;;  %v12004_v2 = vcombine.high %v1441_v54, %v1445_v55  ;;  %v12028_v45 = vcombine.high %v1465_v3, %v1469_v39 }
 0x20d   :  { %7111 = vmatpush1.bf16.msra.mxu0 %v11963_v11  ;;  %v1454_v11 = vld [vmem:[%s18253_s0 + $0x1768] sm:$0xff] }
 0x20e   :  { %7439 = vmatpush1.bf16.msra.mxu1 %v11965_v18  ;;  %7112 = vmatprep.subr.bf16.mxu0 %v11972_v19  ;;  %v12003_v18 = vcombine.low %v1441_v54, %v1445_v55  ;;  %v12005_v19 = vcombine.low %v1442_v57, %v1446_v61  ;;  %v12014_v21 = vcombine.high %v1450_v10, %v1454_v11 }
 0x20f   :  { %7440 = vmatprep.subr.bf16.mxu1 %v11974_v20  ;;  %v12012_v20 = vcombine.high %v1449_v5, %v1453_v6 }
 0x211   :  { %7113 = vmatpush1.bf16.msra.mxu0 %v11971_v29  ;;  %v1462_v29 = vld [vmem:[%s18253_s0 + $0x17a8] sm:$0xff] }
 0x212   :  { %7441 = vmatpush1.bf16.msra.mxu1 %v11973_v1  ;;  %7114 = vmatprep.subr.bf16.mxu0 %v11980_v60  ;;  %v12011_v1 = vcombine.low %v1449_v5, %v1453_v6  ;;  %v144_v60 = vrot.slane %v14580_v38, %v14127_v43  ;;  %v12022_v32 = vcombine.high %v1458_v28, %v1462_v29  ;;  %v1486_v5 = vld [vmem:[%s18253_s0 + $0x1868] sm:$0xff] }
 0x213   :  { %7442 = vmatprep.subr.bf16.mxu1 %v11982_v31  ;;  %v12013_v31 = vcombine.low %v1450_v10, %v1454_v11  ;;  %v12021_v44 = vcombine.low %v1458_v28, %v1462_v29 }
 0x214   :  { %v585_v42 = vadd.f32 %v14225_v63, %v144_v60  ;;  %v1474_v63 = vld [vmem:[%s18253_s0 + $0x1808] sm:$0xff] }
 0x215   :  { %7115 = vmatpush1.bf16.msra.mxu0 %v11979_v15  ;;  %v156_v15 = vrot.slane %v14580_v38, %v14142_v52  ;;  %v1473_v38 = vld [vmem:[%s18253_s0 + $0x1800] sm:$0xff] }
 0x216   :  { %7443 = vmatpush1.bf16.msra.mxu1 %v11981_v0  ;;  %7116 = vmatprep.subr.bf16.mxu0 %v11988_v7  ;;  %v1466_v0 = vld [vmem:[%s18253_s0 + $0x17c8] sm:$0xff]  ;;  %v683_v54 = vmax.f32 %v585_v42, 0.0  ;;  %v1509_v42 = vld [vmem:[%s18253_s0 + $0x1920] sm:$0xff] }
 0x217   :  { %7444 = vmatprep.subr.bf16.mxu1 %v11990_v40  ;;  %v1470_v7 = vld [vmem:[%s18253_s0 + $0x17e8] sm:$0xff]  ;;  %v12019_v40 = vcombine.low %v1457_v22, %v1461_v24 }
 0x218   :  { %v12030_v48 = vcombine.high %v1466_v0, %v1470_v7  ;;  %v12029_v55 = vcombine.low %v1466_v0, %v1470_v7  ;;  %v15038_v6 = vpack.c.bf16 %v683_v54, %v683_v54  ;;  %v1490_v22 = vld [vmem:[%s18253_s0 + $0x1888] sm:$0xff] }
 0x219   :  { %7117 = vmatpush1.bf16.msra.mxu0 %v11987_v49  ;;  %v1477_v49 = vld [vmem:[%s18253_s0 + $0x1820] sm:$0xff]  ;;  %v1494_v24 = vld [vmem:[%s18253_s0 + $0x18a8] sm:$0xff] }
 0x21a   :  { %7445 = vmatpush1.bf16.msra.mxu1 %v11989_v50  ;;  %7118 = vmatprep.subr.bf16.mxu0 %v11996_v8  ;;  %v628_v50 = vadd.f32 %v14040_v34, %v156_v15  ;;  %v1478_v8 = vld [vmem:[%s18253_s0 + $0x1828] sm:$0xff]  ;;  %v12036_v57 = vcombine.high %v1473_v38, %v1477_v49  ;;  %v1481_v34 = vld [vmem:[%s18253_s0 + $0x1840] sm:$0xff]  ;;  %v12054_v60 = vcombine.high %v1490_v22, %v1494_v24 }
 0x21b   :  { %7446 = vmatprep.subr.bf16.mxu1 %v11998_v17  ;;  %v12027_v17 = vcombine.low %v1465_v3, %v1469_v39  ;;  %v12038_v61 = vcombine.high %v1474_v63, %v1478_v8  ;;  %v12037_v10 = vcombine.low %v1474_v63, %v1478_v8  ;;  %v1502_v3 = vld [vmem:[%s18253_s0 + $0x18e8] sm:$0xff]  ;;  %v12053_v15 = vcombine.low %v1490_v22, %v1494_v24  ;;  %v1513_v63 = vld [vmem:[%s18253_s0 + $0x1940] sm:$0xff] }
 0x21c   :  { %v1517_v8 = vld [vmem:[%s18253_s0 + $0x1960] sm:$0xff]  ;;  %v1518_v54 = vld [vmem:[%s18253_s0 + $0x1968] sm:$0xff] }
 0x21d   :  { %7119 = vmatpush1.bf16.msra.mxu0 %v11995_v59  ;;  %v686_v59 = vmax.f32 %v628_v50, 0.0  ;;  %v1530_v22 = vld [vmem:[%s18253_s0 + $0x19c8] sm:$0xff] }
 0x21e   :  { %7447 = vmatpush1.bf16.msra.mxu1 %v11997_v62  ;;  %7120 = vmatprep.subr.bf16.mxu0 %v12004_v2  ;;  %v1485_v62 = vld [vmem:[%s18253_s0 + $0x1860] sm:$0xff]  ;;  %v12035_v2 = vcombine.low %v1473_v38, %v1477_v49  ;;  %v1534_v24 = vld [vmem:[%s18253_s0 + $0x19e8] sm:$0xff] }
 0x21f   :  { %7448 = vmatprep.subr.bf16.mxu1 %v12006_v4  ;;  %v1482_v4 = vld [vmem:[%s18253_s0 + $0x1848] sm:$0xff]  ;;  %v12044_v11 = vcombine.high %v1481_v34, %v1485_v62  ;;  %v12043_v28 = vcombine.low %v1481_v34, %v1485_v62  ;;  %v1521_v34 = vld [vmem:[%s18253_s0 + $0x1980] sm:$0xff] }
 0x220   :  { %v12045_v29 = vcombine.low %v1482_v4, %v1486_v5  ;;  %v1525_v62 = vld [vmem:[%s18253_s0 + $0x19a0] sm:$0xff] }
 0x221   :  { %7121 = vmatpush1.bf16.msra.mxu0 %v12003_v18  ;;  %v1489_v18 = vld [vmem:[%s18253_s0 + $0x1880] sm:$0xff] }
 0x222   :  { %7449 = vmatpush1.bf16.msra.mxu1 %v12005_v19  ;;  %7122 = vmatprep.subr.bf16.mxu0 %v12012_v20  ;;  %v1493_v19 = vld [vmem:[%s18253_s0 + $0x18a0] sm:$0xff]  ;;  %v15046_v20 = vpack.c.bf16 %v686_v59, %v686_v59 }
 0x223   :  { %7450 = vmatprep.subr.bf16.mxu1 %v12014_v21  ;;  %v12046_v21 = vcombine.high %v1482_v4, %v1486_v5  ;;  %v12051_v39 = vcombine.low %v1489_v18, %v1493_v19  ;;  %v1526_v4 = vld [vmem:[%s18253_s0 + $0x19a8] sm:$0xff]  ;;  %v12075_v5 = vcombine.low %v1513_v63, %v1517_v8 }
 0x225   :  { %7123 = vmatpush1.bf16.msra.mxu0 %v12011_v1  ;;  %v12052_v1 = vcombine.high %v1489_v18, %v1493_v19  ;;  %v1529_v19 = vld [vmem:[%s18253_s0 + $0x19c0] sm:$0xff] }
 0x226   :  { %7451 = vmatpush1.bf16.msra.mxu1 %v12013_v31  ;;  %7124 = vmatprep.subr.bf16.mxu0 %v12020_v13  ;;  %v1497_v31 = vld [vmem:[%s18253_s0 + $0x18c0] sm:$0xff] }
 0x227   :  { %7452 = vmatprep.subr.bf16.mxu1 %v12022_v32  ;;  %v1501_v13 = vld [vmem:[%s18253_s0 + $0x18e0] sm:$0xff]  ;;  %v1498_v32 = vld [vmem:[%s18253_s0 + $0x18c8] sm:$0xff] }
 0x228   :  { %v12060_v0 = vcombine.high %v1497_v31, %v1501_v13  ;;  %v12062_v7 = vcombine.high %v1498_v32, %v1502_v3  ;;  %v12061_v38 = vcombine.low %v1498_v32, %v1502_v3  ;;  %v1538_v32 = vld [vmem:[%s18253_s0 + $0x1a08] sm:$0xff] }
 0x229   :  { %7125 = vmatpush1.bf16.msra.mxu0 %v12019_v40  ;;  %v1505_v40 = vld [vmem:[%s18253_s0 + $0x1900] sm:$0xff]  ;;  %v1542_v3 = vld [vmem:[%s18253_s0 + $0x1a28] sm:$0xff] }
 0x22a   :  { %7453 = vmatpush1.bf16.msra.mxu1 %v12021_v44  ;;  %7126 = vmatprep.subr.bf16.mxu0 %v12028_v45  ;;  %v1506_v44 = vld [vmem:[%s18253_s0 + $0x1908] sm:$0xff]  ;;  %v12068_v49 = vcombine.high %v1505_v40, %v1509_v42 }
 0x22b   :  { %7454 = vmatprep.subr.bf16.mxu1 %v12030_v48  ;;  %v1510_v45 = vld [vmem:[%s18253_s0 + $0x1928] sm:$0xff]  ;;  %v12059_v48 = vcombine.low %v1497_v31, %v1501_v13  ;;  %v1537_v31 = vld [vmem:[%s18253_s0 + $0x1a00] sm:$0xff] }
 0x22c   :  { %v12070_v50 = vcombine.high %v1506_v44, %v1510_v45  ;;  %v1541_v13 = vld [vmem:[%s18253_s0 + $0x1a20] sm:$0xff] }
 0x22d   :  { %7127 = vmatpush1.bf16.msra.mxu0 %v12027_v17  ;;  %v1514_v17 = vld [vmem:[%s18253_s0 + $0x1948] sm:$0xff] }
 0x22e   :  { %7455 = vmatpush1.bf16.msra.mxu1 %v12029_v55  ;;  %7137 = vmatprep.subr.bf16.mxu0 %v12036_v57  ;;  %v12067_v55 = vcombine.low %v1505_v40, %v1509_v42  ;;  %v12069_v57 = vcombine.low %v1506_v44, %v1510_v45  ;;  %v12078_v59 = vcombine.high %v1514_v17, %v1518_v54  ;;  %v1545_v40 = vld [vmem:[%s18253_s0 + $0x1a40] sm:$0xff]  ;;  %v1546_v44 = vld [vmem:[%s18253_s0 + $0x1a48] sm:$0xff] }
 0x22f   :  { %7465 = vmatprep.subr.bf16.mxu1 %v12038_v61  ;;  %v12076_v61 = vcombine.high %v1513_v63, %v1517_v8  ;;  %v1549_v42 = vld [vmem:[%s18253_s0 + $0x1a60] sm:$0xff]  ;;  %v1550_v45 = vld [vmem:[%s18253_s0 + $0x1a68] sm:$0xff] }
 0x230   :  { %7129 = vmatmul.mubr.bf16.vlgmr.msra.gmra.mrb[8].mxu0 %v15038_v6  ;;  %v1553_v63 = vld [vmem:[%s18253_s0 + $0x1a80] sm:$0xff] }
 0x231   :  { %7457 = vmatmul.mubr.bf16.vlgmr.msra.gmra.mrb[24].mxu1 %v15038_v6  ;;  %7138 = vmatpush1.bf16.msra.mxu0 %v12035_v2  ;;  %v1522_v2 = vld [vmem:[%s18253_s0 + $0x1988] sm:$0xff]  ;;  %v1557_v8 = vld [vmem:[%s18253_s0 + $0x1aa0] sm:$0xff] }
 0x232   :  { %7169 = vmatprep.mubr.bf16.mxu0 %v15046_v20  ;;  %7466 = vmatpush1.bf16.msra.mxu1 %v12037_v10  ;;  %v12077_v10 = vcombine.low %v1514_v17, %v1518_v54  ;;  %v12086_v18 = vcombine.high %v1522_v2, %v1526_v4  ;;  %v1554_v17 = vld [vmem:[%s18253_s0 + $0x1a88] sm:$0xff] }
 0x233   :  { %7497 = vmatprep.mubr.bf16.mxu1 %v15046_v20  ;;  %7139 = vmatprep.subr.bf16.mxu0 %v12044_v11  ;;  %v12084_v11 = vcombine.high %v1521_v34, %v1525_v62  ;;  %v1558_v54 = vld [vmem:[%s18253_s0 + $0x1aa8] sm:$0xff] }
 0x234   :  { %7467 = vmatprep.subr.bf16.mxu1 %v12046_v21  ;;  %v1533_v21 = vld [vmem:[%s18253_s0 + $0x19e0] sm:$0xff] }
 0x235   :  { %7140 = vmatpush1.bf16.msra.mxu0 %v12043_v28  ;;  %v12083_v28 = vcombine.low %v1521_v34, %v1525_v62  ;;  %v1561_v34 = vld [vmem:[%s18253_s0 + $0x1ac0] sm:$0xff] }
 0x236   :  { %7468 = vmatpush1.bf16.msra.mxu1 %v12045_v29  ;;  %7141 = vmatprep.subr.bf16.mxu0 %v12052_v1  ;;  %v12085_v29 = vcombine.low %v1522_v2, %v1526_v4  ;;  %v12092_v1 = vcombine.high %v1529_v19, %v1533_v21  ;;  %v1565_v62 = vld [vmem:[%s18253_s0 + $0x1ae0] sm:$0xff]  ;;  %v1562_v2 = vld [vmem:[%s18253_s0 + $0x1ac8] sm:$0xff] }
 0x237   :  { %7469 = vmatprep.subr.bf16.mxu1 %v12054_v60  ;;  %v12094_v60 = vcombine.high %v1530_v22, %v1534_v24  ;;  %v1566_v4 = vld [vmem:[%s18253_s0 + $0x1ae8] sm:$0xff] }
 0x239   :  { %7142 = vmatpush1.bf16.msra.mxu0 %v12051_v39  ;;  %v12091_v39 = vcombine.low %v1529_v19, %v1533_v21  ;;  %v1569_v19 = vld [vmem:[%s18253_s0 + $0x1b00] sm:$0xff] }
 0x23a   :  { %7470 = vmatpush1.bf16.msra.mxu1 %v12053_v15  ;;  %7143 = vmatprep.subr.bf16.mxu0 %v12060_v0  ;;  %v12093_v15 = vcombine.low %v1530_v22, %v1534_v24  ;;  %v12100_v0 = vcombine.high %v1537_v31, %v1541_v13  ;;  %v1573_v21 = vld [vmem:[%s18253_s0 + $0x1b20] sm:$0xff]  ;;  %v1570_v22 = vld [vmem:[%s18253_s0 + $0x1b08] sm:$0xff] }
 0x23b   :  { %7471 = vmatprep.subr.bf16.mxu1 %v12062_v7  ;;  %v12102_v7 = vcombine.high %v1538_v32, %v1542_v3  ;;  %v1574_v24 = vld [vmem:[%s18253_s0 + $0x1b28] sm:$0xff] }
 0x23d   :  { %7144 = vmatpush1.bf16.msra.mxu0 %v12059_v48  ;;  %v12099_v48 = vcombine.low %v1537_v31, %v1541_v13  ;;  %v1577_v31 = vld [vmem:[%s18253_s0 + $0x1b40] sm:$0xff] }
 0x23e   :  { %7472 = vmatpush1.bf16.msra.mxu1 %v12061_v38  ;;  %7145 = vmatprep.subr.bf16.mxu0 %v12068_v49  ;;  %v12101_v38 = vcombine.low %v1538_v32, %v1542_v3  ;;  %v12108_v49 = vcombine.high %v1545_v40, %v1549_v42  ;;  %v1581_v13 = vld [vmem:[%s18253_s0 + $0x1b60] sm:$0xff]  ;;  %v1578_v32 = vld [vmem:[%s18253_s0 + $0x1b48] sm:$0xff] }
 0x23f   :  { %7473 = vmatprep.subr.bf16.mxu1 %v12070_v50  ;;  %v12110_v50 = vcombine.high %v1546_v44, %v1550_v45  ;;  %v1582_v3 = vld [vmem:[%s18253_s0 + $0x1b68] sm:$0xff] }
 0x241   :  { %7146 = vmatpush1.bf16.msra.mxu0 %v12067_v55  ;;  %v12107_v55 = vcombine.low %v1545_v40, %v1549_v42  ;;  %v1585_v40 = vld [vmem:[%s18253_s0 + $0x1b80] sm:$0xff] }
 0x242   :  { %7474 = vmatpush1.bf16.msra.mxu1 %v12069_v57  ;;  %7147 = vmatprep.subr.bf16.mxu0 %v12076_v61  ;;  %v12109_v57 = vcombine.low %v1546_v44, %v1550_v45  ;;  %v12116_v61 = vcombine.high %v1553_v63, %v1557_v8  ;;  %v1589_v42 = vld [vmem:[%s18253_s0 + $0x1ba0] sm:$0xff]  ;;  %v1586_v44 = vld [vmem:[%s18253_s0 + $0x1b88] sm:$0xff] }
 0x243   :  { %7475 = vmatprep.subr.bf16.mxu1 %v12078_v59  ;;  %v12118_v59 = vcombine.high %v1554_v17, %v1558_v54  ;;  %v1590_v45 = vld [vmem:[%s18253_s0 + $0x1ba8] sm:$0xff] }
 0x245   :  { %7148 = vmatpush1.bf16.msra.mxu0 %v12075_v5  ;;  %v12115_v5 = vcombine.low %v1553_v63, %v1557_v8  ;;  %v12148_v63 = vcombine.high %v1585_v40, %v1589_v42  ;;  %v12150_v8 = vcombine.high %v1586_v44, %v1590_v45 }
 0x246   :  { %7476 = vmatpush1.bf16.msra.mxu1 %v12077_v10  ;;  %7149 = vmatprep.subr.bf16.mxu0 %v12084_v11  ;;  %v12117_v10 = vcombine.low %v1554_v17, %v1558_v54  ;;  %v12124_v11 = vcombine.high %v1561_v34, %v1565_v62  ;;  %v1593_v17 = vld [vmem:[%s18253_s0 + $0x1bc0] sm:$0xff] }
 0x247   :  { %7477 = vmatprep.subr.bf16.mxu1 %v12086_v18  ;;  %v12126_v18 = vcombine.high %v1562_v2, %v1566_v4  ;;  %v1597_v54 = vld [vmem:[%s18253_s0 + $0x1be0] sm:$0xff] }
 0x249   :  { %7150 = vmatpush1.bf16.msra.mxu0 %v12083_v28  ;;  %v12123_v28 = vcombine.low %v1561_v34, %v1565_v62  ;;  %v12149_v62 = vcombine.low %v1586_v44, %v1590_v45  ;;  %v1622_v44 = vld [vmem:[%s18253_s0 + $0x1ca8] sm:$0xff] }
 0x24a   :  { %7478 = vmatpush1.bf16.msra.mxu1 %v12085_v29  ;;  %7151 = vmatprep.subr.bf16.mxu0 %v12092_v1  ;;  %v12125_v29 = vcombine.low %v1562_v2, %v1566_v4  ;;  %v12132_v1 = vcombine.high %v1569_v19, %v1573_v21  ;;  %v12156_v2 = vcombine.high %v1593_v17, %v1597_v54 }
 0x24b   :  { %7479 = vmatprep.subr.bf16.mxu1 %v12094_v60  ;;  %v12134_v60 = vcombine.high %v1570_v22, %v1574_v24 }
 0x24d   :  { %7152 = vmatpush1.bf16.msra.mxu0 %v12091_v39  ;;  %v12131_v39 = vcombine.low %v1569_v19, %v1573_v21  ;;  %v12155_v19 = vcombine.low %v1593_v17, %v1597_v54  ;;  %v1626_v17 = vld [vmem:[%s18253_s0 + $0x1cc8] sm:$0xff] }
 0x24e   :  { %7480 = vmatpush1.bf16.msra.mxu1 %v12093_v15  ;;  %7153 = vmatprep.subr.bf16.mxu0 %v12100_v0  ;;  %v12133_v15 = vcombine.low %v1570_v22, %v1574_v24  ;;  %v12140_v0 = vcombine.high %v1577_v31, %v1581_v13  ;;  %v1630_v54 = vld [vmem:[%s18253_s0 + $0x1ce8] sm:$0xff] }
 0x24f   :  { %7481 = vmatprep.subr.bf16.mxu1 %v12102_v7  ;;  %v12142_v7 = vcombine.high %v1578_v32, %v1582_v3 }
 0x251   :  { %7154 = vmatpush1.bf16.msra.mxu0 %v12099_v48  ;;  %v12139_v48 = vcombine.low %v1577_v31, %v1581_v13  ;;  %v1610_v31 = vld [vmem:[%s18253_s0 + $0x1c48] sm:$0xff] }
 0x252   :  { %7482 = vmatpush1.bf16.msra.mxu1 %v12101_v38  ;;  %7155 = vmatprep.subr.bf16.mxu0 %v12108_v49  ;;  %v15205_v38 = vld [vmem:[%s18254_s29 + $0x8] sm:$0xff] }
 0x253   :  { %7483 = vmatprep.subr.bf16.mxu1 %v12110_v50  ;;  %v152_v49 = vrot.slane %v15205_v38, %v14351_v58  ;;  %v12141_v50 = vcombine.low %v1578_v32, %v1582_v3  ;;  %v1614_v13 = vld [vmem:[%s18253_s0 + $0x1c68] sm:$0xff] }
 0x255   :  { %7156 = vmatpush1.bf16.msra.mxu0 %v12107_v55  ;;  %v164_v55 = vrot.slane %v15205_v38, %v14366_v12  ;;  %v626_v34 = vadd.f32 %v14029_v27, %v152_v49  ;;  %v1602_v27 = vld [vmem:[%s18253_s0 + $0x1c08] sm:$0xff] }
 0x256   :  { %7484 = vmatpush1.bf16.msra.mxu1 %v12109_v57  ;;  %7157 = vmatprep.subr.bf16.mxu0 %v12116_v61  ;;  %v1594_v57 = vld [vmem:[%s18253_s0 + $0x1bc8] sm:$0xff] }
 0x257   :  { %7485 = vmatprep.subr.bf16.mxu1 %v12118_v59  ;;  %v1598_v61 = vld [vmem:[%s18253_s0 + $0x1be8] sm:$0xff]  ;;  %v12147_v59 = vcombine.low %v1585_v40, %v1589_v42  ;;  %v685_v21 = vmax.f32 %v626_v34, 0.0  ;;  %v12174_v40 = vcombine.high %v1610_v31, %v1614_v13  ;;  %v1633_v34 = vld [vmem:[%s18253_s0 + $0x1d00] sm:$0xff] }
 0x258   :  { %v12158_v4 = vcombine.high %v1594_v57, %v1598_v61  ;;  %v12157_v22 = vcombine.low %v1594_v57, %v1598_v61  ;;  %v1618_v42 = vld [vmem:[%s18253_s0 + $0x1c88] sm:$0xff] }
 0x259   :  { %7158 = vmatpush1.bf16.msra.mxu0 %v12115_v5  ;;  %v1601_v5 = vld [vmem:[%s18253_s0 + $0x1c00] sm:$0xff]  ;;  %v15249_v32 = vpack.c.bf16 %v685_v21, %v685_v21  ;;  %v12181_v57 = vcombine.low %v1618_v42, %v1622_v44  ;;  %v1642_v21 = vld [vmem:[%s18253_s0 + $0x1d48] sm:$0xff] }
 0x25a   :  { %7486 = vmatpush1.bf16.msra.mxu1 %v12117_v10  ;;  %7159 = vmatprep.subr.bf16.mxu0 %v12124_v11  ;;  %v1605_v10 = vld [vmem:[%s18253_s0 + $0x1c20] sm:$0xff]  ;;  %v669_v11 = vadd.f32 %v14264_v37, %v164_v55 }
 0x25b   :  { %7487 = vmatprep.subr.bf16.mxu1 %v12126_v18  ;;  %v1606_v18 = vld [vmem:[%s18253_s0 + $0x1c28] sm:$0xff]  ;;  %v12164_v24 = vcombine.high %v1601_v5, %v1605_v10  ;;  %v1609_v37 = vld [vmem:[%s18253_s0 + $0x1c40] sm:$0xff] }
 0x25c   :  { %v12165_v3 = vcombine.low %v1602_v27, %v1606_v18 }
 0x25d   :  { %7160 = vmatpush1.bf16.msra.mxu0 %v12123_v28  ;;  %v12166_v28 = vcombine.high %v1602_v27, %v1606_v18  ;;  %v1641_v18 = vld [vmem:[%s18253_s0 + $0x1d40] sm:$0xff] }
 0x25e   :  { %7488 = vmatpush1.bf16.msra.mxu1 %v12125_v29  ;;  %7161 = vmatprep.subr.bf16.mxu0 %v12132_v1  ;;  %v688_v29 = vmax.f32 %v669_v11, 0.0  ;;  %v1613_v1 = vld [vmem:[%s18253_s0 + $0x1c60] sm:$0xff] }
 0x25f   :  { %7489 = vmatprep.subr.bf16.mxu1 %v12134_v60  ;;  %v12163_v60 = vcombine.low %v1601_v5, %v1605_v10  ;;  %v12171_v45 = vcombine.low %v1609_v37, %v1613_v1  ;;  %v12189_v10 = vcombine.low %v1626_v17, %v1630_v54 }
 0x261   :  { %7162 = vmatpush1.bf16.msra.mxu0 %v12131_v39  ;;  %v12172_v39 = vcombine.high %v1609_v37, %v1613_v1  ;;  %v1649_v1 = vld [vmem:[%s18253_s0 + $0x1d80] sm:$0xff] }
 0x262   :  { %7490 = vmatpush1.bf16.msra.mxu1 %v12133_v15  ;;  %7163 = vmatprep.subr.bf16.mxu0 %v12140_v0  ;;  %v1617_v15 = vld [vmem:[%s18253_s0 + $0x1c80] sm:$0xff] }
 0x263   :  { %7491 = vmatprep.subr.bf16.mxu1 %v12142_v7  ;;  %v1621_v0 = vld [vmem:[%s18253_s0 + $0x1ca0] sm:$0xff]  ;;  %v15257_v7 = vpack.c.bf16 %v688_v29, %v688_v29 }
 0x264   :  { %v12180_v49 = vcombine.high %v1617_v15, %v1621_v0  ;;  %v12179_v55 = vcombine.low %v1617_v15, %v1621_v0 }
 0x265   :  { %7164 = vmatpush1.bf16.msra.mxu0 %v12139_v48  ;;  %v12173_v48 = vcombine.low %v1610_v31, %v1614_v13  ;;  %v1650_v31 = vld [vmem:[%s18253_s0 + $0x1d88] sm:$0xff] }
 0x266   :  { %7492 = vmatpush1.bf16.msra.mxu1 %v12141_v50  ;;  %7165 = vmatprep.subr.bf16.mxu0 %v12148_v63  ;;  %v12182_v50 = vcombine.high %v1618_v42, %v1622_v44  ;;  %v1625_v63 = vld [vmem:[%s18253_s0 + $0x1cc0] sm:$0xff]  ;;  %v1654_v13 = vld [vmem:[%s18253_s0 + $0x1da8] sm:$0xff] }
 0x267   :  { %7493 = vmatprep.subr.bf16.mxu1 %v12150_v8  ;;  %v1629_v8 = vld [vmem:[%s18253_s0 + $0x1ce0] sm:$0xff]  ;;  %v12214_v0 = vcombine.high %v1650_v31, %v1654_v13  ;;  %v1658_v44 = vld [vmem:[%s18253_s0 + $0x1dc8] sm:$0xff] }
 0x268   :  { %v12188_v61 = vcombine.high %v1625_v63, %v1629_v8  ;;  %v12187_v5 = vcombine.low %v1625_v63, %v1629_v8  ;;  %v1661_v42 = vld [vmem:[%s18253_s0 + $0x1de0] sm:$0xff] }
 0x269   :  { %7166 = vmatpush1.bf16.msra.mxu0 %v12147_v59  ;;  %v12190_v59 = vcombine.high %v1626_v17, %v1630_v54  ;;  %v1665_v8 = vld [vmem:[%s18253_s0 + $0x1e00] sm:$0xff]  ;;  %v1666_v54 = vld [vmem:[%s18253_s0 + $0x1e08] sm:$0xff] }
 0x26a   :  { %7494 = vmatpush1.bf16.msra.mxu1 %v12149_v62  ;;  %7167 = vmatprep.subr.bf16.mxu0 %v12156_v2  ;;  %v1637_v62 = vld [vmem:[%s18253_s0 + $0x1d20] sm:$0xff]  ;;  %v1634_v2 = vld [vmem:[%s18253_s0 + $0x1d08] sm:$0xff] }
 0x26b   :  { %7495 = vmatprep.subr.bf16.mxu1 %v12158_v4  ;;  %v1638_v4 = vld [vmem:[%s18253_s0 + $0x1d28] sm:$0xff]  ;;  %v12196_v11 = vcombine.high %v1633_v34, %v1637_v62  ;;  %v1669_v17 = vld [vmem:[%s18253_s0 + $0x1e20] sm:$0xff] }
 0x26c   :  { %v12198_v27 = vcombine.high %v1634_v2, %v1638_v4 }
 0x26d   :  { %7168 = vmatpush1.bf16.msra.mxu0 %v12155_v19  ;;  %v1645_v19 = vld [vmem:[%s18253_s0 + $0x1d60] sm:$0xff] }
 0x26e   :  { %7496 = vmatpush1.bf16.msra.mxu1 %v12157_v22  ;;  %7178 = vmatprep.subr.bf16.mxu0 %v12164_v24  ;;  %v1646_v22 = vld [vmem:[%s18253_s0 + $0x1d68] sm:$0xff]  ;;  %v12195_v24 = vcombine.low %v1633_v34, %v1637_v62  ;;  %v12204_v29 = vcombine.high %v1641_v18, %v1645_v19  ;;  %v1673_v62 = vld [vmem:[%s18253_s0 + $0x1e40] sm:$0xff] }
 0x26f   :  { %7506 = vmatprep.subr.bf16.mxu1 %v12166_v28  ;;  %v12197_v28 = vcombine.low %v1634_v2, %v1638_v4  ;;  %v12206_v37 = vcombine.high %v1642_v21, %v1646_v22  ;;  %v1677_v2 = vld [vmem:[%s18253_s0 + $0x1e60] sm:$0xff]  ;;  %v1674_v4 = vld [vmem:[%s18253_s0 + $0x1e48] sm:$0xff] }
 0x270   :  { %7170 = vmatmul.mubr.bf16.vlgmr.msra.gmra.mrb[8].mxu0 %v15249_v32 }
 0x271   :  { %7498 = vmatmul.mubr.bf16.vlgmr.msra.gmra.mrb[24].mxu1 %v15249_v32  ;;  %7179 = vmatpush1.bf16.msra.mxu0 %v12163_v60  ;;  %v1653_v60 = vld [vmem:[%s18253_s0 + $0x1da0] sm:$0xff] }
 0x272   :  { %7210 = vmatprep.mubr.bf16.mxu0 %v15257_v7  ;;  %7507 = vmatpush1.bf16.msra.mxu1 %v12165_v3  ;;  %v12203_v3 = vcombine.low %v1641_v18, %v1645_v19  ;;  %v12212_v15 = vcombine.high %v1649_v1, %v1653_v60  ;;  %v1681_v19 = vld [vmem:[%s18253_s0 + $0x1e80] sm:$0xff] }
 0x273   :  { %7538 = vmatprep.mubr.bf16.mxu1 %v15257_v7  ;;  %7180 = vmatprep.subr.bf16.mxu0 %v12172_v39  ;;  %v12205_v39 = vcombine.low %v1642_v21, %v1646_v22  ;;  %v1685_v21 = vld [vmem:[%s18253_s0 + $0x1ea0] sm:$0xff]  ;;  %v1682_v22 = vld [vmem:[%s18253_s0 + $0x1e88] sm:$0xff] }
 0x274   :  { %7508 = vmatprep.subr.bf16.mxu1 %v12174_v40  ;;  %v1657_v40 = vld [vmem:[%s18253_s0 + $0x1dc0] sm:$0xff] }
 0x275   :  { %7181 = vmatpush1.bf16.msra.mxu0 %v12171_v45  ;;  %v1662_v45 = vld [vmem:[%s18253_s0 + $0x1de8] sm:$0xff] }
 0x276   :  { %7509 = vmatpush1.bf16.msra.mxu1 %v12173_v48  ;;  %7182 = vmatprep.subr.bf16.mxu0 %v12180_v49  ;;  %v12211_v48 = vcombine.low %v1649_v1, %v1653_v60  ;;  %v12213_v49 = vcombine.low %v1650_v31, %v1654_v13  ;;  %v12222_v63 = vcombine.high %v1658_v44, %v1662_v45  ;;  %v1689_v60 = vld [vmem:[%s18253_s0 + $0x1ec0] sm:$0xff]  ;;  %v1690_v13 = vld [vmem:[%s18253_s0 + $0x1ec8] sm:$0xff] }
 0x277   :  { %7510 = vmatprep.subr.bf16.mxu1 %v12182_v50  ;;  %v12220_v50 = vcombine.high %v1657_v40, %v1661_v42  ;;  %v1693_v31 = vld [vmem:[%s18253_s0 + $0x1ee0] sm:$0xff] }
 0x279   :  { %7183 = vmatpush1.bf16.msra.mxu0 %v12179_v55  ;;  %v1670_v55 = vld [vmem:[%s18253_s0 + $0x1e28] sm:$0xff] }
 0x27a   :  { %7511 = vmatpush1.bf16.msra.mxu1 %v12181_v57  ;;  %7184 = vmatprep.subr.bf16.mxu0 %v12188_v61  ;;  %v12219_v57 = vcombine.low %v1657_v40, %v1661_v42  ;;  %v12221_v61 = vcombine.low %v1658_v44, %v1662_v45  ;;  %v12230_v34 = vcombine.high %v1666_v54, %v1670_v55  ;;  %v1697_v42 = vld [vmem:[%s18253_s0 + $0x1f00] sm:$0xff]  ;;  %v1698_v45 = vld [vmem:[%s18253_s0 + $0x1f08] sm:$0xff] }
 0x27b   :  { %7512 = vmatprep.subr.bf16.mxu1 %v12190_v59  ;;  %v12228_v59 = vcombine.high %v1665_v8, %v1669_v17  ;;  %v1701_v44 = vld [vmem:[%s18253_s0 + $0x1f20] sm:$0xff] }
 0x27d   :  { %7185 = vmatpush1.bf16.msra.mxu0 %v12187_v5  ;;  %v1678_v5 = vld [vmem:[%s18253_s0 + $0x1e68] sm:$0xff] }
 0x27e   :  { %7513 = vmatpush1.bf16.msra.mxu1 %v12189_v10  ;;  %7186 = vmatprep.subr.bf16.mxu0 %v12196_v11  ;;  %v12227_v10 = vcombine.low %v1665_v8, %v1669_v17  ;;  %v12229_v11 = vcombine.low %v1666_v54, %v1670_v55  ;;  %v12238_v18 = vcombine.high %v1674_v4, %v1678_v5  ;;  %v1705_v17 = vld [vmem:[%s18253_s0 + $0x1f40] sm:$0xff]  ;;  %v1706_v55 = vld [vmem:[%s18253_s0 + $0x1f48] sm:$0xff] }
 0x27f   :  { %7514 = vmatprep.subr.bf16.mxu1 %v12198_v27  ;;  %v12236_v27 = vcombine.high %v1673_v62, %v1677_v2  ;;  %v1709_v54 = vld [vmem:[%s18253_s0 + $0x1f60] sm:$0xff] }
 0x281   :  { %7187 = vmatpush1.bf16.msra.mxu0 %v12195_v24  ;;  %v1686_v24 = vld [vmem:[%s18253_s0 + $0x1ea8] sm:$0xff] }
 0x282   :  { %7515 = vmatpush1.bf16.msra.mxu1 %v12197_v28  ;;  %7188 = vmatprep.subr.bf16.mxu0 %v12204_v29  ;;  %v12235_v28 = vcombine.low %v1673_v62, %v1677_v2  ;;  %v12237_v29 = vcombine.low %v1674_v4, %v1678_v5  ;;  %v12246_v1 = vcombine.high %v1682_v22, %v1686_v24  ;;  %v1713_v2 = vld [vmem:[%s18253_s0 + $0x1f80] sm:$0xff]  ;;  %v1714_v5 = vld [vmem:[%s18253_s0 + $0x1f88] sm:$0xff] }
 0x283   :  { %7516 = vmatprep.subr.bf16.mxu1 %v12206_v37  ;;  %v12244_v37 = vcombine.high %v1681_v19, %v1685_v21  ;;  %v1717_v4 = vld [vmem:[%s18253_s0 + $0x1fa0] sm:$0xff] }
 0x285   :  { %7189 = vmatpush1.bf16.msra.mxu0 %v12203_v3  ;;  %v1694_v3 = vld [vmem:[%s18253_s0 + $0x1ee8] sm:$0xff] }
 0x286   :  { %7517 = vmatpush1.bf16.msra.mxu1 %v12205_v39  ;;  %7190 = vmatprep.subr.bf16.mxu0 %v12212_v15  ;;  %v12243_v39 = vcombine.low %v1681_v19, %v1685_v21  ;;  %v12245_v15 = vcombine.low %v1682_v22, %v1686_v24  ;;  %v12254_v40 = vcombine.high %v1690_v13, %v1694_v3  ;;  %v1721_v22 = vld [vmem:[%s18253_s0 + $0x1fc0] sm:$0xff] }
 0x287   :  { %7518 = vmatprep.subr.bf16.mxu1 %v12214_v0  ;;  %v12252_v0 = vcombine.high %v1689_v60, %v1693_v31  ;;  %v12276_v19 = vcombine.high %v1713_v2, %v1717_v4  ;;  %v1725_v24 = vld [vmem:[%s18253_s0 + $0x1fe0] sm:$0xff] }
 0x289   :  { %7191 = vmatpush1.bf16.msra.mxu0 %v12211_v48  ;;  %v1702_v48 = vld [vmem:[%s18253_s0 + $0x1f28] sm:$0xff] }
 0x28a   :  { %7519 = vmatpush1.bf16.msra.mxu1 %v12213_v49  ;;  %7192 = vmatprep.subr.bf16.mxu0 %v12220_v50  ;;  %v12251_v49 = vcombine.low %v1689_v60, %v1693_v31  ;;  %v12253_v50 = vcombine.low %v1690_v13, %v1694_v3  ;;  %v12262_v8 = vcombine.high %v1698_v45, %v1702_v48  ;;  %v707_v13 = vld [vmem:[%s18253_s0 + $0x10] sm:$0xff] }
 0x28b   :  { %7520 = vmatprep.subr.bf16.mxu1 %v12222_v63  ;;  %v12260_v63 = vcombine.high %v1697_v42, %v1701_v44  ;;  %v12284_v60 = vcombine.high %v1721_v22, %v1725_v24  ;;  %v711_v3 = vld [vmem:[%s18253_s0 + $0x30] sm:$0xff] }
 0x28d   :  { %7193 = vmatpush1.bf16.msra.mxu0 %v12219_v57  ;;  %v1710_v57 = vld [vmem:[%s18253_s0 + $0x1f68] sm:$0xff] }
 0x28e   :  { %7521 = vmatpush1.bf16.msra.mxu1 %v12221_v61  ;;  %7194 = vmatprep.subr.bf16.mxu0 %v12228_v59  ;;  %v12259_v61 = vcombine.low %v1697_v42, %v1701_v44  ;;  %v12261_v59 = vcombine.low %v1698_v45, %v1702_v48  ;;  %v12270_v62 = vcombine.high %v1706_v55, %v1710_v57  ;;  %v715_v45 = vld [vmem:[%s18253_s0 + $0x50] sm:$0xff] }
 0x28f   :  { %7522 = vmatprep.subr.bf16.mxu1 %v12230_v34  ;;  %v12268_v34 = vcombine.high %v1705_v17, %v1709_v54  ;;  %v11272_v42 = vcombine.high %v707_v13, %v711_v3  ;;  %v719_v48 = vld [vmem:[%s18253_s0 + $0x70] sm:$0xff] }
 0x291   :  { %7195 = vmatpush1.bf16.msra.mxu0 %v12227_v10  ;;  %v1718_v10 = vld [vmem:[%s18253_s0 + $0x1fa8] sm:$0xff] }
 0x292   :  { %7523 = vmatpush1.bf16.msra.mxu1 %v12229_v11  ;;  %7196 = vmatprep.subr.bf16.mxu0 %v12236_v27  ;;  %v12267_v11 = vcombine.low %v1705_v17, %v1709_v54  ;;  %v160_v27 = vrot.slane %v15205_v38, %v14563_v23  ;;  %v12278_v21 = vcombine.high %v1714_v5, %v1718_v10  ;;  %v1726_v38 = vld [vmem:[%s18253_s0 + $0x1fe8] sm:$0xff] }
 0x293   :  { %7524 = vmatprep.subr.bf16.mxu1 %v12238_v18  ;;  %v12269_v18 = vcombine.low %v1706_v55, %v1710_v57  ;;  %v11280_v54 = vcombine.high %v715_v45, %v719_v48  ;;  %v723_v55 = vld [vmem:[%s18253_s0 + $0x90] sm:$0xff] }
 0x294   :  { %v727_v57 = vld [vmem:[%s18253_s0 + $0xb0] sm:$0xff] }
 0x295   :  { %7197 = vmatpush1.bf16.msra.mxu0 %v12235_v28  ;;  %v1722_v28 = vld [vmem:[%s18253_s0 + $0x1fc8] sm:$0xff] }
 0x296   :  { %7525 = vmatpush1.bf16.msra.mxu1 %v12237_v29  ;;  %7198 = vmatprep.subr.bf16.mxu0 %v12244_v37  ;;  %v12275_v29 = vcombine.low %v1713_v2, %v1717_v4  ;;  %v667_v37 = vadd.f32 %v14253_v30, %v160_v27  ;;  %v12286_v31 = vcombine.high %v1722_v28, %v1726_v38  ;;  %v712_v30 = vld [vmem:[%s18253_s0 + $0x38] sm:$0xff] }
 0x297   :  { %7526 = vmatprep.subr.bf16.mxu1 %v12246_v1  ;;  %v12277_v1 = vcombine.low %v1714_v5, %v1718_v10  ;;  %v11288_v4 = vcombine.high %v723_v55, %v727_v57  ;;  %v731_v10 = vld [vmem:[%s18253_s0 + $0xd0] sm:$0xff]  ;;  %v732_v27 = vld [vmem:[%s18253_s0 + $0xd8] sm:$0xff] }
 0x299   :  { %7199 = vmatpush1.bf16.msra.mxu0 %v12243_v39  ;;  %v708_v39 = vld [vmem:[%s18253_s0 + $0x18] sm:$0xff] }
 0x29a   :  { %7527 = vmatpush1.bf16.msra.mxu1 %v12245_v15  ;;  %7200 = vmatprep.subr.bf16.mxu0 %v12252_v0  ;;  %v12283_v15 = vcombine.low %v1721_v22, %v1725_v24  ;;  %v687_v0 = vmax.f32 %v667_v37, 0.0  ;;  %v11274_v44 = vcombine.high %v708_v39, %v712_v30  ;;  %v11273_v17 = vcombine.low %v708_v39, %v712_v30  ;;  %v739_v24 = vld [vmem:[%s18253_s0 + $0x110] sm:$0xff]  ;;  %v748_v39 = vld [vmem:[%s18253_s0 + $0x158] sm:$0xff] }
 0x29b   :  { %7528 = vmatprep.subr.bf16.mxu1 %v12254_v40  ;;  %v12285_v40 = vcombine.low %v1722_v28, %v1726_v38  ;;  %v743_v28 = vld [vmem:[%s18253_s0 + $0x130] sm:$0xff]  ;;  %v740_v38 = vld [vmem:[%s18253_s0 + $0x118] sm:$0xff] }
 0x29c   :  { %v752_v30 = vld [vmem:[%s18253_s0 + $0x178] sm:$0xff] }
 0x29d   :  { %7201 = vmatpush1.bf16.msra.mxu0 %v12251_v49  ;;  %v11271_v49 = vcombine.low %v707_v13, %v711_v3  ;;  %v747_v13 = vld [vmem:[%s18253_s0 + $0x150] sm:$0xff] }
 0x29e   :  { %7529 = vmatpush1.bf16.msra.mxu1 %v12253_v50  ;;  %7202 = vmatprep.subr.bf16.mxu0 %v12260_v63  ;;  %v716_v50 = vld [vmem:[%s18253_s0 + $0x58] sm:$0xff]  ;;  %v751_v3 = vld [vmem:[%s18253_s0 + $0x170] sm:$0xff] }
 0x29f   :  { %7530 = vmatprep.subr.bf16.mxu1 %v12262_v8  ;;  %v720_v63 = vld [vmem:[%s18253_s0 + $0x78] sm:$0xff]  ;;  %v15452_v8 = vpack.c.bf16 %v687_v0, %v687_v0 }
 0x2a0   :  { %v11281_v2 = vcombine.low %v716_v50, %v720_v63 }
 0x2a1   :  { %7203 = vmatpush1.bf16.msra.mxu0 %v12259_v61  ;;  %v11282_v61 = vcombine.high %v716_v50, %v720_v63  ;;  %v11311_v50 = vcombine.low %v747_v13, %v751_v3  ;;  %v11313_v63 = vcombine.low %v748_v39, %v752_v30 }
 0x2a2   :  { %7531 = vmatpush1.bf16.msra.mxu1 %v12261_v59  ;;  %7204 = vmatprep.subr.bf16.mxu0 %v12268_v34  ;;  %v724_v59 = vld [vmem:[%s18253_s0 + $0x98] sm:$0xff] }
 0x2a3   :  { %7532 = vmatprep.subr.bf16.mxu1 %v12270_v62  ;;  %v728_v34 = vld [vmem:[%s18253_s0 + $0xb8] sm:$0xff]  ;;  %v11279_v62 = vcombine.low %v715_v45, %v719_v48  ;;  %v759_v45 = vld [vmem:[%s18253_s0 + $0x1b0] sm:$0xff] }
 0x2a4   :  { %v11290_v5 = vcombine.high %v724_v59, %v728_v34  ;;  %v756_v48 = vld [vmem:[%s18253_s0 + $0x198] sm:$0xff] }
 0x2a5   :  { %7205 = vmatpush1.bf16.msra.mxu0 %v12267_v11  ;;  %v735_v11 = vld [vmem:[%s18253_s0 + $0xf0] sm:$0xff] }
 0x2a6   :  { %7533 = vmatpush1.bf16.msra.mxu1 %v12269_v18  ;;  %7206 = vmatprep.subr.bf16.mxu0 %v12276_v19  ;;  %v736_v18 = vld [vmem:[%s18253_s0 + $0xf8] sm:$0xff]  ;;  %v11289_v19 = vcombine.low %v724_v59, %v728_v34  ;;  %v11295_v37 = vcombine.low %v731_v10, %v735_v11 }
 0x2a7   :  { %7534 = vmatprep.subr.bf16.mxu1 %v12278_v21  ;;  %v11296_v21 = vcombine.high %v731_v10, %v735_v11  ;;  %v11298_v22 = vcombine.high %v732_v27, %v736_v18  ;;  %v768_v59 = vld [vmem:[%s18253_s0 + $0x1f8] sm:$0xff]  ;;  %v775_v10 = vld [vmem:[%s18253_s0 + $0x230] sm:$0xff] }
 0x2a8   :  { %v772_v11 = vld [vmem:[%s18253_s0 + $0x218] sm:$0xff] }
 0x2a9   :  { %7207 = vmatpush1.bf16.msra.mxu0 %v12275_v29  ;;  %v744_v29 = vld [vmem:[%s18253_s0 + $0x138] sm:$0xff] }
 0x2aa   :  { %7535 = vmatpush1.bf16.msra.mxu1 %v12277_v1  ;;  %7208 = vmatprep.subr.bf16.mxu0 %v12284_v60  ;;  %v11297_v1 = vcombine.low %v732_v27, %v736_v18  ;;  %v11304_v60 = vcombine.high %v739_v24, %v743_v28  ;;  %v11305_v0 = vcombine.low %v740_v38, %v744_v29  ;;  %v776_v27 = vld [vmem:[%s18253_s0 + $0x238] sm:$0xff] }
 0x2ab   :  { %7536 = vmatprep.subr.bf16.mxu1 %v12286_v31  ;;  %v11306_v31 = vcombine.high %v740_v38, %v744_v29  ;;  %v784_v38 = vld [vmem:[%s18253_s0 + $0x278] sm:$0xff] }
 0x2ad   :  { %7209 = vmatpush1.bf16.msra.mxu0 %v12283_v15  ;;  %v11303_v15 = vcombine.low %v739_v24, %v743_v28  ;;  %v783_v24 = vld [vmem:[%s18253_s0 + $0x270] sm:$0xff]  ;;  %v780_v28 = vld [vmem:[%s18253_s0 + $0x258] sm:$0xff] }
 0x2ae   :  { %7537 = vmatpush1.bf16.msra.mxu1 %v12285_v40  ;;  %7547 = vmatprep.subr.bf16.mxu0 %v11272_v42  ;;  %v11312_v40 = vcombine.high %v747_v13, %v751_v3  ;;  %v11314_v42 = vcombine.high %v748_v39, %v752_v30  ;;  %v791_v13 = vld [vmem:[%s18253_s0 + $0x2b0] sm:$0xff]  ;;  %v788_v3 = vld [vmem:[%s18253_s0 + $0x298] sm:$0xff] }
 0x2af   :  { %7875 = vmatprep.subr.bf16.mxu1 %v11274_v44  ;;  %v755_v44 = vld [vmem:[%s18253_s0 + $0x190] sm:$0xff]  ;;  %v792_v39 = vld [vmem:[%s18253_s0 + $0x2b8] sm:$0xff] }
 0x2b0   :  { %7211 = vmatmul.mubr.bf16.vlgmr.msra.gmra.mrb[8].mxu0 %v15452_v8  ;;  %v11319_v34 = vcombine.low %v755_v44, %v759_v45 }
 0x2b1   :  { %7539 = vmatmul.mubr.bf16.vlgmr.msra.gmra.mrb[24].mxu1 %v15452_v8  ;;  %7548 = vmatpush1.bf16.msra.mxu0 %v11271_v49  ;;  %v760_v49 = vld [vmem:[%s18253_s0 + $0x1b8] sm:$0xff] }
 0x2b2   :  { %7579 = vmatprep.mubr.bf16.mxu0 %v13954_v33  ;;  %7876 = vmatpush1.bf16.msra.mxu1 %v11273_v17  ;;  %v11320_v17 = vcombine.high %v755_v44, %v759_v45  ;;  %v799_v44 = vld [vmem:[%s18253_s0 + $0x2f0] sm:$0xff]  ;;  %v796_v45 = vld [vmem:[%s18253_s0 + $0x2d8] sm:$0xff] }
 0x2b3   :  { %7907 = vmatprep.mubr.bf16.mxu1 %v13954_v33  ;;  %7549 = vmatprep.subr.bf16.mxu0 %v11280_v54  ;;  %v11287_v33 = vcombine.low %v723_v55, %v727_v57  ;;  %v11322_v54 = vcombine.high %v756_v48, %v760_v49  ;;  %v763_v55 = vld [vmem:[%s18253_s0 + $0x1d0] sm:$0xff] }
 0x2b4   :  { %7877 = vmatprep.subr.bf16.mxu1 %v11282_v61  ;;  %v767_v57 = vld [vmem:[%s18253_s0 + $0x1f0] sm:$0xff]  ;;  %v764_v61 = vld [vmem:[%s18253_s0 + $0x1d8] sm:$0xff] }
 0x2b5   :  { %7550 = vmatpush1.bf16.msra.mxu0 %v11279_v62  ;;  %v11321_v62 = vcombine.low %v756_v48, %v760_v49  ;;  %v11327_v18 = vcombine.low %v763_v55, %v767_v57  ;;  %v800_v48 = vld [vmem:[%s18253_s0 + $0x2f8] sm:$0xff] }
 0x2b6   :  { %7878 = vmatpush1.bf16.msra.mxu1 %v11281_v2  ;;  %7551 = vmatprep.subr.bf16.mxu0 %v11288_v4  ;;  %v11328_v2 = vcombine.high %v763_v55, %v767_v57  ;;  %v11330_v4 = vcombine.high %v764_v61, %v768_v59  ;;  %v807_v55 = vld [vmem:[%s18253_s0 + $0x330] sm:$0xff]  ;;  %v804_v57 = vld [vmem:[%s18253_s0 + $0x318] sm:$0xff] }
 0x2b7   :  { %7879 = vmatprep.subr.bf16.mxu1 %v11290_v5  ;;  %v771_v5 = vld [vmem:[%s18253_s0 + $0x210] sm:$0xff] }
 0x2b8   :  { %v11335_v29 = vcombine.low %v771_v5, %v775_v10 }
 0x2b9   :  { %7552 = vmatpush1.bf16.msra.mxu0 %v11287_v33  ;;  %v11329_v33 = vcombine.low %v764_v61, %v768_v59  ;;  %v808_v61 = vld [vmem:[%s18253_s0 + $0x338] sm:$0xff] }
 0x2ba   :  { %7880 = vmatpush1.bf16.msra.mxu1 %v11289_v19  ;;  %7553 = vmatprep.subr.bf16.mxu0 %v11296_v21  ;;  %v11336_v19 = vcombine.high %v771_v5, %v775_v10  ;;  %v11338_v21 = vcombine.high %v772_v11, %v776_v27  ;;  %v815_v5 = vld [vmem:[%s18253_s0 + $0x370] sm:$0xff]  ;;  %v812_v10 = vld [vmem:[%s18253_s0 + $0x358] sm:$0xff] }
 0x2bb   :  { %7881 = vmatprep.subr.bf16.mxu1 %v11298_v22  ;;  %v779_v22 = vld [vmem:[%s18253_s0 + $0x250] sm:$0xff] }
 0x2bc   :  { %v11343_v30 = vcombine.low %v779_v22, %v783_v24 }
 0x2bd   :  { %7554 = vmatpush1.bf16.msra.mxu0 %v11295_v37  ;;  %v11337_v37 = vcombine.low %v772_v11, %v776_v27  ;;  %v816_v11 = vld [vmem:[%s18253_s0 + $0x378] sm:$0xff] }
 0x2be   :  { %7882 = vmatpush1.bf16.msra.mxu1 %v11297_v1  ;;  %7555 = vmatprep.subr.bf16.mxu0 %v11304_v60  ;;  %v11344_v1 = vcombine.high %v779_v22, %v783_v24  ;;  %v11346_v60 = vcombine.high %v780_v28, %v784_v38  ;;  %v823_v22 = vld [vmem:[%s18253_s0 + $0x3b0] sm:$0xff]  ;;  %v820_v24 = vld [vmem:[%s18253_s0 + $0x398] sm:$0xff] }
 0x2bf   :  { %7883 = vmatprep.subr.bf16.mxu1 %v11306_v31  ;;  %v787_v31 = vld [vmem:[%s18253_s0 + $0x290] sm:$0xff] }
 0x2c0   :  { %v11351_v49 = vcombine.low %v787_v31, %v791_v13 }
 0x2c1   :  { %7556 = vmatpush1.bf16.msra.mxu0 %v11303_v15  ;;  %v11345_v15 = vcombine.low %v780_v28, %v784_v38  ;;  %v824_v28 = vld [vmem:[%s18253_s0 + $0x3b8] sm:$0xff] }
 0x2c2   :  { %7884 = vmatpush1.bf16.msra.mxu1 %v11305_v0  ;;  %7557 = vmatprep.subr.bf16.mxu0 %v11312_v40  ;;  %v11352_v0 = vcombine.high %v787_v31, %v791_v13  ;;  %v11354_v40 = vcombine.high %v788_v3, %v792_v39  ;;  %v831_v31 = vld [vmem:[%s18253_s0 + $0x3f0] sm:$0xff]  ;;  %v828_v13 = vld [vmem:[%s18253_s0 + $0x3d8] sm:$0xff] }
 0x2c3   :  { %7885 = vmatprep.subr.bf16.mxu1 %v11314_v42  ;;  %v795_v42 = vld [vmem:[%s18253_s0 + $0x2d0] sm:$0xff] }
 0x2c4   :  { %v11359_v59 = vcombine.low %v795_v42, %v799_v44 }
 0x2c5   :  { %7558 = vmatpush1.bf16.msra.mxu0 %v11311_v50  ;;  %v11353_v50 = vcombine.low %v788_v3, %v792_v39  ;;  %v832_v3 = vld [vmem:[%s18253_s0 + $0x3f8] sm:$0xff] }
 0x2c6   :  { %7886 = vmatpush1.bf16.msra.mxu1 %v11313_v63  ;;  %7559 = vmatprep.subr.bf16.mxu0 %v11320_v17  ;;  %v11360_v63 = vcombine.high %v795_v42, %v799_v44  ;;  %v11362_v17 = vcombine.high %v796_v45, %v800_v48  ;;  %v839_v42 = vld [vmem:[%s18253_s0 + $0x430] sm:$0xff]  ;;  %v836_v44 = vld [vmem:[%s18253_s0 + $0x418] sm:$0xff] }
 0x2c7   :  { %7887 = vmatprep.subr.bf16.mxu1 %v11322_v54  ;;  %v803_v54 = vld [vmem:[%s18253_s0 + $0x310] sm:$0xff] }
 0x2c8   :  { %v11367_v27 = vcombine.low %v803_v54, %v807_v55 }
 0x2c9   :  { %7560 = vmatpush1.bf16.msra.mxu0 %v11319_v34  ;;  %v11361_v34 = vcombine.low %v796_v45, %v800_v48  ;;  %v840_v45 = vld [vmem:[%s18253_s0 + $0x438] sm:$0xff] }
 0x2ca   :  { %7888 = vmatpush1.bf16.msra.mxu1 %v11321_v62  ;;  %7561 = vmatprep.subr.bf16.mxu0 %v11328_v2  ;;  %v11368_v62 = vcombine.high %v803_v54, %v807_v55  ;;  %v11370_v2 = vcombine.high %v804_v57, %v808_v61  ;;  %v847_v54 = vld [vmem:[%s18253_s0 + $0x470] sm:$0xff] }
 0x2cb   :  { %7889 = vmatprep.subr.bf16.mxu1 %v11330_v4  ;;  %v811_v4 = vld [vmem:[%s18253_s0 + $0x350] sm:$0xff] }
 0x2cc   :  { %v11375_v38 = vcombine.low %v811_v4, %v815_v5 }
 0x2cd   :  { %7562 = vmatpush1.bf16.msra.mxu0 %v11327_v18  ;;  %v11369_v18 = vcombine.low %v804_v57, %v808_v61  ;;  %v844_v57 = vld [vmem:[%s18253_s0 + $0x458] sm:$0xff] }
 0x2ce   :  { %7890 = vmatpush1.bf16.msra.mxu1 %v11329_v33  ;;  %7563 = vmatprep.subr.bf16.mxu0 %v11336_v19  ;;  %v11376_v33 = vcombine.high %v811_v4, %v815_v5  ;;  %v11378_v19 = vcombine.high %v812_v10, %v816_v11  ;;  %v848_v61 = vld [vmem:[%s18253_s0 + $0x478] sm:$0xff] }
 0x2cf   :  { %7891 = vmatprep.subr.bf16.mxu1 %v11338_v21  ;;  %v819_v21 = vld [vmem:[%s18253_s0 + $0x390] sm:$0xff]  ;;  %v11410_v4 = vcombine.high %v844_v57, %v848_v61  ;;  %v852_v5 = vld [vmem:[%s18253_s0 + $0x498] sm:$0xff] }
 0x2d0   :  { %v11383_v39 = vcombine.low %v819_v21, %v823_v22 }
 0x2d1   :  { %7564 = vmatpush1.bf16.msra.mxu0 %v11335_v29  ;;  %v11377_v29 = vcombine.low %v812_v10, %v816_v11  ;;  %v856_v10 = vld [vmem:[%s18253_s0 + $0x4b8] sm:$0xff] }
 0x2d2   :  { %7892 = vmatpush1.bf16.msra.mxu1 %v11337_v37  ;;  %7565 = vmatprep.subr.bf16.mxu0 %v11344_v1  ;;  %v11384_v37 = vcombine.high %v819_v21, %v823_v22  ;;  %v11386_v1 = vcombine.high %v820_v24, %v824_v28  ;;  %v863_v21 = vld [vmem:[%s18253_s0 + $0x4f0] sm:$0xff]  ;;  %v864_v22 = vld [vmem:[%s18253_s0 + $0x4f8] sm:$0xff] }
 0x2d3   :  { %7893 = vmatprep.subr.bf16.mxu1 %v11346_v60  ;;  %v827_v60 = vld [vmem:[%s18253_s0 + $0x3d0] sm:$0xff] }
 0x2d4   :  { %v11391_v48 = vcombine.low %v827_v60, %v831_v31 }
 0x2d5   :  { %7566 = vmatpush1.bf16.msra.mxu0 %v11343_v30  ;;  %v11385_v30 = vcombine.low %v820_v24, %v824_v28  ;;  %v11417_v24 = vcombine.low %v852_v5, %v856_v10 }
 0x2d6   :  { %7894 = vmatpush1.bf16.msra.mxu1 %v11345_v15  ;;  %7567 = vmatprep.subr.bf16.mxu0 %v11352_v0  ;;  %v11392_v15 = vcombine.high %v827_v60, %v831_v31  ;;  %v11394_v0 = vcombine.high %v828_v13, %v832_v3  ;;  %v872_v60 = vld [vmem:[%s18253_s0 + $0x538] sm:$0xff] }
 0x2d7   :  { %7895 = vmatprep.subr.bf16.mxu1 %v11354_v40  ;;  %v835_v40 = vld [vmem:[%s18253_s0 + $0x410] sm:$0xff] }
 0x2d8   :  { %v11399_v55 = vcombine.low %v835_v40, %v839_v42 }
 0x2d9   :  { %7568 = vmatpush1.bf16.msra.mxu0 %v11351_v49  ;;  %v11393_v49 = vcombine.low %v828_v13, %v832_v3 }
 0x2da   :  { %7896 = vmatpush1.bf16.msra.mxu1 %v11353_v50  ;;  %7569 = vmatprep.subr.bf16.mxu0 %v11360_v63  ;;  %v11400_v50 = vcombine.high %v835_v40, %v839_v42  ;;  %v11402_v63 = vcombine.high %v836_v44, %v840_v45  ;;  %v880_v40 = vld [vmem:[%s18253_s0 + $0x578] sm:$0xff] }
 0x2db   :  { %7897 = vmatprep.subr.bf16.mxu1 %v11362_v17  ;;  %v843_v17 = vld [vmem:[%s18253_s0 + $0x450] sm:$0xff] }
 0x2dc   :  { %v11407_v11 = vcombine.low %v843_v17, %v847_v54 }
 0x2dd   :  { %7570 = vmatpush1.bf16.msra.mxu0 %v11359_v59  ;;  %v11401_v59 = vcombine.low %v836_v44, %v840_v45 }
 0x2de   :  { %7898 = vmatpush1.bf16.msra.mxu1 %v11361_v34  ;;  %7571 = vmatprep.subr.bf16.mxu0 %v11368_v62  ;;  %v11408_v34 = vcombine.high %v843_v17, %v847_v54  ;;  %v851_v62 = vld [vmem:[%s18253_s0 + $0x490] sm:$0xff]  ;;  %v888_v17 = vld [vmem:[%s18253_s0 + $0x5b8] sm:$0xff] }
 0x2df   :  { %7899 = vmatprep.subr.bf16.mxu1 %v11370_v2  ;;  %v855_v2 = vld [vmem:[%s18253_s0 + $0x4b0] sm:$0xff] }
 0x2e1   :  { %7572 = vmatpush1.bf16.msra.mxu0 %v11367_v27  ;;  %v11409_v27 = vcombine.low %v844_v57, %v848_v61 }
 0x2e2   :  { %7900 = vmatpush1.bf16.msra.mxu1 %v11369_v18  ;;  %7573 = vmatprep.subr.bf16.mxu0 %v11376_v33  ;;  %v11416_v18 = vcombine.high %v851_v62, %v855_v2  ;;  %v11418_v33 = vcombine.high %v852_v5, %v856_v10 }
 0x2e3   :  { %7901 = vmatprep.subr.bf16.mxu1 %v11378_v19  ;;  %v859_v19 = vld [vmem:[%s18253_s0 + $0x4d0] sm:$0xff] }
 0x2e4   :  { %v11424_v28 = vcombine.high %v859_v19, %v863_v21  ;;  %v11423_v31 = vcombine.low %v859_v19, %v863_v21  ;;  %v904_v19 = vld [vmem:[%s18253_s0 + $0x638] sm:$0xff] }
 0x2e5   :  { %7574 = vmatpush1.bf16.msra.mxu0 %v11375_v38 }
 0x2e6   :  { %7902 = vmatpush1.bf16.msra.mxu1 %v11377_v29  ;;  %7575 = vmatprep.subr.bf16.mxu0 %v11384_v37  ;;  %v867_v29 = vld [vmem:[%s18253_s0 + $0x510] sm:$0xff] }
 0x2e7   :  { %7903 = vmatprep.subr.bf16.mxu1 %v11386_v1  ;;  %v871_v37 = vld [vmem:[%s18253_s0 + $0x530] sm:$0xff]  ;;  %v868_v1 = vld [vmem:[%s18253_s0 + $0x518] sm:$0xff] }
 0x2e8   :  { %v11432_v3 = vcombine.high %v867_v29, %v871_v37  ;;  %v11431_v42 = vcombine.low %v867_v29, %v871_v37  ;;  %v11433_v44 = vcombine.low %v868_v1, %v872_v60  ;;  %v912_v29 = vld [vmem:[%s18253_s0 + $0x678] sm:$0xff] }
 0x2e9   :  { %7576 = vmatpush1.bf16.msra.mxu0 %v11383_v39  ;;  %v11434_v39 = vcombine.high %v868_v1, %v872_v60 }
 0x2ea   :  { %7904 = vmatpush1.bf16.msra.mxu1 %v11385_v30  ;;  %7577 = vmatprep.subr.bf16.mxu0 %v11392_v15  ;;  %v875_v30 = vld [vmem:[%s18253_s0 + $0x550] sm:$0xff] }
 0x2eb   :  { %7905 = vmatprep.subr.bf16.mxu1 %v11394_v0  ;;  %v879_v15 = vld [vmem:[%s18253_s0 + $0x570] sm:$0xff]  ;;  %v876_v0 = vld [vmem:[%s18253_s0 + $0x558] sm:$0xff] }
 0x2ec   :  { %v11440_v45 = vcombine.high %v875_v30, %v879_v15  ;;  %v11439_v54 = vcombine.low %v875_v30, %v879_v15  ;;  %v920_v30 = vld [vmem:[%s18253_s0 + $0x6b8] sm:$0xff] }
 0x2ed   :  { %7578 = vmatpush1.bf16.msra.mxu0 %v11391_v48  ;;  %v11442_v48 = vcombine.high %v876_v0, %v880_v40 }
 0x2ee   :  { %7906 = vmatpush1.bf16.msra.mxu1 %v11393_v49  ;;  %7588 = vmatprep.subr.bf16.mxu0 %v11400_v50  ;;  %v883_v49 = vld [vmem:[%s18253_s0 + $0x590] sm:$0xff] }
 0x2ef   :  { %7916 = vmatprep.subr.bf16.mxu1 %v11402_v63  ;;  %v887_v50 = vld [vmem:[%s18253_s0 + $0x5b0] sm:$0xff]  ;;  %v884_v63 = vld [vmem:[%s18253_s0 + $0x598] sm:$0xff] }
 0x2f0   :  { %7580 = vmatmul.mubr.bf16.vlgmr.msra.gmra.mrb[12].mxu0 %v13958_v35  ;;  %v11448_v57 = vcombine.high %v883_v49, %v887_v50  ;;  %v11450_v61 = vcombine.high %v884_v63, %v888_v17  ;;  %v11449_v5 = vcombine.low %v884_v63, %v888_v17 }
 0x2f1   :  { %7908 = vmatmul.mubr.bf16.vlgmr.msra.gmra.mrb[28].mxu1 %v13958_v35  ;;  %7589 = vmatpush1.bf16.msra.mxu0 %v11399_v55  ;;  %v860_v35 = vld [vmem:[%s18253_s0 + $0x4d8] sm:$0xff]  ;;  %v11441_v55 = vcombine.low %v876_v0, %v880_v40 }
 0x2f2   :  { %7620 = vmatprep.mubr.bf16.mxu0 %v13990_v56  ;;  %7917 = vmatpush1.bf16.msra.mxu1 %v11401_v59  ;;  %v11426_v38 = vcombine.high %v860_v35, %v864_v22  ;;  %v11425_v13 = vcombine.low %v860_v35, %v864_v22  ;;  %v891_v59 = vld [vmem:[%s18253_s0 + $0x5d0] sm:$0xff] }
 0x2f3   :  { %7948 = vmatprep.mubr.bf16.mxu1 %v13990_v56  ;;  %7590 = vmatprep.subr.bf16.mxu0 %v11408_v34  ;;  %v11415_v56 = vcombine.low %v851_v62, %v855_v2  ;;  %v895_v34 = vld [vmem:[%s18253_s0 + $0x5f0] sm:$0xff]  ;;  %v892_v62 = vld [vmem:[%s18253_s0 + $0x5d8] sm:$0xff] }
 0x2f4   :  { %7918 = vmatprep.subr.bf16.mxu1 %v11410_v4  ;;  %v896_v2 = vld [vmem:[%s18253_s0 + $0x5f8] sm:$0xff]  ;;  %v11447_v4 = vcombine.low %v883_v49, %v887_v50  ;;  %v11456_v10 = vcombine.high %v891_v59, %v895_v34  ;;  %v11455_v21 = vcombine.low %v891_v59, %v895_v34 }
 0x2f5   :  { %7591 = vmatpush1.bf16.msra.mxu0 %v11407_v11  ;;  %v11458_v11 = vcombine.high %v892_v62, %v896_v2  ;;  %v11457_v35 = vcombine.low %v892_v62, %v896_v2  ;;  %v928_v49 = vld [vmem:[%s18253_s0 + $0x6f8] sm:$0xff] }
 0x2f6   :  { %7919 = vmatpush1.bf16.msra.mxu1 %v11409_v27  ;;  %7592 = vmatprep.subr.bf16.mxu0 %v11416_v18  ;;  %v899_v27 = vld [vmem:[%s18253_s0 + $0x610] sm:$0xff]  ;;  %v936_v59 = vld [vmem:[%s18253_s0 + $0x738] sm:$0xff] }
 0x2f7   :  { %7920 = vmatprep.subr.bf16.mxu1 %v11418_v33  ;;  %v903_v18 = vld [vmem:[%s18253_s0 + $0x630] sm:$0xff]  ;;  %v900_v33 = vld [vmem:[%s18253_s0 + $0x618] sm:$0xff] }
 0x2f8   :  { %v11464_v22 = vcombine.high %v899_v27, %v903_v18  ;;  %v11463_v37 = vcombine.low %v899_v27, %v903_v18  ;;  %v11465_v1 = vcombine.low %v900_v33, %v904_v19  ;;  %v944_v27 = vld [vmem:[%s18253_s0 + $0x778] sm:$0xff] }
 0x2f9   :  { %7593 = vmatpush1.bf16.msra.mxu0 %v11415_v56  ;;  %v11466_v56 = vcombine.high %v900_v33, %v904_v19 }
 0x2fa   :  { %7921 = vmatpush1.bf16.msra.mxu1 %v11417_v24  ;;  %7594 = vmatprep.subr.bf16.mxu0 %v11424_v28  ;;  %v907_v24 = vld [vmem:[%s18253_s0 + $0x650] sm:$0xff] }
 0x2fb   :  { %7922 = vmatprep.subr.bf16.mxu1 %v11426_v38  ;;  %v911_v28 = vld [vmem:[%s18253_s0 + $0x670] sm:$0xff]  ;;  %v908_v38 = vld [vmem:[%s18253_s0 + $0x658] sm:$0xff] }
 0x2fc   :  { %v11472_v60 = vcombine.high %v907_v24, %v911_v28  ;;  %v11471_v15 = vcombine.low %v907_v24, %v911_v28  ;;  %v11473_v0 = vcombine.low %v908_v38, %v912_v29  ;;  %v952_v24 = vld [vmem:[%s18253_s0 + $0x7b8] sm:$0xff] }
 0x2fd   :  { %7595 = vmatpush1.bf16.msra.mxu0 %v11423_v31  ;;  %v11474_v31 = vcombine.high %v908_v38, %v912_v29 }
 0x2fe   :  { %7923 = vmatpush1.bf16.msra.mxu1 %v11425_v13  ;;  %7596 = vmatprep.subr.bf16.mxu0 %v11432_v3  ;;  %v915_v13 = vld [vmem:[%s18253_s0 + $0x690] sm:$0xff] }
 0x2ff   :  { %7924 = vmatprep.subr.bf16.mxu1 %v11434_v39  ;;  %v919_v3 = vld [vmem:[%s18253_s0 + $0x6b0] sm:$0xff]  ;;  %v916_v39 = vld [vmem:[%s18253_s0 + $0x698] sm:$0xff] }
 0x300   :  { %v11480_v40 = vcombine.high %v915_v13, %v919_v3  ;;  %v11479_v50 = vcombine.low %v915_v13, %v919_v3  ;;  %v11481_v63 = vcombine.low %v916_v39, %v920_v30  ;;  %v960_v13 = vld [vmem:[%s18253_s0 + $0x7f8] sm:$0xff] }
 0x301   :  { %7597 = vmatpush1.bf16.msra.mxu0 %v11431_v42  ;;  %v11482_v42 = vcombine.high %v916_v39, %v920_v30 }
 0x302   :  { %7925 = vmatpush1.bf16.msra.mxu1 %v11433_v44  ;;  %7598 = vmatprep.subr.bf16.mxu0 %v11440_v45  ;;  %v923_v44 = vld [vmem:[%s18253_s0 + $0x6d0] sm:$0xff] }
 0x303   :  { %7926 = vmatprep.subr.bf16.mxu1 %v11442_v48  ;;  %v927_v45 = vld [vmem:[%s18253_s0 + $0x6f0] sm:$0xff]  ;;  %v924_v48 = vld [vmem:[%s18253_s0 + $0x6d8] sm:$0xff] }
 0x304   :  { %v11488_v17 = vcombine.high %v923_v44, %v927_v45  ;;  %v11487_v34 = vcombine.low %v923_v44, %v927_v45  ;;  %v11489_v62 = vcombine.low %v924_v48, %v928_v49  ;;  %v968_v44 = vld [vmem:[%s18253_s0 + $0x838] sm:$0xff] }
 0x305   :  { %7599 = vmatpush1.bf16.msra.mxu0 %v11439_v54  ;;  %v11490_v54 = vcombine.high %v924_v48, %v928_v49 }
 0x306   :  { %7927 = vmatpush1.bf16.msra.mxu1 %v11441_v55  ;;  %7600 = vmatprep.subr.bf16.mxu0 %v11448_v57  ;;  %v931_v55 = vld [vmem:[%s18253_s0 + $0x710] sm:$0xff] }
 0x307   :  { %7928 = vmatprep.subr.bf16.mxu1 %v11450_v61  ;;  %v935_v57 = vld [vmem:[%s18253_s0 + $0x730] sm:$0xff]  ;;  %v932_v61 = vld [vmem:[%s18253_s0 + $0x718] sm:$0xff] }
 0x308   :  { %v11496_v2 = vcombine.high %v931_v55, %v935_v57  ;;  %v11495_v18 = vcombine.low %v931_v55, %v935_v57  ;;  %v11497_v33 = vcombine.low %v932_v61, %v936_v59  ;;  %v972_v55 = vld [vmem:[%s18253_s0 + $0x858] sm:$0xff] }
 0x309   :  { %7601 = vmatpush1.bf16.msra.mxu0 %v11447_v4  ;;  %v11498_v4 = vcombine.high %v932_v61, %v936_v59  ;;  %v976_v57 = vld [vmem:[%s18253_s0 + $0x878] sm:$0xff] }
 0x30a   :  { %7929 = vmatpush1.bf16.msra.mxu1 %v11449_v5  ;;  %7602 = vmatprep.subr.bf16.mxu0 %v11456_v10  ;;  %v939_v5 = vld [vmem:[%s18253_s0 + $0x750] sm:$0xff] }
 0x30b   :  { %7930 = vmatprep.subr.bf16.mxu1 %v11458_v11  ;;  %v943_v10 = vld [vmem:[%s18253_s0 + $0x770] sm:$0xff]  ;;  %v940_v11 = vld [vmem:[%s18253_s0 + $0x758] sm:$0xff] }
 0x30c   :  { %v11504_v19 = vcombine.high %v939_v5, %v943_v10  ;;  %v11503_v28 = vcombine.low %v939_v5, %v943_v10  ;;  %v11505_v38 = vcombine.low %v940_v11, %v944_v27  ;;  %v984_v5 = vld [vmem:[%s18253_s0 + $0x8b8] sm:$0xff] }
 0x30d   :  { %7603 = vmatpush1.bf16.msra.mxu0 %v11455_v21  ;;  %v11506_v21 = vcombine.high %v940_v11, %v944_v27  ;;  %v11537_v11 = vcombine.low %v972_v55, %v976_v57 }
 0x30e   :  { %7931 = vmatpush1.bf16.msra.mxu1 %v11457_v35  ;;  %7604 = vmatprep.subr.bf16.mxu0 %v11464_v22  ;;  %v947_v35 = vld [vmem:[%s18253_s0 + $0x790] sm:$0xff] }
 0x30f   :  { %7932 = vmatprep.subr.bf16.mxu1 %v11466_v56  ;;  %v951_v22 = vld [vmem:[%s18253_s0 + $0x7b0] sm:$0xff]  ;;  %v948_v56 = vld [vmem:[%s18253_s0 + $0x798] sm:$0xff] }
 0x310   :  { %v11512_v29 = vcombine.high %v947_v35, %v951_v22  ;;  %v11511_v3 = vcombine.low %v947_v35, %v951_v22  ;;  %v11513_v39 = vcombine.low %v948_v56, %v952_v24 }
 0x311   :  { %7605 = vmatpush1.bf16.msra.mxu0 %v11463_v37  ;;  %v11514_v37 = vcombine.high %v948_v56, %v952_v24  ;;  %v995_v24 = vld [vmem:[%s18253_s0 + $0x910] sm:$0xff] }
 0x312   :  { %7933 = vmatpush1.bf16.msra.mxu1 %v11465_v1  ;;  %7606 = vmatprep.subr.bf16.mxu0 %v11472_v60  ;;  %v955_v1 = vld [vmem:[%s18253_s0 + $0x7d0] sm:$0xff] }
 0x313   :  { %7934 = vmatprep.subr.bf16.mxu1 %v11474_v31  ;;  %v959_v60 = vld [vmem:[%s18253_s0 + $0x7f0] sm:$0xff]  ;;  %v956_v31 = vld [vmem:[%s18253_s0 + $0x7d8] sm:$0xff] }
 0x314   :  { %v11520_v30 = vcombine.high %v955_v1, %v959_v60  ;;  %v11519_v45 = vcombine.low %v955_v1, %v959_v60  ;;  %v11521_v48 = vcombine.low %v956_v31, %v960_v13 }
 0x315   :  { %7607 = vmatpush1.bf16.msra.mxu0 %v11471_v15  ;;  %v11522_v15 = vcombine.high %v956_v31, %v960_v13  ;;  %v1003_v13 = vld [vmem:[%s18253_s0 + $0x950] sm:$0xff] }
 0x316   :  { %7935 = vmatpush1.bf16.msra.mxu1 %v11473_v0  ;;  %7608 = vmatprep.subr.bf16.mxu0 %v11480_v40  ;;  %v963_v0 = vld [vmem:[%s18253_s0 + $0x810] sm:$0xff] }
 0x317   :  { %7936 = vmatprep.subr.bf16.mxu1 %v11482_v42  ;;  %v967_v40 = vld [vmem:[%s18253_s0 + $0x830] sm:$0xff]  ;;  %v964_v42 = vld [vmem:[%s18253_s0 + $0x818] sm:$0xff] }
 0x318   :  { %v11528_v49 = vcombine.high %v963_v0, %v967_v40  ;;  %v11529_v61 = vcombine.low %v964_v42, %v968_v44 }
 0x319   :  { %7609 = vmatpush1.bf16.msra.mxu0 %v11479_v50  ;;  %v11530_v50 = vcombine.high %v964_v42, %v968_v44  ;;  %v1011_v44 = vld [vmem:[%s18253_s0 + $0x990] sm:$0xff] }
 0x31a   :  { %7937 = vmatpush1.bf16.msra.mxu1 %v11481_v63  ;;  %7610 = vmatprep.subr.bf16.mxu0 %v11488_v17  ;;  %v971_v63 = vld [vmem:[%s18253_s0 + $0x850] sm:$0xff] }
 0x31b   :  { %7938 = vmatprep.subr.bf16.mxu1 %v11490_v54  ;;  %v975_v17 = vld [vmem:[%s18253_s0 + $0x870] sm:$0xff]  ;;  %v11527_v54 = vcombine.low %v963_v0, %v967_v40 }
 0x31c   :  { %v11536_v59 = vcombine.high %v971_v63, %v975_v17  ;;  %v11535_v10 = vcombine.low %v971_v63, %v975_v17 }
 0x31d   :  { %7611 = vmatpush1.bf16.msra.mxu0 %v11487_v34  ;;  %v979_v34 = vld [vmem:[%s18253_s0 + $0x890] sm:$0xff] }
 0x31e   :  { %7939 = vmatpush1.bf16.msra.mxu1 %v11489_v62  ;;  %7612 = vmatprep.subr.bf16.mxu0 %v11496_v2  ;;  %v983_v62 = vld [vmem:[%s18253_s0 + $0x8b0] sm:$0xff]  ;;  %v11538_v2 = vcombine.high %v972_v55, %v976_v57 }
 0x31f   :  { %7940 = vmatprep.subr.bf16.mxu1 %v11498_v4  ;;  %v980_v4 = vld [vmem:[%s18253_s0 + $0x898] sm:$0xff]  ;;  %v11544_v27 = vcombine.high %v979_v34, %v983_v62  ;;  %v1019_v55 = vld [vmem:[%s18253_s0 + $0x9d0] sm:$0xff] }
 0x320   :  { %v11545_v35 = vcombine.low %v980_v4, %v984_v5  ;;  %v1023_v57 = vld [vmem:[%s18253_s0 + $0x9f0] sm:$0xff] }
 0x321   :  { %7613 = vmatpush1.bf16.msra.mxu0 %v11495_v18  ;;  %v11546_v18 = vcombine.high %v980_v4, %v984_v5  ;;  %v1027_v5 = vld [vmem:[%s18253_s0 + $0xa10] sm:$0xff] }
 0x322   :  { %7941 = vmatpush1.bf16.msra.mxu1 %v11497_v33  ;;  %7614 = vmatprep.subr.bf16.mxu0 %v11504_v19  ;;  %v987_v33 = vld [vmem:[%s18253_s0 + $0x8d0] sm:$0xff] }
 0x323   :  { %7942 = vmatprep.subr.bf16.mxu1 %v11506_v21  ;;  %v991_v19 = vld [vmem:[%s18253_s0 + $0x8f0] sm:$0xff]  ;;  %v992_v21 = vld [vmem:[%s18253_s0 + $0x8f8] sm:$0xff] }
 0x324   :  { %v11552_v22 = vcombine.high %v987_v33, %v991_v19 }
 0x325   :  { %7615 = vmatpush1.bf16.msra.mxu0 %v11503_v28  ;;  %v999_v28 = vld [vmem:[%s18253_s0 + $0x930] sm:$0xff] }
 0x326   :  { %7943 = vmatpush1.bf16.msra.mxu1 %v11505_v38  ;;  %7616 = vmatprep.subr.bf16.mxu0 %v11512_v29  ;;  %v996_v38 = vld [vmem:[%s18253_s0 + $0x918] sm:$0xff]  ;;  %v11560_v60 = vcombine.high %v995_v24, %v999_v28 }
 0x327   :  { %7944 = vmatprep.subr.bf16.mxu1 %v11514_v37  ;;  %v1000_v29 = vld [vmem:[%s18253_s0 + $0x938] sm:$0xff]  ;;  %v11551_v37 = vcombine.low %v987_v33, %v991_v19 }
 0x328   :  { %v11562_v31 = vcombine.high %v996_v38, %v1000_v29  ;;  %v11561_v0 = vcombine.low %v996_v38, %v1000_v29  ;;  %v1043_v29 = vld [vmem:[%s18253_s0 + $0xa90] sm:$0xff] }
 0x329   :  { %7617 = vmatpush1.bf16.msra.mxu0 %v11511_v3  ;;  %v1007_v3 = vld [vmem:[%s18253_s0 + $0x970] sm:$0xff] }
 0x32a   :  { %7945 = vmatpush1.bf16.msra.mxu1 %v11513_v39  ;;  %7618 = vmatprep.subr.bf16.mxu0 %v11520_v30  ;;  %v1004_v39 = vld [vmem:[%s18253_s0 + $0x958] sm:$0xff]  ;;  %v11568_v40 = vcombine.high %v1003_v13, %v1007_v3 }
 0x32b   :  { %7946 = vmatprep.subr.bf16.mxu1 %v11522_v15  ;;  %v1008_v30 = vld [vmem:[%s18253_s0 + $0x978] sm:$0xff]  ;;  %v11559_v15 = vcombine.low %v995_v24, %v999_v28 }
 0x32c   :  { %v11570_v42 = vcombine.high %v1004_v39, %v1008_v30  ;;  %v11569_v63 = vcombine.low %v1004_v39, %v1008_v30  ;;  %v1051_v30 = vld [vmem:[%s18253_s0 + $0xad0] sm:$0xff] }
 0x32d   :  { %7619 = vmatpush1.bf16.msra.mxu0 %v11519_v45  ;;  %v1015_v45 = vld [vmem:[%s18253_s0 + $0x9b0] sm:$0xff] }
 0x32e   :  { %7947 = vmatpush1.bf16.msra.mxu1 %v11521_v48  ;;  %7629 = vmatprep.subr.bf16.mxu0 %v11528_v49  ;;  %v1012_v48 = vld [vmem:[%s18253_s0 + $0x998] sm:$0xff]  ;;  %v11576_v17 = vcombine.high %v1011_v44, %v1015_v45 }
 0x32f   :  { %7957 = vmatprep.subr.bf16.mxu1 %v11530_v50  ;;  %v1016_v49 = vld [vmem:[%s18253_s0 + $0x9b8] sm:$0xff]  ;;  %v11567_v50 = vcombine.low %v1003_v13, %v1007_v3 }
 0x330   :  { %7621 = vmatmul.mubr.bf16.vlgmr.msra.gmra.mrb[12].mxu0 %v14190_v36 }
 0x331   :  { %7949 = vmatmul.mubr.bf16.vlgmr.msra.gmra.mrb[28].mxu1 %v14190_v36  ;;  %7630 = vmatpush1.bf16.msra.mxu0 %v11527_v54  ;;  %v988_v36 = vld [vmem:[%s18253_s0 + $0x8d8] sm:$0xff]  ;;  %v11578_v54 = vcombine.high %v1012_v48, %v1016_v49 }
 0x332   :  { %7661 = vmatprep.mubr.bf16.mxu0 %v14204_v46  ;;  %7958 = vmatpush1.bf16.msra.mxu1 %v11529_v61  ;;  %v11554_v56 = vcombine.high %v988_v36, %v992_v21  ;;  %v11553_v1 = vcombine.low %v988_v36, %v992_v21  ;;  %v1020_v61 = vld [vmem:[%s18253_s0 + $0x9d8] sm:$0xff]  ;;  %v1035_v21 = vld [vmem:[%s18253_s0 + $0xa50] sm:$0xff] }
 0x333   :  { %7989 = vmatprep.mubr.bf16.mxu1 %v14204_v46  ;;  %7631 = vmatprep.subr.bf16.mxu0 %v11536_v59  ;;  %v11543_v46 = vcombine.low %v979_v34, %v983_v62  ;;  %v1024_v59 = vld [vmem:[%s18253_s0 + $0x9f8] sm:$0xff]  ;;  %v11575_v34 = vcombine.low %v1011_v44, %v1015_v45  ;;  %v11577_v62 = vcombine.low %v1012_v48, %v1016_v49  ;;  %v1059_v49 = vld [vmem:[%s18253_s0 + $0xb10] sm:$0xff] }
 0x334   :  { %7959 = vmatprep.subr.bf16.mxu1 %v11538_v2  ;;  %v11584_v2 = vcombine.high %v1019_v55, %v1023_v57  ;;  %v11586_v4 = vcombine.high %v1020_v61, %v1024_v59  ;;  %v11585_v33 = vcombine.low %v1020_v61, %v1024_v59  ;;  %v1067_v59 = vld [vmem:[%s18253_s0 + $0xb50] sm:$0xff] }
 0x335   :  { %7632 = vmatpush1.bf16.msra.mxu0 %v11535_v10  ;;  %v1031_v10 = vld [vmem:[%s18253_s0 + $0xa30] sm:$0xff] }
 0x336   :  { %7960 = vmatpush1.bf16.msra.mxu1 %v11537_v11  ;;  %7633 = vmatprep.subr.bf16.mxu0 %v11544_v27  ;;  %v1028_v11 = vld [vmem:[%s18253_s0 + $0xa18] sm:$0xff]  ;;  %v11592_v19 = vcombine.high %v1027_v5, %v1031_v10 }
 0x337   :  { %7961 = vmatprep.subr.bf16.mxu1 %v11546_v18  ;;  %v1032_v27 = vld [vmem:[%s18253_s0 + $0xa38] sm:$0xff]  ;;  %v11583_v18 = vcombine.low %v1019_v55, %v1023_v57 }
 0x338   :  { %v11594_v36 = vcombine.high %v1028_v11, %v1032_v27  ;;  %v11593_v24 = vcombine.low %v1028_v11, %v1032_v27  ;;  %v1075_v27 = vld [vmem:[%s18253_s0 + $0xb90] sm:$0xff] }
 0x339   :  { %7634 = vmatpush1.bf16.msra.mxu0 %v11543_v46  ;;  %v1039_v46 = vld [vmem:[%s18253_s0 + $0xa70] sm:$0xff] }
 0x33a   :  { %7962 = vmatpush1.bf16.msra.mxu1 %v11545_v35  ;;  %7635 = vmatprep.subr.bf16.mxu0 %v11552_v22  ;;  %v1036_v35 = vld [vmem:[%s18253_s0 + $0xa58] sm:$0xff]  ;;  %v11600_v28 = vcombine.high %v1035_v21, %v1039_v46 }
 0x33b   :  { %7963 = vmatprep.subr.bf16.mxu1 %v11554_v56  ;;  %v1040_v22 = vld [vmem:[%s18253_s0 + $0xa78] sm:$0xff]  ;;  %v11591_v56 = vcombine.low %v1027_v5, %v1031_v10 }
 0x33c   :  { %v11602_v38 = vcombine.high %v1036_v35, %v1040_v22  ;;  %v11601_v13 = vcombine.low %v1036_v35, %v1040_v22  ;;  %v1083_v22 = vld [vmem:[%s18253_s0 + $0xbd0] sm:$0xff] }
 0x33d   :  { %7636 = vmatpush1.bf16.msra.mxu0 %v11551_v37  ;;  %v1047_v37 = vld [vmem:[%s18253_s0 + $0xab0] sm:$0xff] }
 0x33e   :  { %7964 = vmatpush1.bf16.msra.mxu1 %v11553_v1  ;;  %7637 = vmatprep.subr.bf16.mxu0 %v11560_v60  ;;  %v1044_v1 = vld [vmem:[%s18253_s0 + $0xa98] sm:$0xff]  ;;  %v11608_v3 = vcombine.high %v1043_v29, %v1047_v37 }
 0x33f   :  { %7965 = vmatprep.subr.bf16.mxu1 %v11562_v31  ;;  %v1048_v60 = vld [vmem:[%s18253_s0 + $0xab8] sm:$0xff]  ;;  %v11599_v31 = vcombine.low %v1035_v21, %v1039_v46 }
 0x340   :  { %v11610_v39 = vcombine.high %v1044_v1, %v1048_v60  ;;  %v11609_v44 = vcombine.low %v1044_v1, %v1048_v60  ;;  %v1091_v60 = vld [vmem:[%s18253_s0 + $0xc10] sm:$0xff] }
 0x341   :  { %7638 = vmatpush1.bf16.msra.mxu0 %v11559_v15  ;;  %v1055_v15 = vld [vmem:[%s18253_s0 + $0xaf0] sm:$0xff] }
 0x342   :  { %7966 = vmatpush1.bf16.msra.mxu1 %v11561_v0  ;;  %7639 = vmatprep.subr.bf16.mxu0 %v11568_v40  ;;  %v1052_v0 = vld [vmem:[%s18253_s0 + $0xad8] sm:$0xff]  ;;  %v11616_v45 = vcombine.high %v1051_v30, %v1055_v15 }
 0x343   :  { %7967 = vmatprep.subr.bf16.mxu1 %v11570_v42  ;;  %v1056_v40 = vld [vmem:[%s18253_s0 + $0xaf8] sm:$0xff]  ;;  %v11607_v42 = vcombine.low %v1043_v29, %v1047_v37 }
 0x344   :  { %v11618_v48 = vcombine.high %v1052_v0, %v1056_v40  ;;  %v11617_v55 = vcombine.low %v1052_v0, %v1056_v40  ;;  %v1099_v40 = vld [vmem:[%s18253_s0 + $0xc50] sm:$0xff] }
 0x345   :  { %7640 = vmatpush1.bf16.msra.mxu0 %v11567_v50  ;;  %v1063_v50 = vld [vmem:[%s18253_s0 + $0xb30] sm:$0xff] }
 0x346   :  { %7968 = vmatpush1.bf16.msra.mxu1 %v11569_v63  ;;  %7641 = vmatprep.subr.bf16.mxu0 %v11576_v17  ;;  %v1060_v63 = vld [vmem:[%s18253_s0 + $0xb18] sm:$0xff]  ;;  %v11624_v57 = vcombine.high %v1059_v49, %v1063_v50 }
 0x347   :  { %7969 = vmatprep.subr.bf16.mxu1 %v11578_v54  ;;  %v1064_v17 = vld [vmem:[%s18253_s0 + $0xb38] sm:$0xff]  ;;  %v11615_v54 = vcombine.low %v1051_v30, %v1055_v15 }
 0x348   :  { %v11626_v61 = vcombine.high %v1060_v63, %v1064_v17  ;;  %v11625_v5 = vcombine.low %v1060_v63, %v1064_v17  ;;  %v1107_v63 = vld [vmem:[%s18253_s0 + $0xc90] sm:$0xff] }
 0x349   :  { %7642 = vmatpush1.bf16.msra.mxu0 %v11575_v34  ;;  %v1071_v34 = vld [vmem:[%s18253_s0 + $0xb70] sm:$0xff] }
 0x34a   :  { %7970 = vmatpush1.bf16.msra.mxu1 %v11577_v62  ;;  %7643 = vmatprep.subr.bf16.mxu0 %v11584_v2  ;;  %v1068_v62 = vld [vmem:[%s18253_s0 + $0xb58] sm:$0xff]  ;;  %v11632_v10 = vcombine.high %v1067_v59, %v1071_v34  ;;  %v1111_v17 = vld [vmem:[%s18253_s0 + $0xcb0] sm:$0xff] }
 0x34b   :  { %7971 = vmatprep.subr.bf16.mxu1 %v11586_v4  ;;  %v1072_v2 = vld [vmem:[%s18253_s0 + $0xb78] sm:$0xff]  ;;  %v11623_v4 = vcombine.low %v1059_v49, %v1063_v50 }
 0x34c   :  { %v11634_v11 = vcombine.high %v1068_v62, %v1072_v2  ;;  %v11633_v21 = vcombine.low %v1068_v62, %v1072_v2  ;;  %v1115_v2 = vld [vmem:[%s18253_s0 + $0xcd0] sm:$0xff] }
 0x34d   :  { %7644 = vmatpush1.bf16.msra.mxu0 %v11583_v18  ;;  %v1079_v18 = vld [vmem:[%s18253_s0 + $0xbb0] sm:$0xff] }
 0x34e   :  { %7972 = vmatpush1.bf16.msra.mxu1 %v11585_v33  ;;  %7645 = vmatprep.subr.bf16.mxu0 %v11592_v19  ;;  %v1076_v33 = vld [vmem:[%s18253_s0 + $0xb98] sm:$0xff]  ;;  %v11640_v46 = vcombine.high %v1075_v27, %v1079_v18 }
 0x34f   :  { %7973 = vmatprep.subr.bf16.mxu1 %v11594_v36  ;;  %v1080_v19 = vld [vmem:[%s18253_s0 + $0xbb8] sm:$0xff]  ;;  %v11631_v36 = vcombine.low %v1067_v59, %v1071_v34  ;;  %v11672_v34 = vcombine.high %v1107_v63, %v1111_v17 }
 0x350   :  { %v11642_v35 = vcombine.high %v1076_v33, %v1080_v19  ;;  %v11641_v29 = vcombine.low %v1076_v33, %v1080_v19  ;;  %v1127_v33 = vld [vmem:[%s18253_s0 + $0xd30] sm:$0xff]  ;;  %v1124_v19 = vld [vmem:[%s18253_s0 + $0xd18] sm:$0xff] }
 0x351   :  { %7646 = vmatpush1.bf16.msra.mxu0 %v11591_v56  ;;  %v1087_v56 = vld [vmem:[%s18253_s0 + $0xbf0] sm:$0xff] }
 0x352   :  { %7974 = vmatpush1.bf16.msra.mxu1 %v11593_v24  ;;  %7647 = vmatprep.subr.bf16.mxu0 %v11600_v28  ;;  %v1084_v24 = vld [vmem:[%s18253_s0 + $0xbd8] sm:$0xff]  ;;  %v11648_v37 = vcombine.high %v1083_v22, %v1087_v56 }
 0x353   :  { %7975 = vmatprep.subr.bf16.mxu1 %v11602_v38  ;;  %v1088_v28 = vld [vmem:[%s18253_s0 + $0xbf8] sm:$0xff]  ;;  %v11639_v38 = vcombine.low %v1075_v27, %v1079_v18  ;;  %v1123_v18 = vld [vmem:[%s18253_s0 + $0xd10] sm:$0xff] }
 0x354   :  { %v11650_v1 = vcombine.high %v1084_v24, %v1088_v28  ;;  %v11649_v30 = vcombine.low %v1084_v24, %v1088_v28  ;;  %v1135_v24 = vld [vmem:[%s18253_s0 + $0xd70] sm:$0xff]  ;;  %v1132_v28 = vld [vmem:[%s18253_s0 + $0xd58] sm:$0xff] }
 0x355   :  { %7648 = vmatpush1.bf16.msra.mxu0 %v11599_v31  ;;  %v1095_v31 = vld [vmem:[%s18253_s0 + $0xc30] sm:$0xff] }
 0x356   :  { %7976 = vmatpush1.bf16.msra.mxu1 %v11601_v13  ;;  %7649 = vmatprep.subr.bf16.mxu0 %v11608_v3  ;;  %v1092_v13 = vld [vmem:[%s18253_s0 + $0xc18] sm:$0xff]  ;;  %v11656_v15 = vcombine.high %v1091_v60, %v1095_v31 }
 0x357   :  { %7977 = vmatprep.subr.bf16.mxu1 %v11610_v39  ;;  %v1096_v3 = vld [vmem:[%s18253_s0 + $0xc38] sm:$0xff]  ;;  %v11647_v39 = vcombine.low %v1083_v22, %v1087_v56  ;;  %v1131_v56 = vld [vmem:[%s18253_s0 + $0xd50] sm:$0xff] }
 0x358   :  { %v11658_v0 = vcombine.high %v1092_v13, %v1096_v3  ;;  %v11657_v49 = vcombine.low %v1092_v13, %v1096_v3  ;;  %v1143_v13 = vld [vmem:[%s18253_s0 + $0xdb0] sm:$0xff]  ;;  %v1140_v3 = vld [vmem:[%s18253_s0 + $0xd98] sm:$0xff] }
 0x359   :  { %7650 = vmatpush1.bf16.msra.mxu0 %v11607_v42  ;;  %v1103_v42 = vld [vmem:[%s18253_s0 + $0xc70] sm:$0xff] }
 0x35a   :  { %7978 = vmatpush1.bf16.msra.mxu1 %v11609_v44  ;;  %7651 = vmatprep.subr.bf16.mxu0 %v11616_v45  ;;  %v11655_v44 = vcombine.low %v1091_v60, %v1095_v31  ;;  %v1100_v45 = vld [vmem:[%s18253_s0 + $0xc58] sm:$0xff]  ;;  %v11664_v50 = vcombine.high %v1099_v40, %v1103_v42  ;;  %v1139_v31 = vld [vmem:[%s18253_s0 + $0xd90] sm:$0xff] }
 0x35b   :  { %7979 = vmatprep.subr.bf16.mxu1 %v11618_v48  ;;  %v1104_v48 = vld [vmem:[%s18253_s0 + $0xc78] sm:$0xff] }
 0x35c   :  { %v11665_v59 = vcombine.low %v1100_v45, %v1104_v48 }
 0x35d   :  { %7652 = vmatpush1.bf16.msra.mxu0 %v11615_v54  ;;  %v11666_v54 = vcombine.high %v1100_v45, %v1104_v48  ;;  %v1151_v45 = vld [vmem:[%s18253_s0 + $0xdf0] sm:$0xff] }
 0x35e   :  { %7980 = vmatpush1.bf16.msra.mxu1 %v11617_v55  ;;  %7653 = vmatprep.subr.bf16.mxu0 %v11624_v57  ;;  %v1108_v55 = vld [vmem:[%s18253_s0 + $0xc98] sm:$0xff] }
 0x35f   :  { %7981 = vmatprep.subr.bf16.mxu1 %v11626_v61  ;;  %v1112_v57 = vld [vmem:[%s18253_s0 + $0xcb8] sm:$0xff]  ;;  %v11663_v61 = vcombine.low %v1099_v40, %v1103_v42 }
 0x360   :  { %v11674_v62 = vcombine.high %v1108_v55, %v1112_v57 }
 0x361   :  { %7654 = vmatpush1.bf16.msra.mxu0 %v11623_v4  ;;  %v1119_v4 = vld [vmem:[%s18253_s0 + $0xcf0] sm:$0xff] }
 0x362   :  { %7982 = vmatpush1.bf16.msra.mxu1 %v11625_v5  ;;  %7655 = vmatprep.subr.bf16.mxu0 %v11632_v10  ;;  %v1120_v5 = vld [vmem:[%s18253_s0 + $0xcf8] sm:$0xff]  ;;  %v11673_v10 = vcombine.low %v1108_v55, %v1112_v57  ;;  %v11703_v55 = vcombine.low %v1139_v31, %v1143_v13 }
 0x363   :  { %7983 = vmatprep.subr.bf16.mxu1 %v11634_v11  ;;  %v11680_v11 = vcombine.high %v1115_v2, %v1119_v4 }
 0x365   :  { %7656 = vmatpush1.bf16.msra.mxu0 %v11631_v36  ;;  %v1128_v36 = vld [vmem:[%s18253_s0 + $0xd38] sm:$0xff] }
 0x366   :  { %7984 = vmatpush1.bf16.msra.mxu1 %v11633_v21  ;;  %7657 = vmatprep.subr.bf16.mxu0 %v11640_v46  ;;  %v11679_v21 = vcombine.low %v1115_v2, %v1119_v4  ;;  %v11690_v22 = vcombine.high %v1124_v19, %v1128_v36  ;;  %v1155_v4 = vld [vmem:[%s18253_s0 + $0xe10] sm:$0xff] }
 0x367   :  { %7985 = vmatprep.subr.bf16.mxu1 %v11642_v35  ;;  %v11688_v35 = vcombine.high %v1123_v18, %v1127_v33 }
 0x369   :  { %7658 = vmatpush1.bf16.msra.mxu0 %v11639_v38  ;;  %v1136_v38 = vld [vmem:[%s18253_s0 + $0xd78] sm:$0xff] }
 0x36a   :  { %7986 = vmatpush1.bf16.msra.mxu1 %v11641_v29  ;;  %7659 = vmatprep.subr.bf16.mxu0 %v11648_v37  ;;  %v11687_v29 = vcombine.low %v1123_v18, %v1127_v33  ;;  %v11689_v37 = vcombine.low %v1124_v19, %v1128_v36  ;;  %v11698_v60 = vcombine.high %v1132_v28, %v1136_v38  ;;  %v1163_v33 = vld [vmem:[%s18253_s0 + $0xe50] sm:$0xff]  ;;  %v1164_v36 = vld [vmem:[%s18253_s0 + $0xe58] sm:$0xff] }
 0x36b   :  { %7987 = vmatprep.subr.bf16.mxu1 %v11650_v1  ;;  %v11696_v1 = vcombine.high %v1131_v56, %v1135_v24  ;;  %v1167_v19 = vld [vmem:[%s18253_s0 + $0xe70] sm:$0xff] }
 0x36d   :  { %7660 = vmatpush1.bf16.msra.mxu0 %v11647_v39  ;;  %v1144_v39 = vld [vmem:[%s18253_s0 + $0xdb8] sm:$0xff] }
 0x36e   :  { %7988 = vmatpush1.bf16.msra.mxu1 %v11649_v30  ;;  %7670 = vmatprep.subr.bf16.mxu0 %v11656_v15  ;;  %v11695_v30 = vcombine.low %v1131_v56, %v1135_v24  ;;  %v11697_v15 = vcombine.low %v1132_v28, %v1136_v38  ;;  %v11706_v42 = vcombine.high %v1140_v3, %v1144_v39  ;;  %v1171_v24 = vld [vmem:[%s18253_s0 + $0xe90] sm:$0xff]  ;;  %v1172_v38 = vld [vmem:[%s18253_s0 + $0xe98] sm:$0xff] }
 0x36f   :  { %7998 = vmatprep.subr.bf16.mxu1 %v11658_v0  ;;  %v11704_v0 = vcombine.high %v1139_v31, %v1143_v13  ;;  %v1175_v28 = vld [vmem:[%s18253_s0 + $0xeb0] sm:$0xff] }
 0x370   :  { %7662 = vmatmul.mubr.bf16.vlgmr.msra.gmra.mrb[12].mxu0 %v14410_v53  ;;  %v1179_v13 = vld [vmem:[%s18253_s0 + $0xed0] sm:$0xff] }
 0x371   :  { %7990 = vmatmul.mubr.bf16.vlgmr.msra.gmra.mrb[28].mxu1 %v14410_v53  ;;  %7671 = vmatpush1.bf16.msra.mxu0 %v11655_v44  ;;  %v1116_v53 = vld [vmem:[%s18253_s0 + $0xcd8] sm:$0xff]  ;;  %v1147_v44 = vld [vmem:[%s18253_s0 + $0xdd0] sm:$0xff] }
 0x372   :  { %7702 = vmatprep.mubr.bf16.mxu0 %v14424_v9  ;;  %7999 = vmatpush1.bf16.msra.mxu1 %v11657_v49  ;;  %v11682_v27 = vcombine.high %v1116_v53, %v1120_v5  ;;  %v11681_v46 = vcombine.low %v1116_v53, %v1120_v5  ;;  %v1159_v53 = vld [vmem:[%s18253_s0 + $0xe30] sm:$0xff]  ;;  %v1156_v5 = vld [vmem:[%s18253_s0 + $0xe18] sm:$0xff] }
 0x373   :  { %8030 = vmatprep.mubr.bf16.mxu1 %v14424_v9  ;;  %7672 = vmatprep.subr.bf16.mxu0 %v11664_v50  ;;  %v11671_v9 = vcombine.low %v1107_v63, %v1111_v17  ;;  %v1148_v50 = vld [vmem:[%s18253_s0 + $0xdd8] sm:$0xff] }
 0x374   :  { %8000 = vmatprep.subr.bf16.mxu1 %v11666_v54  ;;  %v1152_v63 = vld [vmem:[%s18253_s0 + $0xdf8] sm:$0xff] }
 0x375   :  { %7673 = vmatpush1.bf16.msra.mxu0 %v11663_v61  ;;  %v11714_v2 = vcombine.high %v1148_v50, %v1152_v63 }
 0x376   :  { %8001 = vmatpush1.bf16.msra.mxu1 %v11665_v59  ;;  %7674 = vmatprep.subr.bf16.mxu0 %v11672_v34  ;;  %v11705_v59 = vcombine.low %v1140_v3, %v1144_v39  ;;  %v11712_v34 = vcombine.high %v1147_v44, %v1151_v45  ;;  %v1183_v3 = vld [vmem:[%s18253_s0 + $0xef0] sm:$0xff]  ;;  %v1180_v39 = vld [vmem:[%s18253_s0 + $0xed8] sm:$0xff] }
 0x377   :  { %8002 = vmatprep.subr.bf16.mxu1 %v11674_v62 }
 0x379   :  { %7675 = vmatpush1.bf16.msra.mxu0 %v11671_v9  ;;  %v1160_v9 = vld [vmem:[%s18253_s0 + $0xe38] sm:$0xff] }
 0x37a   :  { %8003 = vmatpush1.bf16.msra.mxu1 %v11673_v10  ;;  %7676 = vmatprep.subr.bf16.mxu0 %v11680_v11  ;;  %v11711_v10 = vcombine.low %v1147_v44, %v1151_v45  ;;  %v11713_v11 = vcombine.low %v1148_v50, %v1152_v63  ;;  %v11722_v18 = vcombine.high %v1156_v5, %v1160_v9  ;;  %v1187_v45 = vld [vmem:[%s18253_s0 + $0xf10] sm:$0xff]  ;;  %v1188_v63 = vld [vmem:[%s18253_s0 + $0xf18] sm:$0xff] }
 0x37b   :  { %8004 = vmatprep.subr.bf16.mxu1 %v11682_v27  ;;  %v11720_v27 = vcombine.high %v1155_v4, %v1159_v53  ;;  %v1191_v50 = vld [vmem:[%s18253_s0 + $0xf30] sm:$0xff] }
 0x37d   :  { %7677 = vmatpush1.bf16.msra.mxu0 %v11679_v21  ;;  %v1168_v21 = vld [vmem:[%s18253_s0 + $0xe78] sm:$0xff] }
 0x37e   :  { %8005 = vmatpush1.bf16.msra.mxu1 %v11681_v46  ;;  %7678 = vmatprep.subr.bf16.mxu0 %v11688_v35  ;;  %v11719_v46 = vcombine.low %v1155_v4, %v1159_v53  ;;  %v11721_v35 = vcombine.low %v1156_v5, %v1160_v9  ;;  %v11730_v56 = vcombine.high %v1164_v36, %v1168_v21  ;;  %v1200_v4 = vld [vmem:[%s18253_s0 + $0xf78] sm:$0xff] }
 0x37f   :  { %8006 = vmatprep.subr.bf16.mxu1 %v11690_v22  ;;  %v11728_v22 = vcombine.high %v1163_v33, %v1167_v19  ;;  %v11751_v53 = vcombine.low %v1187_v45, %v1191_v50 }
 0x381   :  { %7679 = vmatpush1.bf16.msra.mxu0 %v11687_v29  ;;  %v1176_v29 = vld [vmem:[%s18253_s0 + $0xeb8] sm:$0xff] }
 0x382   :  { %8007 = vmatpush1.bf16.msra.mxu1 %v11689_v37  ;;  %7680 = vmatprep.subr.bf16.mxu0 %v11696_v1  ;;  %v11727_v37 = vcombine.low %v1163_v33, %v1167_v19  ;;  %v11729_v1 = vcombine.low %v1164_v36, %v1168_v21  ;;  %v11738_v31 = vcombine.high %v1172_v38, %v1176_v29  ;;  %v1208_v33 = vld [vmem:[%s18253_s0 + $0xfb8] sm:$0xff] }
 0x383   :  { %v16106_v40 = vpop.f32.mrb[8].mxu0  ;;  %8008 = vmatprep.subr.bf16.mxu1 %v11698_v60  ;;  %v11736_v60 = vcombine.high %v1171_v24, %v1175_v28 }
 0x384   :  { %v16114_v48 = vpop.f32.mrb[24].mxu1  ;;  %v16116_v49 = vpop.f32.mrb[9].mxu0 }
 0x385   :  { %v16124_v17 = vpop.f32.mrb[25].mxu1  ;;  %v7216_v54 = vpop.f32.mrb[10].mxu0  ;;  %7681 = vmatpush1.bf16.msra.mxu0 %v11695_v30  ;;  %v1184_v30 = vld [vmem:[%s18253_s0 + $0xef8] sm:$0xff] }
 0x386   :  { %v7544_v57 = vpop.f32.mrb[26].mxu1  ;;  %8009 = vmatpush1.bf16.msra.mxu1 %v11697_v15  ;;  %v7217_v61 = vpop.f32.mrb[11].mxu0  ;;  %7682 = vmatprep.subr.bf16.mxu0 %v11704_v0  ;;  %v11735_v15 = vcombine.low %v1171_v24, %v1175_v28  ;;  %v11737_v0 = vcombine.low %v1172_v38, %v1176_v29  ;;  %v11746_v44 = vcombine.high %v1180_v39, %v1184_v30  ;;  %v1192_v54 = vld [vmem:[%s18253_s0 + $0xf38] sm:$0xff] }
 0x387   :  { %v7545_v62 = vpop.f32.mrb[27].mxu1  ;;  %8010 = vmatprep.subr.bf16.mxu1 %v11706_v42  ;;  %v11744_v42 = vcombine.high %v1179_v13, %v1183_v3  ;;  %v11745_v57 = vcombine.low %v1180_v39, %v1184_v30  ;;  %v11752_v61 = vcombine.high %v1187_v45, %v1191_v50  ;;  %v11753_v5 = vcombine.low %v1188_v63, %v1192_v54  ;;  %v1216_v24 = vld [vmem:[%s18253_s0 + $0xff8] sm:$0xff] }
 0x388   :  { %v1199_v62 = vld [vmem:[%s18253_s0 + $0xf70] sm:$0xff]  ;;  %v1228_v45 = vld [vmem:[%s18253_s0 + $0x1058] sm:$0xff] }
 0x389   :  { %7683 = vmatpush1.bf16.msra.mxu0 %v11703_v55  ;;  %v11743_v55 = vcombine.low %v1179_v13, %v1183_v3  ;;  %v1224_v13 = vld [vmem:[%s18253_s0 + $0x1038] sm:$0xff] }
 0x38a   :  { %8011 = vmatpush1.bf16.msra.mxu1 %v11705_v59  ;;  %7684 = vmatprep.subr.bf16.mxu0 %v11712_v34  ;;  %v11754_v59 = vcombine.high %v1188_v63, %v1192_v54  ;;  %v1195_v34 = vld [vmem:[%s18253_s0 + $0xf50] sm:$0xff]  ;;  %v1232_v50 = vld [vmem:[%s18253_s0 + $0x1078] sm:$0xff] }
 0x38b   :  { %8012 = vmatprep.subr.bf16.mxu1 %v11714_v2  ;;  %v1196_v2 = vld [vmem:[%s18253_s0 + $0xf58] sm:$0xff]  ;;  %v11760_v9 = vcombine.high %v1195_v34, %v1199_v62  ;;  %v11759_v19 = vcombine.low %v1195_v34, %v1199_v62 }
 0x38c   :  { %v11761_v36 = vcombine.low %v1196_v2, %v1200_v4  ;;  %v1240_v34 = vld [vmem:[%s18253_s0 + $0x10b8] sm:$0xff] }
 0x38d   :  { %7685 = vmatpush1.bf16.msra.mxu0 %v11711_v10  ;;  %v11762_v10 = vcombine.high %v1196_v2, %v1200_v4  ;;  %v11793_v2 = vcombine.low %v1228_v45, %v1232_v50 }
 0x38e   :  { %8013 = vmatpush1.bf16.msra.mxu1 %v11713_v11  ;;  %7686 = vmatprep.subr.bf16.mxu0 %v11720_v27  ;;  %v1203_v11 = vld [vmem:[%s18253_s0 + $0xf90] sm:$0xff] }
 0x38f   :  { %8014 = vmatprep.subr.bf16.mxu1 %v11722_v18  ;;  %v1207_v27 = vld [vmem:[%s18253_s0 + $0xfb0] sm:$0xff]  ;;  %v1204_v18 = vld [vmem:[%s18253_s0 + $0xf98] sm:$0xff] }
 0x390   :  { %v11768_v21 = vcombine.high %v1203_v11, %v1207_v27  ;;  %v11767_v28 = vcombine.low %v1203_v11, %v1207_v27  ;;  %v11769_v38 = vcombine.low %v1204_v18, %v1208_v33 }
 0x391   :  { %7687 = vmatpush1.bf16.msra.mxu0 %v11719_v46  ;;  %v11770_v46 = vcombine.high %v1204_v18, %v1208_v33  ;;  %v1251_v33 = vld [vmem:[%s18253_s0 + $0x1110] sm:$0xff] }
 0x392   :  { %8015 = vmatpush1.bf16.msra.mxu1 %v11721_v35  ;;  %7688 = vmatprep.subr.bf16.mxu0 %v11728_v22  ;;  %v1211_v35 = vld [vmem:[%s18253_s0 + $0xfd0] sm:$0xff] }
 0x393   :  { %8016 = vmatprep.subr.bf16.mxu1 %v11730_v56  ;;  %v1215_v22 = vld [vmem:[%s18253_s0 + $0xff0] sm:$0xff]  ;;  %v1212_v56 = vld [vmem:[%s18253_s0 + $0xfd8] sm:$0xff] }
 0x394   :  { %v11776_v29 = vcombine.high %v1211_v35, %v1215_v22  ;;  %v11775_v3 = vcombine.low %v1211_v35, %v1215_v22  ;;  %v11777_v39 = vcombine.low %v1212_v56, %v1216_v24 }
 0x395   :  { %7689 = vmatpush1.bf16.msra.mxu0 %v11727_v37  ;;  %v11778_v37 = vcombine.high %v1212_v56, %v1216_v24  ;;  %v1259_v24 = vld [vmem:[%s18253_s0 + $0x1150] sm:$0xff] }
 0x396   :  { %8017 = vmatpush1.bf16.msra.mxu1 %v11729_v1  ;;  %7690 = vmatprep.subr.bf16.mxu0 %v11736_v60  ;;  %v1219_v1 = vld [vmem:[%s18253_s0 + $0x1010] sm:$0xff] }
 0x397   :  { %8018 = vmatprep.subr.bf16.mxu1 %v11738_v31  ;;  %v1223_v60 = vld [vmem:[%s18253_s0 + $0x1030] sm:$0xff]  ;;  %v1220_v31 = vld [vmem:[%s18253_s0 + $0x1018] sm:$0xff] }
 0x398   :  { %v11784_v30 = vcombine.high %v1219_v1, %v1223_v60  ;;  %v11785_v63 = vcombine.low %v1220_v31, %v1224_v13 }
 0x399   :  { %7691 = vmatpush1.bf16.msra.mxu0 %v11735_v15  ;;  %v11786_v15 = vcombine.high %v1220_v31, %v1224_v13  ;;  %v1267_v13 = vld [vmem:[%s18253_s0 + $0x1190] sm:$0xff] }
 0x39a   :  { %8019 = vmatpush1.bf16.msra.mxu1 %v11737_v0  ;;  %7692 = vmatprep.subr.bf16.mxu0 %v11744_v42  ;;  %v1227_v0 = vld [vmem:[%s18253_s0 + $0x1050] sm:$0xff] }
 0x39b   :  { %8020 = vmatprep.subr.bf16.mxu1 %v11746_v44  ;;  %v1231_v42 = vld [vmem:[%s18253_s0 + $0x1070] sm:$0xff]  ;;  %v11783_v44 = vcombine.low %v1219_v1, %v1223_v60 }
 0x39c   :  { %v11792_v54 = vcombine.high %v1227_v0, %v1231_v42  ;;  %v11791_v62 = vcombine.low %v1227_v0, %v1231_v42 }
 0x39d   :  { %7693 = vmatpush1.bf16.msra.mxu0 %v11743_v55  ;;  %v1235_v55 = vld [vmem:[%s18253_s0 + $0x1090] sm:$0xff] }
 0x39e   :  { %8021 = vmatpush1.bf16.msra.mxu1 %v11745_v57  ;;  %7694 = vmatprep.subr.bf16.mxu0 %v11752_v61  ;;  %v1239_v57 = vld [vmem:[%s18253_s0 + $0x10b0] sm:$0xff]  ;;  %v11794_v61 = vcombine.high %v1228_v45, %v1232_v50 }
 0x39f   :  { %8022 = vmatprep.subr.bf16.mxu1 %v11754_v59  ;;  %v1236_v59 = vld [vmem:[%s18253_s0 + $0x1098] sm:$0xff]  ;;  %v11800_v4 = vcombine.high %v1235_v55, %v1239_v57  ;;  %v1275_v45 = vld [vmem:[%s18253_s0 + $0x11d0] sm:$0xff] }
 0x3a0   :  { %v11801_v11 = vcombine.low %v1236_v59, %v1240_v34  ;;  %v1279_v50 = vld [vmem:[%s18253_s0 + $0x11f0] sm:$0xff] }
 0x3a1   :  { %7695 = vmatpush1.bf16.msra.mxu0 %v11751_v53  ;;  %v11802_v53 = vcombine.high %v1236_v59, %v1240_v34  ;;  %v1283_v34 = vld [vmem:[%s18253_s0 + $0x1210] sm:$0xff] }
 0x3a2   :  { %8023 = vmatpush1.bf16.msra.mxu1 %v11753_v5  ;;  %7696 = vmatprep.subr.bf16.mxu0 %v11760_v9  ;;  %v1243_v5 = vld [vmem:[%s18253_s0 + $0x10d0] sm:$0xff] }
 0x3a3   :  { %8024 = vmatprep.subr.bf16.mxu1 %v11762_v10  ;;  %v1247_v9 = vld [vmem:[%s18253_s0 + $0x10f0] sm:$0xff]  ;;  %v1248_v10 = vld [vmem:[%s18253_s0 + $0x10f8] sm:$0xff] }
 0x3a4   :  { %v11808_v27 = vcombine.high %v1243_v5, %v1247_v9 }
 0x3a5   :  { %7697 = vmatpush1.bf16.msra.mxu0 %v11759_v19  ;;  %v1255_v19 = vld [vmem:[%s18253_s0 + $0x1130] sm:$0xff] }
 0x3a6   :  { %8025 = vmatpush1.bf16.msra.mxu1 %v11761_v36  ;;  %7698 = vmatprep.subr.bf16.mxu0 %v11768_v21  ;;  %v1252_v36 = vld [vmem:[%s18253_s0 + $0x1118] sm:$0xff]  ;;  %v11816_v22 = vcombine.high %v1251_v33, %v1255_v19 }
 0x3a7   :  { %8026 = vmatprep.subr.bf16.mxu1 %v11770_v46  ;;  %v1256_v21 = vld [vmem:[%s18253_s0 + $0x1138] sm:$0xff]  ;;  %v11807_v46 = vcombine.low %v1243_v5, %v1247_v9 }
 0x3a8   :  { %v11818_v56 = vcombine.high %v1252_v36, %v1256_v21  ;;  %v11817_v1 = vcombine.low %v1252_v36, %v1256_v21  ;;  %v1299_v21 = vld [vmem:[%s18253_s0 + $0x1290] sm:$0xff] }
 0x3a9   :  { %7699 = vmatpush1.bf16.msra.mxu0 %v11767_v28  ;;  %v1263_v28 = vld [vmem:[%s18253_s0 + $0x1170] sm:$0xff] }
 0x3aa   :  { %8027 = vmatpush1.bf16.msra.mxu1 %v11769_v38  ;;  %7700 = vmatprep.subr.bf16.mxu0 %v11776_v29  ;;  %v1260_v38 = vld [vmem:[%s18253_s0 + $0x1158] sm:$0xff]  ;;  %v11824_v60 = vcombine.high %v1259_v24, %v1263_v28 }
 0x3ab   :  { %8028 = vmatprep.subr.bf16.mxu1 %v11778_v37  ;;  %v1264_v29 = vld [vmem:[%s18253_s0 + $0x1178] sm:$0xff]  ;;  %v11815_v37 = vcombine.low %v1251_v33, %v1255_v19 }
 0x3ac   :  { %v11826_v31 = vcombine.high %v1260_v38, %v1264_v29  ;;  %v11825_v0 = vcombine.low %v1260_v38, %v1264_v29  ;;  %v1307_v29 = vld [vmem:[%s18253_s0 + $0x12d0] sm:$0xff] }
 0x3ad   :  { %7701 = vmatpush1.bf16.msra.mxu0 %v11775_v3  ;;  %v1271_v3 = vld [vmem:[%s18253_s0 + $0x11b0] sm:$0xff] }
 0x3ae   :  { %8029 = vmatpush1.bf16.msra.mxu1 %v11777_v39  ;;  %7711 = vmatprep.subr.bf16.mxu0 %v11784_v30  ;;  %v1268_v39 = vld [vmem:[%s18253_s0 + $0x1198] sm:$0xff]  ;;  %v11832_v42 = vcombine.high %v1267_v13, %v1271_v3 }
 0x3af   :  { %8039 = vmatprep.subr.bf16.mxu1 %v11786_v15  ;;  %v1272_v30 = vld [vmem:[%s18253_s0 + $0x11b8] sm:$0xff]  ;;  %v11823_v15 = vcombine.low %v1259_v24, %v1263_v28 }
 0x3b0   :  { %7703 = vmatmul.mubr.bf16.vlgmr.msra.gmra.mrb[12].mxu0 %v14617_v41 }
 0x3b1   :  { %8031 = vmatmul.mubr.bf16.vlgmr.msra.gmra.mrb[28].mxu1 %v14617_v41  ;;  %7712 = vmatpush1.bf16.msra.mxu0 %v11783_v44  ;;  %v1244_v41 = vld [vmem:[%s18253_s0 + $0x10d8] sm:$0xff]  ;;  %v11834_v44 = vcombine.high %v1268_v39, %v1272_v30 }
 0x3b2   :  { %7743 = vmatprep.mubr.bf16.mxu0 %v14628_v26  ;;  %8040 = vmatpush1.bf16.msra.mxu1 %v11785_v63  ;;  %v11810_v18 = vcombine.high %v1244_v41, %v1248_v10  ;;  %v11809_v35 = vcombine.low %v1244_v41, %v1248_v10  ;;  %v1276_v63 = vld [vmem:[%s18253_s0 + $0x11d8] sm:$0xff]  ;;  %v1291_v10 = vld [vmem:[%s18253_s0 + $0x1250] sm:$0xff] }
 0x3b3   :  { %8071 = vmatprep.mubr.bf16.mxu1 %v14628_v26  ;;  %7713 = vmatprep.subr.bf16.mxu0 %v11792_v54  ;;  %v11799_v26 = vcombine.low %v1235_v55, %v1239_v57  ;;  %v1280_v54 = vld [vmem:[%s18253_s0 + $0x11f8] sm:$0xff]  ;;  %v11831_v55 = vcombine.low %v1267_v13, %v1271_v3  ;;  %v11833_v57 = vcombine.low %v1268_v39, %v1272_v30  ;;  %v1315_v30 = vld [vmem:[%s18253_s0 + $0x1310] sm:$0xff] }
 0x3b4   :  { %8041 = vmatprep.subr.bf16.mxu1 %v11794_v61  ;;  %v11840_v61 = vcombine.high %v1275_v45, %v1279_v50  ;;  %v11842_v59 = vcombine.high %v1276_v63, %v1280_v54  ;;  %v11841_v5 = vcombine.low %v1276_v63, %v1280_v54  ;;  %v1323_v54 = vld [vmem:[%s18253_s0 + $0x1350] sm:$0xff] }
 0x3b5   :  { %7714 = vmatpush1.bf16.msra.mxu0 %v11791_v62  ;;  %v1287_v62 = vld [vmem:[%s18253_s0 + $0x1230] sm:$0xff] }
 0x3b6   :  { %8042 = vmatpush1.bf16.msra.mxu1 %v11793_v2  ;;  %7715 = vmatprep.subr.bf16.mxu0 %v11800_v4  ;;  %v1284_v2 = vld [vmem:[%s18253_s0 + $0x1218] sm:$0xff]  ;;  %v11848_v9 = vcombine.high %v1283_v34, %v1287_v62 }
 0x3b7   :  { %8043 = vmatprep.subr.bf16.mxu1 %v11802_v53  ;;  %v1288_v4 = vld [vmem:[%s18253_s0 + $0x1238] sm:$0xff]  ;;  %v11839_v53 = vcombine.low %v1275_v45, %v1279_v50 }
 0x3b8   :  { %v11850_v41 = vcombine.high %v1284_v2, %v1288_v4  ;;  %v11849_v33 = vcombine.low %v1284_v2, %v1288_v4  ;;  %v1331_v4 = vld [vmem:[%s18253_s0 + $0x1390] sm:$0xff] }
 0x3b9   :  { %7716 = vmatpush1.bf16.msra.mxu0 %v11799_v26  ;;  %v1295_v26 = vld [vmem:[%s18253_s0 + $0x1270] sm:$0xff] }
 0x3ba   :  { %8044 = vmatpush1.bf16.msra.mxu1 %v11801_v11  ;;  %7717 = vmatprep.subr.bf16.mxu0 %v11808_v27  ;;  %v1292_v11 = vld [vmem:[%s18253_s0 + $0x1258] sm:$0xff]  ;;  %v11856_v19 = vcombine.high %v1291_v10, %v1295_v26 }
 0x3bb   :  { %8045 = vmatprep.subr.bf16.mxu1 %v11810_v18  ;;  %v1296_v27 = vld [vmem:[%s18253_s0 + $0x1278] sm:$0xff]  ;;  %v11847_v18 = vcombine.low %v1283_v34, %v1287_v62 }
 0x3bc   :  { %v11858_v36 = vcombine.high %v1292_v11, %v1296_v27  ;;  %v11857_v24 = vcombine.low %v1292_v11, %v1296_v27  ;;  %v1339_v27 = vld [vmem:[%s18253_s0 + $0x13d0] sm:$0xff] }
 0x3bd   :  { %7718 = vmatpush1.bf16.msra.mxu0 %v11807_v46  ;;  %v1303_v46 = vld [vmem:[%s18253_s0 + $0x12b0] sm:$0xff] }
 0x3be   :  { %8046 = vmatpush1.bf16.msra.mxu1 %v11809_v35  ;;  %7719 = vmatprep.subr.bf16.mxu0 %v11816_v22  ;;  %v1300_v35 = vld [vmem:[%s18253_s0 + $0x1298] sm:$0xff]  ;;  %v11864_v28 = vcombine.high %v1299_v21, %v1303_v46 }
 0x3bf   :  { %8047 = vmatprep.subr.bf16.mxu1 %v11818_v56  ;;  %v1304_v22 = vld [vmem:[%s18253_s0 + $0x12b8] sm:$0xff]  ;;  %v11855_v56 = vcombine.low %v1291_v10, %v1295_v26 }
 0x3c0   :  { %v11866_v38 = vcombine.high %v1300_v35, %v1304_v22  ;;  %v11865_v13 = vcombine.low %v1300_v35, %v1304_v22  ;;  %v1347_v22 = vld [vmem:[%s18253_s0 + $0x1410] sm:$0xff] }
 0x3c1   :  { %7720 = vmatpush1.bf16.msra.mxu0 %v11815_v37  ;;  %v1311_v37 = vld [vmem:[%s18253_s0 + $0x12f0] sm:$0xff] }
 0x3c2   :  { %8048 = vmatpush1.bf16.msra.mxu1 %v11817_v1  ;;  %7721 = vmatprep.subr.bf16.mxu0 %v11824_v60  ;;  %v1308_v1 = vld [vmem:[%s18253_s0 + $0x12d8] sm:$0xff]  ;;  %v11872_v3 = vcombine.high %v1307_v29, %v1311_v37 }
 0x3c3   :  { %8049 = vmatprep.subr.bf16.mxu1 %v11826_v31  ;;  %v1312_v60 = vld [vmem:[%s18253_s0 + $0x12f8] sm:$0xff]  ;;  %v11863_v31 = vcombine.low %v1299_v21, %v1303_v46 }
 0x3c4   :  { %v11874_v39 = vcombine.high %v1308_v1, %v1312_v60  ;;  %v11873_v45 = vcombine.low %v1308_v1, %v1312_v60  ;;  %v1355_v60 = vld [vmem:[%s18253_s0 + $0x1450] sm:$0xff] }
 0x3c5   :  { %7722 = vmatpush1.bf16.msra.mxu0 %v11823_v15  ;;  %v1319_v15 = vld [vmem:[%s18253_s0 + $0x1330] sm:$0xff] }
 0x3c6   :  { %8050 = vmatpush1.bf16.msra.mxu1 %v11825_v0  ;;  %7723 = vmatprep.subr.bf16.mxu0 %v11832_v42  ;;  %v1316_v0 = vld [vmem:[%s18253_s0 + $0x1318] sm:$0xff]  ;;  %v11880_v50 = vcombine.high %v1315_v30, %v1319_v15 }
 0x3c7   :  { %8051 = vmatprep.subr.bf16.mxu1 %v11834_v44  ;;  %v1320_v42 = vld [vmem:[%s18253_s0 + $0x1338] sm:$0xff]  ;;  %v11871_v44 = vcombine.low %v1307_v29, %v1311_v37 }
 0x3c8   :  { %v11882_v63 = vcombine.high %v1316_v0, %v1320_v42  ;;  %v11881_v34 = vcombine.low %v1316_v0, %v1320_v42  ;;  %v1363_v0 = vld [vmem:[%s18253_s0 + $0x1490] sm:$0xff] }
 0x3c9   :  { %7724 = vmatpush1.bf16.msra.mxu0 %v11831_v55  ;;  %v1327_v55 = vld [vmem:[%s18253_s0 + $0x1370] sm:$0xff] }
 0x3ca   :  { %8052 = vmatpush1.bf16.msra.mxu1 %v11833_v57  ;;  %7725 = vmatprep.subr.bf16.mxu0 %v11840_v61  ;;  %v1324_v57 = vld [vmem:[%s18253_s0 + $0x1358] sm:$0xff]  ;;  %v11888_v62 = vcombine.high %v1323_v54, %v1327_v55  ;;  %v1367_v42 = vld [vmem:[%s18253_s0 + $0x14b0] sm:$0xff] }
 0x3cb   :  { %8053 = vmatprep.subr.bf16.mxu1 %v11842_v59  ;;  %v1328_v61 = vld [vmem:[%s18253_s0 + $0x1378] sm:$0xff]  ;;  %v11879_v59 = vcombine.low %v1315_v30, %v1319_v15 }
 0x3cc   :  { %v11890_v2 = vcombine.high %v1324_v57, %v1328_v61  ;;  %v11889_v10 = vcombine.low %v1324_v57, %v1328_v61  ;;  %v1371_v61 = vld [vmem:[%s18253_s0 + $0x14d0] sm:$0xff] }
 0x3cd   :  { %7726 = vmatpush1.bf16.msra.mxu0 %v11839_v53  ;;  %v1335_v53 = vld [vmem:[%s18253_s0 + $0x13b0] sm:$0xff] }
 0x3ce   :  { %8054 = vmatpush1.bf16.msra.mxu1 %v11841_v5  ;;  %7727 = vmatprep.subr.bf16.mxu0 %v11848_v9  ;;  %v1332_v5 = vld [vmem:[%s18253_s0 + $0x1398] sm:$0xff]  ;;  %v11896_v26 = vcombine.high %v1331_v4, %v1335_v53 }
 0x3cf   :  { %8055 = vmatprep.subr.bf16.mxu1 %v11850_v41  ;;  %v1336_v9 = vld [vmem:[%s18253_s0 + $0x13b8] sm:$0xff]  ;;  %v11887_v41 = vcombine.low %v1323_v54, %v1327_v55  ;;  %v11928_v55 = vcombine.high %v1363_v0, %v1367_v42 }
 0x3d0   :  { %v11898_v11 = vcombine.high %v1332_v5, %v1336_v9  ;;  %v11897_v21 = vcombine.low %v1332_v5, %v1336_v9  ;;  %v1383_v5 = vld [vmem:[%s18253_s0 + $0x1530] sm:$0xff]  ;;  %v1380_v9 = vld [vmem:[%s18253_s0 + $0x1518] sm:$0xff] }
 0x3d1   :  { %7728 = vmatpush1.bf16.msra.mxu0 %v11847_v18  ;;  %v1343_v18 = vld [vmem:[%s18253_s0 + $0x13f0] sm:$0xff] }
 0x3d2   :  { %8056 = vmatpush1.bf16.msra.mxu1 %v11849_v33  ;;  %7729 = vmatprep.subr.bf16.mxu0 %v11856_v19  ;;  %v1340_v33 = vld [vmem:[%s18253_s0 + $0x13d8] sm:$0xff]  ;;  %v11904_v46 = vcombine.high %v1339_v27, %v1343_v18 }
 0x3d3   :  { %8057 = vmatprep.subr.bf16.mxu1 %v11858_v36  ;;  %v1344_v19 = vld [vmem:[%s18253_s0 + $0x13f8] sm:$0xff]  ;;  %v11895_v36 = vcombine.low %v1331_v4, %v1335_v53  ;;  %v1379_v53 = vld [vmem:[%s18253_s0 + $0x1510] sm:$0xff] }
 0x3d4   :  { %v11906_v35 = vcombine.high %v1340_v33, %v1344_v19  ;;  %v11905_v29 = vcombine.low %v1340_v33, %v1344_v19  ;;  %v1391_v33 = vld [vmem:[%s18253_s0 + $0x1570] sm:$0xff]  ;;  %v1388_v19 = vld [vmem:[%s18253_s0 + $0x1558] sm:$0xff] }
 0x3d5   :  { %7730 = vmatpush1.bf16.msra.mxu0 %v11855_v56  ;;  %v1351_v56 = vld [vmem:[%s18253_s0 + $0x1430] sm:$0xff] }
 0x3d6   :  { %8058 = vmatpush1.bf16.msra.mxu1 %v11857_v24  ;;  %7731 = vmatprep.subr.bf16.mxu0 %v11864_v28  ;;  %v1348_v24 = vld [vmem:[%s18253_s0 + $0x1418] sm:$0xff]  ;;  %v11912_v37 = vcombine.high %v1347_v22, %v1351_v56 }
 0x3d7   :  { %8059 = vmatprep.subr.bf16.mxu1 %v11866_v38  ;;  %v1352_v28 = vld [vmem:[%s18253_s0 + $0x1438] sm:$0xff]  ;;  %v11903_v38 = vcombine.low %v1339_v27, %v1343_v18  ;;  %v1387_v18 = vld [vmem:[%s18253_s0 + $0x1550] sm:$0xff] }
 0x3d8   :  { %v11914_v1 = vcombine.high %v1348_v24, %v1352_v28  ;;  %v11913_v30 = vcombine.low %v1348_v24, %v1352_v28  ;;  %v1399_v24 = vld [vmem:[%s18253_s0 + $0x15b0] sm:$0xff]  ;;  %v1396_v28 = vld [vmem:[%s18253_s0 + $0x1598] sm:$0xff] }
 0x3d9   :  { %7732 = vmatpush1.bf16.msra.mxu0 %v11863_v31  ;;  %v1359_v31 = vld [vmem:[%s18253_s0 + $0x1470] sm:$0xff] }
 0x3da   :  { %8060 = vmatpush1.bf16.msra.mxu1 %v11865_v13  ;;  %7733 = vmatprep.subr.bf16.mxu0 %v11872_v3  ;;  %v11911_v13 = vcombine.low %v1347_v22, %v1351_v56  ;;  %v1356_v3 = vld [vmem:[%s18253_s0 + $0x1458] sm:$0xff]  ;;  %v11920_v15 = vcombine.high %v1355_v60, %v1359_v31  ;;  %v1395_v56 = vld [vmem:[%s18253_s0 + $0x1590] sm:$0xff] }
 0x3db   :  { %8061 = vmatprep.subr.bf16.mxu1 %v11874_v39  ;;  %v1360_v39 = vld [vmem:[%s18253_s0 + $0x1478] sm:$0xff] }
 0x3dc   :  { %v11921_v54 = vcombine.low %v1356_v3, %v1360_v39 }
 0x3dd   :  { %7734 = vmatpush1.bf16.msra.mxu0 %v11871_v44  ;;  %v11922_v44 = vcombine.high %v1356_v3, %v1360_v39  ;;  %v1404_v3 = vld [vmem:[%s18253_s0 + $0x15d8] sm:$0xff] }
 0x3de   :  { %8062 = vmatpush1.bf16.msra.mxu1 %v11873_v45  ;;  %7735 = vmatprep.subr.bf16.mxu0 %v11880_v50  ;;  %v1364_v45 = vld [vmem:[%s18253_s0 + $0x1498] sm:$0xff] }
 0x3df   :  { %8063 = vmatprep.subr.bf16.mxu1 %v11882_v63  ;;  %v1368_v50 = vld [vmem:[%s18253_s0 + $0x14b8] sm:$0xff]  ;;  %v11919_v63 = vcombine.low %v1355_v60, %v1359_v31  ;;  %v1403_v31 = vld [vmem:[%s18253_s0 + $0x15d0] sm:$0xff] }
 0x3e0   :  { %v11930_v57 = vcombine.high %v1364_v45, %v1368_v50  ;;  %v1408_v39 = vld [vmem:[%s18253_s0 + $0x15f8] sm:$0xff] }
 0x3e1   :  { %7736 = vmatpush1.bf16.msra.mxu0 %v11879_v59  ;;  %v1375_v59 = vld [vmem:[%s18253_s0 + $0x14f0] sm:$0xff] }
 0x3e2   :  { %8064 = vmatpush1.bf16.msra.mxu1 %v11881_v34  ;;  %7737 = vmatprep.subr.bf16.mxu0 %v11888_v62  ;;  %v1376_v34 = vld [vmem:[%s18253_s0 + $0x14f8] sm:$0xff]  ;;  %v11929_v62 = vcombine.low %v1364_v45, %v1368_v50  ;;  %v1415_v45 = vld [vmem:[%s18253_s0 + $0x1630] sm:$0xff] }
 0x3e3   :  { %8065 = vmatprep.subr.bf16.mxu1 %v11890_v2  ;;  %v11936_v2 = vcombine.high %v1371_v61, %v1375_v59  ;;  %v1412_v50 = vld [vmem:[%s18253_s0 + $0x1618] sm:$0xff] }
 0x3e5   :  { %7738 = vmatpush1.bf16.msra.mxu0 %v11887_v41  ;;  %v1384_v41 = vld [vmem:[%s18253_s0 + $0x1538] sm:$0xff] }
 0x3e6   :  { %8066 = vmatpush1.bf16.msra.mxu1 %v11889_v10  ;;  %7739 = vmatprep.subr.bf16.mxu0 %v11896_v26  ;;  %v11935_v10 = vcombine.low %v1371_v61, %v1375_v59  ;;  %v11946_v27 = vcombine.high %v1380_v9, %v1384_v41  ;;  %v1419_v59 = vld [vmem:[%s18253_s0 + $0x1650] sm:$0xff] }
 0x3e7   :  { %8067 = vmatprep.subr.bf16.mxu1 %v11898_v11  ;;  %v11944_v11 = vcombine.high %v1379_v53, %v1383_v5 }
 0x3e9   :  { %7740 = vmatpush1.bf16.msra.mxu0 %v11895_v36  ;;  %v1392_v36 = vld [vmem:[%s18253_s0 + $0x1578] sm:$0xff] }
 0x3ea   :  { %8068 = vmatpush1.bf16.msra.mxu1 %v11897_v21  ;;  %7741 = vmatprep.subr.bf16.mxu0 %v11904_v46  ;;  %v11943_v21 = vcombine.low %v1379_v53, %v1383_v5  ;;  %v11945_v46 = vcombine.low %v1380_v9, %v1384_v41  ;;  %v11954_v22 = vcombine.high %v1388_v19, %v1392_v36  ;;  %v1427_v5 = vld [vmem:[%s18253_s0 + $0x1690] sm:$0xff]  ;;  %v1428_v41 = vld [vmem:[%s18253_s0 + $0x1698] sm:$0xff] }
 0x3eb   :  { %8069 = vmatprep.subr.bf16.mxu1 %v11906_v35  ;;  %v11952_v35 = vcombine.high %v1387_v18, %v1391_v33  ;;  %v1431_v9 = vld [vmem:[%s18253_s0 + $0x16b0] sm:$0xff] }
 0x3ed   :  { %7742 = vmatpush1.bf16.msra.mxu0 %v11903_v38  ;;  %v1400_v38 = vld [vmem:[%s18253_s0 + $0x15b8] sm:$0xff] }
 0x3ee   :  { %8070 = vmatpush1.bf16.msra.mxu1 %v11905_v29  ;;  %7752 = vmatprep.subr.bf16.mxu0 %v11912_v37  ;;  %v11951_v29 = vcombine.low %v1387_v18, %v1391_v33  ;;  %v11953_v37 = vcombine.low %v1388_v19, %v1392_v36  ;;  %v11962_v60 = vcombine.high %v1396_v28, %v1400_v38  ;;  %v1435_v33 = vld [vmem:[%s18253_s0 + $0x16d0] sm:$0xff]  ;;  %v1436_v36 = vld [vmem:[%s18253_s0 + $0x16d8] sm:$0xff] }
 0x3ef   :  { %8080 = vmatprep.subr.bf16.mxu1 %v11914_v1  ;;  %v11960_v1 = vcombine.high %v1395_v56, %v1399_v24  ;;  %v1439_v19 = vld [vmem:[%s18253_s0 + $0x16f0] sm:$0xff] }
 0x3f0   :  { %7744 = vmatmul.mubr.bf16.vlgmr.msra.gmra.mrb[12].mxu0 %v14832_v47 }
 0x3f1   :  { %8072 = vmatmul.mubr.bf16.vlgmr.msra.gmra.mrb[28].mxu1 %v14832_v47  ;;  %7753 = vmatpush1.bf16.msra.mxu0 %v11911_v13  ;;  %v1372_v47 = vld [vmem:[%s18253_s0 + $0x14d8] sm:$0xff]  ;;  %v1407_v13 = vld [vmem:[%s18253_s0 + $0x15f0] sm:$0xff] }
 0x3f2   :  { %7784 = vmatprep.mubr.bf16.mxu0 %v14840_v51  ;;  %8081 = vmatpush1.bf16.msra.mxu1 %v11913_v30  ;;  %v11938_v4 = vcombine.high %v1372_v47, %v1376_v34  ;;  %v11937_v26 = vcombine.low %v1372_v47, %v1376_v34  ;;  %v11959_v30 = vcombine.low %v1395_v56, %v1399_v24  ;;  %v1423_v47 = vld [vmem:[%s18253_s0 + $0x1670] sm:$0xff]  ;;  %v1420_v34 = vld [vmem:[%s18253_s0 + $0x1658] sm:$0xff] }
 0x3f3   :  { %8112 = vmatprep.mubr.bf16.mxu1 %v14840_v51  ;;  %7754 = vmatprep.subr.bf16.mxu0 %v11920_v15  ;;  %v11927_v51 = vcombine.low %v1363_v0, %v1367_v42  ;;  %v11961_v15 = vcombine.low %v1396_v28, %v1400_v38  ;;  %v11968_v0 = vcombine.high %v1403_v31, %v1407_v13  ;;  %v1443_v24 = vld [vmem:[%s18253_s0 + $0x1710] sm:$0xff]  ;;  %v1444_v38 = vld [vmem:[%s18253_s0 + $0x1718] sm:$0xff] }
 0x3f4   :  { %8082 = vmatprep.subr.bf16.mxu1 %v11922_v44  ;;  %v11970_v42 = vcombine.high %v1404_v3, %v1408_v39  ;;  %v1411_v44 = vld [vmem:[%s18253_s0 + $0x1610] sm:$0xff] }
 0x3f5   :  { %7755 = vmatpush1.bf16.msra.mxu0 %v11919_v63  ;;  %v1416_v63 = vld [vmem:[%s18253_s0 + $0x1638] sm:$0xff]  ;;  %v1447_v28 = vld [vmem:[%s18253_s0 + $0x1730] sm:$0xff] }
 0x3f6   :  { %8083 = vmatpush1.bf16.msra.mxu1 %v11921_v54  ;;  %7756 = vmatprep.subr.bf16.mxu0 %v11928_v55  ;;  %v11967_v54 = vcombine.low %v1403_v31, %v1407_v13  ;;  %v11969_v55 = vcombine.low %v1404_v3, %v1408_v39  ;;  %v11978_v61 = vcombine.high %v1412_v50, %v1416_v63  ;;  %v1451_v13 = vld [vmem:[%s18253_s0 + $0x1750] sm:$0xff]  ;;  %v1452_v39 = vld [vmem:[%s18253_s0 + $0x1758] sm:$0xff] }
 0x3f7   :  { %8084 = vmatprep.subr.bf16.mxu1 %v11930_v57  ;;  %v11976_v57 = vcombine.high %v1411_v44, %v1415_v45  ;;  %v1455_v3 = vld [vmem:[%s18253_s0 + $0x1770] sm:$0xff] }
 0x3f9   :  { %7757 = vmatpush1.bf16.msra.mxu0 %v11927_v51  ;;  %v1424_v51 = vld [vmem:[%s18253_s0 + $0x1678] sm:$0xff] }
 0x3fa   :  { %8085 = vmatpush1.bf16.msra.mxu1 %v11929_v62  ;;  %7758 = vmatprep.subr.bf16.mxu0 %v11936_v2  ;;  %v11975_v62 = vcombine.low %v1411_v44, %v1415_v45  ;;  %v11977_v2 = vcombine.low %v1412_v50, %v1416_v63  ;;  %v11986_v53 = vcombine.high %v1420_v34, %v1424_v51  ;;  %v1459_v45 = vld [vmem:[%s18253_s0 + $0x1790] sm:$0xff]  ;;  %v1460_v63 = vld [vmem:[%s18253_s0 + $0x1798] sm:$0xff] }
 0x3fb   :  { %8086 = vmatprep.subr.bf16.mxu1 %v11938_v4  ;;  %v11984_v4 = vcombine.high %v1419_v59, %v1423_v47  ;;  %v1463_v50 = vld [vmem:[%s18253_s0 + $0x17b0] sm:$0xff] }
 0x3fd   :  { %7759 = vmatpush1.bf16.msra.mxu0 %v11935_v10  ;;  %v1432_v10 = vld [vmem:[%s18253_s0 + $0x16b8] sm:$0xff] }
 0x3fe   :  { %8087 = vmatpush1.bf16.msra.mxu1 %v11937_v26  ;;  %7760 = vmatprep.subr.bf16.mxu0 %v11944_v11  ;;  %v11983_v26 = vcombine.low %v1419_v59, %v1423_v47  ;;  %v11985_v11 = vcombine.low %v1420_v34, %v1424_v51  ;;  %v11994_v18 = vcombine.high %v1428_v41, %v1432_v10  ;;  %v1467_v47 = vld [vmem:[%s18253_s0 + $0x17d0] sm:$0xff]  ;;  %v1468_v51 = vld [vmem:[%s18253_s0 + $0x17d8] sm:$0xff] }
 0x3ff   :  { %8088 = vmatprep.subr.bf16.mxu1 %v11946_v27  ;;  %v11992_v27 = vcombine.high %v1427_v5, %v1431_v9  ;;  %v1471_v34 = vld [vmem:[%s18253_s0 + $0x17f0] sm:$0xff] }
 0x401   :  { %7761 = vmatpush1.bf16.msra.mxu0 %v11943_v21  ;;  %v1440_v21 = vld [vmem:[%s18253_s0 + $0x16f8] sm:$0xff] }
 0x402   :  { %8089 = vmatpush1.bf16.msra.mxu1 %v11945_v46  ;;  %7762 = vmatprep.subr.bf16.mxu0 %v11952_v35  ;;  %v11991_v46 = vcombine.low %v1427_v5, %v1431_v9  ;;  %v11993_v35 = vcombine.low %v1428_v41, %v1432_v10  ;;  %v12002_v56 = vcombine.high %v1436_v36, %v1440_v21  ;;  %v1475_v9 = vld [vmem:[%s18253_s0 + $0x1810] sm:$0xff]  ;;  %v1476_v10 = vld [vmem:[%s18253_s0 + $0x1818] sm:$0xff] }
 0x403   :  { %8090 = vmatprep.subr.bf16.mxu1 %v11954_v22  ;;  %v12000_v22 = vcombine.high %v1435_v33, %v1439_v19  ;;  %v1479_v41 = vld [vmem:[%s18253_s0 + $0x1830] sm:$0xff] }
 0x405   :  { %7763 = vmatpush1.bf16.msra.mxu0 %v11951_v29  ;;  %v1448_v29 = vld [vmem:[%s18253_s0 + $0x1738] sm:$0xff] }
 0x406   :  { %8091 = vmatpush1.bf16.msra.mxu1 %v11953_v37  ;;  %7764 = vmatprep.subr.bf16.mxu0 %v11960_v1  ;;  %v11999_v37 = vcombine.low %v1435_v33, %v1439_v19  ;;  %v12001_v1 = vcombine.low %v1436_v36, %v1440_v21  ;;  %v12010_v31 = vcombine.high %v1444_v38, %v1448_v29  ;;  %v1483_v19 = vld [vmem:[%s18253_s0 + $0x1850] sm:$0xff] }
 0x407   :  { %8092 = vmatprep.subr.bf16.mxu1 %v11962_v60  ;;  %v12008_v60 = vcombine.high %v1443_v24, %v1447_v28  ;;  %v1487_v36 = vld [vmem:[%s18253_s0 + $0x1870] sm:$0xff]  ;;  %v12039_v21 = vcombine.low %v1475_v9, %v1479_v41 }
 0x409   :  { %7765 = vmatpush1.bf16.msra.mxu0 %v11959_v30  ;;  %v1456_v30 = vld [vmem:[%s18253_s0 + $0x1778] sm:$0xff] }
 0x40a   :  { %8093 = vmatpush1.bf16.msra.mxu1 %v11961_v15  ;;  %7766 = vmatprep.subr.bf16.mxu0 %v11968_v0  ;;  %v12007_v15 = vcombine.low %v1443_v24, %v1447_v28  ;;  %v12009_v0 = vcombine.low %v1444_v38, %v1448_v29  ;;  %v12018_v44 = vcombine.high %v1452_v39, %v1456_v30  ;;  %v1491_v24 = vld [vmem:[%s18253_s0 + $0x1890] sm:$0xff]  ;;  %v1492_v38 = vld [vmem:[%s18253_s0 + $0x1898] sm:$0xff] }
 0x40b   :  { %8094 = vmatprep.subr.bf16.mxu1 %v11970_v42  ;;  %v12016_v42 = vcombine.high %v1451_v13, %v1455_v3  ;;  %v1495_v28 = vld [vmem:[%s18253_s0 + $0x18b0] sm:$0xff] }
 0x40d   :  { %7767 = vmatpush1.bf16.msra.mxu0 %v11967_v54  ;;  %v1464_v54 = vld [vmem:[%s18253_s0 + $0x17b8] sm:$0xff] }
 0x40e   :  { %8095 = vmatpush1.bf16.msra.mxu1 %v11969_v55  ;;  %7768 = vmatprep.subr.bf16.mxu0 %v11976_v57  ;;  %v12015_v55 = vcombine.low %v1451_v13, %v1455_v3  ;;  %v12017_v57 = vcombine.low %v1452_v39, %v1456_v30  ;;  %v12026_v59 = vcombine.high %v1460_v63, %v1464_v54  ;;  %v1499_v13 = vld [vmem:[%s18253_s0 + $0x18d0] sm:$0xff]  ;;  %v1504_v30 = vld [vmem:[%s18253_s0 + $0x18f8] sm:$0xff] }
 0x40f   :  { %8096 = vmatprep.subr.bf16.mxu1 %v11978_v61  ;;  %v12024_v61 = vcombine.high %v1459_v45, %v1463_v50  ;;  %v1503_v39 = vld [vmem:[%s18253_s0 + $0x18f0] sm:$0xff] }
 0x411   :  { %7769 = vmatpush1.bf16.msra.mxu0 %v11975_v62  ;;  %v1472_v62 = vld [vmem:[%s18253_s0 + $0x17f8] sm:$0xff] }
 0x412   :  { %8097 = vmatpush1.bf16.msra.mxu1 %v11977_v2  ;;  %7770 = vmatprep.subr.bf16.mxu0 %v11984_v4  ;;  %v12023_v2 = vcombine.low %v1459_v45, %v1463_v50  ;;  %v12025_v4 = vcombine.low %v1460_v63, %v1464_v54  ;;  %v12034_v5 = vcombine.high %v1468_v51, %v1472_v62  ;;  %v1508_v50 = vld [vmem:[%s18253_s0 + $0x1918] sm:$0xff] }
 0x413   :  { %8098 = vmatprep.subr.bf16.mxu1 %v11986_v53  ;;  %v12032_v53 = vcombine.high %v1467_v47, %v1471_v34  ;;  %v1512_v63 = vld [vmem:[%s18253_s0 + $0x1938] sm:$0xff]  ;;  %v12063_v54 = vcombine.low %v1499_v13, %v1503_v39 }
 0x415   :  { %7771 = vmatpush1.bf16.msra.mxu0 %v11983_v26  ;;  %v1480_v26 = vld [vmem:[%s18253_s0 + $0x1838] sm:$0xff] }
 0x416   :  { %8099 = vmatpush1.bf16.msra.mxu1 %v11985_v11  ;;  %7772 = vmatprep.subr.bf16.mxu0 %v11992_v27  ;;  %v12031_v11 = vcombine.low %v1467_v47, %v1471_v34  ;;  %v12033_v27 = vcombine.low %v1468_v51, %v1472_v62  ;;  %v12042_v33 = vcombine.high %v1476_v10, %v1480_v26  ;;  %v1516_v47 = vld [vmem:[%s18253_s0 + $0x1958] sm:$0xff] }
 0x417   :  { %8100 = vmatprep.subr.bf16.mxu1 %v11994_v18  ;;  %v12040_v18 = vcombine.high %v1475_v9, %v1479_v41  ;;  %v12074_v34 = vcombine.high %v1508_v50, %v1512_v63  ;;  %v1520_v51 = vld [vmem:[%s18253_s0 + $0x1978] sm:$0xff] }
 0x418   :  { %v1524_v9 = vld [vmem:[%s18253_s0 + $0x1998] sm:$0xff]  ;;  %v12082_v41 = vcombine.high %v1516_v47, %v1520_v51 }
 0x419   :  { %7773 = vmatpush1.bf16.msra.mxu0 %v11991_v46  ;;  %v1484_v46 = vld [vmem:[%s18253_s0 + $0x1858] sm:$0xff] }
 0x41a   :  { %8101 = vmatpush1.bf16.msra.mxu1 %v11993_v35  ;;  %7774 = vmatprep.subr.bf16.mxu0 %v12000_v22  ;;  %v1488_v35 = vld [vmem:[%s18253_s0 + $0x1878] sm:$0xff]  ;;  %v12041_v22 = vcombine.low %v1476_v10, %v1480_v26 }
 0x41b   :  { %8102 = vmatprep.subr.bf16.mxu1 %v12002_v56  ;;  %v12048_v56 = vcombine.high %v1483_v19, %v1487_v36  ;;  %v12050_v29 = vcombine.high %v1484_v46, %v1488_v35  ;;  %v1528_v10 = vld [vmem:[%s18253_s0 + $0x19b8] sm:$0xff] }
 0x41d   :  { %7775 = vmatpush1.bf16.msra.mxu0 %v11999_v37  ;;  %v1496_v37 = vld [vmem:[%s18253_s0 + $0x18b8] sm:$0xff] }
 0x41e   :  { %8103 = vmatpush1.bf16.msra.mxu1 %v12001_v1  ;;  %7776 = vmatprep.subr.bf16.mxu0 %v12008_v60  ;;  %v12047_v1 = vcombine.low %v1483_v19, %v1487_v36  ;;  %v12049_v60 = vcombine.low %v1484_v46, %v1488_v35  ;;  %v12058_v3 = vcombine.high %v1492_v38, %v1496_v37  ;;  %v1532_v19 = vld [vmem:[%s18253_s0 + $0x19d8] sm:$0xff] }
 0x41f   :  { %8104 = vmatprep.subr.bf16.mxu1 %v12010_v31  ;;  %v12056_v31 = vcombine.high %v1491_v24, %v1495_v28  ;;  %v12090_v36 = vcombine.high %v1524_v9, %v1528_v10  ;;  %v12089_v35 = vcombine.low %v1524_v9, %v1528_v10 }
 0x421   :  { %7777 = vmatpush1.bf16.msra.mxu0 %v12007_v15  ;;  %v12055_v15 = vcombine.low %v1491_v24, %v1495_v28  ;;  %v1543_v24 = vld [vmem:[%s18253_s0 + $0x1a30] sm:$0xff]  ;;  %v1540_v28 = vld [vmem:[%s18253_s0 + $0x1a18] sm:$0xff] }
 0x422   :  { %8105 = vmatpush1.bf16.msra.mxu1 %v12009_v0  ;;  %7778 = vmatprep.subr.bf16.mxu0 %v12016_v42  ;;  %v12064_v0 = vcombine.high %v1499_v13, %v1503_v39  ;;  %v1507_v42 = vld [vmem:[%s18253_s0 + $0x1910] sm:$0xff] }
 0x423   :  { %8106 = vmatprep.subr.bf16.mxu1 %v12018_v44  ;;  %v1511_v44 = vld [vmem:[%s18253_s0 + $0x1930] sm:$0xff] }
 0x424   :  { %v12071_v62 = vcombine.low %v1507_v42, %v1511_v44  ;;  %v1551_v13 = vld [vmem:[%s18253_s0 + $0x1a70] sm:$0xff] }
 0x425   :  { %7779 = vmatpush1.bf16.msra.mxu0 %v12015_v55 }
 0x426   :  { %8107 = vmatpush1.bf16.msra.mxu1 %v12017_v57  ;;  %7780 = vmatprep.subr.bf16.mxu0 %v12024_v61  ;;  %v12072_v57 = vcombine.high %v1507_v42, %v1511_v44  ;;  %v1515_v61 = vld [vmem:[%s18253_s0 + $0x1950] sm:$0xff]  ;;  %v1556_v44 = vld [vmem:[%s18253_s0 + $0x1a98] sm:$0xff] }
 0x427   :  { %8108 = vmatprep.subr.bf16.mxu1 %v12026_v59  ;;  %v1519_v59 = vld [vmem:[%s18253_s0 + $0x1970] sm:$0xff] }
 0x428   :  { %v12079_v26 = vcombine.low %v1515_v61, %v1519_v59  ;;  %v1559_v42 = vld [vmem:[%s18253_s0 + $0x1ab0] sm:$0xff] }
 0x429   :  { %7781 = vmatpush1.bf16.msra.mxu0 %v12023_v2  ;;  %v12073_v2 = vcombine.low %v1508_v50, %v1512_v63  ;;  %v1560_v50 = vld [vmem:[%s18253_s0 + $0x1ab8] sm:$0xff] }
 0x42a   :  { %8109 = vmatpush1.bf16.msra.mxu1 %v12025_v4  ;;  %7782 = vmatprep.subr.bf16.mxu0 %v12032_v53  ;;  %v12080_v4 = vcombine.high %v1515_v61, %v1519_v59  ;;  %v1523_v53 = vld [vmem:[%s18253_s0 + $0x1990] sm:$0xff]  ;;  %v1564_v59 = vld [vmem:[%s18253_s0 + $0x1ad8] sm:$0xff] }
 0x42b   :  { %8110 = vmatprep.subr.bf16.mxu1 %v12034_v5  ;;  %v1527_v5 = vld [vmem:[%s18253_s0 + $0x19b0] sm:$0xff] }
 0x42c   :  { %v12087_v46 = vcombine.low %v1523_v53, %v1527_v5  ;;  %v1567_v61 = vld [vmem:[%s18253_s0 + $0x1af0] sm:$0xff] }
 0x42d   :  { %7783 = vmatpush1.bf16.msra.mxu0 %v12031_v11  ;;  %v12081_v11 = vcombine.low %v1516_v47, %v1520_v51  ;;  %v12122_v47 = vcombine.high %v1556_v44, %v1560_v50 }
 0x42e   :  { %8111 = vmatpush1.bf16.msra.mxu1 %v12033_v27  ;;  %7793 = vmatprep.subr.bf16.mxu0 %v12040_v18  ;;  %v12088_v27 = vcombine.high %v1523_v53, %v1527_v5  ;;  %v1531_v18 = vld [vmem:[%s18253_s0 + $0x19d0] sm:$0xff]  ;;  %v1572_v5 = vld [vmem:[%s18253_s0 + $0x1b18] sm:$0xff] }
 0x42f   :  { %8121 = vmatprep.subr.bf16.mxu1 %v12042_v33  ;;  %v1535_v33 = vld [vmem:[%s18253_s0 + $0x19f0] sm:$0xff] }
 0x430   :  { %7785 = vmatmul.mubr.bf16.vlgmr.msra.gmra.mrb[12].mxu0 %v15038_v6  ;;  %v1575_v53 = vld [vmem:[%s18253_s0 + $0x1b30] sm:$0xff] }
 0x431   :  { %8113 = vmatmul.mubr.bf16.vlgmr.msra.gmra.mrb[28].mxu1 %v15038_v6  ;;  %7794 = vmatpush1.bf16.msra.mxu0 %v12039_v21  ;;  %v1500_v6 = vld [vmem:[%s18253_s0 + $0x18d8] sm:$0xff] }
 0x432   :  { %7825 = vmatprep.mubr.bf16.mxu0 %v15046_v20  ;;  %8122 = vmatpush1.bf16.msra.mxu1 %v12041_v22  ;;  %v12066_v45 = vcombine.high %v1500_v6, %v1504_v30  ;;  %v12065_v55 = vcombine.low %v1500_v6, %v1504_v30  ;;  %v1536_v21 = vld [vmem:[%s18253_s0 + $0x19f8] sm:$0xff]  ;;  %v12096_v22 = vcombine.high %v1531_v18, %v1535_v33 }
 0x433   :  { %8153 = vmatprep.mubr.bf16.mxu1 %v15046_v20  ;;  %7795 = vmatprep.subr.bf16.mxu0 %v12048_v56  ;;  %v12057_v20 = vcombine.low %v1492_v38, %v1496_v37  ;;  %v1539_v56 = vld [vmem:[%s18253_s0 + $0x1a10] sm:$0xff]  ;;  %v12098_v38 = vcombine.high %v1532_v19, %v1536_v21  ;;  %v12095_v37 = vcombine.low %v1531_v18, %v1535_v33  ;;  %v1552_v6 = vld [vmem:[%s18253_s0 + $0x1a78] sm:$0xff] }
 0x434   :  { %8123 = vmatprep.subr.bf16.mxu1 %v12050_v29  ;;  %v1544_v29 = vld [vmem:[%s18253_s0 + $0x1a38] sm:$0xff]  ;;  %v12103_v30 = vcombine.low %v1539_v56, %v1543_v24  ;;  %v1583_v18 = vld [vmem:[%s18253_s0 + $0x1b70] sm:$0xff] }
 0x435   :  { %7796 = vmatpush1.bf16.msra.mxu0 %v12047_v1  ;;  %v12097_v1 = vcombine.low %v1532_v19, %v1536_v21  ;;  %v12106_v39 = vcombine.high %v1540_v28, %v1544_v29  ;;  %v1580_v33 = vld [vmem:[%s18253_s0 + $0x1b58] sm:$0xff] }
 0x436   :  { %8124 = vmatpush1.bf16.msra.mxu1 %v12049_v60  ;;  %7797 = vmatprep.subr.bf16.mxu0 %v12056_v31  ;;  %v12104_v60 = vcombine.high %v1539_v56, %v1543_v24  ;;  %v1547_v31 = vld [vmem:[%s18253_s0 + $0x1a50] sm:$0xff]  ;;  %v1588_v24 = vld [vmem:[%s18253_s0 + $0x1b98] sm:$0xff] }
 0x437   :  { %8125 = vmatprep.subr.bf16.mxu1 %v12058_v3  ;;  %v1548_v3 = vld [vmem:[%s18253_s0 + $0x1a58] sm:$0xff]  ;;  %v12111_v63 = vcombine.low %v1547_v31, %v1551_v13  ;;  %v1591_v56 = vld [vmem:[%s18253_s0 + $0x1bb0] sm:$0xff] }
 0x439   :  { %7798 = vmatpush1.bf16.msra.mxu0 %v12055_v15  ;;  %v12105_v15 = vcombine.low %v1540_v28, %v1544_v29 }
 0x43a   :  { %8126 = vmatpush1.bf16.msra.mxu1 %v12057_v20  ;;  %7799 = vmatprep.subr.bf16.mxu0 %v12064_v0  ;;  %v12112_v20 = vcombine.high %v1547_v31, %v1551_v13  ;;  %v1555_v0 = vld [vmem:[%s18253_s0 + $0x1a90] sm:$0xff]  ;;  %v1596_v13 = vld [vmem:[%s18253_s0 + $0x1bd8] sm:$0xff] }
 0x43b   :  { %8127 = vmatprep.subr.bf16.mxu1 %v12066_v45  ;;  %v12114_v45 = vcombine.high %v1548_v3, %v1552_v6  ;;  %v12119_v51 = vcombine.low %v1555_v0, %v1559_v42  ;;  %v1599_v31 = vld [vmem:[%s18253_s0 + $0x1bf0] sm:$0xff] }
 0x43d   :  { %7800 = vmatpush1.bf16.msra.mxu0 %v12063_v54  ;;  %v12113_v54 = vcombine.low %v1548_v3, %v1552_v6 }
 0x43e   :  { %8128 = vmatpush1.bf16.msra.mxu1 %v12065_v55  ;;  %7801 = vmatprep.subr.bf16.mxu0 %v12072_v57  ;;  %v12120_v55 = vcombine.high %v1555_v0, %v1559_v42  ;;  %v1563_v57 = vld [vmem:[%s18253_s0 + $0x1ad0] sm:$0xff]  ;;  %v1604_v42 = vld [vmem:[%s18253_s0 + $0x1c18] sm:$0xff] }
 0x43f   :  { %8129 = vmatprep.subr.bf16.mxu1 %v12074_v34  ;;  %v1568_v34 = vld [vmem:[%s18253_s0 + $0x1af8] sm:$0xff]  ;;  %v12127_v10 = vcombine.low %v1563_v57, %v1567_v61  ;;  %v1607_v0 = vld [vmem:[%s18253_s0 + $0x1c30] sm:$0xff] }
 0x440   :  { %v12130_v9 = vcombine.high %v1564_v59, %v1568_v34 }
 0x441   :  { %7802 = vmatpush1.bf16.msra.mxu0 %v12071_v62  ;;  %v12121_v62 = vcombine.low %v1556_v44, %v1560_v50 }
 0x442   :  { %8130 = vmatpush1.bf16.msra.mxu1 %v12073_v2  ;;  %7803 = vmatprep.subr.bf16.mxu0 %v12080_v4  ;;  %v12128_v2 = vcombine.high %v1563_v57, %v1567_v61  ;;  %v1571_v4 = vld [vmem:[%s18253_s0 + $0x1b10] sm:$0xff] }
 0x443   :  { %8131 = vmatprep.subr.bf16.mxu1 %v12082_v41  ;;  %v1576_v41 = vld [vmem:[%s18253_s0 + $0x1b38] sm:$0xff]  ;;  %v12135_v21 = vcombine.low %v1571_v4, %v1575_v53  ;;  %v1615_v57 = vld [vmem:[%s18253_s0 + $0x1c70] sm:$0xff] }
 0x444   :  { %v12138_v19 = vcombine.high %v1572_v5, %v1576_v41 }
 0x445   :  { %7804 = vmatpush1.bf16.msra.mxu0 %v12079_v26  ;;  %v12129_v26 = vcombine.low %v1564_v59, %v1568_v34  ;;  %v1612_v59 = vld [vmem:[%s18253_s0 + $0x1c58] sm:$0xff] }
 0x446   :  { %8132 = vmatpush1.bf16.msra.mxu1 %v12081_v11  ;;  %7805 = vmatprep.subr.bf16.mxu0 %v12088_v27  ;;  %v12136_v11 = vcombine.high %v1571_v4, %v1575_v53  ;;  %v1579_v27 = vld [vmem:[%s18253_s0 + $0x1b50] sm:$0xff] }
 0x447   :  { %8133 = vmatprep.subr.bf16.mxu1 %v12090_v36  ;;  %v1584_v36 = vld [vmem:[%s18253_s0 + $0x1b78] sm:$0xff]  ;;  %v12143_v29 = vcombine.low %v1579_v27, %v1583_v18 }
 0x448   :  { %v12146_v28 = vcombine.high %v1580_v33, %v1584_v36 }
 0x449   :  { %7806 = vmatpush1.bf16.msra.mxu0 %v12087_v46  ;;  %v12137_v46 = vcombine.low %v1572_v5, %v1576_v41  ;;  %v1620_v5 = vld [vmem:[%s18253_s0 + $0x1c98] sm:$0xff] }
 0x44a   :  { %8134 = vmatpush1.bf16.msra.mxu1 %v12089_v35  ;;  %7807 = vmatprep.subr.bf16.mxu0 %v12096_v22  ;;  %v12144_v35 = vcombine.high %v1579_v27, %v1583_v18  ;;  %v1587_v22 = vld [vmem:[%s18253_s0 + $0x1b90] sm:$0xff] }
 0x44b   :  { %8135 = vmatprep.subr.bf16.mxu1 %v12098_v38  ;;  %v1592_v38 = vld [vmem:[%s18253_s0 + $0x1bb8] sm:$0xff]  ;;  %v12151_v6 = vcombine.low %v1587_v22, %v1591_v56  ;;  %v1627_v27 = vld [vmem:[%s18253_s0 + $0x1cd0] sm:$0xff] }
 0x44c   :  { %v12154_v3 = vcombine.high %v1588_v24, %v1592_v38  ;;  %v1631_v18 = vld [vmem:[%s18253_s0 + $0x1cf0] sm:$0xff] }
 0x44d   :  { %7808 = vmatpush1.bf16.msra.mxu0 %v12095_v37  ;;  %v12145_v37 = vcombine.low %v1580_v33, %v1584_v36  ;;  %v1632_v33 = vld [vmem:[%s18253_s0 + $0x1cf8] sm:$0xff]  ;;  %v12192_v36 = vcombine.high %v1627_v27, %v1631_v18 }
 0x44e   :  { %8136 = vmatpush1.bf16.msra.mxu1 %v12097_v1  ;;  %7809 = vmatprep.subr.bf16.mxu0 %v12104_v60  ;;  %v12152_v1 = vcombine.high %v1587_v22, %v1591_v56  ;;  %v1595_v60 = vld [vmem:[%s18253_s0 + $0x1bd0] sm:$0xff]  ;;  %v1640_v56 = vld [vmem:[%s18253_s0 + $0x1d38] sm:$0xff] }
 0x44f   :  { %8137 = vmatprep.subr.bf16.mxu1 %v12106_v39  ;;  %v1600_v39 = vld [vmem:[%s18253_s0 + $0x1bf8] sm:$0xff]  ;;  %v12159_v50 = vcombine.low %v1595_v60, %v1599_v31 }
 0x450   :  { %v12162_v44 = vcombine.high %v1596_v13, %v1600_v39 }
 0x451   :  { %7810 = vmatpush1.bf16.msra.mxu0 %v12103_v30  ;;  %v12153_v30 = vcombine.low %v1588_v24, %v1592_v38  ;;  %v12191_v24 = vcombine.low %v1627_v27, %v1631_v18  ;;  %v1680_v27 = vld [vmem:[%s18253_s0 + $0x1e78] sm:$0xff] }
 0x452   :  { %8138 = vmatpush1.bf16.msra.mxu1 %v12105_v15  ;;  %7811 = vmatprep.subr.bf16.mxu0 %v12112_v20  ;;  %v12160_v15 = vcombine.high %v1595_v60, %v1599_v31  ;;  %v1603_v20 = vld [vmem:[%s18253_s0 + $0x1c10] sm:$0xff]  ;;  %v1648_v31 = vld [vmem:[%s18253_s0 + $0x1d78] sm:$0xff] }
 0x453   :  { %8139 = vmatprep.subr.bf16.mxu1 %v12114_v45  ;;  %v1608_v45 = vld [vmem:[%s18253_s0 + $0x1c38] sm:$0xff]  ;;  %v12167_v34 = vcombine.low %v1603_v20, %v1607_v0 }
 0x454   :  { %v12170_v61 = vcombine.high %v1604_v42, %v1608_v45 }
 0x455   :  { %7812 = vmatpush1.bf16.msra.mxu0 %v12111_v63  ;;  %v12161_v63 = vcombine.low %v1596_v13, %v1600_v39 }
 0x456   :  { %8140 = vmatpush1.bf16.msra.mxu1 %v12113_v54  ;;  %7813 = vmatprep.subr.bf16.mxu0 %v12120_v55  ;;  %v12168_v54 = vcombine.high %v1603_v20, %v1607_v0  ;;  %v1611_v55 = vld [vmem:[%s18253_s0 + $0x1c50] sm:$0xff]  ;;  %v1656_v0 = vld [vmem:[%s18253_s0 + $0x1db8] sm:$0xff] }
 0x457   :  { %8141 = vmatprep.subr.bf16.mxu1 %v12122_v47  ;;  %v1616_v47 = vld [vmem:[%s18253_s0 + $0x1c78] sm:$0xff]  ;;  %v12176_v4 = vcombine.high %v1611_v55, %v1615_v57  ;;  %v12175_v41 = vcombine.low %v1611_v55, %v1615_v57 }
 0x458   :  { %v12178_v53 = vcombine.high %v1612_v59, %v1616_v47  ;;  %v1664_v57 = vld [vmem:[%s18253_s0 + $0x1df8] sm:$0xff] }
 0x459   :  { %7814 = vmatpush1.bf16.msra.mxu0 %v12119_v51  ;;  %v1619_v51 = vld [vmem:[%s18253_s0 + $0x1c90] sm:$0xff] }
 0x45a   :  { %8142 = vmatpush1.bf16.msra.mxu1 %v12121_v62  ;;  %7815 = vmatprep.subr.bf16.mxu0 %v12128_v2  ;;  %v1623_v62 = vld [vmem:[%s18253_s0 + $0x1cb0] sm:$0xff]  ;;  %v12169_v2 = vcombine.low %v1604_v42, %v1608_v45 }
 0x45b   :  { %8143 = vmatprep.subr.bf16.mxu1 %v12130_v9  ;;  %v1624_v9 = vld [vmem:[%s18253_s0 + $0x1cb8] sm:$0xff] }
 0x45d   :  { %7816 = vmatpush1.bf16.msra.mxu0 %v12127_v10  ;;  %v12177_v10 = vcombine.low %v1612_v59, %v1616_v47 }
 0x45e   :  { %8144 = vmatpush1.bf16.msra.mxu1 %v12129_v26  ;;  %7817 = vmatprep.subr.bf16.mxu0 %v12136_v11  ;;  %v12184_v26 = vcombine.high %v1619_v51, %v1623_v62  ;;  %v12186_v11 = vcombine.high %v1620_v5, %v1624_v9 }
 0x45f   :  { %8145 = vmatprep.subr.bf16.mxu1 %v12138_v19  ;;  %v12185_v19 = vcombine.low %v1620_v5, %v1624_v9 }
 0x461   :  { %7818 = vmatpush1.bf16.msra.mxu0 %v12135_v21  ;;  %v1635_v21 = vld [vmem:[%s18253_s0 + $0x1d10] sm:$0xff] }
 0x462   :  { %8146 = vmatpush1.bf16.msra.mxu1 %v12137_v46  ;;  %7819 = vmatprep.subr.bf16.mxu0 %v12144_v35  ;;  %v1639_v46 = vld [vmem:[%s18253_s0 + $0x1d30] sm:$0xff]  ;;  %v1636_v35 = vld [vmem:[%s18253_s0 + $0x1d18] sm:$0xff] }
 0x463   :  { %8147 = vmatprep.subr.bf16.mxu1 %v12146_v28  ;;  %v12200_v38 = vcombine.high %v1635_v21, %v1639_v46  ;;  %v12202_v60 = vcombine.high %v1636_v35, %v1640_v56  ;;  %v12199_v13 = vcombine.low %v1635_v21, %v1639_v46  ;;  %v1688_v46 = vld [vmem:[%s18253_s0 + $0x1eb8] sm:$0xff] }
 0x465   :  { %7820 = vmatpush1.bf16.msra.mxu0 %v12143_v29  ;;  %v1643_v29 = vld [vmem:[%s18253_s0 + $0x1d50] sm:$0xff] }
 0x466   :  { %8148 = vmatpush1.bf16.msra.mxu1 %v12145_v37  ;;  %7821 = vmatprep.subr.bf16.mxu0 %v12152_v1  ;;  %v1647_v37 = vld [vmem:[%s18253_s0 + $0x1d70] sm:$0xff]  ;;  %v1644_v1 = vld [vmem:[%s18253_s0 + $0x1d58] sm:$0xff] }
 0x467   :  { %8149 = vmatprep.subr.bf16.mxu1 %v12154_v3  ;;  %v12201_v3 = vcombine.low %v1636_v35, %v1640_v56  ;;  %v12208_v39 = vcombine.high %v1643_v29, %v1647_v37  ;;  %v12210_v20 = vcombine.high %v1644_v1, %v1648_v31  ;;  %v12207_v42 = vcombine.low %v1643_v29, %v1647_v37  ;;  %v1696_v37 = vld [vmem:[%s18253_s0 + $0x1ef8] sm:$0xff] }
 0x469   :  { %7822 = vmatpush1.bf16.msra.mxu0 %v12151_v6  ;;  %v1651_v6 = vld [vmem:[%s18253_s0 + $0x1d90] sm:$0xff] }
 0x46a   :  { %8150 = vmatpush1.bf16.msra.mxu1 %v12153_v30  ;;  %7823 = vmatprep.subr.bf16.mxu0 %v12160_v15  ;;  %v1655_v30 = vld [vmem:[%s18253_s0 + $0x1db0] sm:$0xff]  ;;  %v1652_v15 = vld [vmem:[%s18253_s0 + $0x1d98] sm:$0xff] }
 0x46b   :  { %8151 = vmatprep.subr.bf16.mxu1 %v12162_v44  ;;  %v12209_v44 = vcombine.low %v1644_v1, %v1648_v31  ;;  %v12216_v45 = vcombine.high %v1651_v6, %v1655_v30  ;;  %v12218_v55 = vcombine.high %v1652_v15, %v1656_v0  ;;  %v12217_v59 = vcombine.low %v1652_v15, %v1656_v0 }
 0x46d   :  { %7824 = vmatpush1.bf16.msra.mxu0 %v12159_v50  ;;  %v1659_v50 = vld [vmem:[%s18253_s0 + $0x1dd0] sm:$0xff] }
 0x46e   :  { %8152 = vmatpush1.bf16.msra.mxu1 %v12161_v63  ;;  %7834 = vmatprep.subr.bf16.mxu0 %v12168_v54  ;;  %v1663_v63 = vld [vmem:[%s18253_s0 + $0x1df0] sm:$0xff]  ;;  %v1660_v54 = vld [vmem:[%s18253_s0 + $0x1dd8] sm:$0xff] }
 0x46f   :  { %8162 = vmatprep.subr.bf16.mxu1 %v12170_v61  ;;  %v12215_v61 = vcombine.low %v1651_v6, %v1655_v30  ;;  %v12224_v47 = vcombine.high %v1659_v50, %v1663_v63  ;;  %v12225_v5 = vcombine.low %v1660_v54, %v1664_v57  ;;  %v1704_v30 = vld [vmem:[%s18253_s0 + $0x1f38] sm:$0xff] }
 0x470   :  { %7826 = vmatmul.mubr.bf16.vlgmr.msra.gmra.mrb[12].mxu0 %v15249_v32 }
 0x471   :  { %8154 = vmatmul.mubr.bf16.vlgmr.msra.gmra.mrb[28].mxu1 %v15249_v32  ;;  %7835 = vmatpush1.bf16.msra.mxu0 %v12167_v34  ;;  %v1628_v32 = vld [vmem:[%s18253_s0 + $0x1cd8] sm:$0xff]  ;;  %v1667_v34 = vld [vmem:[%s18253_s0 + $0x1e10] sm:$0xff] }
 0x472   :  { %7866 = vmatprep.mubr.bf16.mxu0 %v15257_v7  ;;  %8163 = vmatpush1.bf16.msra.mxu1 %v12169_v2  ;;  %v12194_v22 = vcombine.high %v1628_v32, %v1632_v33  ;;  %v12193_v28 = vcombine.low %v1628_v32, %v1632_v33  ;;  %v12226_v2 = vcombine.high %v1660_v54, %v1664_v57 }
 0x473   :  { %8194 = vmatprep.mubr.bf16.mxu1 %v15257_v7  ;;  %7836 = vmatprep.subr.bf16.mxu0 %v12176_v4  ;;  %v12183_v7 = vcombine.low %v1619_v51, %v1623_v62  ;;  %v1671_v51 = vld [vmem:[%s18253_s0 + $0x1e30] sm:$0xff]  ;;  %v1668_v62 = vld [vmem:[%s18253_s0 + $0x1e18] sm:$0xff] }
 0x474   :  { %8164 = vmatprep.subr.bf16.mxu1 %v12178_v53  ;;  %v1672_v4 = vld [vmem:[%s18253_s0 + $0x1e38] sm:$0xff]  ;;  %v12223_v53 = vcombine.low %v1659_v50, %v1663_v63  ;;  %v12232_v9 = vcombine.high %v1667_v34, %v1671_v51  ;;  %v12231_v18 = vcombine.low %v1667_v34, %v1671_v51  ;;  %v16994_v34 = vld [vmem:[%s18229_s4] sm:$0xff] }
 0x475   :  { %7837 = vmatpush1.bf16.msra.mxu0 %v12175_v41  ;;  %v1675_v41 = vld [vmem:[%s18253_s0 + $0x1e50] sm:$0xff]  ;;  %v12233_v32 = vcombine.low %v1668_v62, %v1672_v4  ;;  %v1712_v63 = vld [vmem:[%s18253_s0 + $0x1f78] sm:$0xff] }
 0x476   :  { %8165 = vmatpush1.bf16.msra.mxu1 %v12177_v10  ;;  %7838 = vmatprep.subr.bf16.mxu0 %v12184_v26  ;;  %v1679_v10 = vld [vmem:[%s18253_s0 + $0x1e70] sm:$0xff]  ;;  %v1676_v26 = vld [vmem:[%s18253_s0 + $0x1e58] sm:$0xff] }
 0x477   :  { %8166 = vmatprep.subr.bf16.mxu1 %v12186_v11  ;;  %v12234_v11 = vcombine.high %v1668_v62, %v1672_v4  ;;  %v12240_v33 = vcombine.high %v1675_v41, %v1679_v10  ;;  %v12242_v21 = vcombine.high %v1676_v26, %v1680_v27  ;;  %v12239_v35 = vcombine.low %v1675_v41, %v1679_v10  ;;  %v1720_v62 = vld [vmem:[%s18253_s0 + $0x1fb8] sm:$0xff] }
 0x478   :  { %v1724_v41 = vld [vmem:[%s18253_s0 + $0x1fd8] sm:$0xff] }
 0x479   :  { %7839 = vmatpush1.bf16.msra.mxu0 %v12183_v7  ;;  %v1683_v7 = vld [vmem:[%s18253_s0 + $0x1e90] sm:$0xff] }
 0x47a   :  { %8167 = vmatpush1.bf16.msra.mxu1 %v12185_v19  ;;  %7840 = vmatprep.subr.bf16.mxu0 %v12192_v36  ;;  %v1687_v19 = vld [vmem:[%s18253_s0 + $0x1eb0] sm:$0xff]  ;;  %v1684_v36 = vld [vmem:[%s18253_s0 + $0x1e98] sm:$0xff] }
 0x47b   :  { %8168 = vmatprep.subr.bf16.mxu1 %v12194_v22  ;;  %v12241_v22 = vcombine.low %v1676_v26, %v1680_v27  ;;  %v12248_v56 = vcombine.high %v1683_v7, %v1687_v19  ;;  %v12250_v29 = vcombine.high %v1684_v36, %v1688_v46  ;;  %v12247_v1 = vcombine.low %v1683_v7, %v1687_v19  ;;  %v1728_v26 = vld [vmem:[%s18253_s0 + $0x1ff8] sm:$0xff] }
 0x47d   :  { %7841 = vmatpush1.bf16.msra.mxu0 %v12191_v24  ;;  %v1691_v24 = vld [vmem:[%s18253_s0 + $0x1ed0] sm:$0xff] }
 0x47e   :  { %8169 = vmatpush1.bf16.msra.mxu1 %v12193_v28  ;;  %7842 = vmatprep.subr.bf16.mxu0 %v12200_v38  ;;  %v1695_v28 = vld [vmem:[%s18253_s0 + $0x1ef0] sm:$0xff]  ;;  %v1692_v38 = vld [vmem:[%s18253_s0 + $0x1ed8] sm:$0xff] }
 0x47f   :  { %8170 = vmatprep.subr.bf16.mxu1 %v12202_v60  ;;  %v12249_v60 = vcombine.low %v1684_v36, %v1688_v46  ;;  %v12256_v31 = vcombine.high %v1691_v24, %v1695_v28  ;;  %v12258_v6 = vcombine.high %v1692_v38, %v1696_v37  ;;  %v12255_v15 = vcombine.low %v1691_v24, %v1695_v28  ;;  %v12959_v46 = vld [vmem:[%s18228_s5] ss:$16 sps:$4 sm:$0xff]   ;;  %v12970_v28 = vld [vmem:[%s18228_s5 + $0x2c] ss:$16 sps:$4 sm:$0xff]  }
 0x480   :  { %v12289_v36 = vcombine.low %v1724_v41, %v1728_v26 }
 0x481   :  { %7843 = vmatpush1.bf16.msra.mxu0 %v12199_v13  ;;  %v1699_v13 = vld [vmem:[%s18253_s0 + $0x1f10] sm:$0xff] }
 0x482   :  { %8171 = vmatpush1.bf16.msra.mxu1 %v12201_v3  ;;  %7844 = vmatprep.subr.bf16.mxu0 %v12208_v39  ;;  %v1703_v3 = vld [vmem:[%s18253_s0 + $0x1f30] sm:$0xff]  ;;  %v1700_v39 = vld [vmem:[%s18253_s0 + $0x1f18] sm:$0xff] }
 0x483   :  { %8172 = vmatprep.subr.bf16.mxu1 %v12210_v20  ;;  %v12257_v20 = vcombine.low %v1692_v38, %v1696_v37  ;;  %v12264_v0 = vcombine.high %v1699_v13, %v1703_v3  ;;  %v12266_v50 = vcombine.high %v1700_v39, %v1704_v30  ;;  %v12263_v54 = vcombine.low %v1699_v13, %v1703_v3  ;;  %v12965_v38 = vld [vmem:[%s18228_s5 + $0x20] ss:$16 sps:$4 sm:$0xff]   ;;  %v12973_v37 = vld [vmem:[%s18228_s5 + $0x44] ss:$16 sps:$4 sm:$0xff]   ;;  %v12982_v13 = vld [vmem:[%s18228_s5 + $0x6c] ss:$16 sps:$4 sm:$0xff]  }
 0x484   :  { %v12977_v3 = vld [vmem:[%s18228_s5 + $0x60] ss:$16 sps:$4 sm:$0xff]  }
 0x485   :  { %7845 = vmatpush1.bf16.msra.mxu0 %v12207_v42  ;;  %v1707_v42 = vld [vmem:[%s18253_s0 + $0x1f50] sm:$0xff] }
 0x486   :  { %8173 = vmatpush1.bf16.msra.mxu1 %v12209_v44  ;;  %7846 = vmatprep.subr.bf16.mxu0 %v12216_v45  ;;  %v1711_v44 = vld [vmem:[%s18253_s0 + $0x1f70] sm:$0xff]  ;;  %v1708_v45 = vld [vmem:[%s18253_s0 + $0x1f58] sm:$0xff] }
 0x487   :  { %8174 = vmatprep.subr.bf16.mxu1 %v12218_v55  ;;  %v12265_v55 = vcombine.low %v1700_v39, %v1704_v30  ;;  %v12272_v57 = vcombine.high %v1707_v42, %v1711_v44  ;;  %v12274_v51 = vcombine.high %v1708_v45, %v1712_v63  ;;  %v12273_v4 = vcombine.low %v1708_v45, %v1712_v63  ;;  %v12980_v39 = vld [vmem:[%s18228_s5 + $0x68] ss:$16 sps:$4 sm:$0xff]   ;;  %v12988_v30 = vld [vmem:[%s18228_s5 + $0x8c] ss:$16 sps:$4 sm:$0xff]  }
 0x488   :  { %v12992_v45 = vld [vmem:[%s18228_s5 + $0xa8] ss:$16 sps:$4 sm:$0xff]   ;;  %v13000_v63 = vld [vmem:[%s18228_s5 + $0xcc] ss:$16 sps:$4 sm:$0xff]  }
 0x489   :  { %7847 = vmatpush1.bf16.msra.mxu0 %v12215_v61  ;;  %v1715_v61 = vld [vmem:[%s18253_s0 + $0x1f90] sm:$0xff] }
 0x48a   :  { %8175 = vmatpush1.bf16.msra.mxu1 %v12217_v59  ;;  %7848 = vmatprep.subr.bf16.mxu0 %v12224_v47  ;;  %v1719_v59 = vld [vmem:[%s18253_s0 + $0x1fb0] sm:$0xff]  ;;  %v1716_v47 = vld [vmem:[%s18253_s0 + $0x1f98] sm:$0xff] }
 0x48b   :  { %8176 = vmatprep.subr.bf16.mxu1 %v12226_v2  ;;  %v12271_v2 = vcombine.low %v1707_v42, %v1711_v44  ;;  %v12282_v10 = vcombine.high %v1716_v47, %v1720_v62  ;;  %v12279_v27 = vcombine.low %v1715_v61, %v1719_v59  ;;  %v12994_v42 = vld [vmem:[%s18228_s5 + $0xac] ss:$16 sps:$4 sm:$0xff]   ;;  %v12989_v44 = vld [vmem:[%s18228_s5 + $0xa0] ss:$16 sps:$4 sm:$0xff]  }
 0x48d   :  { %7849 = vmatpush1.bf16.msra.mxu0 %v12223_v53  ;;  %v12280_v53 = vcombine.high %v1715_v61, %v1719_v59  ;;  %v13006_v61 = vld [vmem:[%s18228_s5 + $0xec] ss:$16 sps:$4 sm:$0xff]   ;;  %v13001_v59 = vld [vmem:[%s18228_s5 + $0xe0] ss:$16 sps:$4 sm:$0xff]  }
 0x48e   :  { %8177 = vmatpush1.bf16.msra.mxu1 %v12225_v5  ;;  %7850 = vmatprep.subr.bf16.mxu0 %v12232_v9  ;;  %v1723_v5 = vld [vmem:[%s18253_s0 + $0x1fd0] sm:$0xff] }
 0x48f   :  { %8178 = vmatprep.subr.bf16.mxu1 %v12234_v11  ;;  %v1727_v9 = vld [vmem:[%s18253_s0 + $0x1ff0] sm:$0xff]  ;;  %v1738_v11 = vrot.slane %v16994_v34, %v13933_v16 }
 0x490   :  { %v12287_v19 = vcombine.low %v1723_v5, %v1727_v9 }
 0x491   :  { %7851 = vmatpush1.bf16.msra.mxu0 %v12231_v18  ;;  %v12281_v18 = vcombine.low %v1716_v47, %v1720_v62  ;;  %v12803_v7 = vadd.f32 %v16116_v49, %v1738_v11  ;;  %v12962_v49 = vld [vmem:[%s18228_s5 + $0x8] ss:$16 sps:$4 sm:$0xff]   ;;  %v13012_v62 = vld [vmem:[%s18228_s5 + $0x10c] ss:$16 sps:$4 sm:$0xff]   ;;  %v13019_v11 = vld [vmem:[%s18228_s5 + $0x140] ss:$16 sps:$4 sm:$0xff]  }
 0x492   :  { %8179 = vmatpush1.bf16.msra.mxu1 %v12233_v32  ;;  %7852 = vmatprep.subr.bf16.mxu0 %v12240_v33  ;;  %v12288_v32 = vcombine.high %v1723_v5, %v1727_v9  ;;  %v12290_v33 = vcombine.high %v1724_v41, %v1728_v26  ;;  %v13004_v47 = vld [vmem:[%s18228_s5 + $0xe8] ss:$16 sps:$4 sm:$0xff]   ;;  %v13018_v5 = vld [vmem:[%s18228_s5 + $0x12c] ss:$16 sps:$4 sm:$0xff]   ;;  %v13013_v9 = vld [vmem:[%s18228_s5 + $0x120] ss:$16 sps:$4 sm:$0xff]  }
 0x493   :  { %8180 = vmatprep.subr.bf16.mxu1 %v12242_v21  ;;  %v12961_v21 = vld [vmem:[%s18228_s5 + $0x4] ss:$16 sps:$4 sm:$0xff]   ;;  %v13016_v41 = vld [vmem:[%s18228_s5 + $0x128] ss:$16 sps:$4 sm:$0xff]   ;;  %v13024_v26 = vld [vmem:[%s18228_s5 + $0x14c] ss:$16 sps:$4 sm:$0xff]  }
 0x495   :  { %7853 = vmatpush1.bf16.msra.mxu0 %v12239_v35  ;;  %v12964_v35 = vld [vmem:[%s18228_s5 + $0xc] ss:$16 sps:$4 sm:$0xff]  }
 0x496   :  { %8181 = vmatpush1.bf16.msra.mxu1 %v12241_v22  ;;  %7854 = vmatprep.subr.bf16.mxu0 %v12248_v56  ;;  %v8204_v22 = vmax.f32 %v12803_v7, 0.0  ;;  %v12967_v56 = vld [vmem:[%s18228_s5 + $0x24] ss:$16 sps:$4 sm:$0xff]   ;;  %v13028_v7 = vld [vmem:[%s18228_s5 + $0x168] ss:$16 sps:$4 sm:$0xff]  }
 0x497   :  { %8182 = vmatprep.subr.bf16.mxu1 %v12250_v29  ;;  %v12968_v29 = vld [vmem:[%s18228_s5 + $0x28] ss:$16 sps:$4 sm:$0xff]  }
 0x498   :  { %v8212_v24 = vpack.c.bf16 %v8204_v22, %v8204_v22  ;;  %v13042_v22 = vld [vmem:[%s18228_s5 + $0x1ac] ss:$16 sps:$4 sm:$0xff]  }
 0x499   :  { %7855 = vmatpush1.bf16.msra.mxu0 %v12247_v1  ;;  %v12971_v1 = vld [vmem:[%s18228_s5 + $0x40] ss:$16 sps:$4 sm:$0xff]  }
 0x49a   :  { %8183 = vmatpush1.bf16.msra.mxu1 %v12249_v60  ;;  %7856 = vmatprep.subr.bf16.mxu0 %v12256_v31  ;;  %v12974_v60 = vld [vmem:[%s18228_s5 + $0x48] ss:$16 sps:$4 sm:$0xff]   ;;  %v12979_v31 = vld [vmem:[%s18228_s5 + $0x64] ss:$16 sps:$4 sm:$0xff]  }
 0x49b   :  { %8184 = vmatprep.subr.bf16.mxu1 %v12258_v6  ;;  %v12985_v6 = vld [vmem:[%s18228_s5 + $0x84] ss:$16 sps:$4 sm:$0xff]  }
 0x49d   :  { %7857 = vmatpush1.bf16.msra.mxu0 %v12255_v15  ;;  %v12983_v15 = vld [vmem:[%s18228_s5 + $0x80] ss:$16 sps:$4 sm:$0xff]  }
 0x49e   :  { %8185 = vmatpush1.bf16.msra.mxu1 %v12257_v20  ;;  %7858 = vmatprep.subr.bf16.mxu0 %v12264_v0  ;;  %v12986_v20 = vld [vmem:[%s18228_s5 + $0x88] ss:$16 sps:$4 sm:$0xff]   ;;  %v12991_v0 = vld [vmem:[%s18228_s5 + $0xa4] ss:$16 sps:$4 sm:$0xff]  }
 0x49f   :  { %8186 = vmatprep.subr.bf16.mxu1 %v12266_v50  ;;  %v12997_v50 = vld [vmem:[%s18228_s5 + $0xc4] ss:$16 sps:$4 sm:$0xff]  }
 0x4a1   :  { %7859 = vmatpush1.bf16.msra.mxu0 %v12263_v54  ;;  %v12995_v54 = vld [vmem:[%s18228_s5 + $0xc0] ss:$16 sps:$4 sm:$0xff]  }
 0x4a2   :  { %8187 = vmatpush1.bf16.msra.mxu1 %v12265_v55  ;;  %7860 = vmatprep.subr.bf16.mxu0 %v12272_v57  ;;  %v12998_v55 = vld [vmem:[%s18228_s5 + $0xc8] ss:$16 sps:$4 sm:$0xff]   ;;  %v13003_v57 = vld [vmem:[%s18228_s5 + $0xe4] ss:$16 sps:$4 sm:$0xff]  }
 0x4a3   :  { %8188 = vmatprep.subr.bf16.mxu1 %v12274_v51  ;;  %v13009_v51 = vld [vmem:[%s18228_s5 + $0x104] ss:$16 sps:$4 sm:$0xff]  }
 0x4a5   :  { %7861 = vmatpush1.bf16.msra.mxu0 %v12271_v2  ;;  %v13007_v2 = vld [vmem:[%s18228_s5 + $0x100] ss:$16 sps:$4 sm:$0xff]  }
 0x4a6   :  { %8189 = vmatpush1.bf16.msra.mxu1 %v12273_v4  ;;  %7862 = vmatprep.subr.bf16.mxu0 %v12280_v53  ;;  %v13010_v4 = vld [vmem:[%s18228_s5 + $0x108] ss:$16 sps:$4 sm:$0xff]   ;;  %v13015_v53 = vld [vmem:[%s18228_s5 + $0x124] ss:$16 sps:$4 sm:$0xff]  }
 0x4a7   :  { %8190 = vmatprep.subr.bf16.mxu1 %v12282_v10  ;;  %v13021_v10 = vld [vmem:[%s18228_s5 + $0x144] ss:$16 sps:$4 sm:$0xff]  }
 0x4a9   :  { %7863 = vmatpush1.bf16.msra.mxu0 %v12279_v27  ;;  %v13022_v27 = vld [vmem:[%s18228_s5 + $0x148] ss:$16 sps:$4 sm:$0xff]  }
 0x4aa   :  { %8191 = vmatpush1.bf16.msra.mxu1 %v12281_v18  ;;  %7864 = vmatprep.subr.bf16.mxu0 %v12288_v32  ;;  %v13027_v18 = vld [vmem:[%s18228_s5 + $0x164] ss:$16 sps:$4 sm:$0xff]   ;;  %v13030_v32 = vld [vmem:[%s18228_s5 + $0x16c] ss:$16 sps:$4 sm:$0xff]  }
 0x4ab   :  { %8192 = vmatprep.subr.bf16.mxu1 %v12290_v33  ;;  %v13025_v33 = vld [vmem:[%s18228_s5 + $0x160] ss:$16 sps:$4 sm:$0xff]  }
 0x4ad   :  { %7865 = vmatpush1.bf16.msra.mxu0 %v12287_v19  ;;  %v13033_v19 = vld [vmem:[%s18228_s5 + $0x184] ss:$16 sps:$4 sm:$0xff]  }
 0x4ae   :  { %8193 = vmatpush1.bf16.msra.mxu1 %v12289_v36  ;;  %9777 = vmatprep.subr.bf16.mxu0 %v12961_v21  ;;  %v13036_v36 = vld [vmem:[%s18228_s5 + $0x18c] ss:$16 sps:$4 sm:$0xff]   ;;  %v13031_v21 = vld [vmem:[%s18228_s5 + $0x180] ss:$16 sps:$4 sm:$0xff]  }
 0x4af   :  { %9941 = vmatprep.subr.bf16.mxu1 %v12964_v35  ;;  %v13039_v35 = vld [vmem:[%s18228_s5 + $0x1a4] ss:$16 sps:$4 sm:$0xff]  }
 0x4b0   :  { %7867 = vmatmul.mubr.bf16.vlgmr.msra.gmra.mrb[12].mxu0 %v15452_v8 }
 0x4b1   :  { %8195 = vmatmul.mubr.bf16.vlgmr.msra.gmra.mrb[28].mxu1 %v15452_v8  ;;  %9778 = vmatpush1.bf16.msra.mxu0 %v12959_v46  ;;  %v12976_v8 = vld [vmem:[%s18228_s5 + $0x4c] ss:$16 sps:$4 sm:$0xff]   ;;  %v13034_v46 = vld [vmem:[%s18228_s5 + $0x188] ss:$16 sps:$4 sm:$0xff]  }
 0x4b2   :  { %9809 = vmatprep.mubr.bf16.mxu0 %v8212_v24  ;;  %9942 = vmatpush1.bf16.msra.mxu1 %v12962_v49  ;;  %v13037_v49 = vld [vmem:[%s18228_s5 + $0x1a0] ss:$16 sps:$4 sm:$0xff]  }
 0x4b3   :  { %9973 = vmatprep.mubr.bf16.mxu1 %v8212_v24  ;;  %9779 = vmatprep.subr.bf16.mxu0 %v12967_v56  ;;  %v1734_v56 = vrot.slane %v16994_v34, %v13925_v14  ;;  %v13040_v24 = vld [vmem:[%s18228_s5 + $0x1a8] ss:$16 sps:$4 sm:$0xff]  }
 0x4b4   :  { %9943 = vmatprep.subr.bf16.mxu1 %v12970_v28  ;;  %v13045_v28 = vld [vmem:[%s18228_s5 + $0x1c4] ss:$16 sps:$4 sm:$0xff]  }
 0x4b5   :  { %9780 = vmatpush1.bf16.msra.mxu0 %v12965_v38  ;;  %v13048_v38 = vld [vmem:[%s18228_s5 + $0x1cc] ss:$16 sps:$4 sm:$0xff]  }
 0x4b6   :  { %9944 = vmatpush1.bf16.msra.mxu1 %v12968_v29  ;;  %9781 = vmatprep.subr.bf16.mxu0 %v12973_v37  ;;  %v1746_v29 = vrot.slane %v16994_v34, %v13940_v25  ;;  %v13043_v37 = vld [vmem:[%s18228_s5 + $0x1c0] ss:$16 sps:$4 sm:$0xff]  }
 0x4b7   :  { %9945 = vmatprep.subr.bf16.mxu1 %v12976_v8  ;;  %v12802_v8 = vadd.f32 %v16106_v40, %v1734_v56  ;;  %v13049_v40 = vld [vmem:[%s18228_s5 + $0x1e0] ss:$16 sps:$4 sm:$0xff]   ;;  %v13114_v56 = vld [vmem:[%s18228_s5 + $0x32c] ss:$16 sps:$4 sm:$0xff]  }
 0x4b9   :  { %9782 = vmatpush1.bf16.msra.mxu0 %v12971_v1  ;;  %v13046_v1 = vld [vmem:[%s18228_s5 + $0x1c8] ss:$16 sps:$4 sm:$0xff]  }
 0x4ba   :  { %9946 = vmatpush1.bf16.msra.mxu1 %v12974_v60  ;;  %9783 = vmatprep.subr.bf16.mxu0 %v12979_v31  ;;  %v13051_v60 = vld [vmem:[%s18228_s5 + $0x1e4] ss:$16 sps:$4 sm:$0xff]   ;;  %v13054_v31 = vld [vmem:[%s18228_s5 + $0x1ec] ss:$16 sps:$4 sm:$0xff]  }
 0x4bb   :  { %9947 = vmatprep.subr.bf16.mxu1 %v12982_v13  ;;  %v12805_v13 = vadd.f32 %v16124_v17, %v1746_v29  ;;  %v13060_v17 = vld [vmem:[%s18228_s5 + $0x20c] ss:$16 sps:$4 sm:$0xff]  }
 0x4bc   :  { %v13120_v29 = vld [vmem:[%s18228_s5 + $0x34c] ss:$16 sps:$4 sm:$0xff]  }
 0x4bd   :  { %9784 = vmatpush1.bf16.msra.mxu0 %v12977_v3  ;;  %v8203_v3 = vmax.f32 %v12802_v8, 0.0  ;;  %v13118_v8 = vld [vmem:[%s18228_s5 + $0x348] ss:$16 sps:$4 sm:$0xff]  }
 0x4be   :  { %9948 = vmatpush1.bf16.msra.mxu1 %v12980_v39  ;;  %9785 = vmatprep.subr.bf16.mxu0 %v12985_v6  ;;  %v13052_v39 = vld [vmem:[%s18228_s5 + $0x1e8] ss:$16 sps:$4 sm:$0xff]   ;;  %v13057_v6 = vld [vmem:[%s18228_s5 + $0x204] ss:$16 sps:$4 sm:$0xff]  }
 0x4bf   :  { %9949 = vmatprep.subr.bf16.mxu1 %v12988_v30  ;;  %v8206_v30 = vmax.f32 %v12805_v13, 0.0  ;;  %v13124_v13 = vld [vmem:[%s18228_s5 + $0x368] ss:$16 sps:$4 sm:$0xff]  }
 0x4c1   :  { %9786 = vmatpush1.bf16.msra.mxu0 %v12983_v15  ;;  %v13055_v15 = vld [vmem:[%s18228_s5 + $0x200] ss:$16 sps:$4 sm:$0xff]  }
 0x4c2   :  { %9950 = vmatpush1.bf16.msra.mxu1 %v12986_v20  ;;  %9787 = vmatprep.subr.bf16.mxu0 %v12991_v0  ;;  %v8211_v20 = vpack.c.bf16 %v8203_v3, %v8203_v3  ;;  %v13058_v0 = vld [vmem:[%s18228_s5 + $0x208] ss:$16 sps:$4 sm:$0xff]   ;;  %v13132_v3 = vld [vmem:[%s18228_s5 + $0x38c] ss:$16 sps:$4 sm:$0xff]  }
 0x4c3   :  { %9951 = vmatprep.subr.bf16.mxu1 %v12994_v42  ;;  %v13063_v42 = vld [vmem:[%s18228_s5 + $0x224] ss:$16 sps:$4 sm:$0xff]  }
 0x4c5   :  { %9788 = vmatpush1.bf16.msra.mxu0 %v12989_v44  ;;  %v8214_v44 = vpack.c.bf16 %v8206_v30, %v8206_v30  ;;  %v13138_v30 = vld [vmem:[%s18228_s5 + $0x3ac] ss:$16 sps:$4 sm:$0xff]  }
 0x4c6   :  { %9952 = vmatpush1.bf16.msra.mxu1 %v12992_v45  ;;  %9789 = vmatprep.subr.bf16.mxu0 %v12997_v50  ;;  %v13066_v45 = vld [vmem:[%s18228_s5 + $0x22c] ss:$16 sps:$4 sm:$0xff]   ;;  %v13061_v50 = vld [vmem:[%s18228_s5 + $0x220] ss:$16 sps:$4 sm:$0xff]  }
 0x4c7   :  { %9953 = vmatprep.subr.bf16.mxu1 %v13000_v63  ;;  %v13064_v63 = vld [vmem:[%s18228_s5 + $0x228] ss:$16 sps:$4 sm:$0xff]  }
 0x4c9   :  { %9790 = vmatpush1.bf16.msra.mxu0 %v12995_v54  ;;  %v13069_v54 = vld [vmem:[%s18228_s5 + $0x244] ss:$16 sps:$4 sm:$0xff]  }
 0x4ca   :  { %9954 = vmatpush1.bf16.msra.mxu1 %v12998_v55  ;;  %9791 = vmatprep.subr.bf16.mxu0 %v13003_v57  ;;  %v13072_v55 = vld [vmem:[%s18228_s5 + $0x24c] ss:$16 sps:$4 sm:$0xff]   ;;  %v13067_v57 = vld [vmem:[%s18228_s5 + $0x240] ss:$16 sps:$4 sm:$0xff]  }
 0x4cb   :  { %9955 = vmatprep.subr.bf16.mxu1 %v13006_v61  ;;  %v13070_v61 = vld [vmem:[%s18228_s5 + $0x248] ss:$16 sps:$4 sm:$0xff]  }
 0x4cd   :  { %9792 = vmatpush1.bf16.msra.mxu0 %v13001_v59  ;;  %v13075_v59 = vld [vmem:[%s18228_s5 + $0x264] ss:$16 sps:$4 sm:$0xff]  }
 0x4ce   :  { %9956 = vmatpush1.bf16.msra.mxu1 %v13004_v47  ;;  %9793 = vmatprep.subr.bf16.mxu0 %v13009_v51  ;;  %v13078_v47 = vld [vmem:[%s18228_s5 + $0x26c] ss:$16 sps:$4 sm:$0xff]   ;;  %v13073_v51 = vld [vmem:[%s18228_s5 + $0x260] ss:$16 sps:$4 sm:$0xff]  }
 0x4cf   :  { %9957 = vmatprep.subr.bf16.mxu1 %v13012_v62  ;;  %v13076_v62 = vld [vmem:[%s18228_s5 + $0x268] ss:$16 sps:$4 sm:$0xff]  }
 0x4d1   :  { %9794 = vmatpush1.bf16.msra.mxu0 %v13007_v2  ;;  %v13081_v2 = vld [vmem:[%s18228_s5 + $0x284] ss:$16 sps:$4 sm:$0xff]  }
 0x4d2   :  { %9958 = vmatpush1.bf16.msra.mxu1 %v13010_v4  ;;  %9795 = vmatprep.subr.bf16.mxu0 %v13015_v53  ;;  %v13084_v4 = vld [vmem:[%s18228_s5 + $0x28c] ss:$16 sps:$4 sm:$0xff]   ;;  %v13079_v53 = vld [vmem:[%s18228_s5 + $0x280] ss:$16 sps:$4 sm:$0xff]  }
 0x4d3   :  { %9959 = vmatprep.subr.bf16.mxu1 %v13018_v5  ;;  %v13082_v5 = vld [vmem:[%s18228_s5 + $0x288] ss:$16 sps:$4 sm:$0xff]  }
 0x4d5   :  { %9796 = vmatpush1.bf16.msra.mxu0 %v13013_v9  ;;  %v13087_v9 = vld [vmem:[%s18228_s5 + $0x2a4] ss:$16 sps:$4 sm:$0xff]  }
 0x4d6   :  { %9960 = vmatpush1.bf16.msra.mxu1 %v13016_v41  ;;  %9797 = vmatprep.subr.bf16.mxu0 %v13021_v10  ;;  %v13090_v41 = vld [vmem:[%s18228_s5 + $0x2ac] ss:$16 sps:$4 sm:$0xff]   ;;  %v13085_v10 = vld [vmem:[%s18228_s5 + $0x2a0] ss:$16 sps:$4 sm:$0xff]  }
 0x4d7   :  { %9961 = vmatprep.subr.bf16.mxu1 %v13024_v26  ;;  %v13088_v26 = vld [vmem:[%s18228_s5 + $0x2a8] ss:$16 sps:$4 sm:$0xff]  }
 0x4d9   :  { %9798 = vmatpush1.bf16.msra.mxu0 %v13019_v11  ;;  %v13093_v11 = vld [vmem:[%s18228_s5 + $0x2c4] ss:$16 sps:$4 sm:$0xff]  }
 0x4da   :  { %9962 = vmatpush1.bf16.msra.mxu1 %v13022_v27  ;;  %9799 = vmatprep.subr.bf16.mxu0 %v13027_v18  ;;  %v13096_v27 = vld [vmem:[%s18228_s5 + $0x2cc] ss:$16 sps:$4 sm:$0xff]   ;;  %v13091_v18 = vld [vmem:[%s18228_s5 + $0x2c0] ss:$16 sps:$4 sm:$0xff]  }
 0x4db   :  { %9963 = vmatprep.subr.bf16.mxu1 %v13030_v32  ;;  %v13094_v32 = vld [vmem:[%s18228_s5 + $0x2c8] ss:$16 sps:$4 sm:$0xff]  }
 0x4dd   :  { %9800 = vmatpush1.bf16.msra.mxu0 %v13025_v33  ;;  %v13099_v33 = vld [vmem:[%s18228_s5 + $0x2e4] ss:$16 sps:$4 sm:$0xff]  }
 0x4de   :  { %9964 = vmatpush1.bf16.msra.mxu1 %v13028_v7  ;;  %9801 = vmatprep.subr.bf16.mxu0 %v13033_v19  ;;  %v13102_v7 = vld [vmem:[%s18228_s5 + $0x2ec] ss:$16 sps:$4 sm:$0xff]   ;;  %v13097_v19 = vld [vmem:[%s18228_s5 + $0x2e0] ss:$16 sps:$4 sm:$0xff]  }
 0x4df   :  { %9965 = vmatprep.subr.bf16.mxu1 %v13036_v36  ;;  %v13100_v36 = vld [vmem:[%s18228_s5 + $0x2e8] ss:$16 sps:$4 sm:$0xff]  }
 0x4e1   :  { %9802 = vmatpush1.bf16.msra.mxu0 %v13031_v21  ;;  %v13105_v21 = vld [vmem:[%s18228_s5 + $0x304] ss:$16 sps:$4 sm:$0xff]  }
 0x4e2   :  { %9966 = vmatpush1.bf16.msra.mxu1 %v13034_v46  ;;  %9803 = vmatprep.subr.bf16.mxu0 %v13039_v35  ;;  %v13108_v46 = vld [vmem:[%s18228_s5 + $0x30c] ss:$16 sps:$4 sm:$0xff]   ;;  %v13103_v35 = vld [vmem:[%s18228_s5 + $0x300] ss:$16 sps:$4 sm:$0xff]  }
 0x4e3   :  { %9967 = vmatprep.subr.bf16.mxu1 %v13042_v22  ;;  %v13106_v22 = vld [vmem:[%s18228_s5 + $0x308] ss:$16 sps:$4 sm:$0xff]  }
 0x4e5   :  { %9804 = vmatpush1.bf16.msra.mxu0 %v13037_v49  ;;  %v13111_v49 = vld [vmem:[%s18228_s5 + $0x324] ss:$16 sps:$4 sm:$0xff]  }
 0x4e6   :  { %9968 = vmatpush1.bf16.msra.mxu1 %v13040_v24  ;;  %9805 = vmatprep.subr.bf16.mxu0 %v13045_v28  ;;  %v13109_v24 = vld [vmem:[%s18228_s5 + $0x320] ss:$16 sps:$4 sm:$0xff]   ;;  %v13112_v28 = vld [vmem:[%s18228_s5 + $0x328] ss:$16 sps:$4 sm:$0xff]  }
 0x4e7   :  { %9969 = vmatprep.subr.bf16.mxu1 %v13048_v38  ;;  %v13117_v38 = vld [vmem:[%s18228_s5 + $0x344] ss:$16 sps:$4 sm:$0xff]  }
 0x4e9   :  { %9806 = vmatpush1.bf16.msra.mxu0 %v13043_v37  ;;  %v13115_v37 = vld [vmem:[%s18228_s5 + $0x340] ss:$16 sps:$4 sm:$0xff]  }
 0x4ea   :  { %9970 = vmatpush1.bf16.msra.mxu1 %v13046_v1  ;;  %9807 = vmatprep.subr.bf16.mxu0 %v13051_v60  ;;  %v13123_v1 = vld [vmem:[%s18228_s5 + $0x364] ss:$16 sps:$4 sm:$0xff]   ;;  %v13126_v60 = vld [vmem:[%s18228_s5 + $0x36c] ss:$16 sps:$4 sm:$0xff]  }
 0x4eb   :  { %9971 = vmatprep.subr.bf16.mxu1 %v13054_v31  ;;  %v13121_v31 = vld [vmem:[%s18228_s5 + $0x360] ss:$16 sps:$4 sm:$0xff]  }
 0x4ed   :  { %9808 = vmatpush1.bf16.msra.mxu0 %v13049_v40  ;;  %v13129_v40 = vld [vmem:[%s18228_s5 + $0x384] ss:$16 sps:$4 sm:$0xff]  }
 0x4ee   :  { %9972 = vmatpush1.bf16.msra.mxu1 %v13052_v39  ;;  %9818 = vmatprep.subr.bf16.mxu0 %v13057_v6  ;;  %v13127_v39 = vld [vmem:[%s18228_s5 + $0x380] ss:$16 sps:$4 sm:$0xff]   ;;  %v13130_v6 = vld [vmem:[%s18228_s5 + $0x388] ss:$16 sps:$4 sm:$0xff]  }
 0x4ef   :  { %9982 = vmatprep.subr.bf16.mxu1 %v13060_v17  ;;  %v13135_v17 = vld [vmem:[%s18228_s5 + $0x3a4] ss:$16 sps:$4 sm:$0xff]  }
 0x4f0   :  { %9810 = vmatmul.mubr.bf16.vlgmr.msra.gmra.mrb[16].mxu0 %v8211_v20 }
 0x4f1   :  { %9974 = vmatmul.mubr.bf16.vlgmr.msra.gmra.mrb[32].mxu1 %v8211_v20  ;;  %9819 = vmatpush1.bf16.msra.mxu0 %v13055_v15  ;;  %v13133_v15 = vld [vmem:[%s18228_s5 + $0x3a0] ss:$16 sps:$4 sm:$0xff]   ;;  %v1742_v20 = vrot.slane %v16994_v34, %v14127_v43 }
 0x4f2   :  { %9850 = vmatprep.mubr.bf16.mxu0 %v8214_v44  ;;  %9983 = vmatpush1.bf16.msra.mxu1 %v13058_v0  ;;  %v13136_v0 = vld [vmem:[%s18228_s5 + $0x3a8] ss:$16 sps:$4 sm:$0xff]   ;;  %v13139_v34 = vld [vmem:[%s18228_s5 + $0x3c0] ss:$16 sps:$4 sm:$0xff]  }
 0x4f3   :  { %10014 = vmatprep.mubr.bf16.mxu1 %v8214_v44  ;;  %9820 = vmatprep.subr.bf16.mxu0 %v13063_v42  ;;  %v13141_v42 = vld [vmem:[%s18228_s5 + $0x3c4] ss:$16 sps:$4 sm:$0xff]   ;;  %v13144_v44 = vld [vmem:[%s18228_s5 + $0x3cc] ss:$16 sps:$4 sm:$0xff]  }
 0x4f4   :  { %9984 = vmatprep.subr.bf16.mxu1 %v13066_v45  ;;  %v12804_v45 = vadd.f32 %v16114_v48, %v1742_v20  ;;  %v13145_v48 = vld [vmem:[%s18228_s5 + $0x3e0] ss:$16 sps:$4 sm:$0xff]   ;;  %v13214_v20 = vld [vmem:[%s18228_s5 + $0x548] ss:$16 sps:$4 sm:$0xff]  }
 0x4f5   :  { %9821 = vmatpush1.bf16.msra.mxu0 %v13061_v50  ;;  %v13142_v50 = vld [vmem:[%s18228_s5 + $0x3c8] ss:$16 sps:$4 sm:$0xff]  }
 0x4f6   :  { %9985 = vmatpush1.bf16.msra.mxu1 %v13064_v63  ;;  %9822 = vmatprep.subr.bf16.mxu0 %v13069_v54  ;;  %v13147_v63 = vld [vmem:[%s18228_s5 + $0x3e4] ss:$16 sps:$4 sm:$0xff]   ;;  %v13150_v54 = vld [vmem:[%s18228_s5 + $0x3ec] ss:$16 sps:$4 sm:$0xff]  }
 0x4f7   :  { %9986 = vmatprep.subr.bf16.mxu1 %v13072_v55  ;;  %v8205_v55 = vmax.f32 %v12804_v45, 0.0  ;;  %v13225_v45 = vld [vmem:[%s18228_s5 + $0x584] ss:$16 sps:$4 sm:$0xff]  }
 0x4f9   :  { %9823 = vmatpush1.bf16.msra.mxu0 %v13067_v57  ;;  %v13148_v57 = vld [vmem:[%s18228_s5 + $0x3e8] ss:$16 sps:$4 sm:$0xff]  }
 0x4fa   :  { %9987 = vmatpush1.bf16.msra.mxu1 %v13070_v61  ;;  %9824 = vmatprep.subr.bf16.mxu0 %v13075_v59  ;;  %v13153_v61 = vld [vmem:[%s18228_s5 + $0x404] ss:$16 sps:$4 sm:$0xff]   ;;  %v13156_v59 = vld [vmem:[%s18228_s5 + $0x40c] ss:$16 sps:$4 sm:$0xff]  }
 0x4fb   :  { %9988 = vmatprep.subr.bf16.mxu1 %v13078_v47  ;;  %v13151_v47 = vld [vmem:[%s18228_s5 + $0x400] ss:$16 sps:$4 sm:$0xff]  }
 0x4fd   :  { %9825 = vmatpush1.bf16.msra.mxu0 %v13073_v51  ;;  %v8213_v51 = vpack.c.bf16 %v8205_v55, %v8205_v55  ;;  %v13234_v55 = vld [vmem:[%s18228_s5 + $0x5ac] ss:$16 sps:$4 sm:$0xff]  }
 0x4fe   :  { %9989 = vmatpush1.bf16.msra.mxu1 %v13076_v62  ;;  %9826 = vmatprep.subr.bf16.mxu0 %v13081_v2  ;;  %v13154_v62 = vld [vmem:[%s18228_s5 + $0x408] ss:$16 sps:$4 sm:$0xff]   ;;  %v13159_v2 = vld [vmem:[%s18228_s5 + $0x424] ss:$16 sps:$4 sm:$0xff]  }
 0x4ff   :  { %9990 = vmatprep.subr.bf16.mxu1 %v13084_v4  ;;  %v13162_v4 = vld [vmem:[%s18228_s5 + $0x42c] ss:$16 sps:$4 sm:$0xff]  }
 0x501   :  { %9827 = vmatpush1.bf16.msra.mxu0 %v13079_v53  ;;  %v13157_v53 = vld [vmem:[%s18228_s5 + $0x420] ss:$16 sps:$4 sm:$0xff]  }
 0x502   :  { %9991 = vmatpush1.bf16.msra.mxu1 %v13082_v5  ;;  %9828 = vmatprep.subr.bf16.mxu0 %v13087_v9  ;;  %v13160_v5 = vld [vmem:[%s18228_s5 + $0x428] ss:$16 sps:$4 sm:$0xff]   ;;  %v13165_v9 = vld [vmem:[%s18228_s5 + $0x444] ss:$16 sps:$4 sm:$0xff]  }
 0x503   :  { %9992 = vmatprep.subr.bf16.mxu1 %v13090_v41  ;;  %v13168_v41 = vld [vmem:[%s18228_s5 + $0x44c] ss:$16 sps:$4 sm:$0xff]  }
 0x505   :  { %9829 = vmatpush1.bf16.msra.mxu0 %v13085_v10  ;;  %v13163_v10 = vld [vmem:[%s18228_s5 + $0x440] ss:$16 sps:$4 sm:$0xff]  }
 0x506   :  { %9993 = vmatpush1.bf16.msra.mxu1 %v13088_v26  ;;  %9830 = vmatprep.subr.bf16.mxu0 %v13093_v11  ;;  %v13166_v26 = vld [vmem:[%s18228_s5 + $0x448] ss:$16 sps:$4 sm:$0xff]   ;;  %v13171_v11 = vld [vmem:[%s18228_s5 + $0x464] ss:$16 sps:$4 sm:$0xff]  }
 0x507   :  { %9994 = vmatprep.subr.bf16.mxu1 %v13096_v27  ;;  %v13174_v27 = vld [vmem:[%s18228_s5 + $0x46c] ss:$16 sps:$4 sm:$0xff]  }
 0x509   :  { %9831 = vmatpush1.bf16.msra.mxu0 %v13091_v18  ;;  %v13169_v18 = vld [vmem:[%s18228_s5 + $0x460] ss:$16 sps:$4 sm:$0xff]  }
 0x50a   :  { %9995 = vmatpush1.bf16.msra.mxu1 %v13094_v32  ;;  %9832 = vmatprep.subr.bf16.mxu0 %v13099_v33  ;;  %v13172_v32 = vld [vmem:[%s18228_s5 + $0x468] ss:$16 sps:$4 sm:$0xff]   ;;  %v13177_v33 = vld [vmem:[%s18228_s5 + $0x484] ss:$16 sps:$4 sm:$0xff]  }
 0x50b   :  { %9996 = vmatprep.subr.bf16.mxu1 %v13102_v7  ;;  %v13180_v7 = vld [vmem:[%s18228_s5 + $0x48c] ss:$16 sps:$4 sm:$0xff]  }
 0x50d   :  { %9833 = vmatpush1.bf16.msra.mxu0 %v13097_v19  ;;  %v13175_v19 = vld [vmem:[%s18228_s5 + $0x480] ss:$16 sps:$4 sm:$0xff]  }
 0x50e   :  { %9997 = vmatpush1.bf16.msra.mxu1 %v13100_v36  ;;  %9834 = vmatprep.subr.bf16.mxu0 %v13105_v21  ;;  %v13178_v36 = vld [vmem:[%s18228_s5 + $0x488] ss:$16 sps:$4 sm:$0xff]   ;;  %v13183_v21 = vld [vmem:[%s18228_s5 + $0x4a4] ss:$16 sps:$4 sm:$0xff]  }
 0x50f   :  { %9998 = vmatprep.subr.bf16.mxu1 %v13108_v46  ;;  %v13186_v46 = vld [vmem:[%s18228_s5 + $0x4ac] ss:$16 sps:$4 sm:$0xff]  }
 0x511   :  { %9835 = vmatpush1.bf16.msra.mxu0 %v13103_v35  ;;  %v13181_v35 = vld [vmem:[%s18228_s5 + $0x4a0] ss:$16 sps:$4 sm:$0xff]  }
 0x512   :  { %9999 = vmatpush1.bf16.msra.mxu1 %v13106_v22  ;;  %9836 = vmatprep.subr.bf16.mxu0 %v13111_v49  ;;  %v13184_v22 = vld [vmem:[%s18228_s5 + $0x4a8] ss:$16 sps:$4 sm:$0xff]   ;;  %v13189_v49 = vld [vmem:[%s18228_s5 + $0x4c4] ss:$16 sps:$4 sm:$0xff]  }
 0x513   :  { %10000 = vmatprep.subr.bf16.mxu1 %v13114_v56  ;;  %v13192_v56 = vld [vmem:[%s18228_s5 + $0x4cc] ss:$16 sps:$4 sm:$0xff]  }
 0x515   :  { %9837 = vmatpush1.bf16.msra.mxu0 %v13109_v24  ;;  %v13187_v24 = vld [vmem:[%s18228_s5 + $0x4c0] ss:$16 sps:$4 sm:$0xff]  }
 0x516   :  { %10001 = vmatpush1.bf16.msra.mxu1 %v13112_v28  ;;  %9838 = vmatprep.subr.bf16.mxu0 %v13117_v38  ;;  %v13190_v28 = vld [vmem:[%s18228_s5 + $0x4c8] ss:$16 sps:$4 sm:$0xff]   ;;  %v13195_v38 = vld [vmem:[%s18228_s5 + $0x4e4] ss:$16 sps:$4 sm:$0xff]  }
 0x517   :  { %10002 = vmatprep.subr.bf16.mxu1 %v13120_v29  ;;  %v13198_v29 = vld [vmem:[%s18228_s5 + $0x4ec] ss:$16 sps:$4 sm:$0xff]  }
 0x519   :  { %9839 = vmatpush1.bf16.msra.mxu0 %v13115_v37  ;;  %v13193_v37 = vld [vmem:[%s18228_s5 + $0x4e0] ss:$16 sps:$4 sm:$0xff]  }
 0x51a   :  { %10003 = vmatpush1.bf16.msra.mxu1 %v13118_v8  ;;  %9840 = vmatprep.subr.bf16.mxu0 %v13123_v1  ;;  %v13196_v8 = vld [vmem:[%s18228_s5 + $0x4e8] ss:$16 sps:$4 sm:$0xff]   ;;  %v13201_v1 = vld [vmem:[%s18228_s5 + $0x504] ss:$16 sps:$4 sm:$0xff]  }
 0x51b   :  { %10004 = vmatprep.subr.bf16.mxu1 %v13126_v60  ;;  %v13204_v60 = vld [vmem:[%s18228_s5 + $0x50c] ss:$16 sps:$4 sm:$0xff]  }
 0x51d   :  { %9841 = vmatpush1.bf16.msra.mxu0 %v13121_v31  ;;  %v13199_v31 = vld [vmem:[%s18228_s5 + $0x500] ss:$16 sps:$4 sm:$0xff]  }
 0x51e   :  { %10005 = vmatpush1.bf16.msra.mxu1 %v13124_v13  ;;  %9842 = vmatprep.subr.bf16.mxu0 %v13129_v40  ;;  %v13202_v13 = vld [vmem:[%s18228_s5 + $0x508] ss:$16 sps:$4 sm:$0xff]   ;;  %v13207_v40 = vld [vmem:[%s18228_s5 + $0x524] ss:$16 sps:$4 sm:$0xff]  }
 0x51f   :  { %10006 = vmatprep.subr.bf16.mxu1 %v13132_v3  ;;  %v13205_v3 = vld [vmem:[%s18228_s5 + $0x520] ss:$16 sps:$4 sm:$0xff]  }
 0x521   :  { %9843 = vmatpush1.bf16.msra.mxu0 %v13127_v39  ;;  %v13210_v39 = vld [vmem:[%s18228_s5 + $0x52c] ss:$16 sps:$4 sm:$0xff]  }
 0x522   :  { %10007 = vmatpush1.bf16.msra.mxu1 %v13130_v6  ;;  %9844 = vmatprep.subr.bf16.mxu0 %v13135_v17  ;;  %v13208_v6 = vld [vmem:[%s18228_s5 + $0x528] ss:$16 sps:$4 sm:$0xff]   ;;  %v13213_v17 = vld [vmem:[%s18228_s5 + $0x544] ss:$16 sps:$4 sm:$0xff]  }
 0x523   :  { %10008 = vmatprep.subr.bf16.mxu1 %v13138_v30  ;;  %v13216_v30 = vld [vmem:[%s18228_s5 + $0x54c] ss:$16 sps:$4 sm:$0xff]  }
 0x525   :  { %9845 = vmatpush1.bf16.msra.mxu0 %v13133_v15  ;;  %v13211_v15 = vld [vmem:[%s18228_s5 + $0x540] ss:$16 sps:$4 sm:$0xff]  }
 0x526   :  { %10009 = vmatpush1.bf16.msra.mxu1 %v13136_v0  ;;  %9846 = vmatprep.subr.bf16.mxu0 %v13141_v42  ;;  %v13219_v0 = vld [vmem:[%s18228_s5 + $0x564] ss:$16 sps:$4 sm:$0xff]   ;;  %v13222_v42 = vld [vmem:[%s18228_s5 + $0x56c] ss:$16 sps:$4 sm:$0xff]  }
 0x527   :  { %10010 = vmatprep.subr.bf16.mxu1 %v13144_v44  ;;  %v13217_v44 = vld [vmem:[%s18228_s5 + $0x560] ss:$16 sps:$4 sm:$0xff]  }
 0x529   :  { %9847 = vmatpush1.bf16.msra.mxu0 %v13139_v34  ;;  %v13220_v34 = vld [vmem:[%s18228_s5 + $0x568] ss:$16 sps:$4 sm:$0xff]  }
 0x52a   :  { %10011 = vmatpush1.bf16.msra.mxu1 %v13142_v50  ;;  %9848 = vmatprep.subr.bf16.mxu0 %v13147_v63  ;;  %v13228_v50 = vld [vmem:[%s18228_s5 + $0x58c] ss:$16 sps:$4 sm:$0xff]   ;;  %v13223_v63 = vld [vmem:[%s18228_s5 + $0x580] ss:$16 sps:$4 sm:$0xff]  }
 0x52b   :  { %10012 = vmatprep.subr.bf16.mxu1 %v13150_v54  ;;  %v13226_v54 = vld [vmem:[%s18228_s5 + $0x588] ss:$16 sps:$4 sm:$0xff]  }
 0x52d   :  { %9849 = vmatpush1.bf16.msra.mxu0 %v13145_v48  ;;  %v13231_v48 = vld [vmem:[%s18228_s5 + $0x5a4] ss:$16 sps:$4 sm:$0xff]  }
 0x52e   :  { %10013 = vmatpush1.bf16.msra.mxu1 %v13148_v57  ;;  %9859 = vmatprep.subr.bf16.mxu0 %v13153_v61  ;;  %v13229_v57 = vld [vmem:[%s18228_s5 + $0x5a0] ss:$16 sps:$4 sm:$0xff]   ;;  %v13232_v61 = vld [vmem:[%s18228_s5 + $0x5a8] ss:$16 sps:$4 sm:$0xff]  }
 0x52f   :  { %10023 = vmatprep.subr.bf16.mxu1 %v13156_v59  ;;  %v13237_v59 = vld [vmem:[%s18228_s5 + $0x5c4] ss:$16 sps:$4 sm:$0xff]  }
 0x530   :  { %9851 = vmatmul.mubr.bf16.vlgmr.msra.gmra.mrb[16].mxu0 %v8213_v51 }
 0x531   :  { %10015 = vmatmul.mubr.bf16.vlgmr.msra.gmra.mrb[32].mxu1 %v8213_v51  ;;  %9860 = vmatpush1.bf16.msra.mxu0 %v13151_v47  ;;  %v13240_v47 = vld [vmem:[%s18228_s5 + $0x5cc] ss:$16 sps:$4 sm:$0xff]   ;;  %v13235_v51 = vld [vmem:[%s18228_s5 + $0x5c0] ss:$16 sps:$4 sm:$0xff]  }
 0x532   :  { %10024 = vmatpush1.bf16.msra.mxu1 %v13154_v62  ;;  %9861 = vmatprep.subr.bf16.mxu0 %v13159_v2  ;;  %v13238_v62 = vld [vmem:[%s18228_s5 + $0x5c8] ss:$16 sps:$4 sm:$0xff]   ;;  %v13243_v2 = vld [vmem:[%s18228_s5 + $0x5e4] ss:$16 sps:$4 sm:$0xff]  }
 0x533   :  { %10025 = vmatprep.subr.bf16.mxu1 %v13162_v4  ;;  %v13246_v4 = vld [vmem:[%s18228_s5 + $0x5ec] ss:$16 sps:$4 sm:$0xff]  }
 0x535   :  { %9862 = vmatpush1.bf16.msra.mxu0 %v13157_v53  ;;  %v13241_v53 = vld [vmem:[%s18228_s5 + $0x5e0] ss:$16 sps:$4 sm:$0xff]  }
 0x536   :  { %10026 = vmatpush1.bf16.msra.mxu1 %v13160_v5  ;;  %9863 = vmatprep.subr.bf16.mxu0 %v13165_v9  ;;  %v13244_v5 = vld [vmem:[%s18228_s5 + $0x5e8] ss:$16 sps:$4 sm:$0xff]   ;;  %v13249_v9 = vld [vmem:[%s18228_s5 + $0x604] ss:$16 sps:$4 sm:$0xff]  }
 0x537   :  { %10027 = vmatprep.subr.bf16.mxu1 %v13168_v41  ;;  %v13252_v41 = vld [vmem:[%s18228_s5 + $0x60c] ss:$16 sps:$4 sm:$0xff]  }
 0x539   :  { %9864 = vmatpush1.bf16.msra.mxu0 %v13163_v10  ;;  %v17610_v10 = vld [vmem:[%s18229_s4] sm:$0xff] }
 0x53a   :  { %10028 = vmatpush1.bf16.msra.mxu1 %v13166_v26  ;;  %9865 = vmatprep.subr.bf16.mxu0 %v13171_v11  ;;  %v1750_v26 = vrot.slane %v17610_v10, %v14351_v58  ;;  %v1754_v11 = vrot.slane %v17610_v10, %v14142_v52  ;;  %v13247_v52 = vld [vmem:[%s18228_s5 + $0x600] ss:$16 sps:$4 sm:$0xff]  }
 0x53b   :  { %10029 = vmatprep.subr.bf16.mxu1 %v13174_v27  ;;  %v1762_v27 = vrot.slane %v17610_v10, %v14366_v12  ;;  %v13250_v12 = vld [vmem:[%s18228_s5 + $0x608] ss:$16 sps:$4 sm:$0xff]  }
 0x53d   :  { %9866 = vmatpush1.bf16.msra.mxu0 %v13169_v18 }
 0x53e   :  { %10030 = vmatpush1.bf16.msra.mxu1 %v13172_v32  ;;  %9867 = vmatprep.subr.bf16.mxu0 %v13177_v33 }
 0x53f   :  { %10031 = vmatprep.subr.bf16.mxu1 %v13180_v7 }
 0x541   :  { %9868 = vmatpush1.bf16.msra.mxu0 %v13175_v19 }
 0x542   :  { %10032 = vmatpush1.bf16.msra.mxu1 %v13178_v36  ;;  %9869 = vmatprep.subr.bf16.mxu0 %v13183_v21 }
 0x543   :  { %10033 = vmatprep.subr.bf16.mxu1 %v13186_v46 }
 0x545   :  { %9870 = vmatpush1.bf16.msra.mxu0 %v13181_v35 }
 0x546   :  { %10034 = vmatpush1.bf16.msra.mxu1 %v13184_v22  ;;  %9871 = vmatprep.subr.bf16.mxu0 %v13189_v49 }
 0x547   :  { %10035 = vmatprep.subr.bf16.mxu1 %v13192_v56 }
 0x549   :  { %9872 = vmatpush1.bf16.msra.mxu0 %v13187_v24 }
 0x54a   :  { %10036 = vmatpush1.bf16.msra.mxu1 %v13190_v28  ;;  %9873 = vmatprep.subr.bf16.mxu0 %v13195_v38 }
 0x54b   :  { %10037 = vmatprep.subr.bf16.mxu1 %v13198_v29  ;;  %v13255_v29 = vld [vmem:[%s18228_s5 + $0x624] ss:$16 sps:$4 sm:$0xff]  }
 0x54d   :  { %9874 = vmatpush1.bf16.msra.mxu0 %v13193_v37  ;;  %v13258_v37 = vld [vmem:[%s18228_s5 + $0x62c] ss:$16 sps:$4 sm:$0xff]  }
 0x54e   :  { %10038 = vmatpush1.bf16.msra.mxu1 %v13196_v8  ;;  %9875 = vmatprep.subr.bf16.mxu0 %v13201_v1  ;;  %v13253_v1 = vld [vmem:[%s18228_s5 + $0x620] ss:$16 sps:$4 sm:$0xff]  }
 0x54f   :  { %10039 = vmatprep.subr.bf16.mxu1 %v13204_v60  ;;  %v13256_v60 = vld [vmem:[%s18228_s5 + $0x628] ss:$16 sps:$4 sm:$0xff]  }
 0x551   :  { %9876 = vmatpush1.bf16.msra.mxu0 %v13199_v31  ;;  %v13261_v31 = vld [vmem:[%s18228_s5 + $0x644] ss:$16 sps:$4 sm:$0xff]  }
 0x552   :  { %10040 = vmatpush1.bf16.msra.mxu1 %v13202_v13  ;;  %9877 = vmatprep.subr.bf16.mxu0 %v13207_v40  ;;  %v13264_v13 = vld [vmem:[%s18228_s5 + $0x64c] ss:$16 sps:$4 sm:$0xff]   ;;  %v13259_v40 = vld [vmem:[%s18228_s5 + $0x640] ss:$16 sps:$4 sm:$0xff]  }
 0x553   :  { %10041 = vmatprep.subr.bf16.mxu1 %v13210_v39  ;;  %v13267_v39 = vld [vmem:[%s18228_s5 + $0x664] ss:$16 sps:$4 sm:$0xff]  }
 0x555   :  { %9878 = vmatpush1.bf16.msra.mxu0 %v13205_v3  ;;  %v13262_v3 = vld [vmem:[%s18228_s5 + $0x648] ss:$16 sps:$4 sm:$0xff]  }
 0x556   :  { %10042 = vmatpush1.bf16.msra.mxu1 %v13208_v6  ;;  %9879 = vmatprep.subr.bf16.mxu0 %v13213_v17  ;;  %v13270_v6 = vld [vmem:[%s18228_s5 + $0x66c] ss:$16 sps:$4 sm:$0xff]   ;;  %v13265_v17 = vld [vmem:[%s18228_s5 + $0x660] ss:$16 sps:$4 sm:$0xff]  }
 0x557   :  { %10043 = vmatprep.subr.bf16.mxu1 %v13216_v30  ;;  %v13268_v30 = vld [vmem:[%s18228_s5 + $0x668] ss:$16 sps:$4 sm:$0xff]  }
 0x559   :  { %9880 = vmatpush1.bf16.msra.mxu0 %v13211_v15  ;;  %v13273_v15 = vld [vmem:[%s18228_s5 + $0x684] ss:$16 sps:$4 sm:$0xff]  }
 0x55a   :  { %10044 = vmatpush1.bf16.msra.mxu1 %v13214_v20  ;;  %9881 = vmatprep.subr.bf16.mxu0 %v13219_v0  ;;  %v13276_v20 = vld [vmem:[%s18228_s5 + $0x68c] ss:$16 sps:$4 sm:$0xff]   ;;  %v13271_v0 = vld [vmem:[%s18228_s5 + $0x680] ss:$16 sps:$4 sm:$0xff]  }
 0x55b   :  { %10045 = vmatprep.subr.bf16.mxu1 %v13222_v42  ;;  %v13274_v42 = vld [vmem:[%s18228_s5 + $0x688] ss:$16 sps:$4 sm:$0xff]  }
 0x55d   :  { %9882 = vmatpush1.bf16.msra.mxu0 %v13217_v44  ;;  %v13279_v44 = vld [vmem:[%s18228_s5 + $0x6a4] ss:$16 sps:$4 sm:$0xff]  }
 0x55e   :  { %10046 = vmatpush1.bf16.msra.mxu1 %v13220_v34  ;;  %9883 = vmatprep.subr.bf16.mxu0 %v13225_v45  ;;  %v13282_v34 = vld [vmem:[%s18228_s5 + $0x6ac] ss:$16 sps:$4 sm:$0xff]   ;;  %v13277_v45 = vld [vmem:[%s18228_s5 + $0x6a0] ss:$16 sps:$4 sm:$0xff]  }
 0x55f   :  { %10047 = vmatprep.subr.bf16.mxu1 %v13228_v50  ;;  %v13280_v50 = vld [vmem:[%s18228_s5 + $0x6a8] ss:$16 sps:$4 sm:$0xff]  }
 0x561   :  { %9884 = vmatpush1.bf16.msra.mxu0 %v13223_v63  ;;  %v13285_v63 = vld [vmem:[%s18228_s5 + $0x6c4] ss:$16 sps:$4 sm:$0xff]  }
 0x562   :  { %10048 = vmatpush1.bf16.msra.mxu1 %v13226_v54  ;;  %9885 = vmatprep.subr.bf16.mxu0 %v13231_v48  ;;  %v13288_v54 = vld [vmem:[%s18228_s5 + $0x6cc] ss:$16 sps:$4 sm:$0xff]   ;;  %v13283_v48 = vld [vmem:[%s18228_s5 + $0x6c0] ss:$16 sps:$4 sm:$0xff]  }
 0x563   :  { %10049 = vmatprep.subr.bf16.mxu1 %v13234_v55  ;;  %v13286_v55 = vld [vmem:[%s18228_s5 + $0x6c8] ss:$16 sps:$4 sm:$0xff]  }
 0x565   :  { %9886 = vmatpush1.bf16.msra.mxu0 %v13229_v57  ;;  %v13291_v57 = vld [vmem:[%s18228_s5 + $0x6e4] ss:$16 sps:$4 sm:$0xff]  }
 0x566   :  { %10050 = vmatpush1.bf16.msra.mxu1 %v13232_v61  ;;  %9887 = vmatprep.subr.bf16.mxu0 %v13237_v59  ;;  %v13294_v61 = vld [vmem:[%s18228_s5 + $0x6ec] ss:$16 sps:$4 sm:$0xff]   ;;  %v13289_v59 = vld [vmem:[%s18228_s5 + $0x6e0] ss:$16 sps:$4 sm:$0xff]  }
 0x567   :  { %10051 = vmatprep.subr.bf16.mxu1 %v13240_v47  ;;  %v13292_v47 = vld [vmem:[%s18228_s5 + $0x6e8] ss:$16 sps:$4 sm:$0xff]  }
 0x569   :  { %9888 = vmatpush1.bf16.msra.mxu0 %v13235_v51  ;;  %v13297_v51 = vld [vmem:[%s18228_s5 + $0x704] ss:$16 sps:$4 sm:$0xff]  }
 0x56a   :  { %10052 = vmatpush1.bf16.msra.mxu1 %v13238_v62  ;;  %9889 = vmatprep.subr.bf16.mxu0 %v13243_v2  ;;  %v13300_v62 = vld [vmem:[%s18228_s5 + $0x70c] ss:$16 sps:$4 sm:$0xff]   ;;  %v13295_v2 = vld [vmem:[%s18228_s5 + $0x700] ss:$16 sps:$4 sm:$0xff]  }
 0x56b   :  { %10053 = vmatprep.subr.bf16.mxu1 %v13246_v4  ;;  %v13298_v4 = vld [vmem:[%s18228_s5 + $0x708] ss:$16 sps:$4 sm:$0xff]  }
 0x56d   :  { %9890 = vmatpush1.bf16.msra.mxu0 %v13241_v53  ;;  %v13303_v53 = vld [vmem:[%s18228_s5 + $0x724] ss:$16 sps:$4 sm:$0xff]  }
 0x56e   :  { %10054 = vmatpush1.bf16.msra.mxu1 %v13244_v5  ;;  %9900 = vmatprep.subr.bf16.mxu0 %v13249_v9  ;;  %v13306_v5 = vld [vmem:[%s18228_s5 + $0x72c] ss:$16 sps:$4 sm:$0xff]   ;;  %v13301_v9 = vld [vmem:[%s18228_s5 + $0x720] ss:$16 sps:$4 sm:$0xff]  }
 0x56f   :  { %10064 = vmatprep.subr.bf16.mxu1 %v13252_v41  ;;  %v13304_v41 = vld [vmem:[%s18228_s5 + $0x728] ss:$16 sps:$4 sm:$0xff]  }
 0x583   :  { %v7868_v18 = vpop.f32.mrb[12].mxu0 }
 0x584   :  { %v12806_v32 = vadd.f32 %v7868_v18, %v1750_v26  ;;  %v17618_v33 = vpop.f32.mrb[28].mxu1  ;;  %v7870_v7 = vpop.f32.mrb[13].mxu0  ;;  %v13309_v26 = vld [vmem:[%s18228_s5 + $0x744] ss:$16 sps:$4 sm:$0xff]   ;;  %v13310_v18 = vld [vmem:[%s18228_s5 + $0x748] ss:$16 sps:$4 sm:$0xff]  }
 0x585   :  { %v12807_v19 = vadd.f32 %v7870_v7, %v1754_v11  ;;  %v8198_v36 = vpop.f32.mrb[29].mxu1  ;;  %v7872_v21 = vpop.f32.mrb[14].mxu0  ;;  %v13312_v11 = vld [vmem:[%s18228_s5 + $0x74c] ss:$16 sps:$4 sm:$0xff]  }
 0x586   :  { %v8207_v46 = vmax.f32 %v12806_v32, 0.0  ;;  %v12809_v35 = vadd.f32 %v8198_v36, %v1762_v27  ;;  %v8200_v22 = vpop.f32.mrb[30].mxu1  ;;  %v7873_v49 = vpop.f32.mrb[15].mxu0  ;;  %v13307_v27 = vld [vmem:[%s18228_s5 + $0x740] ss:$16 sps:$4 sm:$0xff]  }
 0x587   :  { %v8208_v56 = vmax.f32 %v12807_v19, 0.0  ;;  %v8201_v58 = vpop.f32.mrb[31].mxu1  ;;  %v13315_v32 = vld [vmem:[%s18228_s5 + $0x764] ss:$16 sps:$4 sm:$0xff]   ;;  %v13318_v7 = vld [vmem:[%s18228_s5 + $0x76c] ss:$16 sps:$4 sm:$0xff]  }
 0x588   :  { %v8210_v24 = vmax.f32 %v12809_v35, 0.0  ;;  %v8215_v38 = vpack.c.bf16 %v8207_v46, %v8207_v46  ;;  %v13313_v19 = vld [vmem:[%s18228_s5 + $0x760] ss:$16 sps:$4 sm:$0xff]   ;;  %v13316_v36 = vld [vmem:[%s18228_s5 + $0x768] ss:$16 sps:$4 sm:$0xff]  }
 0x589   :  { %v8216_v28 = vpack.c.bf16 %v8208_v56, %v8208_v56  ;;  %v13321_v21 = vld [vmem:[%s18228_s5 + $0x784] ss:$16 sps:$4 sm:$0xff]   ;;  %v13324_v46 = vld [vmem:[%s18228_s5 + $0x78c] ss:$16 sps:$4 sm:$0xff]   ;;  %v13319_v35 = vld [vmem:[%s18228_s5 + $0x780] ss:$16 sps:$4 sm:$0xff]  }
 0x58a   :  { %v8218_v8 = vpack.c.bf16 %v8210_v24, %v8210_v24  ;;  %v13322_v22 = vld [vmem:[%s18228_s5 + $0x788] ss:$16 sps:$4 sm:$0xff]   ;;  %v13327_v49 = vld [vmem:[%s18228_s5 + $0x7a4] ss:$16 sps:$4 sm:$0xff]   ;;  %v13330_v56 = vld [vmem:[%s18228_s5 + $0x7ac] ss:$16 sps:$4 sm:$0xff]  }
 0x58b   :  { %9891 = vmatprep.mubr.bf16.mxu0 %v8216_v28  ;;  %10055 = vmatprep.mubr.bf16.mxu1 %v8216_v28  ;;  %v13325_v58 = vld [vmem:[%s18228_s5 + $0x7a0] ss:$16 sps:$4 sm:$0xff]   ;;  %v13328_v24 = vld [vmem:[%s18228_s5 + $0x7a8] ss:$16 sps:$4 sm:$0xff]   ;;  %v1758_v28 = vrot.slane %v17610_v10, %v14563_v23 }
 0x58c   :  { %9892 = vmatmul.mubr.bf16.vlgmr.msra.gmra.mrb[16].mxu0 %v8215_v38  ;;  %10056 = vmatmul.mubr.bf16.vlgmr.msra.gmra.mrb[32].mxu1 %v8215_v38  ;;  %v13331_v38 = vld [vmem:[%s18228_s5 + $0x7c0] ss:$16 sps:$4 sm:$0xff]   ;;  %v13334_v23 = vld [vmem:[%s18228_s5 + $0x7c8] ss:$16 sps:$4 sm:$0xff]  }
 0x58d   :  { %9901 = vmatpush1.bf16.msra.mxu0 %v13247_v52  ;;  %10065 = vmatpush1.bf16.msra.mxu1 %v13250_v12  ;;  %v13333_v52 = vld [vmem:[%s18228_s5 + $0x7c4] ss:$16 sps:$4 sm:$0xff]   ;;  %v13336_v12 = vld [vmem:[%s18228_s5 + $0x7cc] ss:$16 sps:$4 sm:$0xff]   ;;  %v12808_v10 = vadd.f32 %v17618_v33, %v1758_v28  ;;  %v13340_v33 = vld [vmem:[%s18228_s5 + $0x7e8] ss:$16 sps:$4 sm:$0xff]  }
 0x58e   :  { %9932 = vmatprep.mubr.bf16.mxu0 %v8218_v8  ;;  %10096 = vmatprep.mubr.bf16.mxu1 %v8218_v8  ;;  %v13337_v8 = vld [vmem:[%s18228_s5 + $0x7e0] ss:$16 sps:$4 sm:$0xff]  }
 0x58f   :  { %9902 = vmatprep.subr.bf16.mxu0 %v13255_v29  ;;  %10066 = vmatprep.subr.bf16.mxu1 %v13258_v37  ;;  %v13339_v29 = vld [vmem:[%s18228_s5 + $0x7e4] ss:$16 sps:$4 sm:$0xff]   ;;  %v13342_v37 = vld [vmem:[%s18228_s5 + $0x7ec] ss:$16 sps:$4 sm:$0xff]  }
 0x591   :  { %9903 = vmatpush1.bf16.msra.mxu0 %v13253_v1  ;;  %10067 = vmatpush1.bf16.msra.mxu1 %v13256_v60  ;;  %v8209_v1 = vmax.f32 %v12808_v10, 0.0  ;;  %v13345_v60 = vld [vmem:[%s18230_s7 + $0x4] ss:$8 sps:$4 sm:$0xff]  }
 0x592   :  { %9904 = vmatprep.subr.bf16.mxu0 %v13261_v31  ;;  %10068 = vmatprep.subr.bf16.mxu1 %v13264_v13  ;;  %v13343_v31 = vld [vmem:[%s18230_s7] ss:$8 sps:$4 sm:$0xff]  }
 0x593   :  { %v8217_v13 = vpack.c.bf16 %v8209_v1, %v8209_v1 }
 0x595   :  { %9905 = vmatpush1.bf16.msra.mxu0 %v13259_v40  ;;  %10069 = vmatpush1.bf16.msra.mxu1 %v13262_v3  ;;  %v13348_v40 = vld [vmem:[%s18230_s7 + $0x14] ss:$8 sps:$4 sm:$0xff]   ;;  %v13346_v3 = vld [vmem:[%s18230_s7 + $0x10] ss:$8 sps:$4 sm:$0xff]  }
 0x596   :  { %9906 = vmatprep.subr.bf16.mxu0 %v13267_v39  ;;  %10070 = vmatprep.subr.bf16.mxu1 %v13270_v6  ;;  %v13351_v39 = vld [vmem:[%s18230_s7 + $0x24] ss:$8 sps:$4 sm:$0xff]   ;;  %v13349_v6 = vld [vmem:[%s18230_s7 + $0x20] ss:$8 sps:$4 sm:$0xff]  }
 0x599   :  { %9907 = vmatpush1.bf16.msra.mxu0 %v13265_v17  ;;  %10071 = vmatpush1.bf16.msra.mxu1 %v13268_v30  ;;  %v13354_v17 = vld [vmem:[%s18230_s7 + $0x34] ss:$8 sps:$4 sm:$0xff]   ;;  %v13352_v30 = vld [vmem:[%s18230_s7 + $0x30] ss:$8 sps:$4 sm:$0xff]  }
 0x59a   :  { %9908 = vmatprep.subr.bf16.mxu0 %v13273_v15  ;;  %10072 = vmatprep.subr.bf16.mxu1 %v13276_v20  ;;  %v13357_v15 = vld [vmem:[%s18230_s7 + $0x44] ss:$8 sps:$4 sm:$0xff]   ;;  %v13355_v20 = vld [vmem:[%s18230_s7 + $0x40] ss:$8 sps:$4 sm:$0xff]  }
 0x59d   :  { %9909 = vmatpush1.bf16.msra.mxu0 %v13271_v0  ;;  %10073 = vmatpush1.bf16.msra.mxu1 %v13274_v42  ;;  %v13360_v0 = vld [vmem:[%s18230_s7 + $0x54] ss:$8 sps:$4 sm:$0xff]   ;;  %v13358_v42 = vld [vmem:[%s18230_s7 + $0x50] ss:$8 sps:$4 sm:$0xff]  }
 0x59e   :  { %9910 = vmatprep.subr.bf16.mxu0 %v13279_v44  ;;  %10074 = vmatprep.subr.bf16.mxu1 %v13282_v34  ;;  %v13363_v44 = vld [vmem:[%s18230_s7 + $0x64] ss:$8 sps:$4 sm:$0xff]   ;;  %v13361_v34 = vld [vmem:[%s18230_s7 + $0x60] ss:$8 sps:$4 sm:$0xff]  }
 0x5a1   :  { %9911 = vmatpush1.bf16.msra.mxu0 %v13277_v45  ;;  %10075 = vmatpush1.bf16.msra.mxu1 %v13280_v50  ;;  %v13366_v45 = vld [vmem:[%s18230_s7 + $0x74] ss:$8 sps:$4 sm:$0xff]   ;;  %v13364_v50 = vld [vmem:[%s18230_s7 + $0x70] ss:$8 sps:$4 sm:$0xff]  }
 0x5a2   :  { %9912 = vmatprep.subr.bf16.mxu0 %v13285_v63  ;;  %10076 = vmatprep.subr.bf16.mxu1 %v13288_v54  ;;  %v13369_v63 = vld [vmem:[%s18230_s7 + $0x84] ss:$8 sps:$4 sm:$0xff]   ;;  %v13367_v54 = vld [vmem:[%s18230_s7 + $0x80] ss:$8 sps:$4 sm:$0xff]  }
 0x5a5   :  { %9913 = vmatpush1.bf16.msra.mxu0 %v13283_v48  ;;  %10077 = vmatpush1.bf16.msra.mxu1 %v13286_v55  ;;  %v13372_v48 = vld [vmem:[%s18230_s7 + $0x94] ss:$8 sps:$4 sm:$0xff]   ;;  %v13370_v55 = vld [vmem:[%s18230_s7 + $0x90] ss:$8 sps:$4 sm:$0xff]  }
 0x5a6   :  { %9914 = vmatprep.subr.bf16.mxu0 %v13291_v57  ;;  %10078 = vmatprep.subr.bf16.mxu1 %v13294_v61  ;;  %v13375_v57 = vld [vmem:[%s18230_s7 + $0xa4] ss:$8 sps:$4 sm:$0xff]   ;;  %v13373_v61 = vld [vmem:[%s18230_s7 + $0xa0] ss:$8 sps:$4 sm:$0xff]  }
 0x5a9   :  { %9915 = vmatpush1.bf16.msra.mxu0 %v13289_v59  ;;  %10079 = vmatpush1.bf16.msra.mxu1 %v13292_v47  ;;  %v13378_v59 = vld [vmem:[%s18230_s7 + $0xb4] ss:$8 sps:$4 sm:$0xff]   ;;  %v13376_v47 = vld [vmem:[%s18230_s7 + $0xb0] ss:$8 sps:$4 sm:$0xff]  }
 0x5aa   :  { %9916 = vmatprep.subr.bf16.mxu0 %v13297_v51  ;;  %10080 = vmatprep.subr.bf16.mxu1 %v13300_v62  ;;  %v13381_v51 = vld [vmem:[%s18230_s7 + $0xc4] ss:$8 sps:$4 sm:$0xff]   ;;  %v13379_v62 = vld [vmem:[%s18230_s7 + $0xc0] ss:$8 sps:$4 sm:$0xff]  }
 0x5ad   :  { %9917 = vmatpush1.bf16.msra.mxu0 %v13295_v2  ;;  %10081 = vmatpush1.bf16.msra.mxu1 %v13298_v4  ;;  %v13384_v2 = vld [vmem:[%s18230_s7 + $0xd4] ss:$8 sps:$4 sm:$0xff]   ;;  %v13382_v4 = vld [vmem:[%s18230_s7 + $0xd0] ss:$8 sps:$4 sm:$0xff]  }
 0x5ae   :  { %9918 = vmatprep.subr.bf16.mxu0 %v13303_v53  ;;  %10082 = vmatprep.subr.bf16.mxu1 %v13306_v5  ;;  %v13387_v53 = vld [vmem:[%s18230_s7 + $0xe4] ss:$8 sps:$4 sm:$0xff]   ;;  %v13385_v5 = vld [vmem:[%s18230_s7 + $0xe0] ss:$8 sps:$4 sm:$0xff]  }
 0x5b1   :  { %9919 = vmatpush1.bf16.msra.mxu0 %v13301_v9  ;;  %10083 = vmatpush1.bf16.msra.mxu1 %v13304_v41  ;;  %v13390_v9 = vld [vmem:[%s18230_s7 + $0xf4] ss:$8 sps:$4 sm:$0xff]   ;;  %v13388_v41 = vld [vmem:[%s18230_s7 + $0xf0] ss:$8 sps:$4 sm:$0xff]  }
 0x5b2   :  { %9920 = vmatprep.subr.bf16.mxu0 %v13309_v26  ;;  %10084 = vmatprep.subr.bf16.mxu1 %v13312_v11  ;;  %v13393_v26 = vld [vmem:[%s18230_s7 + $0x104] ss:$8 sps:$4 sm:$0xff]  }
 0x5b3   :  { %v13439_v11 = vld [vmem:[%s18231_s9 + $0x40] sm:$0xff]  }
 0x5b5   :  { %9921 = vmatpush1.bf16.msra.mxu0 %v13307_v27  ;;  %10085 = vmatpush1.bf16.msra.mxu1 %v13310_v18  ;;  %v13440_v27 = vld [vmem:[%s18231_s9] sm:$0xff]   ;;  %v13441_v18 = vld [vmem:[%s18231_s9 + $0x48] sm:$0xff]  }
 0x5b6   :  { %9922 = vmatprep.subr.bf16.mxu0 %v13315_v32  ;;  %10086 = vmatprep.subr.bf16.mxu1 %v13318_v7  ;;  %v13442_v32 = vld [vmem:[%s18231_s9 + $0x8] sm:$0xff]   ;;  %v13443_v7 = vld [vmem:[%s18231_s9 + $0x50] sm:$0xff]  }
 0x5b9   :  { %9923 = vmatpush1.bf16.msra.mxu0 %v13313_v19  ;;  %10087 = vmatpush1.bf16.msra.mxu1 %v13316_v36  ;;  %v13444_v19 = vld [vmem:[%s18231_s9 + $0x10] sm:$0xff]   ;;  %v13445_v36 = vld [vmem:[%s18231_s9 + $0x58] sm:$0xff]  }
 0x5ba   :  { %9924 = vmatprep.subr.bf16.mxu0 %v13321_v21  ;;  %10088 = vmatprep.subr.bf16.mxu1 %v13324_v46  ;;  %v13446_v21 = vld [vmem:[%s18231_s9 + $0x18] sm:$0xff]   ;;  %v13447_v46 = vld [vmem:[%s18231_s9 + $0x60] sm:$0xff]  }
 0x5bd   :  { %9925 = vmatpush1.bf16.msra.mxu0 %v13319_v35  ;;  %10089 = vmatpush1.bf16.msra.mxu1 %v13322_v22  ;;  %v13448_v35 = vld [vmem:[%s18231_s9 + $0x20] sm:$0xff]   ;;  %v13449_v22 = vld [vmem:[%s18231_s9 + $0x68] sm:$0xff]  }
 0x5be   :  { %9926 = vmatprep.subr.bf16.mxu0 %v13327_v49  ;;  %10090 = vmatprep.subr.bf16.mxu1 %v13330_v56  ;;  %v13450_v49 = vld [vmem:[%s18231_s9 + $0x28] sm:$0xff]   ;;  %v17947_v56 = vld [vmem:[%s18232_s6] sm:$0xf] }
 0x5bf   :  { %v8492_v28 = vrot.slane %v17947_v56, %v13940_v25  ;;  %v13391_v25 = vld [vmem:[%s18230_s7 + $0x100] ss:$8 sps:$4 sm:$0xff]  }
 0x5c1   :  { %9927 = vmatpush1.bf16.msra.mxu0 %v13325_v58  ;;  %10091 = vmatpush1.bf16.msra.mxu1 %v13328_v24  ;;  %v8480_v58 = vrot.slane %v17947_v56, %v13925_v14  ;;  %v8484_v24 = vrot.slane %v17947_v56, %v13933_v16 }
 0x5c2   :  { %9928 = vmatprep.subr.bf16.mxu0 %v13333_v52  ;;  %10092 = vmatprep.subr.bf16.mxu1 %v13336_v12 }
 0x5c5   :  { %9929 = vmatpush1.bf16.msra.mxu0 %v13331_v38  ;;  %10093 = vmatpush1.bf16.msra.mxu1 %v13334_v23 }
 0x5c6   :  { %9930 = vmatprep.subr.bf16.mxu0 %v13339_v29  ;;  %10094 = vmatprep.subr.bf16.mxu1 %v13342_v37 }
 0x5c9   :  { %9931 = vmatpush1.bf16.msra.mxu0 %v13337_v8  ;;  %10095 = vmatpush1.bf16.msra.mxu1 %v13340_v33 }
 0x5ca   :  { %10509 = vmatprep.subr.bf16.mxu0 %v13345_v60  ;;  %12664 = vmatprep.subr.bf16.mxu1 %v13439_v11  ;;  %v13435_v11 = vld [vmem:[%s18230_s7 + $0x1e4] ss:$8 sps:$4 sm:$0xff]  }
 0x5cc   :  { %9933 = vmatmul.mubr.bf16.vlgmr.msra.gmra.mrb[16].mxu0 %v8217_v13  ;;  %10097 = vmatmul.mubr.bf16.vlgmr.msra.gmra.mrb[32].mxu1 %v8217_v13 }
 0x5cd   :  { %10510 = vmatpush1.bf16.msra.mxu0 %v13343_v31  ;;  %12665 = vmatpush3.bf16.msra.mxu1 %v13440_v27  ;;  %v13433_v27 = vld [vmem:[%s18230_s7 + $0x1e0] ss:$8 sps:$4 sm:$0xff]  }
 0x5ce   :  { %10511 = vmatprep.subr.bf16.mxu0 %v13348_v40  ;;  %12666 = vmatprep.subr.bf16.mxu1 %v13441_v18 }
 0x5d1   :  { %10512 = vmatpush1.bf16.msra.mxu0 %v13346_v3  ;;  %12667 = vmatpush3.bf16.msra.mxu1 %v13442_v32  ;;  %v13438_v32 = vld [vmem:[%s18230_s7 + $0x1f4] ss:$8 sps:$4 sm:$0xff]  }
 0x5d2   :  { %10513 = vmatprep.subr.bf16.mxu0 %v13351_v39  ;;  %12668 = vmatprep.subr.bf16.mxu1 %v13443_v7 }
 0x5d5   :  { %10514 = vmatpush1.bf16.msra.mxu0 %v13349_v6  ;;  %12669 = vmatpush3.bf16.msra.mxu1 %v13444_v19  ;;  %v13396_v6 = vld [vmem:[%s18230_s7 + $0x114] ss:$8 sps:$4 sm:$0xff]  }
 0x5d6   :  { %10515 = vmatprep.subr.bf16.mxu0 %v13354_v17  ;;  %12670 = vmatprep.subr.bf16.mxu1 %v13445_v36  ;;  %v13451_v36 = vld [vmem:[%s18231_s9 + $0x70] sm:$0xff]  }
 0x5d9   :  { %10516 = vmatpush1.bf16.msra.mxu0 %v13352_v30  ;;  %12671 = vmatpush3.bf16.msra.mxu1 %v13446_v21  ;;  %v13394_v30 = vld [vmem:[%s18230_s7 + $0x110] ss:$8 sps:$4 sm:$0xff]  }
 0x5da   :  { %10517 = vmatprep.subr.bf16.mxu0 %v13357_v15  ;;  %12672 = vmatprep.subr.bf16.mxu1 %v13447_v46  ;;  %v13399_v15 = vld [vmem:[%s18230_s7 + $0x124] ss:$8 sps:$4 sm:$0xff]   ;;  %v13452_v21 = vld [vmem:[%s18231_s9 + $0x30] sm:$0xff]   ;;  %v13453_v46 = vld [vmem:[%s18231_s9 + $0x78] sm:$0xff]  }
 0x5dd   :  { %10518 = vmatpush1.bf16.msra.mxu0 %v13355_v20  ;;  %12673 = vmatpush3.bf16.msra.mxu1 %v13448_v35  ;;  %v13397_v20 = vld [vmem:[%s18230_s7 + $0x120] ss:$8 sps:$4 sm:$0xff]   ;;  %v13454_v35 = vld [vmem:[%s18231_s9 + $0x38] sm:$0xff]  }
 0x5de   :  { %10519 = vmatprep.subr.bf16.mxu0 %v13360_v0  ;;  %12674 = vmatprep.subr.bf16.mxu1 %v13449_v22  ;;  %v13402_v0 = vld [vmem:[%s18230_s7 + $0x134] ss:$8 sps:$4 sm:$0xff]   ;;  %v13491_v22 = vmov 0.0  }
 0x5e1   :  { %10520 = vmatpush1.bf16.msra.mxu0 %v13358_v42  ;;  %12675 = vmatpush3.bf16.msra.mxu1 %v13450_v49  ;;  %v13400_v42 = vld [vmem:[%s18230_s7 + $0x130] ss:$8 sps:$4 sm:$0xff]   ;;  %v10177_v49 = vld [vmem:[%s18234_s8] sm:$0x3] }
 0x5e2   :  { %10521 = vmatprep.subr.bf16.mxu0 %v13363_v44  ;;  %v13405_v44 = vld [vmem:[%s18230_s7 + $0x144] ss:$8 sps:$4 sm:$0xff]   ;;  %12676 = vmatprep.subr.bf16.mxu1 %v13451_v36 }
 0x5e3   :  { %v13484_v36 = vld [vmem:[%s18239_s17 + $0x28] sm:$0xff]  }
 0x5e5   :  { %10522 = vmatpush1.bf16.msra.mxu0 %v13361_v34  ;;  %v13403_v34 = vld [vmem:[%s18230_s7 + $0x140] ss:$8 sps:$4 sm:$0xff]   ;;  %12677 = vmatpush3.bf16.msra.mxu1 %v13452_v21 }
 0x5e6   :  { %10523 = vmatprep.subr.bf16.mxu0 %v13366_v45  ;;  %v13408_v45 = vld [vmem:[%s18230_s7 + $0x154] ss:$8 sps:$4 sm:$0xff]   ;;  %12678 = vmatprep.subr.bf16.mxu1 %v13453_v46  ;;  %v12637_v21 = vld [vmem:[%s18240_s14] ss:$0 sm:$0xff] }
 0x5e9   :  { %10524 = vmatpush1.bf16.msra.mxu0 %v13364_v50  ;;  %v13406_v50 = vld [vmem:[%s18230_s7 + $0x150] ss:$8 sps:$4 sm:$0xff]   ;;  %12679 = vmatpush3.bf16.msra.mxu1 %v13454_v35 }
 0x5ea   :  { %10525 = vmatprep.subr.bf16.mxu0 %v13369_v63  ;;  %v13411_v63 = vld [vmem:[%s18230_s7 + $0x164] ss:$8 sps:$4 sm:$0xff]   ;;  %12722 = vmatprep.subr.bf16.mxu1 %v13491_v22 }
 0x5ed   :  { %10526 = vmatpush1.bf16.msra.mxu0 %v13367_v54  ;;  %v13409_v54 = vld [vmem:[%s18230_s7 + $0x160] ss:$8 sps:$4 sm:$0xff]  }
 0x5ee   :  { %10527 = vmatprep.subr.bf16.mxu0 %v13372_v48  ;;  %v13414_v48 = vld [vmem:[%s18230_s7 + $0x174] ss:$8 sps:$4 sm:$0xff]  }
 0x5f1   :  { %10528 = vmatpush1.bf16.msra.mxu0 %v13370_v55  ;;  %v13412_v55 = vld [vmem:[%s18230_s7 + $0x170] ss:$8 sps:$4 sm:$0xff]  }
 0x5f2   :  { %10529 = vmatprep.subr.bf16.mxu0 %v13375_v57  ;;  %v13417_v57 = vld [vmem:[%s18230_s7 + $0x184] ss:$8 sps:$4 sm:$0xff]  }
 0x5f5   :  { %10530 = vmatpush1.bf16.msra.mxu0 %v13373_v61  ;;  %v13415_v61 = vld [vmem:[%s18230_s7 + $0x180] ss:$8 sps:$4 sm:$0xff]  }
 0x5f6   :  { %10531 = vmatprep.subr.bf16.mxu0 %v13378_v59  ;;  %v13420_v59 = vld [vmem:[%s18230_s7 + $0x194] ss:$8 sps:$4 sm:$0xff]  }
 0x5f9   :  { %10532 = vmatpush1.bf16.msra.mxu0 %v13376_v47  ;;  %v13418_v47 = vld [vmem:[%s18230_s7 + $0x190] ss:$8 sps:$4 sm:$0xff]  }
 0x5fa   :  { %10533 = vmatprep.subr.bf16.mxu0 %v13381_v51  ;;  %v13423_v51 = vld [vmem:[%s18230_s7 + $0x1a4] ss:$8 sps:$4 sm:$0xff]  }
 0x5fd   :  { %10534 = vmatpush1.bf16.msra.mxu0 %v13379_v62  ;;  %v13421_v62 = vld [vmem:[%s18230_s7 + $0x1a0] ss:$8 sps:$4 sm:$0xff]  }
 0x5fe   :  { %10535 = vmatprep.subr.bf16.mxu0 %v13384_v2  ;;  %v13426_v2 = vld [vmem:[%s18230_s7 + $0x1b4] ss:$8 sps:$4 sm:$0xff]  }
 0x601   :  { %10536 = vmatpush1.bf16.msra.mxu0 %v13382_v4  ;;  %v13424_v4 = vld [vmem:[%s18230_s7 + $0x1b0] ss:$8 sps:$4 sm:$0xff]  }
 0x602   :  { %10537 = vmatprep.subr.bf16.mxu0 %v13387_v53  ;;  %v13429_v53 = vld [vmem:[%s18230_s7 + $0x1c4] ss:$8 sps:$4 sm:$0xff]  }
 0x605   :  { %10538 = vmatpush1.bf16.msra.mxu0 %v13385_v5  ;;  %v13427_v5 = vld [vmem:[%s18230_s7 + $0x1c0] ss:$8 sps:$4 sm:$0xff]  }
 0x606   :  { %10539 = vmatprep.subr.bf16.mxu0 %v13390_v9  ;;  %v13432_v9 = vld [vmem:[%s18230_s7 + $0x1d4] ss:$8 sps:$4 sm:$0xff]  }
 0x609   :  { %10540 = vmatpush1.bf16.msra.mxu0 %v13388_v41  ;;  %v13430_v41 = vld [vmem:[%s18230_s7 + $0x1d0] ss:$8 sps:$4 sm:$0xff]  }
 0x60a   :  { %10550 = vmatprep.subr.bf16.mxu0 %v13393_v26  ;;  %v8488_v26 = vrot.slane %v17947_v56, %v14127_v43  ;;  %v13436_v43 = vld [vmem:[%s18230_s7 + $0x1f0] ss:$8 sps:$4 sm:$0xff]   ;;  %v10182_v56 = vrot.slane %v10177_v49, %v13925_v14  ;;  %v13456_v14 = vld [vmem:[%s18233_s11 + $0x8] sm:$0xff]  }
 0x69f   :  { %v9934_v52 = vpop.f32.mrb[16].mxu0  ;;  %v17955_v12 = vpop.f32.mrb[32].mxu1 }
 0x6a0   :  { %v12810_v38 = vadd.f32 %v9934_v52, %v8480_v58  ;;  %v9936_v23 = vpop.f32.mrb[17].mxu0  ;;  %v10100_v10 = vpop.f32.mrb[33].mxu1  ;;  %v12812_v18 = vadd.f32 %v17955_v12, %v8488_v26  ;;  %v10186_v58 = vrot.slane %v10177_v49, %v13933_v16  ;;  %v13457_v16 = vld [vmem:[%s18233_s11 + $0x10] sm:$0xff]   ;;  %v13476_v26 = vld [vmem:[%s18237_s15 + $0x28] sm:$0xff]  }
 0x6a1   :  { %v12811_v29 = vadd.f32 %v9936_v23, %v8484_v24  ;;  %v12813_v37 = vadd.f32 %v10100_v10, %v8492_v28  ;;  %v9938_v8 = vpop.f32.mrb[18].mxu0  ;;  %v10102_v33 = vpop.f32.mrb[34].mxu1 }
 0x6a2   :  { %v10105_v1 = vmax.f32 %v12810_v38, 0.0  ;;  %v9939_v60 = vpop.f32.mrb[19].mxu0  ;;  %v10103_v31 = vpop.f32.mrb[35].mxu1  ;;  %v10107_v7 = vmax.f32 %v12812_v18, 0.0  ;;  %v13455_v8 = vld [vmem:[%s18233_s11] sm:$0xff]  }
 0x6a3   :  { %v10106_v13 = vmax.f32 %v12811_v29, 0.0  ;;  %v10108_v40 = vmax.f32 %v12813_v37, 0.0  ;;  %v13459_v60 = vld [vmem:[%s18233_s11 + $0x20] sm:$0xff]   ;;  %v13460_v31 = vld [vmem:[%s18233_s11 + $0x28] sm:$0xff]  }
 0x6a4   :  { %v10109_v39 = vpack.c.bf16 %v10105_v1, %v10105_v1  ;;  %v10111_v19 = vpack.c.bf16 %v10107_v7, %v10107_v7  ;;  %v13458_v1 = vld [vmem:[%s18233_s11 + $0x18] sm:$0xff]   ;;  %v13479_v18 = vld [vmem:[%s18239_s17] sm:$0xff]  }
 0x6a5   :  { %v10110_v3 = vpack.c.bf16 %v10106_v13, %v10106_v13  ;;  %v10112_v17 = vpack.c.bf16 %v10108_v40, %v10108_v40  ;;  %v13461_v13 = vld [vmem:[%s18233_s11 + $0x30] sm:$0xff]   ;;  %v13462_v40 = vld [vmem:[%s18233_s11 + $0x38] sm:$0xff]  }
 0x6a6   :  { %v13482_v7 = vld [vmem:[%s18239_s17 + $0x18] sm:$0xff]  }
 0x6a7   :  { %10541 = vmatprep.mubr.bf16.mxu0 %v10110_v3 }
 0x6a8   :  { %10542 = vmatmul.mubr.bf16.vlgmr.msra.gmra.mrb[20].mxu0 %v10109_v39 }
 0x6a9   :  { %10551 = vmatpush1.bf16.msra.mxu0 %v13391_v25  ;;  %10582 = vmatprep.mubr.bf16.mxu0 %v10112_v17  ;;  %v12611_v25 = vld [vmem:[%s18236_s10] ss:$0 sm:$0xff] }
 0x6aa   :  { %10552 = vmatprep.subr.bf16.mxu0 %v13396_v6 }
 0x6ad   :  { %10553 = vmatpush1.bf16.msra.mxu0 %v13394_v30 }
 0x6ae   :  { %10554 = vmatprep.subr.bf16.mxu0 %v13399_v15 }
 0x6b1   :  { %10555 = vmatpush1.bf16.msra.mxu0 %v13397_v20 }
 0x6b2   :  { %10556 = vmatprep.subr.bf16.mxu0 %v13402_v0  ;;  %v13463_v0 = vld [vmem:[%s18235_s13] sm:$0xff]  }
 0x6b5   :  { %10557 = vmatpush1.bf16.msra.mxu0 %v13400_v42 }
 0x6b6   :  { %10558 = vmatprep.subr.bf16.mxu0 %v13405_v44  ;;  %v13464_v44 = vld [vmem:[%s18235_s13 + $0x8] sm:$0xff]  }
 0x6b9   :  { %10559 = vmatpush1.bf16.msra.mxu0 %v13403_v34  ;;  %v13465_v34 = vld [vmem:[%s18235_s13 + $0x10] sm:$0xff]  }
 0x6ba   :  { %10560 = vmatprep.subr.bf16.mxu0 %v13408_v45  ;;  %v13466_v45 = vld [vmem:[%s18235_s13 + $0x18] sm:$0xff]  }
 0x6bd   :  { %10561 = vmatpush1.bf16.msra.mxu0 %v13406_v50  ;;  %v13467_v50 = vld [vmem:[%s18235_s13 + $0x20] sm:$0xff]  }
 0x6be   :  { %10562 = vmatprep.subr.bf16.mxu0 %v13411_v63  ;;  %v13468_v63 = vld [vmem:[%s18235_s13 + $0x28] sm:$0xff]  }
 0x6c1   :  { %10563 = vmatpush1.bf16.msra.mxu0 %v13409_v54  ;;  %v13469_v54 = vld [vmem:[%s18235_s13 + $0x30] sm:$0xff]  }
 0x6c2   :  { %10564 = vmatprep.subr.bf16.mxu0 %v13414_v48  ;;  %v13470_v48 = vld [vmem:[%s18235_s13 + $0x38] sm:$0xff]  }
 0x6c5   :  { %10565 = vmatpush1.bf16.msra.mxu0 %v13412_v55  ;;  %v12628_v55 = vld [vmem:[%s18238_s12] ss:$0 sm:$0xff] }
 0x6c6   :  { %10566 = vmatprep.subr.bf16.mxu0 %v13417_v57 }
 0x6c9   :  { %10567 = vmatpush1.bf16.msra.mxu0 %v13415_v61 }
 0x6ca   :  { %10568 = vmatprep.subr.bf16.mxu0 %v13420_v59 }
 0x6cd   :  { %10569 = vmatpush1.bf16.msra.mxu0 %v13418_v47 }
 0x6ce   :  { %10570 = vmatprep.subr.bf16.mxu0 %v13423_v51 }
 0x6d1   :  { %10571 = vmatpush1.bf16.msra.mxu0 %v13421_v62 }
 0x6d2   :  { %10572 = vmatprep.subr.bf16.mxu0 %v13426_v2  ;;  %v13471_v2 = vld [vmem:[%s18237_s15] sm:$0xff]  }
 0x6d5   :  { %10573 = vmatpush1.bf16.msra.mxu0 %v13424_v4 }
 0x6d6   :  { %10574 = vmatprep.subr.bf16.mxu0 %v13429_v53  ;;  %v13472_v53 = vld [vmem:[%s18237_s15 + $0x8] sm:$0xff]  }
 0x6d9   :  { %10575 = vmatpush1.bf16.msra.mxu0 %v13427_v5  ;;  %v13473_v5 = vld [vmem:[%s18237_s15 + $0x10] sm:$0xff]  }
 0x6da   :  { %10576 = vmatprep.subr.bf16.mxu0 %v13432_v9  ;;  %v13474_v9 = vld [vmem:[%s18237_s15 + $0x18] sm:$0xff]  }
 0x6dd   :  { %10577 = vmatpush1.bf16.msra.mxu0 %v13430_v41  ;;  %v13475_v41 = vld [vmem:[%s18237_s15 + $0x20] sm:$0xff]  }
 0x6de   :  { %10578 = vmatprep.subr.bf16.mxu0 %v13435_v11  ;;  %v13477_v11 = vld [vmem:[%s18237_s15 + $0x30] sm:$0xff]  }
 0x6e1   :  { %10579 = vmatpush1.bf16.msra.mxu0 %v13433_v27  ;;  %v13478_v27 = vld [vmem:[%s18237_s15 + $0x38] sm:$0xff]  }
 0x6e2   :  { %10580 = vmatprep.subr.bf16.mxu0 %v13438_v32  ;;  %v13480_v32 = vld [vmem:[%s18239_s17 + $0x8] sm:$0xff]  }
 0x6e5   :  { %10581 = vmatpush1.bf16.msra.mxu0 %v13436_v43  ;;  %v13481_v43 = vld [vmem:[%s18239_s17 + $0x10] sm:$0xff]  }
 0x6e6   :  { %12782 = vmatprep.subr.bf16.mxu0 %v13491_v22 }
 0x6e8   :  { %10583 = vmatmul.mubr.bf16.vlgmr.msra.gmra.mrb[20].mxu0 %v10111_v19  ;;  %v13483_v19 = vld [vmem:[%s18239_s17 + $0x20] sm:$0xff]  }
 0x6e9   :  { %12798 = vmatprep.mubr.msk.bf16.mxu0 %vm13492_vm1, %v13491_v22  ;;  %12783 = vmatpush3.bf16.msra.mxu0 %v13479_v18 }
 0x6ea   :  { %12784 = vmatprep.subr.bf16.mxu0 %v13491_v22 }
 0x6ed   :  { %12785 = vmatpush3.bf16.msra.mxu0 %v13480_v32 }
 0x6ee   :  { %12786 = vmatprep.subr.bf16.mxu0 %v13491_v22 }
 0x6f1   :  { %12787 = vmatpush3.bf16.msra.mxu0 %v13481_v43 }
 0x6f2   :  { %12788 = vmatprep.subr.bf16.mxu0 %v13491_v22 }
 0x6f5   :  { %12789 = vmatpush3.bf16.msra.mxu0 %v13482_v7 }
 0x6f6   :  { %12790 = vmatprep.subr.bf16.mxu0 %v13491_v22 }
 0x6f9   :  { %12791 = vmatpush3.bf16.msra.mxu0 %v13483_v19 }
 0x6fa   :  { %12792 = vmatprep.subr.bf16.mxu0 %v13491_v22 }
 0x6fd   :  { %12793 = vmatpush3.bf16.msra.mxu0 %v13484_v36 }
 0x6fe   :  { %12794 = vmatprep.subr.bf16.mxu0 %v13491_v22 }
 0x7bb   :  { %v10584_v24 = vpop.f32.mrb[20].mxu0 }
 0x7bc   :  { %v12814_v28 = vadd.f32 %v10584_v24, %v10182_v56  ;;  %v10586_v52 = vpop.f32.mrb[21].mxu0 }
 0x7bd   :  { %v12815_v12 = vadd.f32 %v10586_v52, %v10186_v58  ;;  %v10588_v38 = vpop.f32.mrb[22].mxu0  ;;  %v13485_v52 = vld [vmem:[%s18239_s17 + $0x30] sm:$0xff]  }
 0x7be   :  { %v10591_v23 = vmax.f32 %v12814_v28, 0.0  ;;  %v10589_v10 = vpop.f32.mrb[23].mxu0  ;;  %12795 = vmatpush3.bf16.msra.mxu0 %v13485_v52  ;;  %v12646_v38 = vld [vmem:[%s18241_s16] ss:$0 sm:$0xff] }
 0x7bf   :  { %v10592_v29 = vmax.f32 %v12815_v12, 0.0  ;;  %12796 = vmatprep.subr.bf16.mxu0 %v13491_v22  ;;  %v13486_v12 = vld [vmem:[%s18239_s17 + $0x38] sm:$0xff]  }
 0x7c0   :  { %v10593_v33 = vpack.c.bf16 %v10591_v23, %v10591_v23 }
 0x7c1   :  { %v10594_v37 = vpack.c.bf16 %v10592_v29, %v10592_v29 }
 0x7c2   :  { %12797 = vmatpush3.bf16.msra.mxu0 %v13486_v12 }
 0x7c3   :  { %10762 = vmatprep.mubr.bf16.mxu1 %v10594_v37 }
 0x7c4   :  { %10763 = vmatmul.mubr.bf16.vlgmr.msra.gmra.mrb[36].mxu1 %v10593_v33 }
 0x7c5   :  { %12723 = vmatpush3.bf16.msra.mxu1 %v13455_v8  ;;  %12738 = vmatprep.mubr.msk.bf16.mxu1 %vm13492_vm1, %v13491_v22 }
 0x7c6   :  { %12724 = vmatprep.subr.bf16.mxu1 %v13491_v22 }
 0x7c9   :  { %12725 = vmatpush3.bf16.msra.mxu1 %v13456_v14 }
 0x7ca   :  { %12726 = vmatprep.subr.bf16.mxu1 %v13491_v22 }
 0x7cd   :  { %12727 = vmatpush3.bf16.msra.mxu1 %v13457_v16 }
 0x7ce   :  { %12728 = vmatprep.subr.bf16.mxu1 %v13491_v22 }
 0x7d1   :  { %12729 = vmatpush3.bf16.msra.mxu1 %v13458_v1 }
 0x7d2   :  { %12730 = vmatprep.subr.bf16.mxu1 %v13491_v22 }
 0x7d5   :  { %12731 = vmatpush3.bf16.msra.mxu1 %v13459_v60 }
 0x7d6   :  { %12732 = vmatprep.subr.bf16.mxu1 %v13491_v22 }
 0x7d9   :  { %12733 = vmatpush3.bf16.msra.mxu1 %v13460_v31 }
 0x7da   :  { %12734 = vmatprep.subr.bf16.mxu1 %v13491_v22 }
 0x7dd   :  { %12735 = vmatpush3.bf16.msra.mxu1 %v13461_v13 }
 0x7de   :  { %12736 = vmatprep.subr.bf16.mxu1 %v13491_v22 }
 0x7e1   :  { %12737 = vmatpush3.bf16.msra.mxu1 %v13462_v40 }
 0x7e2   :  { %12742 = vmatprep.subr.bf16.mxu1 %v13491_v22 }
 0x897   :  { %v12680_v3 = vpop.f32.mrb[36].mxu1 }
 0x898   :  { %v12681_v39 = vpop.f32.mrb[37].mxu1 }
 0x899   :  { %v12682_v6 = vadd.f32 %v12681_v39, %v12680_v3  ;;  %v12683_v17 = vpop.f32.mrb[38].mxu1 }
 0x89a   :  { %v12684_v30 = vpop.f32.mrb[39].mxu1 }
 0x89b   :  { %v10765_v15 = vadd.f32 %v12682_v6, %v12611_v25 }
 0x89d   :  { %v10770_v20 = vmax.f32 %v10765_v15, 0.0 }
 0x89f   :  { %v10771_v42 = vpack.c.bf16 %v10770_v20, %v10770_v20 }
 0x8a1   :  { %12739 = vmatmul.mubr.bf16.vlgmr.msra.gmra.mrb[40].mxu1 %v10771_v42 }
 0x8a2   :  { %12743 = vmatpush3.bf16.msra.mxu1 %v13463_v0  ;;  %12758 = vmatprep.mubr.msk.bf16.mxu1 %vm13492_vm1, %v13491_v22 }
 0x8a3   :  { %12744 = vmatprep.subr.bf16.mxu1 %v13491_v22 }
 0x8a6   :  { %12745 = vmatpush3.bf16.msra.mxu1 %v13464_v44 }
 0x8a7   :  { %12746 = vmatprep.subr.bf16.mxu1 %v13491_v22 }
 0x8aa   :  { %12747 = vmatpush3.bf16.msra.mxu1 %v13465_v34 }
 0x8ab   :  { %12748 = vmatprep.subr.bf16.mxu1 %v13491_v22 }
 0x8ae   :  { %12749 = vmatpush3.bf16.msra.mxu1 %v13466_v45 }
 0x8af   :  { %12750 = vmatprep.subr.bf16.mxu1 %v13491_v22 }
 0x8b2   :  { %12751 = vmatpush3.bf16.msra.mxu1 %v13467_v50 }
 0x8b3   :  { %12752 = vmatprep.subr.bf16.mxu1 %v13491_v22 }
 0x8b6   :  { %12753 = vmatpush3.bf16.msra.mxu1 %v13468_v63 }
 0x8b7   :  { %12754 = vmatprep.subr.bf16.mxu1 %v13491_v22 }
 0x8ba   :  { %12755 = vmatpush3.bf16.msra.mxu1 %v13469_v54 }
 0x8bb   :  { %12756 = vmatprep.subr.bf16.mxu1 %v13491_v22 }
 0x8be   :  { %12757 = vmatpush3.bf16.msra.mxu1 %v13470_v48 }
 0x8bf   :  { %12762 = vmatprep.subr.bf16.mxu1 %v13491_v22 }
 0x974   :  { %v10877_v57 = vpop.f32.mrb[40].mxu1 }
 0x975   :  { %v10878_v61 = vadd.f32 %v12628_v55, %v10877_v57  ;;  %v12740_v59 = vpop.f32.mrb[41].mxu1 }
 0x976   :  { %v10880_v47 = vpop.f32.mrb[42].mxu1 }
 0x977   :  { %v10883_v51 = vmax.f32 %v10878_v61, 0.0  ;;  %v12741_v62 = vpop.f32.mrb[43].mxu1 }
 0x979   :  { %v10884_v4 = vpack.c.bf16 %v10883_v51, %v10883_v51 }
 0x97b   :  { %12759 = vmatmul.mubr.bf16.vlgmr.msra.gmra.mrb[44].mxu1 %v10884_v4 }
 0x97c   :  { %12763 = vmatpush3.bf16.msra.mxu1 %v13471_v2  ;;  %12778 = vmatprep.mubr.msk.bf16.mxu1 %vm13492_vm1, %v13491_v22 }
 0x97d   :  { %12764 = vmatprep.subr.bf16.mxu1 %v13491_v22 }
 0x980   :  { %12765 = vmatpush3.bf16.msra.mxu1 %v13472_v53 }
 0x981   :  { %12766 = vmatprep.subr.bf16.mxu1 %v13491_v22 }
 0x984   :  { %12767 = vmatpush3.bf16.msra.mxu1 %v13473_v5 }
 0x985   :  { %12768 = vmatprep.subr.bf16.mxu1 %v13491_v22 }
 0x988   :  { %12769 = vmatpush3.bf16.msra.mxu1 %v13474_v9 }
 0x989   :  { %12770 = vmatprep.subr.bf16.mxu1 %v13491_v22 }
 0x98c   :  { %12771 = vmatpush3.bf16.msra.mxu1 %v13475_v41 }
 0x98d   :  { %12772 = vmatprep.subr.bf16.mxu1 %v13491_v22 }
 0x990   :  { %12773 = vmatpush3.bf16.msra.mxu1 %v13476_v26 }
 0x991   :  { %12774 = vmatprep.subr.bf16.mxu1 %v13491_v22 }
 0x994   :  { %12775 = vmatpush3.bf16.msra.mxu1 %v13477_v11 }
 0x995   :  { %12776 = vmatprep.subr.bf16.mxu1 %v13491_v22  ;;  %v12655_v22 = vld [vmem:[%s18242_s18] ss:$0 sm:$0xff] }
 0x998   :  { %12777 = vmatpush3.bf16.msra.mxu1 %v13478_v27 }
 0xa4e   :  { %v10990_v46 = vpop.f32.mrb[44].mxu1 }
 0xa4f   :  { %v10991_v35 = vadd.f32 %v12637_v21, %v10990_v46  ;;  %v12760_v49 = vpop.f32.mrb[45].mxu1 }
 0xa50   :  { %v10993_v56 = vpop.f32.mrb[46].mxu1 }
 0xa51   :  { %v10996_v58 = vmax.f32 %v10991_v35, 0.0  ;;  %v12761_v24 = vpop.f32.mrb[47].mxu1 }
 0xa53   :  { %v10997_v28 = vpack.c.bf16 %v10996_v58, %v10996_v58 }
 0xa55   :  { %12779 = vmatmul.mubr.bf16.vlgmr.msra.gmra.mrb[48].mxu1 %v10997_v28 }
 0xb28   :  { %v11103_v23 = vpop.f32.mrb[48].mxu1 }
 0xb29   :  { %v11104_v10 = vadd.f32 %v12646_v38, %v11103_v23  ;;  %v12780_v29 = vpop.f32.mrb[49].mxu1 }
 0xb2a   :  { %v11106_v37 = vpop.f32.mrb[50].mxu1 }
 0xb2b   :  { %v11109_v8 = vmax.f32 %v11104_v10, 0.0  ;;  %v12781_v33 = vpop.f32.mrb[51].mxu1 }
 0xb2d   :  { %v11110_v14 = vpack.c.bf16 %v11109_v8, %v11109_v8 }
 0xb2f   :  { %12799 = vmatmul.mubr.bf16.vlgmr.msra.gmra.mrb[24].mxu0 %v11110_v14 }
 0xc02   :  { %v11216_v16 = vpop.f32.mrb[24].mxu0 }
 0xc03   :  { %v11217_v1 = vadd.f32 %v12655_v22, %v11216_v16  ;;  %v12800_v60 = vpop.f32.mrb[25].mxu0 }
 0xc04   :  { %v11219_v31 = vpop.f32.mrb[26].mxu0 }
 0xc05   :  { %11222 = vst [vmem:[%s18243_s19] sm:$0xff] %v11217_v1  ;;  %v12801_v13 = vpop.f32.mrb[27].mxu0 }

</bundles_post_ra>
